<compile_context>
chip_gen: v6e
topology: v6e:2x2x1
jax: 0.10.0
libtpu: 0.0.40
codegen_flags: <defaults>
</compile_context>

<pallas_src>
import functools
import math

import jax
import jax.numpy as jnp
import numpy as np
from jax import lax
from jax.experimental import pallas as pl
from jax.experimental.pallas import tpu as pltpu

NUM_GROUPS = 8
EPS = 1e-5


def _exp_dtype_for_backend():
    """bf16 exp only on chips with a bf16 EUP/VPU path (v6e / v7x)."""
    try:
        kind = jax.devices()[0].device_kind.lower()
    except Exception:
        return jnp.float32
    if "tpu" not in kind:
        return jnp.float32
    if any(t in kind for t in ("v2", "v3", "v4", "v5")):
        return jnp.float32
    return jnp.bfloat16


def _attn_block_kernel(x_ref, eg_ref, er_ref, gamma_ref, wqkv_ref, bqkv_ref,
                       wproj_ref, bproj_ref, o_ref, attn_ref,
                       *, num_heads, dh_pad, scale, inv_group_norm, exp_dtype):
    x = x_ref[...]                                        # (C, HW) f32
    c_pad = num_heads * dh_pad

    # ---- GroupNorm(8, C): one-pass stats via small one-hot matmuls ----
    s = jnp.sum(x, axis=1, keepdims=True)                 # (C, 1)  lane reduction
    s2 = jnp.sum(x * x, axis=1, keepdims=True)            # (C, 1)
    stats = jnp.concatenate([s, s2], axis=1)              # (C, 2): one MXU push, not two N=1
    grp = jnp.dot(er_ref[...], stats,
                  preferred_element_type=jnp.float32)     # (G, 2) per-group sums
    cm = jnp.dot(eg_ref[...], grp,
                 preferred_element_type=jnp.float32) * inv_group_norm   # (C, 2) mean / E[x^2]
    mean = cm[:, 0:1]
    # One-pass variance (clamped at 0); fine for unit-scale activations, see reference two-pass.
    var = jnp.maximum(cm[:, 1:2] - mean * mean, 0.0)
    g = lax.rsqrt(var + EPS) * gamma_ref[...]             # gamma folded into inverse scale
    xn = ((x - mean) * g).astype(jnp.bfloat16)            # beta folded into bqkv on the host

    # ---- qkv 1x1 conv == (3*C_pad, C) @ (C, HW); bf16 operands, f32 accumulate ----
    qkv = jnp.dot(wqkv_ref[...], xn,
                  preferred_element_type=jnp.float32) + bqkv_ref[...]   # (3*C_pad, HW) f32

    # ---- multi-head attention; heads are 8-aligned sublane slices, lanes stay dense ----
    for h in range(num_heads):
        r0 = h * dh_pad
        q = qkv[0 * c_pad + r0:0 * c_pad + r0 + dh_pad, :] * scale      # scale folded into q
        k = qkv[1 * c_pad + r0:1 * c_pad + r0 + dh_pad, :]
        v = qkv[2 * c_pad + r0:2 * c_pad + r0 + dh_pad, :]
        # scores in (key, query) layout: s_t[j, i] = sum_d k[d, j] * q[d, i]. K = dh is tiny,
        # keep f32 operands before the exp; PV below is then a plain A @ B (no big transpose).
        s_t = lax.dot_general(k, q, (((0,), (0,)), ((), ())),
                              preferred_element_type=jnp.float32)       # (HW_k, HW_q)
        m = jnp.max(s_t, axis=0, keepdims=True)                         # (1, HW_q)
        p = jnp.exp((s_t - m).astype(exp_dtype))                        # un-normalized probs
        l = jnp.sum(p, axis=0, keepdims=True, dtype=jnp.float32)        # (1, HW_q) row sums
        # PV: (dh_pad, HW_k) @ (HW_k, HW_q); bf16 MXU operands, f32 accumulation.
        pv = jnp.dot(v.astype(jnp.bfloat16), p.astype(jnp.bfloat16),
                     preferred_element_type=jnp.float32)                # (dh_pad, HW_q)
        # Deferred normalization: exact reciprocal on an HW-length vector (dh*HW multiplies).
        attn_ref[r0:r0 + dh_pad, :] = (pv * (1.0 / l)).astype(attn_ref.dtype)

    # ---- proj 1x1 conv + residual ----
    proj = jnp.dot(wproj_ref[...], attn_ref[...].astype(jnp.bfloat16),
                   preferred_element_type=jnp.float32) + bproj_ref[...]  # (C, HW)
    o_ref[...] = x + proj


def attention_block(x_nchw, params, num_heads=8):
    B, C, H, W = x_nchw.shape
    HW = H * W
    assert C % NUM_GROUPS == 0 and C % num_heads == 0
    dh = C // num_heads
    dh_pad = ((dh + 7) // 8) * 8          # pad heads to a full sublane (no-op when dh % 8 == 0)
    c_pad = num_heads * dh_pad
    cg = C // NUM_GROUPS

    # NCHW flattens directly into the kernel's (C, HW) working layout: no transposes.
    x = x_nchw.reshape(B, C, HW).astype(jnp.float32)

    # GroupNorm one-hot matrices: (C, G) broadcast and (G, C) reduce (replaces the (C, C) A).
    gid = jnp.arange(C) // cg
    e_gather = (gid[:, None] == jnp.arange(NUM_GROUPS)[None, :]).astype(jnp.float32)  # (C, G)
    e_reduce = e_gather.T                                                             # (G, C)

    gamma = params["gamma"].astype(jnp.float32).reshape(C, 1)
    beta = params["beta"].astype(jnp.float32).reshape(C, 1)

    # Zero-pad per-head weight rows to dh_pad so in-kernel head slices are 8-sublane aligned.
    wqkv = params["wqkv"].astype(jnp.float32).reshape(3, num_heads, dh, C)
    bqkv = params["bqkv"].astype(jnp.float32).reshape(3, num_heads, dh)
    wqkv_p = jnp.zeros((3, num_heads, dh_pad, C), jnp.float32).at[:, :, :dh, :].set(wqkv)
    bqkv_p = jnp.zeros((3, num_heads, dh_pad), jnp.float32).at[:, :, :dh].set(bqkv)
    wqkv_p = wqkv_p.reshape(3 * c_pad, C)
    bqkv_p = bqkv_p.reshape(3 * c_pad, 1)
    # Fold the GroupNorm beta into the qkv bias: qkv(W, xn*gamma + beta) == W @ (xn*gamma) + b_eff.
    bqkv_eff = bqkv_p + wqkv_p @ beta

    wproj = params["wproj"].astype(jnp.float32).reshape(C, num_heads, dh)
    wproj_p = jnp.zeros((C, num_heads, dh_pad), jnp.float32).at[:, :, :dh].set(wproj)
    wproj_p = wproj_p.reshape(C, c_pad)
    bproj = params["bproj"].astype(jnp.float32).reshape(C, 1)

    exp_dtype = _exp_dtype_for_backend()
    # attn scratch in bf16 only when stores stay 16-row aligned (bf16 sublane packing).
    attn_dtype = jnp.bfloat16 if dh_pad % 16 == 0 else jnp.float32

    kernel = functools.partial(
        _attn_block_kernel,
        num_heads=num_heads, dh_pad=dh_pad,
        scale=float(dh) ** -0.5,
        inv_group_norm=1.0 / float(cg * HW),
        exp_dtype=exp_dtype)

    out = pl.pallas_call(
        kernel,
        out_shape=jax.ShapeDtypeStruct((B, C, HW), jnp.float32),
        grid_spec=pltpu.PrefetchScalarGridSpec(
            num_scalar_prefetch=0,
            grid=(B,),
            in_specs=[
                pl.BlockSpec((None, C, HW), lambda b: (b, 0, 0)),     # x slab (C, HW)
                pl.BlockSpec((C, NUM_GROUPS), lambda b: (0, 0)),      # E gather (C, G)
                pl.BlockSpec((NUM_GROUPS, C), lambda b: (0, 0)),      # E reduce (G, C)
                pl.BlockSpec((C, 1), lambda b: (0, 0)),               # gamma
                pl.BlockSpec((3 * c_pad, C), lambda b: (0, 0)),       # wqkv (bf16, head-padded)
                pl.BlockSpec((3 * c_pad, 1), lambda b: (0, 0)),       # bqkv (+ folded beta)
                pl.BlockSpec((C, c_pad), lambda b: (0, 0)),           # wproj (bf16, head-padded)
                pl.BlockSpec((C, 1), lambda b: (0, 0)),               # bproj
            ],
            out_specs=pl.BlockSpec((None, C, HW), lambda b: (b, 0, 0)),
            scratch_shapes=[pltpu.VMEM((c_pad, HW), attn_dtype)],     # per-head PV results
        ),
        # x is a fresh temporary fully consumed before o_ref is written; safe to donate.
        input_output_aliases={0: 0},
        # Batch axis is parallel: on v7x each TensorCore takes a slab (B >= 2 here).
        compiler_params=pltpu.CompilerParams(dimension_semantics=("parallel",)),
    )(x, e_gather, e_reduce, gamma,
      wqkv_p.astype(jnp.bfloat16), bqkv_eff,
      wproj_p.astype(jnp.bfloat16), bproj)

    return out.reshape(B, C, H, W)


def reference(x_nchw, params, num_heads=8):
    """Pure-JAX reference mirroring the PyTorch forward exactly."""
    B, C, H, W = x_nchw.shape
    dh = C // num_heads
    # GroupNorm (two-pass)
    xg = x_nchw.reshape(B, NUM_GROUPS, C // NUM_GROUPS, H, W)
    mean = xg.mean(axis=(2, 3, 4), keepdims=True)
    var = ((xg - mean) ** 2).mean(axis=(2, 3, 4), keepdims=True)
    xn = ((xg - mean) / jnp.sqrt(var + EPS)).reshape(B, C, H, W)
    xn = xn * params["gamma"][None, :, None, None] + params["beta"][None, :, None, None]
    # qkv 1x1 conv
    xf = xn.reshape(B, C, H * W)
    qkv = jnp.einsum("oc,bcn->bon", params["wqkv"], xf) + params["bqkv"][None, :, None]
    qkv = qkv.reshape(B, 3, num_heads, dh, H * W)
    q = jnp.transpose(qkv[:, 0], (0, 1, 3, 2))   # (B, heads, HW, dh)
    k = jnp.transpose(qkv[:, 1], (0, 1, 3, 2))
    v = jnp.transpose(qkv[:, 2], (0, 1, 3, 2))
    attn = jnp.einsum("bhqc,bhkc->bhqk", q, k) * dh ** -0.5
    attn = jax.nn.softmax(attn, axis=-1)
    out = jnp.einsum("bhqk,bhkc->bhqc", attn, v)
    out = jnp.transpose(out, (0, 1, 3, 2)).reshape(B, C, H * W)
    proj = jnp.einsum("oc,bcn->bon", params["wproj"], out) + params["bproj"][None, :, None]
    return x_nchw + proj.reshape(B, C, H, W)


if __name__ == "__main__":
    B, C, H, W = 2, 32, 16, 16
    num_heads = 8

    key = jax.random.PRNGKey(0)
    ks = jax.random.split(key, 8)
    x = jax.random.normal(ks[0], (B, C, H, W), dtype=jnp.float32)
    params = {
        "gamma": 1.0 + 0.1 * jax.random.normal(ks[1], (C,), dtype=jnp.float32),
        "beta": 0.1 * jax.random.normal(ks[2], (C,), dtype=jnp.float32),
        "wqkv": jax.random.normal(ks[3], (3 * C, C), dtype=jnp.float32) / math.sqrt(C),
        "bqkv": 0.05 * jax.random.normal(ks[4], (3 * C,), dtype=jnp.float32),
        "wproj": jax.random.normal(ks[5], (C, C), dtype=jnp.float32) / math.sqrt(C),
        "bproj": 0.05 * jax.random.normal(ks[6], (C,), dtype=jnp.float32),
    }

    out = attention_block(x, params, num_heads=num_heads)
    out = jax.block_until_ready(out)

    ref = jax.block_until_ready(reference(x, params, num_heads=num_heads))
    # Accepted accuracy contract: bf16 MXU operands for qkv/PV/proj (and bf16 exp on v6e/v7x)
    # => bf16-level tolerance against the f32 reference.
    np.testing.assert_allclose(np.asarray(out), np.asarray(ref), rtol=4e-2, atol=4e-2)
    assert out.shape == (B, C, H, W)
    assert bool(jnp.all(jnp.isfinite(out)))

    print("KERNEL_OK")
</pallas_src>

<mosaic_0001>
module attributes {stable_mosaic.version = 11 : i64} {
  func.func @_attn_block_kernel(%arg0: i32, %arg1: memref<1x32x256xf32, #tpu.memory_space<vmem>>, %arg2: memref<32x8xf32, #tpu.memory_space<vmem>>, %arg3: memref<8x32xf32, #tpu.memory_space<vmem>>, %arg4: memref<32x1xf32, #tpu.memory_space<vmem>>, %arg5: memref<192x32xbf16, #tpu.memory_space<vmem>>, %arg6: memref<192x1xf32, #tpu.memory_space<vmem>>, %arg7: memref<32x64xbf16, #tpu.memory_space<vmem>>, %arg8: memref<32x1xf32, #tpu.memory_space<vmem>>, %arg9: memref<1x32x256xf32, #tpu.memory_space<vmem>>, %arg10: memref<64x256xf32, #tpu.memory_space<vmem>>) attributes {dimension_semantics = [#tpu.dimension_semantics<parallel>], iteration_bounds = array<i64: 2>, scalar_prefetch = 0 : i64, scratch_operands = 1 : i64, tpu.core_type = #tpu.core_type<tc>, window_params = [{transform_indices = @transform_0, window_bounds = array<i64: 1, 32, 256>}, {pipeline_mode = #tpu.pipeline_mode<synchronous>, transform_indices = @transform_1, window_bounds = array<i64: 32, 8>}, {pipeline_mode = #tpu.pipeline_mode<synchronous>, transform_indices = @transform_2, window_bounds = array<i64: 8, 32>}, {pipeline_mode = #tpu.pipeline_mode<synchronous>, transform_indices = @transform_3, window_bounds = array<i64: 32, 1>}, {pipeline_mode = #tpu.pipeline_mode<synchronous>, transform_indices = @transform_4, window_bounds = array<i64: 192, 32>}, {pipeline_mode = #tpu.pipeline_mode<synchronous>, transform_indices = @transform_5, window_bounds = array<i64: 192, 1>}, {pipeline_mode = #tpu.pipeline_mode<synchronous>, transform_indices = @transform_6, window_bounds = array<i64: 32, 64>}, {pipeline_mode = #tpu.pipeline_mode<synchronous>, transform_indices = @transform_7, window_bounds = array<i64: 32, 1>}, {transform_indices = @transform_8, window_bounds = array<i64: 1, 32, 256>}]} {
    %c0 = arith.constant 0 : index
    %c0_0 = arith.constant 0 : index
    %c0_1 = arith.constant 0 : index
    %0 = vector.load %arg1[%c0, %c0_0, %c0_1] : memref<1x32x256xf32, #tpu.memory_space<vmem>>, vector<1x32x256xf32>
    %1 = vector.shape_cast %0 : vector<1x32x256xf32> to vector<32x256xf32>
    %cst = arith.constant dense<0.000000e+00> : vector<32xf32>
    %2 = vector.multi_reduction <add>, %1, %cst [1] : vector<32x256xf32> to vector<32xf32>
    %3 = vector.shape_cast %2 : vector<32xf32> to vector<32x1xf32>
    %4 = arith.mulf %1, %1 : vector<32x256xf32>
    %cst_2 = arith.constant dense<0.000000e+00> : vector<32xf32>
    %5 = vector.multi_reduction <add>, %4, %cst_2 [1] : vector<32x256xf32> to vector<32xf32>
    %6 = vector.shape_cast %5 : vector<32xf32> to vector<32x1xf32>
    %7 = tpu.concatenate %3, %6 in 1 : vector<32x1xf32>, vector<32x1xf32> -> vector<32x2xf32>
    %c0_3 = arith.constant 0 : index
    %c0_4 = arith.constant 0 : index
    %8 = vector.load %arg3[%c0_3, %c0_4] : memref<8x32xf32, #tpu.memory_space<vmem>>, vector<8x32xf32>
    %cst_5 = arith.constant dense<0.000000e+00> : vector<8x2xf32>
    %9 = tpu.matmul %8, %7, %cst_5 {dimension_numbers = #tpu.dot_dimension_numbers<[1], [0], [0], [1], [0, 0, 1, 1], [], []>} : vector<8x32xf32>, vector<32x2xf32>, vector<8x2xf32> -> vector<8x2xf32>
    %c0_6 = arith.constant 0 : index
    %c0_7 = arith.constant 0 : index
    %10 = vector.load %arg2[%c0_6, %c0_7] : memref<32x8xf32, #tpu.memory_space<vmem>>, vector<32x8xf32>
    %cst_8 = arith.constant dense<0.000000e+00> : vector<32x2xf32>
    %11 = tpu.matmul %10, %9, %cst_8 {dimension_numbers = #tpu.dot_dimension_numbers<[1], [0], [0], [1], [0, 0, 1, 1], [], []>} : vector<32x8xf32>, vector<8x2xf32>, vector<32x2xf32> -> vector<32x2xf32>
    %cst_9 = arith.constant 9.765625E-4 : f32
    %12 = vector.broadcast %cst_9 : f32 to vector<32x2xf32>
    %13 = arith.mulf %11, %12 : vector<32x2xf32>
    %14 = vector.extract_strided_slice %13 {offsets = [0, 0], sizes = [32, 1], strides = [1, 1]} : vector<32x2xf32> to vector<32x1xf32>
    %15 = vector.extract_strided_slice %13 {offsets = [0, 1], sizes = [32, 1], strides = [1, 1]} : vector<32x2xf32> to vector<32x1xf32>
    %16 = arith.mulf %14, %14 : vector<32x1xf32>
    %17 = arith.subf %15, %16 : vector<32x1xf32>
    %cst_10 = arith.constant 0.000000e+00 : f32
    %18 = vector.broadcast %cst_10 : f32 to vector<32x1xf32>
    %19 = arith.maximumf %17, %18 : vector<32x1xf32>
    %cst_11 = arith.constant 9.99999974E-6 : f32
    %20 = vector.broadcast %cst_11 : f32 to vector<32x1xf32>
    %21 = arith.addf %19, %20 : vector<32x1xf32>
    %22 = math.rsqrt %21 : vector<32x1xf32>
    %c0_12 = arith.constant 0 : index
    %c0_13 = arith.constant 0 : index
    %23 = vector.load %arg4[%c0_12, %c0_13] : memref<32x1xf32, #tpu.memory_space<vmem>>, vector<32x1xf32>
    %24 = arith.mulf %22, %23 : vector<32x1xf32>
    %25 = vector.broadcast %14 : vector<32x1xf32> to vector<32x256xf32>
    %26 = arith.subf %1, %25 : vector<32x256xf32>
    %27 = vector.broadcast %24 : vector<32x1xf32> to vector<32x256xf32>
    %28 = arith.mulf %26, %27 : vector<32x256xf32>
    %29 = arith.truncf %28 : vector<32x256xf32> to vector<32x256xbf16>
    %c0_14 = arith.constant 0 : index
    %c0_15 = arith.constant 0 : index
    %30 = vector.load %arg5[%c0_14, %c0_15] : memref<192x32xbf16, #tpu.memory_space<vmem>>, vector<192x32xbf16>
    %cst_16 = arith.constant dense<0.000000e+00> : vector<192x256xf32>
    %31 = tpu.matmul %30, %29, %cst_16 {dimension_numbers = #tpu.dot_dimension_numbers<[1], [0], [0], [1], [0, 0, 1, 1], [], []>} : vector<192x32xbf16>, vector<32x256xbf16>, vector<192x256xf32> -> vector<192x256xf32>
    %c0_17 = arith.constant 0 : index
    %c0_18 = arith.constant 0 : index
    %32 = vector.load %arg6[%c0_17, %c0_18] : memref<192x1xf32, #tpu.memory_space<vmem>>, vector<192x1xf32>
    %33 = vector.broadcast %32 : vector<192x1xf32> to vector<192x256xf32>
    %34 = arith.addf %31, %33 : vector<192x256xf32>
    %35 = vector.extract_strided_slice %34 {offsets = [0, 0], sizes = [8, 256], strides = [1, 1]} : vector<192x256xf32> to vector<8x256xf32>
    %cst_19 = arith.constant 5.000000e-01 : f32
    %36 = vector.broadcast %cst_19 : f32 to vector<8x256xf32>
    %37 = arith.mulf %35, %36 : vector<8x256xf32>
    %38 = vector.extract_strided_slice %34 {offsets = [64, 0], sizes = [8, 256], strides = [1, 1]} : vector<192x256xf32> to vector<8x256xf32>
    %39 = vector.extract_strided_slice %34 {offsets = [128, 0], sizes = [8, 256], strides = [1, 1]} : vector<192x256xf32> to vector<8x256xf32>
    %cst_20 = arith.constant dense<0.000000e+00> : vector<256x256xf32>
    %40 = tpu.matmul %38, %37, %cst_20 {dimension_numbers = #tpu.dot_dimension_numbers<[0], [0], [1], [1], [0, 1, 1, 1], [], []>} : vector<8x256xf32>, vector<8x256xf32>, vector<256x256xf32> -> vector<256x256xf32>
    %cst_21 = arith.constant dense<0xFF800000> : vector<256xf32>
    %41 = vector.multi_reduction <maximumf>, %40, %cst_21 [0] : vector<256x256xf32> to vector<256xf32>
    %42 = vector.shape_cast %41 : vector<256xf32> to vector<1x256xf32>
    %43 = vector.broadcast %42 : vector<1x256xf32> to vector<256x256xf32>
    %44 = arith.subf %40, %43 : vector<256x256xf32>
    %45 = math.exp %44 : vector<256x256xf32>
    %cst_22 = arith.constant dense<0.000000e+00> : vector<256xf32>
    %46 = vector.multi_reduction <add>, %45, %cst_22 [0] : vector<256x256xf32> to vector<256xf32>
    %47 = vector.shape_cast %46 : vector<256xf32> to vector<1x256xf32>
    %48 = arith.truncf %39 : vector<8x256xf32> to vector<8x256xbf16>
    %49 = arith.truncf %45 : vector<256x256xf32> to vector<256x256xbf16>
    %cst_23 = arith.constant dense<0.000000e+00> : vector<8x256xf32>
    %50 = tpu.matmul %48, %49, %cst_23 {dimension_numbers = #tpu.dot_dimension_numbers<[1], [0], [0], [1], [0, 0, 1, 1], [], []>} : vector<8x256xbf16>, vector<256x256xbf16>, vector<8x256xf32> -> vector<8x256xf32>
    %cst_24 = arith.constant 1.000000e+00 : f32
    %51 = vector.broadcast %cst_24 : f32 to vector<1x256xf32>
    %52 = arith.divf %51, %47 : vector<1x256xf32>
    %53 = vector.broadcast %52 : vector<1x256xf32> to vector<8x256xf32>
    %54 = arith.mulf %50, %53 : vector<8x256xf32>
    %c0_25 = arith.constant 0 : index
    %c0_26 = arith.constant 0 : index
    %55 = vector.load %arg10[%c0_25, %c0_26] : memref<64x256xf32, #tpu.memory_space<vmem>>, vector<8x256xf32>
    tpu.vector_store %arg10[%c0_25, %c0_26], %54 {strides = array<i32>} : memref<64x256xf32, #tpu.memory_space<vmem>>, vector<8x256xf32>,
    %56 = vector.extract_strided_slice %34 {offsets = [8, 0], sizes = [8, 256], strides = [1, 1]} : vector<192x256xf32> to vector<8x256xf32>
    %cst_27 = arith.constant 5.000000e-01 : f32
    %57 = vector.broadcast %cst_27 : f32 to vector<8x256xf32>
    %58 = arith.mulf %56, %57 : vector<8x256xf32>
    %59 = vector.extract_strided_slice %34 {offsets = [72, 0], sizes = [8, 256], strides = [1, 1]} : vector<192x256xf32> to vector<8x256xf32>
    %60 = vector.extract_strided_slice %34 {offsets = [136, 0], sizes = [8, 256], strides = [1, 1]} : vector<192x256xf32> to vector<8x256xf32>
    %cst_28 = arith.constant dense<0.000000e+00> : vector<256x256xf32>
    %61 = tpu.matmul %59, %58, %cst_28 {dimension_numbers = #tpu.dot_dimension_numbers<[0], [0], [1], [1], [0, 1, 1, 1], [], []>} : vector<8x256xf32>, vector<8x256xf32>, vector<256x256xf32> -> vector<256x256xf32>
    %cst_29 = arith.constant dense<0xFF800000> : vector<256xf32>
    %62 = vector.multi_reduction <maximumf>, %61, %cst_29 [0] : vector<256x256xf32> to vector<256xf32>
    %63 = vector.shape_cast %62 : vector<256xf32> to vector<1x256xf32>
    %64 = vector.broadcast %63 : vector<1x256xf32> to vector<256x256xf32>
    %65 = arith.subf %61, %64 : vector<256x256xf32>
    %66 = math.exp %65 : vector<256x256xf32>
    %cst_30 = arith.constant dense<0.000000e+00> : vector<256xf32>
    %67 = vector.multi_reduction <add>, %66, %cst_30 [0] : vector<256x256xf32> to vector<256xf32>
    %68 = vector.shape_cast %67 : vector<256xf32> to vector<1x256xf32>
    %69 = arith.truncf %60 : vector<8x256xf32> to vector<8x256xbf16>
    %70 = arith.truncf %66 : vector<256x256xf32> to vector<256x256xbf16>
    %cst_31 = arith.constant dense<0.000000e+00> : vector<8x256xf32>
    %71 = tpu.matmul %69, %70, %cst_31 {dimension_numbers = #tpu.dot_dimension_numbers<[1], [0], [0], [1], [0, 0, 1, 1], [], []>} : vector<8x256xbf16>, vector<256x256xbf16>, vector<8x256xf32> -> vector<8x256xf32>
    %cst_32 = arith.constant 1.000000e+00 : f32
    %72 = vector.broadcast %cst_32 : f32 to vector<1x256xf32>
    %73 = arith.divf %72, %68 : vector<1x256xf32>
    %74 = vector.broadcast %73 : vector<1x256xf32> to vector<8x256xf32>
    %75 = arith.mulf %71, %74 : vector<8x256xf32>
    %c8 = arith.constant 8 : index
    %c0_33 = arith.constant 0 : index
    %76 = vector.load %arg10[%c8, %c0_33] : memref<64x256xf32, #tpu.memory_space<vmem>>, vector<8x256xf32>
    tpu.vector_store %arg10[%c8, %c0_33], %75 {strides = array<i32>} : memref<64x256xf32, #tpu.memory_space<vmem>>, vector<8x256xf32>,
    %77 = vector.extract_strided_slice %34 {offsets = [16, 0], sizes = [8, 256], strides = [1, 1]} : vector<192x256xf32> to vector<8x256xf32>
    %cst_34 = arith.constant 5.000000e-01 : f32
    %78 = vector.broadcast %cst_34 : f32 to vector<8x256xf32>
    %79 = arith.mulf %77, %78 : vector<8x256xf32>
    %80 = vector.extract_strided_slice %34 {offsets = [80, 0], sizes = [8, 256], strides = [1, 1]} : vector<192x256xf32> to vector<8x256xf32>
    %81 = vector.extract_strided_slice %34 {offsets = [144, 0], sizes = [8, 256], strides = [1, 1]} : vector<192x256xf32> to vector<8x256xf32>
    %cst_35 = arith.constant dense<0.000000e+00> : vector<256x256xf32>
    %82 = tpu.matmul %80, %79, %cst_35 {dimension_numbers = #tpu.dot_dimension_numbers<[0], [0], [1], [1], [0, 1, 1, 1], [], []>} : vector<8x256xf32>, vector<8x256xf32>, vector<256x256xf32> -> vector<256x256xf32>
    %cst_36 = arith.constant dense<0xFF800000> : vector<256xf32>
    %83 = vector.multi_reduction <maximumf>, %82, %cst_36 [0] : vector<256x256xf32> to vector<256xf32>
    %84 = vector.shape_cast %83 : vector<256xf32> to vector<1x256xf32>
    %85 = vector.broadcast %84 : vector<1x256xf32> to vector<256x256xf32>
    %86 = arith.subf %82, %85 : vector<256x256xf32>
    %87 = math.exp %86 : vector<256x256xf32>
    %cst_37 = arith.constant dense<0.000000e+00> : vector<256xf32>
    %88 = vector.multi_reduction <add>, %87, %cst_37 [0] : vector<256x256xf32> to vector<256xf32>
    %89 = vector.shape_cast %88 : vector<256xf32> to vector<1x256xf32>
    %90 = arith.truncf %81 : vector<8x256xf32> to vector<8x256xbf16>
    %91 = arith.truncf %87 : vector<256x256xf32> to vector<256x256xbf16>
    %cst_38 = arith.constant dense<0.000000e+00> : vector<8x256xf32>
    %92 = tpu.matmul %90, %91, %cst_38 {dimension_numbers = #tpu.dot_dimension_numbers<[1], [0], [0], [1], [0, 0, 1, 1], [], []>} : vector<8x256xbf16>, vector<256x256xbf16>, vector<8x256xf32> -> vector<8x256xf32>
    %cst_39 = arith.constant 1.000000e+00 : f32
    %93 = vector.broadcast %cst_39 : f32 to vector<1x256xf32>
    %94 = arith.divf %93, %89 : vector<1x256xf32>
    %95 = vector.broadcast %94 : vector<1x256xf32> to vector<8x256xf32>
    %96 = arith.mulf %92, %95 : vector<8x256xf32>
    %c16 = arith.constant 16 : index
    %c0_40 = arith.constant 0 : index
    %97 = vector.load %arg10[%c16, %c0_40] : memref<64x256xf32, #tpu.memory_space<vmem>>, vector<8x256xf32>
    tpu.vector_store %arg10[%c16, %c0_40], %96 {strides = array<i32>} : memref<64x256xf32, #tpu.memory_space<vmem>>, vector<8x256xf32>,
    %98 = vector.extract_strided_slice %34 {offsets = [24, 0], sizes = [8, 256], strides = [1, 1]} : vector<192x256xf32> to vector<8x256xf32>
    %cst_41 = arith.constant 5.000000e-01 : f32
    %99 = vector.broadcast %cst_41 : f32 to vector<8x256xf32>
    %100 = arith.mulf %98, %99 : vector<8x256xf32>
    %101 = vector.extract_strided_slice %34 {offsets = [88, 0], sizes = [8, 256], strides = [1, 1]} : vector<192x256xf32> to vector<8x256xf32>
    %102 = vector.extract_strided_slice %34 {offsets = [152, 0], sizes = [8, 256], strides = [1, 1]} : vector<192x256xf32> to vector<8x256xf32>
    %cst_42 = arith.constant dense<0.000000e+00> : vector<256x256xf32>
    %103 = tpu.matmul %101, %100, %cst_42 {dimension_numbers = #tpu.dot_dimension_numbers<[0], [0], [1], [1], [0, 1, 1, 1], [], []>} : vector<8x256xf32>, vector<8x256xf32>, vector<256x256xf32> -> vector<256x256xf32>
    %cst_43 = arith.constant dense<0xFF800000> : vector<256xf32>
    %104 = vector.multi_reduction <maximumf>, %103, %cst_43 [0] : vector<256x256xf32> to vector<256xf32>
    %105 = vector.shape_cast %104 : vector<256xf32> to vector<1x256xf32>
    %106 = vector.broadcast %105 : vector<1x256xf32> to vector<256x256xf32>
    %107 = arith.subf %103, %106 : vector<256x256xf32>
    %108 = math.exp %107 : vector<256x256xf32>
    %cst_44 = arith.constant dense<0.000000e+00> : vector<256xf32>
    %109 = vector.multi_reduction <add>, %108, %cst_44 [0] : vector<256x256xf32> to vector<256xf32>
    %110 = vector.shape_cast %109 : vector<256xf32> to vector<1x256xf32>
    %111 = arith.truncf %102 : vector<8x256xf32> to vector<8x256xbf16>
    %112 = arith.truncf %108 : vector<256x256xf32> to vector<256x256xbf16>
    %cst_45 = arith.constant dense<0.000000e+00> : vector<8x256xf32>
    %113 = tpu.matmul %111, %112, %cst_45 {dimension_numbers = #tpu.dot_dimension_numbers<[1], [0], [0], [1], [0, 0, 1, 1], [], []>} : vector<8x256xbf16>, vector<256x256xbf16>, vector<8x256xf32> -> vector<8x256xf32>
    %cst_46 = arith.constant 1.000000e+00 : f32
    %114 = vector.broadcast %cst_46 : f32 to vector<1x256xf32>
    %115 = arith.divf %114, %110 : vector<1x256xf32>
    %116 = vector.broadcast %115 : vector<1x256xf32> to vector<8x256xf32>
    %117 = arith.mulf %113, %116 : vector<8x256xf32>
    %c24 = arith.constant 24 : index
    %c0_47 = arith.constant 0 : index
    %118 = vector.load %arg10[%c24, %c0_47] : memref<64x256xf32, #tpu.memory_space<vmem>>, vector<8x256xf32>
    tpu.vector_store %arg10[%c24, %c0_47], %117 {strides = array<i32>} : memref<64x256xf32, #tpu.memory_space<vmem>>, vector<8x256xf32>,
    %119 = vector.extract_strided_slice %34 {offsets = [32, 0], sizes = [8, 256], strides = [1, 1]} : vector<192x256xf32> to vector<8x256xf32>
    %cst_48 = arith.constant 5.000000e-01 : f32
    %120 = vector.broadcast %cst_48 : f32 to vector<8x256xf32>
    %121 = arith.mulf %119, %120 : vector<8x256xf32>
    %122 = vector.extract_strided_slice %34 {offsets = [96, 0], sizes = [8, 256], strides = [1, 1]} : vector<192x256xf32> to vector<8x256xf32>
    %123 = vector.extract_strided_slice %34 {offsets = [160, 0], sizes = [8, 256], strides = [1, 1]} : vector<192x256xf32> to vector<8x256xf32>
    %cst_49 = arith.constant dense<0.000000e+00> : vector<256x256xf32>
    %124 = tpu.matmul %122, %121, %cst_49 {dimension_numbers = #tpu.dot_dimension_numbers<[0], [0], [1], [1], [0, 1, 1, 1], [], []>} : vector<8x256xf32>, vector<8x256xf32>, vector<256x256xf32> -> vector<256x256xf32>
    %cst_50 = arith.constant dense<0xFF800000> : vector<256xf32>
    %125 = vector.multi_reduction <maximumf>, %124, %cst_50 [0] : vector<256x256xf32> to vector<256xf32>
    %126 = vector.shape_cast %125 : vector<256xf32> to vector<1x256xf32>
    %127 = vector.broadcast %126 : vector<1x256xf32> to vector<256x256xf32>
    %128 = arith.subf %124, %127 : vector<256x256xf32>
    %129 = math.exp %128 : vector<256x256xf32>
    %cst_51 = arith.constant dense<0.000000e+00> : vector<256xf32>
    %130 = vector.multi_reduction <add>, %129, %cst_51 [0] : vector<256x256xf32> to vector<256xf32>
    %131 = vector.shape_cast %130 : vector<256xf32> to vector<1x256xf32>
    %132 = arith.truncf %123 : vector<8x256xf32> to vector<8x256xbf16>
    %133 = arith.truncf %129 : vector<256x256xf32> to vector<256x256xbf16>
    %cst_52 = arith.constant dense<0.000000e+00> : vector<8x256xf32>
    %134 = tpu.matmul %132, %133, %cst_52 {dimension_numbers = #tpu.dot_dimension_numbers<[1], [0], [0], [1], [0, 0, 1, 1], [], []>} : vector<8x256xbf16>, vector<256x256xbf16>, vector<8x256xf32> -> vector<8x256xf32>
    %cst_53 = arith.constant 1.000000e+00 : f32
    %135 = vector.broadcast %cst_53 : f32 to vector<1x256xf32>
    %136 = arith.divf %135, %131 : vector<1x256xf32>
    %137 = vector.broadcast %136 : vector<1x256xf32> to vector<8x256xf32>
    %138 = arith.mulf %134, %137 : vector<8x256xf32>
    %c32 = arith.constant 32 : index
    %c0_54 = arith.constant 0 : index
    %139 = vector.load %arg10[%c32, %c0_54] : memref<64x256xf32, #tpu.memory_space<vmem>>, vector<8x256xf32>
    tpu.vector_store %arg10[%c32, %c0_54], %138 {strides = array<i32>} : memref<64x256xf32, #tpu.memory_space<vmem>>, vector<8x256xf32>,
    %140 = vector.extract_strided_slice %34 {offsets = [40, 0], sizes = [8, 256], strides = [1, 1]} : vector<192x256xf32> to vector<8x256xf32>
    %cst_55 = arith.constant 5.000000e-01 : f32
    %141 = vector.broadcast %cst_55 : f32 to vector<8x256xf32>
    %142 = arith.mulf %140, %141 : vector<8x256xf32>
    %143 = vector.extract_strided_slice %34 {offsets = [104, 0], sizes = [8, 256], strides = [1, 1]} : vector<192x256xf32> to vector<8x256xf32>
    %144 = vector.extract_strided_slice %34 {offsets = [168, 0], sizes = [8, 256], strides = [1, 1]} : vector<192x256xf32> to vector<8x256xf32>
    %cst_56 = arith.constant dense<0.000000e+00> : vector<256x256xf32>
    %145 = tpu.matmul %143, %142, %cst_56 {dimension_numbers = #tpu.dot_dimension_numbers<[0], [0], [1], [1], [0, 1, 1, 1], [], []>} : vector<8x256xf32>, vector<8x256xf32>, vector<256x256xf32> -> vector<256x256xf32>
    %cst_57 = arith.constant dense<0xFF800000> : vector<256xf32>
    %146 = vector.multi_reduction <maximumf>, %145, %cst_57 [0] : vector<256x256xf32> to vector<256xf32>
    %147 = vector.shape_cast %146 : vector<256xf32> to vector<1x256xf32>
    %148 = vector.broadcast %147 : vector<1x256xf32> to vector<256x256xf32>
    %149 = arith.subf %145, %148 : vector<256x256xf32>
    %150 = math.exp %149 : vector<256x256xf32>
    %cst_58 = arith.constant dense<0.000000e+00> : vector<256xf32>
    %151 = vector.multi_reduction <add>, %150, %cst_58 [0] : vector<256x256xf32> to vector<256xf32>
    %152 = vector.shape_cast %151 : vector<256xf32> to vector<1x256xf32>
    %153 = arith.truncf %144 : vector<8x256xf32> to vector<8x256xbf16>
    %154 = arith.truncf %150 : vector<256x256xf32> to vector<256x256xbf16>
    %cst_59 = arith.constant dense<0.000000e+00> : vector<8x256xf32>
    %155 = tpu.matmul %153, %154, %cst_59 {dimension_numbers = #tpu.dot_dimension_numbers<[1], [0], [0], [1], [0, 0, 1, 1], [], []>} : vector<8x256xbf16>, vector<256x256xbf16>, vector<8x256xf32> -> vector<8x256xf32>
    %cst_60 = arith.constant 1.000000e+00 : f32
    %156 = vector.broadcast %cst_60 : f32 to vector<1x256xf32>
    %157 = arith.divf %156, %152 : vector<1x256xf32>
    %158 = vector.broadcast %157 : vector<1x256xf32> to vector<8x256xf32>
    %159 = arith.mulf %155, %158 : vector<8x256xf32>
    %c40 = arith.constant 40 : index
    %c0_61 = arith.constant 0 : index
    %160 = vector.load %arg10[%c40, %c0_61] : memref<64x256xf32, #tpu.memory_space<vmem>>, vector<8x256xf32>
    tpu.vector_store %arg10[%c40, %c0_61], %159 {strides = array<i32>} : memref<64x256xf32, #tpu.memory_space<vmem>>, vector<8x256xf32>,
    %161 = vector.extract_strided_slice %34 {offsets = [48, 0], sizes = [8, 256], strides = [1, 1]} : vector<192x256xf32> to vector<8x256xf32>
    %cst_62 = arith.constant 5.000000e-01 : f32
    %162 = vector.broadcast %cst_62 : f32 to vector<8x256xf32>
    %163 = arith.mulf %161, %162 : vector<8x256xf32>
    %164 = vector.extract_strided_slice %34 {offsets = [112, 0], sizes = [8, 256], strides = [1, 1]} : vector<192x256xf32> to vector<8x256xf32>
    %165 = vector.extract_strided_slice %34 {offsets = [176, 0], sizes = [8, 256], strides = [1, 1]} : vector<192x256xf32> to vector<8x256xf32>
    %cst_63 = arith.constant dense<0.000000e+00> : vector<256x256xf32>
    %166 = tpu.matmul %164, %163, %cst_63 {dimension_numbers = #tpu.dot_dimension_numbers<[0], [0], [1], [1], [0, 1, 1, 1], [], []>} : vector<8x256xf32>, vector<8x256xf32>, vector<256x256xf32> -> vector<256x256xf32>
    %cst_64 = arith.constant dense<0xFF800000> : vector<256xf32>
    %167 = vector.multi_reduction <maximumf>, %166, %cst_64 [0] : vector<256x256xf32> to vector<256xf32>
    %168 = vector.shape_cast %167 : vector<256xf32> to vector<1x256xf32>
    %169 = vector.broadcast %168 : vector<1x256xf32> to vector<256x256xf32>
    %170 = arith.subf %166, %169 : vector<256x256xf32>
    %171 = math.exp %170 : vector<256x256xf32>
    %cst_65 = arith.constant dense<0.000000e+00> : vector<256xf32>
    %172 = vector.multi_reduction <add>, %171, %cst_65 [0] : vector<256x256xf32> to vector<256xf32>
    %173 = vector.shape_cast %172 : vector<256xf32> to vector<1x256xf32>
    %174 = arith.truncf %165 : vector<8x256xf32> to vector<8x256xbf16>
    %175 = arith.truncf %171 : vector<256x256xf32> to vector<256x256xbf16>
    %cst_66 = arith.constant dense<0.000000e+00> : vector<8x256xf32>
    %176 = tpu.matmul %174, %175, %cst_66 {dimension_numbers = #tpu.dot_dimension_numbers<[1], [0], [0], [1], [0, 0, 1, 1], [], []>} : vector<8x256xbf16>, vector<256x256xbf16>, vector<8x256xf32> -> vector<8x256xf32>
    %cst_67 = arith.constant 1.000000e+00 : f32
    %177 = vector.broadcast %cst_67 : f32 to vector<1x256xf32>
    %178 = arith.divf %177, %173 : vector<1x256xf32>
    %179 = vector.broadcast %178 : vector<1x256xf32> to vector<8x256xf32>
    %180 = arith.mulf %176, %179 : vector<8x256xf32>
    %c48 = arith.constant 48 : index
    %c0_68 = arith.constant 0 : index
    %181 = vector.load %arg10[%c48, %c0_68] : memref<64x256xf32, #tpu.memory_space<vmem>>, vector<8x256xf32>
    tpu.vector_store %arg10[%c48, %c0_68], %180 {strides = array<i32>} : memref<64x256xf32, #tpu.memory_space<vmem>>, vector<8x256xf32>,
    %182 = vector.extract_strided_slice %34 {offsets = [56, 0], sizes = [8, 256], strides = [1, 1]} : vector<192x256xf32> to vector<8x256xf32>
    %cst_69 = arith.constant 5.000000e-01 : f32
    %183 = vector.broadcast %cst_69 : f32 to vector<8x256xf32>
    %184 = arith.mulf %182, %183 : vector<8x256xf32>
    %185 = vector.extract_strided_slice %34 {offsets = [120, 0], sizes = [8, 256], strides = [1, 1]} : vector<192x256xf32> to vector<8x256xf32>
    %186 = vector.extract_strided_slice %34 {offsets = [184, 0], sizes = [8, 256], strides = [1, 1]} : vector<192x256xf32> to vector<8x256xf32>
    %cst_70 = arith.constant dense<0.000000e+00> : vector<256x256xf32>
    %187 = tpu.matmul %185, %184, %cst_70 {dimension_numbers = #tpu.dot_dimension_numbers<[0], [0], [1], [1], [0, 1, 1, 1], [], []>} : vector<8x256xf32>, vector<8x256xf32>, vector<256x256xf32> -> vector<256x256xf32>
    %cst_71 = arith.constant dense<0xFF800000> : vector<256xf32>
    %188 = vector.multi_reduction <maximumf>, %187, %cst_71 [0] : vector<256x256xf32> to vector<256xf32>
    %189 = vector.shape_cast %188 : vector<256xf32> to vector<1x256xf32>
    %190 = vector.broadcast %189 : vector<1x256xf32> to vector<256x256xf32>
    %191 = arith.subf %187, %190 : vector<256x256xf32>
    %192 = math.exp %191 : vector<256x256xf32>
    %cst_72 = arith.constant dense<0.000000e+00> : vector<256xf32>
    %193 = vector.multi_reduction <add>, %192, %cst_72 [0] : vector<256x256xf32> to vector<256xf32>
    %194 = vector.shape_cast %193 : vector<256xf32> to vector<1x256xf32>
    %195 = arith.truncf %186 : vector<8x256xf32> to vector<8x256xbf16>
    %196 = arith.truncf %192 : vector<256x256xf32> to vector<256x256xbf16>
    %cst_73 = arith.constant dense<0.000000e+00> : vector<8x256xf32>
    %197 = tpu.matmul %195, %196, %cst_73 {dimension_numbers = #tpu.dot_dimension_numbers<[1], [0], [0], [1], [0, 0, 1, 1], [], []>} : vector<8x256xbf16>, vector<256x256xbf16>, vector<8x256xf32> -> vector<8x256xf32>
    %cst_74 = arith.constant 1.000000e+00 : f32
    %198 = vector.broadcast %cst_74 : f32 to vector<1x256xf32>
    %199 = arith.divf %198, %194 : vector<1x256xf32>
    %200 = vector.broadcast %199 : vector<1x256xf32> to vector<8x256xf32>
    %201 = arith.mulf %197, %200 : vector<8x256xf32>
    %c56 = arith.constant 56 : index
    %c0_75 = arith.constant 0 : index
    %202 = vector.load %arg10[%c56, %c0_75] : memref<64x256xf32, #tpu.memory_space<vmem>>, vector<8x256xf32>
    tpu.vector_store %arg10[%c56, %c0_75], %201 {strides = array<i32>} : memref<64x256xf32, #tpu.memory_space<vmem>>, vector<8x256xf32>,
    %c0_76 = arith.constant 0 : index
    %c0_77 = arith.constant 0 : index
    %203 = vector.load %arg7[%c0_76, %c0_77] : memref<32x64xbf16, #tpu.memory_space<vmem>>, vector<32x64xbf16>
    %c0_78 = arith.constant 0 : index
    %c0_79 = arith.constant 0 : index
    %204 = vector.load %arg10[%c0_78, %c0_79] : memref<64x256xf32, #tpu.memory_space<vmem>>, vector<64x256xf32>
    %205 = arith.truncf %204 : vector<64x256xf32> to vector<64x256xbf16>
    %cst_80 = arith.constant dense<0.000000e+00> : vector<32x256xf32>
    %206 = tpu.matmul %203, %205, %cst_80 {dimension_numbers = #tpu.dot_dimension_numbers<[1], [0], [0], [1], [0, 0, 1, 1], [], []>} : vector<32x64xbf16>, vector<64x256xbf16>, vector<32x256xf32> -> vector<32x256xf32>
    %c0_81 = arith.constant 0 : index
    %c0_82 = arith.constant 0 : index
    %207 = vector.load %arg8[%c0_81, %c0_82] : memref<32x1xf32, #tpu.memory_space<vmem>>, vector<32x1xf32>
    %208 = vector.broadcast %207 : vector<32x1xf32> to vector<32x256xf32>
    %209 = arith.addf %206, %208 : vector<32x256xf32>
    %210 = arith.addf %1, %209 : vector<32x256xf32>
    %c0_83 = arith.constant 0 : index
    %c0_84 = arith.constant 0 : index
    %c0_85 = arith.constant 0 : index
    %211 = vector.load %arg9[%c0_83, %c0_84, %c0_85] : memref<1x32x256xf32, #tpu.memory_space<vmem>>, vector<1x32x256xf32>
    %212 = vector.shape_cast %211 : vector<1x32x256xf32> to vector<32x256xf32>
    %213 = vector.shape_cast %210 : vector<32x256xf32> to vector<1x32x256xf32>
    tpu.vector_store %arg9[%c0_83, %c0_84, %c0_85], %213 {strides = array<i32>} : memref<1x32x256xf32, #tpu.memory_space<vmem>>, vector<1x32x256xf32>,
    return
  }
  func.func @transform_0(%arg0: i32) -> (i32, i32, i32) {
    %c0_i32 = arith.constant 0 : i32
    %c0_i32_0 = arith.constant 0 : i32
    %c0_i32_1 = arith.constant 0 : i32
    return %arg0, %c0_i32, %c0_i32_0 : i32, i32, i32
  }
  func.func @transform_1(%arg0: i32) -> (i32, i32) {
    %c0_i32 = arith.constant 0 : i32
    %c0_i32_0 = arith.constant 0 : i32
    %c0_i32_1 = arith.constant 0 : i32
    return %c0_i32, %c0_i32_0 : i32, i32
  }
  func.func @transform_2(%arg0: i32) -> (i32, i32) {
    %c0_i32 = arith.constant 0 : i32
    %c0_i32_0 = arith.constant 0 : i32
    %c0_i32_1 = arith.constant 0 : i32
    return %c0_i32, %c0_i32_0 : i32, i32
  }
  func.func @transform_3(%arg0: i32) -> (i32, i32) {
    %c0_i32 = arith.constant 0 : i32
    %c0_i32_0 = arith.constant 0 : i32
    %c0_i32_1 = arith.constant 0 : i32
    return %c0_i32, %c0_i32_0 : i32, i32
  }
  func.func @transform_4(%arg0: i32) -> (i32, i32) {
    %c0_i32 = arith.constant 0 : i32
    %c0_i32_0 = arith.constant 0 : i32
    %c0_i32_1 = arith.constant 0 : i32
    return %c0_i32, %c0_i32_0 : i32, i32
  }
  func.func @transform_5(%arg0: i32) -> (i32, i32) {
    %c0_i32 = arith.constant 0 : i32
    %c0_i32_0 = arith.constant 0 : i32
    %c0_i32_1 = arith.constant 0 : i32
    return %c0_i32, %c0_i32_0 : i32, i32
  }
  func.func @transform_6(%arg0: i32) -> (i32, i32) {
    %c0_i32 = arith.constant 0 : i32
    %c0_i32_0 = arith.constant 0 : i32
    %c0_i32_1 = arith.constant 0 : i32
    return %c0_i32, %c0_i32_0 : i32, i32
  }
  func.func @transform_7(%arg0: i32) -> (i32, i32) {
    %c0_i32 = arith.constant 0 : i32
    %c0_i32_0 = arith.constant 0 : i32
    %c0_i32_1 = arith.constant 0 : i32
    return %c0_i32, %c0_i32_0 : i32, i32
  }
  func.func @transform_8(%arg0: i32) -> (i32, i32, i32) {
    %c0_i32 = arith.constant 0 : i32
    %c0_i32_0 = arith.constant 0 : i32
    %c0_i32_1 = arith.constant 0 : i32
    return %arg0, %c0_i32, %c0_i32_0 : i32, i32, i32
  }
}

</mosaic_0001>

<bundles_post_ra>
// kernel: tpu_custom_call.1
= control target key start
LH: loop header
LB: loop body
LE: loop exit
PB: predicated region body
PF: predicated region fallthrough
CT: control target
= control target key end

     0   :  { %13 = vsyncpa [#allocation4], 0  ;;  %s15716_s0 = inlined_call_operand.hbm [shape: f32[2,32,256], index: 0, kind: input, shape index: {}, may-alias: {0,8}]   ;;  %s15717_s1 = inlined_call_operand.vmem [shape: f32[32,8], index: 1, kind: input, shape index: {}]   ;;  %s15718_s2 = inlined_call_operand.vmem [shape: f32[8,32], index: 2, kind: input, shape index: {}]   ;;  %s15719_s3 = inlined_call_operand.vmem [shape: f32[32,1], index: 3, kind: input, shape index: {}]   ;;  %s15720_s4 = inlined_call_operand.vmem [shape: bf16[192,32], index: 4, kind: input, shape index: {}]   ;;  %s15721_s5 = inlined_call_operand.vmem [shape: f32[192,1], index: 5, kind: input, shape index: {}]   ;;  %s15722_s6 = inlined_call_operand.vmem [shape: bf16[32,64], index: 6, kind: input, shape index: {}]   ;;  %s15723_s7 = inlined_call_operand.vmem [shape: f32[32,1], index: 7, kind: input, shape index: {}]   ;;  %s15724_s8 = inlined_call_operand.hbm [shape: f32[2,32,256], index: 8, kind: output, shape index: {}, may-alias: {0,8}]  }
   0x1   :  { %15 = vsyncpa [#allocation4 + $0x1], 0 }
   0x2   :  { %16 = vsyncpa [#allocation5], 0 }
   0x3   :  { %18 = vsyncpa [#allocation5 + $0x1], 0  ;;  %s9684_s27 = smov 0   ;;  %s9686_s28 = smov 0  }
   0x4   :  { %s9688_s29 = smov 0   ;;  %s9690_s30 = smov 0  }
   0x5 LB: > { %s9705_s9 = sadd.s32 4294967295, %s9626_s30   ;;  %s8049_s10 = sadd.s32 4294967294, %s9626_s30   ;;  %s9626_s30 = sphi %s9690_s30, %s16931_s30   ;;  %s9622_s29 = sphi %s9688_s29, %s16930_s29   ;;  %s9618_s28 = sphi %s9686_s28, %s16929_s28   ;;  %s9614_s27 = sphi %s9684_s27, %s16928_s27  }
   0x6   : > { %s9709_s11 = sadd.s32 1, %s9626_s30   ;;  %s31_s12 = sadd.s32 1, %s9622_s29 }
   0x7   : > { %s28_s13 = ssub.s32 %s9626_s30, %s9709_s11  ;;  %p38_p0 = scmp.ne.s32.totalorder %s9622_s29, %s9618_s28 }
   0x8   : > { %p29_p1 = scmp.eq.s32.totalorder %s28_s13, 0  ;;  %p39_p2 = scmp.eq.s32.totalorder %s9626_s30, 0 }
   0x9   : > { %p44_p3 = scmp.ne.s32.totalorder %s9618_s28, %s9614_s27  ;;  %p45_p4 = scmp.eq.s32.totalorder %s9705_s9, 0 }
   0xa   : > { %s9721_s14 = scalar_select %p29_p1, %s9622_s29, %s31_s12  }
   0xb   : > { %p9723_p5 = por %p39_p2, %p38_p0  ;;  %p9727_p6 = por %p45_p4, %p44_p3 }
   0xc   : > { %15950 = sst [smem:[#allocation9_spill]] %s9721_s14  ;;  %p215_p7 = scmp.eq.s32.totalorder %s9705_s9, 1 }
   0xd   : > { %s15952_s16 = scalar_select %p9727_p6, 1, 0 }
   0xe   : > { %p221_p8 = scmp.eq.s32.totalorder %s8049_s10, 1  ;;  %p8399_p10 = scmp.lt.s32.totalorder %s9626_s30, 2 }
   0xf   : > { %p9734_p11 = por %p215_p7, %p38_p0  ;;  %s262_s19 = sand.u32 1, %s9622_s29  }
  0x10   : > { %p9738_p12 = por %p221_p8, %p44_p3  ;;  %s8352_s20 = sshll.u32 %s9626_s30, 10 }
  0x11   : > { %s15953_s17 = scalar_select %p9734_p11, 1, 0 }
  0x12   : > { %s15954_s18 = scalar_select %p9738_p12, 1, 0 }
  0x13   : > { %s8052_s21 = sshll.u32 %s262_s19, 6  ;;  %s9747_s24 = scalar_lea.hbm %s15716_s0, %s8352_s20 }
  0x14   : > { %s266_s25 = scalar_lea.vmem [#allocation3], %s8052_s21  ;;  %p9751_p13 = pnand %p8399_p10, %p9723_p5 }
  0x15   : > { %s273_s26 = sshll.u32 %s266_s25, 4  ;;  %s9757_s12 = scalar_lea.sflag [#allocation4], %s262_s19  ;;  %s9755_s26 = int_to_ptr.vmem [resolvable:$true] %s273_s26 }
  0x16   : > { %s9534_s13 = scalar_lea.hbm %s9747_s24, 1024  ;;  %p9536_p1 = pneg %p9751_p13 }
  0x17   : > { %p9535_p0 = scmp.ne.s32.totalorder %s9747_s24, %s9534_s13  ;;  %s9539_s21 = scalar_lea.hbm %s15716_s0, 2048 }
  0x18   : > { %p9540_p4 = scmp.lt.s32.totalorder %s9747_s24, %s15716_s0  ;;  %p9541_p5 = scmp.lt.s32.totalorder %s9539_s21, %s9534_s13 }
  0x19   : > { %p9537_p2 = pnand %p9536_p1, %p9535_p0 }
  0x1a   : > { %p9542_p7 = por %p9541_p5, %p9540_p4 }
  0x1b   : > { %p9538_p3 = pneg %p9537_p2 }
  0x1d   : > { %p9543_p8 = pnand %p9542_p7, %p9538_p3 }
  0x1f   : > { %9546 = shalt.err (!%p9543_p8)
}
  0x20   : > { %s9547_s19 = scalar_lea.vmem %s9755_s26, 1024  ;;  %s9628_s25 = smov [#allocation3]  }
  0x21   : > { %p9548_p10 = scmp.ne.s32.totalorder %s9755_s26, %s9547_s19  ;;  %s9552_s14 = sshll.u32 %s9628_s25, 4  ;;  %s9553_s14 = int_to_ptr.vmem [resolvable:$false] %s9552_s14 }
  0x22   : > { %s9554_s20 = scalar_lea.vmem %s9553_s14, 2048  ;;  %p9555_p2 = scmp.lt.s32.totalorder %s9755_s26, %s9553_s14 }
  0x23   : > { %p9550_p9 = pnand %p9548_p10, %p9536_p1  ;;  %p9556_p12 = scmp.lt.s32.totalorder %s9554_s20, %s9547_s19 }
  0x25   : > { %p9551_p0 = pneg %p9550_p9  ;;  %p9557_p11 = por %p9556_p12, %p9555_p2 }
  0x27   : > { %p9558_p6 = pnand %p9557_p11, %p9551_p0 }
  0x29   : > { %9561 = shalt.err (!%p9558_p6)
}
  0x2a   : > { %s9629_s13 = smov 256   ;;  %s9630_s22 = smov 16  }
  0x2b   : > { %8394 = dma.hbm_to_vmem [thread:$0]  (!%p9751_p13), %s9747_s24, 1024, %s9755_s26, %s9757_s12, %s9629_s13, %s9629_s13, %s9630_s22  }
  0x2c   : > { %p8055_p9 = scmp.ge.s32.totalorder %s9626_s30, 1  ;;  %p281_p1 = scmp.lt.s32.totalorder %s9626_s30, 3 }
  0x2e   : > { %p282_p3 = pnand %p8055_p9, %p281_p1 }
  0x30   : > { %285 = sbr.rel (%p282_p3) target bundleno = 5399 (0x1517), region = 52 }
  0x35   : > { %s9781_s14 = sand.u32 1, %s9618_s28   ;;  %p15956_p6 = scmp.ne.s32.totalorder %s15952_s16, 0 }
  0x36   : > { %s8056_s21 = sshll.u32 %s9781_s14, 6  ;;  %s288_s15 = scalar_lea.sflag [#allocation4], %s9781_s14 }
  0x37   : > { %s9787_s23 = scalar_lea.vmem [#allocation3], %s8056_s21 }
  0x38   : > { %9605 = dma.done.wait (%p15956_p6), %s288_s15, 1024  }
  0x39   : > { %9607 = vsyncadd (%p15956_p6), %s288_s15, 4294966272  ;;  %v9794_v0 = vld [vmem:[%s9787_s23 + $0x30] sm:$0xff]  ;;  %v9797_v1 = vld [vmem:[%s9787_s23 + $0x38] sm:$0xff]  ;;  %v15729_v24 = vmov 0.0   ;;  %vm9632_vm0 = vmmov 0   ;;  %vm365_vm1 = vcmask 7168  }
  0x3a   : > { %v9800_v2 = vld [vmem:[%s9787_s23 + $0x20] sm:$0xff]  ;;  %v342_v3 = vadd.f32 %v9797_v1, %v9794_v0  ;;  %v9805_v4 = vld [vmem:[%s9787_s23 + $0x28] sm:$0xff]  ;;  %v351_v5 = vmul.f32 %v9794_v0, %v9794_v0  ;;  %v352_v6 = vmul.f32 %v9797_v1, %v9797_v1  ;;  %v9814_v8 = vld [vmem:[%s9787_s23 + $0x10] sm:$0xff]  ;;  %8364 = vmatprep.subr.mxu0 %v15729_v24  ;;  %8372 = vmatprep.mubr.msk.f32.mxu0 %vm9632_vm0, %v15729_v24  ;;  %vm371_vm2 = vcmask 261120   ;;  %s9634_s15 = smov 1   ;;  %s15649_s12 = scalar_lea.vmem [#allocation6], %s8056_s21 }
  0x3b   : > { %v349_v7 = vmul.f32 %v9800_v2, %v9800_v2  ;;  %v9817_v9 = vld [vmem:[%s9787_s23 + $0x18] sm:$0xff]  ;;  %v339_v10 = vadd.f32 %v9805_v4, %v9800_v2  ;;  %v350_v11 = vmul.f32 %v9805_v4, %v9805_v4  ;;  %v9824_v13 = vld [vmem:[%s9787_s23] sm:$0xff]  ;;  %v9827_v14 = vld [vmem:[%s9787_s23 + $0x8] sm:$0xff]  ;;  %v347_v16 = vmul.f32 %v9814_v8, %v9814_v8  ;;  %s7976_s21 = sshll.u32 %s15649_s12, 4  ;;  %s8353_s19 = sshll.u32 %s9705_s9, 10  ;;  %s15663_s21 = int_to_ptr.vmem [resolvable:$true] %s7976_s21 }
  0x3c   : > { %343 = vadd.xlane.f32.xlu0 %v342_v3  ;;  %v362_v12 = vadd.f32 %v352_v6, %v351_v5  ;;  %v348_v17 = vmul.f32 %v9817_v9, %v9817_v9  ;;  %v336_v18 = vadd.f32 %v9817_v9, %v9814_v8  ;;  %v345_v20 = vmul.f32 %v9824_v13, %v9824_v13  ;;  %v370_v36 = vld [vmem:[%s15718_s2] sm:$0xff]  ;;  %v446_v40 = vld [vmem:[%s15717_s1 + $0x8] sm:$0xff]  ;;  %v447_v41 = vld [vmem:[%s15717_s1 + $0x10] sm:$0xff]  ;;  %s15670_s13 = scalar_lea.hbm %s15724_s8, %s8353_s19  ;;  %s7963_s9 = scalar_lea.sflag [#allocation5], %s9781_s14 }
  0x3d   : > { %340 = vadd.xlane.f32.xlu1 %v339_v10  ;;  %v359_v15 = vadd.f32 %v350_v11, %v349_v7  ;;  %v346_v21 = vmul.f32 %v9827_v14, %v9827_v14  ;;  %v333_v22 = vadd.f32 %v9827_v14, %v9824_v13  ;;  %v445_v38 = vld [vmem:[%s15717_s1] sm:$0xff]  ;;  %vm449_vm3 = vcmask 64512   ;;  %v448_v43 = vld [vmem:[%s15717_s1 + $0x18] sm:$0xff]  ;;  %v589_v56 = vld [vmem:[%s15719_s3 + $0x10] sm:$0xff]  ;;  %s9562_s22 = scalar_lea.vmem %s15663_s21, 1024  ;;  %p16924_p12 = scmp.ne.s32.totalorder %s15953_s17, 0 }
  0x3e   : > { %v356_v19 = vadd.f32 %v348_v17, %v347_v16  ;;  %8377 = vmatprep.mubr.msk.f32.mxu1 %vm449_vm3, %v445_v38  ;;  %v15727_v44 = vmov 0   ;;  %v587_v58 = vld [vmem:[%s15719_s3] sm:$0xff]  ;;  %v590_v59 = vld [vmem:[%s15719_s3 + $0x18] sm:$0xff]  ;;  %v588_v60 = vld [vmem:[%s15719_s3 + $0x8] sm:$0xff]  ;;  %v9635_v61 = vmov 1   ;;  %vm7886_vm4 = vcmask 523264   ;;  %p9563_p11 = scmp.ne.s32.totalorder %s15663_s21, %s9562_s22 }
  0x3f   : > { %v353_v23 = vadd.f32 %v346_v21, %v345_v20  ;;  %8442 = vset.pattern.permute.xlu0 %v15727_v44  ;;  %8443 = vset.pattern.permute.xlu1 %v15727_v44 }
  0x40   : > { %363 = vadd.xlane.f32.xlu0 %v362_v12  ;;  %p9564_p13 = pnand %p9563_p11, %p16924_p12 }
  0x41   : > { %360 = vadd.xlane.f32.xlu1 %v359_v15 }
  0x42   : > { %p9565_p4 = pneg %p9564_p13 }
  0x44   : > { %337 = vadd.xlane.f32.xlu0 %v336_v18 }
  0x45   : > { %357 = vadd.xlane.f32.xlu1 %v356_v19 }
  0x48   : > { %334 = vadd.xlane.f32.xlu0 %v333_v22 }
  0x49   : > { %354 = vadd.xlane.f32.xlu1 %v353_v23 }
  0xc5   : > { %v344_v25 = vpop.xlane.xlu0 %343 }
  0xc6   : > { %v341_v26 = vpop.xlane.xlu1 %340 }
  0xc9   : > { %v364_v27 = vpop.xlane.xlu0 %363 }
  0xca   : > { %v361_v28 = vpop.xlane.xlu1 %360  ;;  %v369_v29 = vsel %vm365_vm1, %v344_v25, %v364_v27 }
  0xcb   : > { %8365 = vmatpush3.msra.mxu0 %v369_v29  ;;  %v368_v30 = vsel %vm365_vm1, %v341_v26, %v361_v28 }
  0xcc   : > { %8366 = vmatprep.subr.mxu0 %v15729_v24 }
  0xcd   : > { %8367 = vmatpush3.msra.mxu0 %v368_v30  ;;  %v338_v31 = vpop.xlane.xlu0 %337 }
  0xce   : > { %v358_v32 = vpop.xlane.xlu1 %357  ;;  %8368 = vmatprep.subr.mxu0 %v15729_v24 }
  0xcf   : > { %v367_v33 = vsel %vm365_vm1, %v338_v31, %v358_v32 }
  0xd0   : > { %8369 = vmatpush3.msra.mxu0 %v367_v33 }
  0xd1   : > { %v335_v34 = vpop.xlane.xlu0 %334  ;;  %8370 = vmatprep.subr.mxu0 %v15729_v24 }
  0xd2   : > { %v355_v35 = vpop.xlane.xlu1 %354 }
  0xd3   : > { %v366_v37 = vsel %vm365_vm1, %v335_v34, %v355_v35  ;;  %v703_v35 = vld [vmem:[%s15721_s5 + $0x40] sm:$0xff] }
  0xd4   : > { %8371 = vmatpush3.msra.mxu0 %v366_v37 }
  0xd5   : > { %8373 = vmatmul.mubr.msk.f32.vlgmr.msra.gmra.mxu0 %vm371_vm2, %v370_v36  ;;  %v695_v36 = vld [vmem:[%s15721_s5] sm:$0xff] }
  0xd6   : > { %967 = vmatprep.mubr.bf16.mxu0 %v15727_v44 }
 0x195   : > { %v441_v39 = vpop.f32.mrf.mxu0 }
 0x196   : > { %8375 = vmatprep.subr.mxu1 %v441_v39 }
 0x197   : > { %v8374_v42 = vpop.f32.mrf.mxu0  ;;  %8376 = vmatpush3.msra.mxu1 %v441_v39 }
 0x198   : > { %8378 = vmatmul.mubr.msk.f32.vlgmr.msra.gmra.mxu1 %vm449_vm3, %v446_v40 }
 0x199   : > { %8380 = vmatprep.mubr.msk.f32.mxu1 %vm449_vm3, %v447_v41 }
 0x19c   : > { %8381 = vmatmul.mubr.msk.f32.gmra.mxu1 %vm449_vm3, %v448_v43 }
 0x19d   : > { %1007 = vmatprep.mubr.bf16.mxu1 %v15727_v44 }
 0x258   : > { %v8379_v45 = vpop.f32.mrf.mxu1 }
 0x259   : > { %v548_v54 = vmul.f32 0.0009765625, %v8379_v45 }
 0x25a   : > { %v528_v46 = vpop.f32.mrf.mxu1 }
 0x25b   : > { %v547_v50 = vmul.f32 0.0009765625, %v528_v46  ;;  %v552_v57 = vmul.f32 %v548_v54, %v548_v54 }
 0x25c   : > { %v8382_v47 = vpop.f32.mrf.mxu1 }
 0x25d   : > { %v550_v48 = vmul.f32 0.0009765625, %v8382_v47  ;;  %v551_v55 = vmul.f32 %v547_v50, %v547_v50 }
 0x25e   : > { %v538_v49 = vpop.f32.mrf.mxu1 }
 0x25f   : > { %v549_v51 = vmul.f32 0.0009765625, %v538_v49  ;;  %v554_v52 = vmul.f32 %v550_v48, %v550_v48 }
 0x261   : > { %565 = vrot.lane.b32.xlu1 %v554_v52, %s9634_s15  ;;  %v553_v53 = vmul.f32 %v549_v51, %v549_v51 }
 0x263   : > { %563 = vrot.lane.b32.xlu0 %v553_v53, %s9634_s15 }
 0x265   : > { %559 = vrot.lane.b32.xlu1 %v551_v55, %s9634_s15 }
 0x267   : > { %599 = vrot.lane.b32.xlu0 %v589_v56, %s9634_s15 }
 0x269   : > { %561 = vrot.lane.b32.xlu1 %v552_v57, %s9634_s15 }
 0x26b   : > { %595 = vrot.lane.b32.xlu0 %v587_v58, %s9634_s15 }
 0x26d   : > { %601 = vrot.lane.b32.xlu1 %v590_v59, %s9634_s15 }
 0x26f   : > { %623 = vperm.xlu0 %8442, %v549_v51  }
 0x271   : > { %597 = vrot.lane.b32.xlu1 %v588_v60, %s9634_s15  ;;  %s9636_s15 = smov [#allocation6]  }
 0x272   : > { %s9566_s16 = sshll.u32 %s9636_s15, 4  ;;  %s9567_s16 = int_to_ptr.vmem [resolvable:$false] %s9566_s16 }
 0x273   : > { %8444 = vset.pattern.permute.xlu0 %v9635_v61  ;;  %s9568_s24 = scalar_lea.vmem %s9567_s16, 2048  ;;  %p9569_p5 = scmp.lt.s32.totalorder %s15663_s21, %s9567_s16 }
 0x274   : > { %p9570_p7 = scmp.lt.s32.totalorder %s9568_s24, %s9562_s22 }
 0x275   : > { %628 = vperm.xlu1 %8443, %v550_v48  }
 0x276   : > { %p9571_p8 = por %p9570_p7, %p9569_p5 }
 0x278   : > { %p9572_p10 = pnand %p9571_p8, %p9565_p4 }
 0x279   : > { %613 = vperm.xlu1 %8443, %v547_v50  }
 0x27d   : > { %618 = vperm.xlu1 %8443, %v548_v54  }
 0x281   : > { %8445 = vset.pattern.permute.xlu1 %v9635_v61 }
 0x2d3   : > { %v566_v62 = vpop.permute.xlu1 %565 }
 0x2d4   : > { %v574_v63 = vsub.f32 %v550_v48, %v566_v62  ;;  %v8452_v62 = vld [vmem:[%s15720_s4 + $0x38] sm:$0xff]  }
 0x2d5   : > { %v564_v3 = vpop.permute.xlu0 %563 }
 0x2d6   : > { %v578_v5 = vmax.f32 %v574_v63, 0.0  ;;  %v573_v6 = vsub.f32 %v549_v51, %v564_v3  ;;  %v8453_v63 = vld [vmem:[%s15720_s4 + $0x40] sm:$0xff]   ;;  %v8454_v3 = vld [vmem:[%s15720_s4 + $0x8] sm:$0xff]  }
 0x2d7   : > { %v560_v7 = vpop.permute.xlu1 %559 }
 0x2d8   : > { %v582_v10 = vadd.f32 1e-05, %v578_v5  ;;  %v577_v11 = vmax.f32 %v573_v6, 0.0  ;;  %v571_v12 = vsub.f32 %v547_v50, %v560_v7  ;;  %v8455_v5 = vld [vmem:[%s15720_s4 + $0x10] sm:$0xff]   ;;  %v8456_v6 = vld [vmem:[%s15720_s4 + $0x18] sm:$0xff]  }
 0x2d9   : > { %v600_v22 = vpop.permute.xlu0 %599 }
 0x2da   : > { %8462 = vrsqrt.f32 %v582_v10  ;;  %v581_v15 = vadd.f32 1e-05, %v577_v11  ;;  %v575_v16 = vmax.f32 %v571_v12, 0.0 }
 0x2db   : > { %v562_v17 = vpop.permute.xlu1 %561 }
 0x2dc   : > { %8464 = vrsqrt.f32 %v581_v15  ;;  %v579_v18 = vadd.f32 1e-05, %v575_v16  ;;  %v572_v19 = vsub.f32 %v548_v54, %v562_v17 }
 0x2dd   : > { %v596_v30 = vpop.permute.xlu0 %595 }
 0x2de   : > { %8466 = vrsqrt.f32 %v579_v18  ;;  %v576_v20 = vmax.f32 %v572_v19, 0.0 }
 0x2df   : > { %v602_v23 = vpop.permute.xlu1 %601 }
 0x2e0   : > { %v580_v21 = vadd.f32 1e-05, %v576_v20 }
 0x2e2   : > { %8468 = vrsqrt.f32 %v580_v21 }
 0x2e3   : > { %v598_v33 = vpop.permute.xlu1 %597 }
 0x2e7   : > { %v8463_v25 = vpop.eup %8462 }
 0x2e8   : > { %v610_v26 = vmul.f32 %v8463_v25, %v602_v23  ;;  %v8457_v23 = vld [vmem:[%s15720_s4 + $0x48] sm:$0xff]   ;;  %v8458_v25 = vld [vmem:[%s15720_s4 + $0x50] sm:$0xff]  }
 0x2e9   : > { %v8465_v27 = vpop.eup %8464 }
 0x2ea   : > { %v609_v28 = vmul.f32 %v8465_v27, %v600_v22  ;;  %656 = vperm.xlu0 %8444, %v610_v26   ;;  %v624_v39 = vpop.permute.xlu0 %623  ;;  %v711_v26 = vld [vmem:[%s15721_s5 + $0x80] sm:$0xff]  ;;  %v8459_v27 = vld [vmem:[%s15720_s4 + $0x58] sm:$0xff]  }
 0x2eb   : > { %v8467_v29 = vpop.eup %8466  ;;  %v635_v42 = vsub.f32 %v9800_v2, %v624_v39  ;;  %v636_v43 = vsub.f32 %v9805_v4, %v624_v39 }
 0x2ec   : > { %v607_v31 = vmul.f32 %v8467_v29, %v596_v30  ;;  %651 = vperm.xlu1 %8445, %v609_v28   ;;  %v696_v28 = vld [vmem:[%s15721_s5 + $0x8] sm:$0xff] }
 0x2ed   : > { %v704_v29 = vld [vmem:[%s15721_s5 + $0x48] sm:$0xff] }
 0x2ee   : > { %641 = vperm.xlu0 %8444, %v607_v31  }
 0x2ef   : > { %v8469_v32 = vpop.eup %8468 }
 0x2f0   : > { %v608_v34 = vmul.f32 %v8469_v32, %v598_v33  ;;  %v629_v37 = vpop.permute.xlu1 %628 }
 0x2f1   : > { %v637_v45 = vsub.f32 %v9794_v0, %v629_v37  ;;  %v638_v46 = vsub.f32 %v9797_v1, %v629_v37 }
 0x2f2   : > { %646 = vperm.xlu1 %8445, %v608_v34   ;;  %8446 = vset.pattern.permute.xlu0 %v15727_v44 }
 0x2f3   : > { %761 = vperm.xlu0 %8446, %v703_v35  }
 0x2f4   : > { %v614_v38 = vpop.permute.xlu1 %613 }
 0x2f5   : > { %v631_v54 = vsub.f32 %v9824_v13, %v614_v38  ;;  %v632_v56 = vsub.f32 %v9827_v14, %v614_v38  ;;  %v8448_v13 = vld [vmem:[%s15720_s4 + $0x20] sm:$0xff]   ;;  %v8451_v14 = vld [vmem:[%s15720_s4 + $0x30] sm:$0xff]  }
 0x2f6   : > { %8447 = vset.pattern.permute.xlu1 %v15727_v44 }
 0x2f7   : > { %721 = vperm.xlu1 %8447, %v695_v36  }
 0x2f8   : > { %v619_v40 = vpop.permute.xlu1 %618 }
 0x2f9   : > { %v633_v2 = vsub.f32 %v9814_v8, %v619_v40  ;;  %v634_v4 = vsub.f32 %v9817_v9, %v619_v40  ;;  %v8449_v8 = vld [vmem:[%s15720_s4] sm:$0xff]   ;;  %v8450_v9 = vld [vmem:[%s15720_s4 + $0x28] sm:$0xff]  }
 0x365   : > { %v657_v41 = vpop.permute.xlu0 %656 }
 0x366   : > { %v665_v48 = vmul.f32 %v657_v41, %v637_v45  ;;  %v666_v49 = vmul.f32 %v657_v41, %v638_v46 }
 0x367   : > { %v652_v47 = vpop.permute.xlu1 %651 }
 0x368   : > { %v663_v50 = vmul.f32 %v652_v47, %v635_v42  ;;  %v664_v51 = vmul.f32 %v652_v47, %v636_v43 }
 0x369   : > { %v642_v55 = vpop.permute.xlu0 %641 }
 0x36a   : > { %v669_v52 = vpack.c.bf16 %v665_v48, %v663_v50  ;;  %v670_v53 = vpack.c.bf16 %v666_v49, %v664_v51  ;;  %v659_v1 = vmul.f32 %v642_v55, %v631_v54  ;;  %v660_v57 = vmul.f32 %v642_v55, %v632_v56 }
 0x36c   : > { %947 = vmatprep.subr.bf16.mxu0 %v670_v53  ;;  %8383 = vmatprep.subr.bf16.mxu1 %v670_v53 }
 0x36d   : > { %v647_v0 = vpop.permute.xlu1 %646  ;;  %948 = vmatpush1.bf16.msra.mxu0 %v669_v52  ;;  %8385 = vmatpush1.bf16.msra.mxu1 %v669_v52 }
 0x36e   : > { %v661_v58 = vmul.f32 %v647_v0, %v633_v2  ;;  %v662_v59 = vmul.f32 %v647_v0, %v634_v4  ;;  %v762_v7 = vpop.permute.xlu0 %761 }
 0x370   : > { %v667_v60 = vpack.c.bf16 %v661_v58, %v659_v1  ;;  %v668_v61 = vpack.c.bf16 %v662_v59, %v660_v57 }
 0x372   : > { %949 = vmatprep.subr.bf16.mxu0 %v668_v61  ;;  %8384 = vmatprep.subr.bf16.mxu1 %v668_v61  ;;  %v722_v10 = vpop.permute.xlu1 %721 }
 0x373   : > { %950 = vmatpush1.bf16.msra.mxu0 %v667_v60  ;;  %8386 = vmatpush1.bf16.msra.mxu1 %v667_v60 }
 0x376   : > { %8079 = vmatmul.mubr.msk.bf16.vlgmr.msra.gmra.mxu1 %vm371_vm2, %v8448_v13  ;;  %8075 = vmatmul.mubr.msk.bf16.vlgmr.msra.gmra.mxu0 %vm371_vm2, %v8449_v8 }
 0x377   : > { %1017 = vmatprep.mubr.bf16.mxu1 %v15727_v44  ;;  %977 = vmatprep.mubr.bf16.mxu0 %v15727_v44 }
 0x37e   : > { %8080 = vmatmul.mubr.msk.bf16.gmra.mxu1 %vm371_vm2, %v8450_v9  ;;  %8076 = vmatmul.mubr.msk.bf16.gmra.mxu0 %vm371_vm2, %v8454_v3 }
 0x37f   : > { %1027 = vmatprep.mubr.bf16.mxu1 %v15727_v44  ;;  %987 = vmatprep.mubr.bf16.mxu0 %v15727_v44 }
 0x386   : > { %8081 = vmatmul.mubr.msk.bf16.gmra.mxu1 %vm371_vm2, %v8451_v14  ;;  %8077 = vmatmul.mubr.msk.bf16.gmra.mxu0 %vm371_vm2, %v8455_v5 }
 0x387   : > { %1037 = vmatprep.mubr.bf16.mxu1 %v15727_v44  ;;  %997 = vmatprep.mubr.bf16.mxu0 %v15727_v44 }
 0x38e   : > { %8082 = vmatmul.mubr.msk.bf16.gmra.mxu1 %vm371_vm2, %v8452_v62  ;;  %8078 = vmatmul.mubr.msk.bf16.gmra.mxu0 %vm371_vm2, %v8456_v6 }
 0x38f   : > { %1047 = vmatprep.mubr.bf16.mxu1 %v15727_v44  ;;  %1314 = vmatprep.mubr.f32.mxu0 %v15729_v24 }
 0x396   : > { %8083 = vmatmul.mubr.msk.bf16.gmra.mxu1 %vm371_vm2, %v8453_v63 }
 0x397   : > { %1057 = vmatprep.mubr.bf16.mxu1 %v15727_v44 }
 0x39e   : > { %8084 = vmatmul.mubr.msk.bf16.gmra.mxu1 %vm371_vm2, %v8457_v23 }
 0x39f   : > { %1067 = vmatprep.mubr.bf16.mxu1 %v15727_v44 }
 0x3a6   : > { %8085 = vmatmul.mubr.msk.bf16.gmra.mxu1 %vm371_vm2, %v8458_v25 }
 0x3a7   : > { %1077 = vmatprep.mubr.bf16.mxu1 %v15727_v44 }
 0x3ae   : > { %8086 = vmatmul.mubr.msk.bf16.gmra.mxu1 %vm371_vm2, %v8459_v27 }
 0x436   : > { %v1009_v11 = vpop.f32.mrf.mxu1  ;;  %v969_v12 = vpop.f32.mrf.mxu0 }
 0x437   : > { %v1010_v15 = vadd.f32 %v1009_v11, %v762_v7  ;;  %v970_v16 = vadd.f32 %v969_v12, %v722_v10 }
 0x438   : > { %v1011_v17 = vpop.f32.mrf.mxu1  ;;  %v971_v18 = vpop.f32.mrf.mxu0 }
 0x439   : > { %v1012_v19 = vadd.f32 %v1011_v17, %v762_v7  ;;  %1090 = vxpose.xlu1.b32.start.end [1/1] (short) %v1010_v15, 128  ;;  %v972_v20 = vadd.f32 %v971_v18, %v722_v10  ;;  %v1088_v21 = vmul.f32 0.5, %v970_v16 }
 0x43a   : > { %v9984_v42 = vpop.f32.mrf.mxu1 }
 0x43b   : > { %1122 = vxpose.xlu0.b32.start.end [1/1] (short) %v1012_v19, 128  ;;  %v1089_v22 = vmul.f32 0.5, %v972_v20 }
 0x43c   : > { %v9988_v46 = vpop.f32.mrf.mxu1 }
 0x43d   : > { %1280 = vmatprep.subr.mxu0 %v1089_v22 }
 0x43e   : > { %1281 = vmatpush1.msra.mxu0 %v1088_v21  ;;  %v9992_v47 = vpop.f32.mrf.mxu1  ;;  %v10068_v21 = vpop.f32.mrf.mxu0 }
 0x43f   : > { %15969 = vst [vmem:[#allocation22_spill] sm:$0xff] %v10068_v21 }
 0x440   : > { %v9996_v50 = vpop.f32.mrf.mxu1  ;;  %v10070_v22 = vpop.f32.mrf.mxu0 }
 0x441   : > { %15970 = vst [vmem:[#allocation23_spill] sm:$0xff] %v10070_v22 }
 0x442   : > { %v10000_v53 = vpop.f32.mrf.mxu1  ;;  %v10072_v23 = vpop.f32.mrf.mxu0 }
 0x443   : > { %15957 = vst [vmem:[#allocation10_spill] sm:$0xff] %v10000_v53  ;;  %15971 = vst [vmem:[#allocation24_spill] sm:$0xff] %v10072_v23 }
 0x444   : > { %v10004_v55 = vpop.f32.mrf.mxu1  ;;  %v10074_v25 = vpop.f32.mrf.mxu0 }
 0x445   : > { %15958 = vst [vmem:[#allocation11_spill] sm:$0xff] %v10004_v55  ;;  %15972 = vst [vmem:[#allocation25_spill] sm:$0xff] %v10074_v25 }
 0x446   : > { %v10008_v4 = vpop.f32.mrf.mxu1 }
 0x447   : > { %15959 = vst [vmem:[#allocation12_spill] sm:$0xff] %v10008_v4 }
 0x448   : > { %v10012_v57 = vpop.f32.mrf.mxu1 }
 0x449   : > { %15960 = vst [vmem:[#allocation13_spill] sm:$0xff] %v10012_v57 }
 0x44a   : > { %v10016_v59 = vpop.f32.mrf.mxu1 }
 0x44b   : > { %15961 = vst [vmem:[#allocation14_spill] sm:$0xff] %v10016_v59 }
 0x44c   : > { %v10020_v13 = vpop.f32.mrf.mxu1 }
 0x44d   : > { %15962 = vst [vmem:[#allocation15_spill] sm:$0xff] %v10020_v13 }
 0x44e   : > { %v10024_v9 = vpop.f32.mrf.mxu1 }
 0x44f   : > { %15963 = vst [vmem:[#allocation16_spill] sm:$0xff] %v10024_v9 }
 0x450   : > { %v10028_v14 = vpop.f32.mrf.mxu1 }
 0x451   : > { %15964 = vst [vmem:[#allocation17_spill] sm:$0xff] %v10028_v14 }
 0x452   : > { %v10032_v63 = vpop.f32.mrf.mxu1 }
 0x453   : > { %15965 = vst [vmem:[#allocation18_spill] sm:$0xff] %v10032_v63 }
 0x454   : > { %v10036_v5 = vpop.f32.mrf.mxu1 }
 0x455   : > { %15966 = vst [vmem:[#allocation19_spill] sm:$0xff] %v10036_v5 }
 0x456   : > { %v10040_v6 = vpop.f32.mrf.mxu1 }
 0x457   : > { %15967 = vst [vmem:[#allocation20_spill] sm:$0xff] %v10040_v6 }
 0x458   : > { %v1051_v10 = vpop.f32.mrf.mxu1 }
 0x493   : > { %801 = vperm.xlu1 %8447, %v711_v26   ;;  %v10076_v26 = vpop.f32.mrf.mxu0 }
 0x494   : > { %15973 = vst [vmem:[#allocation26_spill] sm:$0xff] %v10076_v26 }
 0x495   : > { %v10078_v27 = vpop.f32.mrf.mxu0 }
 0x496   : > { %15974 = vst [vmem:[#allocation27_spill] sm:$0xff] %v10078_v27 }
 0x497   : > { %726 = vperm.xlu1 %8447, %v696_v28   ;;  %v10080_v28 = vpop.f32.mrf.mxu0 }
 0x498   : > { %15975 = vst [vmem:[#allocation28_spill] sm:$0xff] %v10080_v28 }
 0x4a0   : > { %766 = vperm.xlu0 %8446, %v704_v29   ;;  %v10082_v29 = vpop.f32.mrf.mxu0 }
 0x4a1   : > { %15976 = vst [vmem:[#allocation29_spill] sm:$0xff] %v10082_v29 }
 0x4b5   : > { %v1106_v30 = vpop.trf.xlu1 }
 0x4b6   : > { %8087 = vmatmul.mubr.msk.f32.vlgmr.msra.gmra.mxu0 %vm449_vm3, %v1106_v30  ;;  %v10084_v30 = vpop.f32.mrf.mxu0 }
 0x4b7   : > { %1320 = vmatprep.mubr.f32.mxu0 %v15729_v24  ;;  %v1138_v32 = vpop.trf.xlu0  ;;  %15977 = vst [vmem:[#allocation30_spill] sm:$0xff] %v10084_v30 }
 0x4b9   : > { %v1107_v31 = vpop.trf.xlu1 }
 0x4ba   : > { %8088 = vmatmul.mubr.msk.f32.gmra.mxu0 %vm449_vm3, %v1107_v31  ;;  %v10086_v31 = vpop.f32.mrf.mxu0 }
 0x4bb   : > { %1326 = vmatprep.mubr.f32.mxu0 %v15729_v24  ;;  %v1139_v35 = vpop.trf.xlu0  ;;  %15978 = vst [vmem:[#allocation31_spill] sm:$0xff] %v10086_v31 }
 0x4bd   : > { %v1108_v33 = vpop.trf.xlu1 }
 0x4be   : > { %8089 = vmatmul.mubr.msk.f32.gmra.mxu0 %vm449_vm3, %v1108_v33 }
 0x4bf   : > { %1332 = vmatprep.mubr.f32.mxu0 %v15729_v24  ;;  %v1140_v37 = vpop.trf.xlu0 }
 0x4c1   : > { %v1109_v34 = vpop.trf.xlu1 }
 0x4c2   : > { %8090 = vmatmul.mubr.msk.f32.gmra.mxu0 %vm449_vm3, %v1109_v34 }
 0x4c3   : > { %1338 = vmatprep.mubr.f32.mxu0 %v15729_v24  ;;  %v1141_v40 = vpop.trf.xlu0 }
 0x4c5   : > { %v1110_v36 = vpop.trf.xlu1 }
 0x4c6   : > { %8091 = vmatmul.mubr.msk.f32.gmra.mxu0 %vm449_vm3, %v1110_v36  ;;  %v712_v36 = vld [vmem:[%s15721_s5 + $0x88] sm:$0xff] }
 0x4c7   : > { %1344 = vmatprep.mubr.f32.mxu0 %v15729_v24  ;;  %v1142_v43 = vpop.trf.xlu0 }
 0x4c9   : > { %v1111_v38 = vpop.trf.xlu1 }
 0x4ca   : > { %8092 = vmatmul.mubr.msk.f32.gmra.mxu0 %vm449_vm3, %v1111_v38 }
 0x4cb   : > { %1350 = vmatprep.mubr.f32.mxu0 %v15729_v24  ;;  %v1143_v49 = vpop.trf.xlu0 }
 0x4cd   : > { %v1112_v39 = vpop.trf.xlu1 }
 0x4ce   : > { %8093 = vmatmul.mubr.msk.f32.gmra.mxu0 %vm449_vm3, %v1112_v39 }
 0x4cf   : > { %1356 = vmatprep.mubr.f32.mxu0 %v15729_v24  ;;  %v1144_v52 = vpop.trf.xlu0 }
 0x4d1   : > { %v1113_v41 = vpop.trf.xlu1 }
 0x4d2   : > { %8094 = vmatmul.mubr.msk.f32.gmra.mxu0 %vm449_vm3, %v1113_v41 }
 0x4d3   : > { %1362 = vmatprep.mubr.f32.mxu0 %v15729_v24  ;;  %v1145_v2 = vpop.trf.xlu0 }
 0x4d5   : > { %v1114_v45 = vpop.trf.xlu1 }
 0x4d6   : > { %8095 = vmatmul.mubr.msk.f32.gmra.mxu0 %vm449_vm3, %v1114_v45 }
 0x4d7   : > { %1368 = vmatprep.mubr.f32.mxu0 %v15729_v24  ;;  %v1146_v1 = vpop.trf.xlu0 }
 0x4d9   : > { %v1115_v48 = vpop.trf.xlu1 }
 0x4da   : > { %8096 = vmatmul.mubr.msk.f32.gmra.mxu0 %vm449_vm3, %v1115_v48  ;;  %v697_v48 = vld [vmem:[%s15721_s5 + $0x10] sm:$0xff] }
 0x4db   : > { %1374 = vmatprep.mubr.f32.mxu0 %v15729_v24  ;;  %v1147_v61 = vpop.trf.xlu0 }
 0x4dd   : > { %v1116_v51 = vpop.trf.xlu1 }
 0x4de   : > { %8097 = vmatmul.mubr.msk.f32.gmra.mxu0 %vm449_vm3, %v1116_v51 }
 0x4df   : > { %1380 = vmatprep.mubr.f32.mxu0 %v15729_v24  ;;  %v1148_v8 = vpop.trf.xlu0 }
 0x4e1   : > { %v1117_v54 = vpop.trf.xlu1 }
 0x4e2   : > { %8098 = vmatmul.mubr.msk.f32.gmra.mxu0 %vm449_vm3, %v1117_v54 }
 0x4e3   : > { %1386 = vmatprep.mubr.f32.mxu0 %v15729_v24  ;;  %v1149_v62 = vpop.trf.xlu0 }
 0x4e5   : > { %v1118_v56 = vpop.trf.xlu1 }
 0x4e6   : > { %8099 = vmatmul.mubr.msk.f32.gmra.mxu0 %vm449_vm3, %v1118_v56 }
 0x4e7   : > { %1392 = vmatprep.mubr.f32.mxu0 %v15729_v24  ;;  %v1150_v3 = vpop.trf.xlu0 }
 0x4e9   : > { %v1119_v0 = vpop.trf.xlu1 }
 0x4ea   : > { %8100 = vmatmul.mubr.msk.f32.gmra.mxu0 %vm449_vm3, %v1119_v0 }
 0x4eb   : > { %1398 = vmatprep.mubr.f32.mxu0 %v15729_v24  ;;  %v1151_v7 = vpop.trf.xlu0 }
 0x4ed   : > { %v1120_v58 = vpop.trf.xlu1 }
 0x4ee   : > { %8101 = vmatmul.mubr.msk.f32.gmra.mxu0 %vm449_vm3, %v1120_v58 }
 0x4ef   : > { %1404 = vmatprep.mubr.f32.mxu0 %v15729_v24  ;;  %v1152_v15 = vpop.trf.xlu0 }
 0x4f1   : > { %v1121_v60 = vpop.trf.xlu1 }
 0x4f2   : > { %8102 = vmatmul.mubr.msk.f32.gmra.mxu0 %vm449_vm3, %v1121_v60 }
 0x4f3   : > { %1410 = vmatprep.mubr.f32.mxu0 %v15729_v24  ;;  %v1153_v17 = vpop.trf.xlu0 }
 0x4f6   : > { %8103 = vmatmul.mubr.msk.f32.gmra.mxu0 %vm449_vm3, %v1138_v32  ;;  %v10088_v32 = vpop.f32.mrf.mxu0 }
 0x4f7   : > { %1416 = vmatprep.mubr.f32.mxu0 %v15729_v24  ;;  %15979 = vst [vmem:[#allocation32_spill] sm:$0xff] %v10088_v32 }
 0x4f8   : > { %v10090_v33 = vpop.f32.mrf.mxu0 }
 0x4f9   : > { %15980 = vst [vmem:[#allocation33_spill] sm:$0xff] %v10090_v33 }
 0x4fa   : > { %8104 = vmatmul.mubr.msk.f32.gmra.mxu0 %vm449_vm3, %v1139_v35  ;;  %v10092_v34 = vpop.f32.mrf.mxu0 }
 0x4fb   : > { %1422 = vmatprep.mubr.f32.mxu0 %v15729_v24  ;;  %15981 = vst [vmem:[#allocation34_spill] sm:$0xff] %v10092_v34 }
 0x4fc   : > { %v10094_v35 = vpop.f32.mrf.mxu0 }
 0x4fd   : > { %15982 = vst [vmem:[#allocation35_spill] sm:$0xff] %v10094_v35 }
 0x4fe   : > { %8105 = vmatmul.mubr.msk.f32.gmra.mxu0 %vm449_vm3, %v1140_v37 }
 0x4ff   : > { %1428 = vmatprep.mubr.f32.mxu0 %v15729_v24 }
 0x502   : > { %8106 = vmatmul.mubr.msk.f32.gmra.mxu0 %vm449_vm3, %v1141_v40 }
 0x503   : > { %1434 = vmatprep.mubr.f32.mxu0 %v15729_v24 }
 0x506   : > { %8107 = vmatmul.mubr.msk.f32.gmra.mxu0 %vm449_vm3, %v1142_v43  ;;  %v705_v43 = vld [vmem:[%s15721_s5 + $0x50] sm:$0xff] }
 0x507   : > { %1440 = vmatprep.mubr.f32.mxu0 %v15729_v24 }
 0x50a   : > { %8108 = vmatmul.mubr.msk.f32.gmra.mxu0 %vm449_vm3, %v1143_v49 }
 0x50b   : > { %1446 = vmatprep.mubr.f32.mxu0 %v15729_v24 }
 0x50e   : > { %v10044_v11 = vpop.permute.xlu1 %801  ;;  %8109 = vmatmul.mubr.msk.f32.gmra.mxu0 %vm449_vm3, %v1144_v52 }
 0x50f   : > { %15968 = vst [vmem:[#allocation21_spill] sm:$0xff] %v10044_v11  ;;  %v1052_v12 = vadd.f32 %v1051_v10, %v10044_v11  ;;  %1452 = vmatprep.mubr.f32.mxu0 %v15729_v24 }
 0x511   : > { %v1848_v16 = vpack.c.bf16 %v1052_v12, %v1052_v12 }
 0x512   : > { %8110 = vmatmul.mubr.msk.f32.gmra.mxu0 %vm449_vm3, %v1145_v2  ;;  %v10137_v58 = vpop.permute.xlu1 %726 }
 0x513   : > { %1913 = vmatprep.mubr.bf16.mxu1 %v1848_v16  ;;  %1458 = vmatprep.mubr.f32.mxu0 %v15729_v24  ;;  %15990 = vst [vmem:[#allocation43_spill] sm:$0xff] %v10137_v58 }
 0x516   : > { %8111 = vmatmul.mubr.msk.f32.gmra.mxu0 %vm449_vm3, %v1146_v1 }
 0x517   : > { %1464 = vmatprep.mubr.f32.mxu0 %v15729_v24 }
 0x51a   : > { %8112 = vmatmul.mubr.msk.f32.gmra.mxu0 %vm449_vm3, %v1147_v61 }
 0x51b   : > { %v767_v18 = vpop.permute.xlu0 %766  ;;  %1470 = vmatprep.mubr.f32.mxu0 %v15729_v24 }
 0x51c   : > { %v1014_v19 = vadd.f32 %v9984_v42, %v767_v18  ;;  %v1016_v20 = vadd.f32 %v9988_v46, %v767_v18 }
 0x51e   : > { %1932 = vxpose.xlu0.b32.start.end [1/1] (short) %v1014_v19, 128  ;;  %1964 = vxpose.xlu1.b32.start.end [1/1] (short) %v1016_v20, 128 }
 0x51f   : > { %8113 = vmatmul.mubr.msk.f32.gmra.mxu0 %vm449_vm3, %v1148_v8 }
 0x520   : > { %1476 = vmatprep.mubr.f32.mxu0 %v15729_v24 }
 0x523   : > { %8114 = vmatmul.mubr.msk.f32.gmra.mxu0 %vm449_vm3, %v1149_v62 }
 0x524   : > { %1482 = vmatprep.mubr.f32.mxu0 %v15729_v24 }
 0x527   : > { %8115 = vmatmul.mubr.msk.f32.gmra.mxu0 %vm449_vm3, %v1150_v3 }
 0x528   : > { %1488 = vmatprep.mubr.f32.mxu0 %v15729_v24 }
 0x52b   : > { %8116 = vmatmul.mubr.msk.f32.gmra.mxu0 %vm449_vm3, %v1151_v7 }
 0x52c   : > { %1494 = vmatprep.mubr.f32.mxu0 %v15729_v24 }
 0x52f   : > { %8117 = vmatmul.mubr.msk.f32.gmra.mxu0 %vm449_vm3, %v1152_v15 }
 0x530   : > { %1500 = vmatprep.mubr.f32.mxu0 %v15729_v24 }
 0x533   : > { %8118 = vmatmul.mubr.msk.f32.gmra.mxu0 %vm449_vm3, %v1153_v17 }
 0x576   : > { %v10099_v37 = vpop.f32.mrf.mxu0 }
 0x578   : > { %806 = vperm.xlu1 %8447, %v712_v36   ;;  %v10101_v38 = vpop.f32.mrf.mxu0 }
 0x57a   : > { %v10103_v39 = vpop.f32.mrf.mxu0 }
 0x57c   : > { %v10105_v40 = vpop.f32.mrf.mxu0 }
 0x57e   : > { %v10107_v41 = vpop.f32.mrf.mxu0 }
 0x580   : > { %v10109_v42 = vpop.f32.mrf.mxu0 }
 0x582   : > { %v10114_v45 = vpop.f32.mrf.mxu0 }
 0x583   : > { %15983 = vst [vmem:[#allocation36_spill] sm:$0xff] %v10114_v45  ;;  %771 = vperm.xlu0 %8446, %v705_v43  }
 0x584   : > { %v10116_v46 = vpop.f32.mrf.mxu0 }
 0x585   : > { %15984 = vst [vmem:[#allocation37_spill] sm:$0xff] %v10116_v46 }
 0x586   : > { %v10121_v49 = vpop.f32.mrf.mxu0 }
 0x587   : > { %731 = vperm.xlu0 %8446, %v697_v48  }
 0x588   : > { %v10123_v51 = vpop.f32.mrf.mxu0 }
 0x589   : > { %15985 = vst [vmem:[#allocation38_spill] sm:$0xff] %v10123_v51 }
 0x58a   : > { %v10125_v52 = vpop.f32.mrf.mxu0 }
 0x58b   : > { %15986 = vst [vmem:[#allocation39_spill] sm:$0xff] %v10125_v52 }
 0x58c   : > { %v10127_v54 = vpop.f32.mrf.mxu0 }
 0x58d   : > { %15987 = vst [vmem:[#allocation40_spill] sm:$0xff] %v10127_v54 }
 0x58e   : > { %v10129_v56 = vpop.f32.mrf.mxu0 }
 0x590   : > { %v10131_v2 = vpop.f32.mrf.mxu0 }
 0x592   : > { %v10133_v0 = vpop.f32.mrf.mxu0 }
 0x593   : > { %15988 = vst [vmem:[#allocation41_spill] sm:$0xff] %v10133_v0 }
 0x594   : > { %v10135_v1 = vpop.f32.mrf.mxu0 }
 0x595   : > { %15989 = vst [vmem:[#allocation42_spill] sm:$0xff] %v10135_v1 }
 0x596   : > { %v10139_v60 = vpop.f32.mrf.mxu0 }
 0x598   : > { %v10141_v61 = vpop.f32.mrf.mxu0 }
 0x59a   : > { %v10143_v8 = vpop.f32.mrf.mxu0  ;;  %v10145_v62 = vpop.trf.xlu1 }
 0x59b   : > { %15991 = vst [vmem:[#allocation44_spill] sm:$0xff] %v10143_v8  ;;  %15992 = vst [vmem:[#allocation45_spill] sm:$0xff] %v10145_v62  ;;  %v10149_v7 = vpop.trf.xlu0 }
 0x59c   : > { %v10147_v3 = vpop.f32.mrf.mxu0  ;;  %15994 = vst [vmem:[#allocation47_spill] sm:$0xff] %v10149_v7 }
 0x59d   : > { %15993 = vst [vmem:[#allocation46_spill] sm:$0xff] %v10147_v3 }
 0x59e   : > { %v10151_v10 = vpop.f32.mrf.mxu0  ;;  %v10153_v12 = vpop.trf.xlu1 }
 0x59f   : > { %15995 = vst [vmem:[#allocation48_spill] sm:$0xff] %v10153_v12  ;;  %v10163_v19 = vpop.trf.xlu0 }
 0x5a0   : > { %v10155_v15 = vpop.f32.mrf.mxu0  ;;  %16000 = vst [vmem:[#allocation53_spill] sm:$0xff] %v10163_v19 }
 0x5a1   : > { %15996 = vst [vmem:[#allocation49_spill] sm:$0xff] %v10155_v15 }
 0x5a2   : > { %v10157_v16 = vpop.f32.mrf.mxu0  ;;  %v10159_v17 = vpop.trf.xlu1 }
 0x5a3   : > { %15997 = vst [vmem:[#allocation50_spill] sm:$0xff] %v10157_v16  ;;  %15998 = vst [vmem:[#allocation51_spill] sm:$0xff] %v10159_v17  ;;  %v10173_v44 = vpop.trf.xlu0 }
 0x5a4   : > { %v10161_v18 = vpop.f32.mrf.mxu0  ;;  %16003 = vst [vmem:[#allocation56_spill] sm:$0xff] %v10173_v44 }
 0x5a5   : > { %15999 = vst [vmem:[#allocation52_spill] sm:$0xff] %v10161_v18 }
 0x5a6   : > { %v10165_v20 = vpop.f32.mrf.mxu0  ;;  %v10167_v36 = vpop.trf.xlu1 }
 0x5a7   : > { %16001 = vst [vmem:[#allocation54_spill] sm:$0xff] %v10167_v36  ;;  %v10183_v33 = vpop.trf.xlu0 }
 0x5a8   : > { %v10169_v43 = vpop.f32.mrf.mxu0  ;;  %16005 = vst [vmem:[#allocation58_spill] sm:$0xff] %v10183_v33  ;;  %v1507_v33 = vmax.f32 %v10099_v37, %v10107_v41 }
 0x5aa   : > { %v10171_v48 = vpop.f32.mrf.mxu0  ;;  %v10175_v24 = vpop.trf.xlu1 }
 0x5ab   : > { %16002 = vst [vmem:[#allocation55_spill] sm:$0xff] %v10171_v48  ;;  %16004 = vst [vmem:[#allocation57_spill] sm:$0xff] %v10175_v24  ;;  %v10193_v5 = vpop.trf.xlu0 }
 0x5ac   : > { %v10177_v34 = vpop.f32.mrf.mxu0  ;;  %16007 = vst [vmem:[#allocation60_spill] sm:$0xff] %v10193_v5 }
 0x5ae   : > { %v10179_v35 = vpop.f32.mrf.mxu0  ;;  %v10185_v30 = vpop.trf.xlu1 }
 0x5af   : > { %16006 = vst [vmem:[#allocation59_spill] sm:$0xff] %v10185_v30  ;;  %v10203_v9 = vpop.trf.xlu0 }
 0x5b0   : > { %v10181_v32 = vpop.f32.mrf.mxu0  ;;  %16009 = vst [vmem:[#allocation62_spill] sm:$0xff] %v10203_v9 }
 0x5b2   : > { %v10187_v31 = vpop.f32.mrf.mxu0  ;;  %v10195_v63 = vpop.trf.xlu1 }
 0x5b3   : > { %16008 = vst [vmem:[#allocation61_spill] sm:$0xff] %v10195_v63  ;;  %v10213_v57 = vpop.trf.xlu0 }
 0x5b4   : > { %v10189_v28 = vpop.f32.mrf.mxu0  ;;  %16013 = vst [vmem:[#allocation66_spill] sm:$0xff] %v10213_v57 }
 0x5b6   : > { %v10191_v29 = vpop.f32.mrf.mxu0  ;;  %v10205_v13 = vpop.trf.xlu1 }
 0x5b7   : > { %16010 = vst [vmem:[#allocation63_spill] sm:$0xff] %v10205_v13  ;;  %v10223_v55 = vpop.trf.xlu0 }
 0x5b8   : > { %v10197_v26 = vpop.f32.mrf.mxu0  ;;  %16016 = vst [vmem:[#allocation69_spill] sm:$0xff] %v10223_v55 }
 0x5ba   : > { %v10199_v27 = vpop.f32.mrf.mxu0  ;;  %v10215_v4 = vpop.trf.xlu1 }
 0x5bb   : > { %16014 = vst [vmem:[#allocation67_spill] sm:$0xff] %v10215_v4  ;;  %v10233_v12 = vpop.trf.xlu0 }
 0x5bc   : > { %v10201_v14 = vpop.f32.mrf.mxu0  ;;  %16019 = vst [vmem:[#allocation72_spill] sm:$0xff] %v10233_v12  ;;  %v1508_v12 = vmax.f32 %v10103_v39, %v10114_v45 }
 0x5be   : > { %v10207_v59 = vpop.f32.mrf.mxu0  ;;  %v10225_v53 = vpop.trf.xlu1  ;;  %v1510_v19 = vmax.f32 %v1508_v12, %v10125_v52 }
 0x5bf   : > { %16011 = vst [vmem:[#allocation64_spill] sm:$0xff] %v10207_v59  ;;  %16017 = vst [vmem:[#allocation70_spill] sm:$0xff] %v10225_v53  ;;  %v10243_v5 = vpop.trf.xlu0 }
 0x5c0   : > { %v10209_v23 = vpop.f32.mrf.mxu0  ;;  %16021 = vst [vmem:[#allocation74_spill] sm:$0xff] %v10243_v5  ;;  %v1512_v6 = vmax.f32 %v1510_v19, %v10133_v0 }
 0x5c2   : > { %v10211_v25 = vpop.f32.mrf.mxu0  ;;  %v10235_v62 = vpop.trf.xlu1  ;;  %v1514_v58 = vmax.f32 %v1512_v6, %v10143_v8 }
 0x5c3   : > { %16012 = vst [vmem:[#allocation65_spill] sm:$0xff] %v10211_v25  ;;  %16020 = vst [vmem:[#allocation73_spill] sm:$0xff] %v10235_v62  ;;  %v1509_v62 = vmax.f32 %v1507_v33, %v10121_v49  ;;  %v10259_v21 = vpop.trf.xlu0 }
 0x5c4   : > { %v10217_v63 = vpop.f32.mrf.mxu0  ;;  %16023 = vst [vmem:[#allocation76_spill] sm:$0xff] %v10259_v21  ;;  %v1516_v12 = vmax.f32 %v1514_v58, %v10157_v16 }
 0x5c6   : > { %v10219_v30 = vpop.f32.mrf.mxu0  ;;  %v10245_v55 = vpop.trf.xlu1  ;;  %v1518_v19 = vmax.f32 %v1516_v12, %v10171_v48 }
 0x5c7   : > { %16015 = vst [vmem:[#allocation68_spill] sm:$0xff] %v10219_v30  ;;  %16022 = vst [vmem:[#allocation75_spill] sm:$0xff] %v10245_v55  ;;  %v1511_v55 = vmax.f32 %v1509_v62, %v10129_v56  ;;  %v10273_v52 = vpop.trf.xlu0 }
 0x5c8   : > { %v10221_v24 = vpop.f32.mrf.mxu0  ;;  %16025 = vst [vmem:[#allocation78_spill] sm:$0xff] %v10273_v52  ;;  %v1520_v6 = vmax.f32 %v1518_v19, %v10187_v31 }
 0x5c9   : > { %v1513_v22 = vmax.f32 %v1511_v55, %v10139_v60 }
 0x5ca   : > { %v10227_v13 = vpop.f32.mrf.mxu0  ;;  %v10261_v5 = vpop.trf.xlu1  ;;  %v1522_v58 = vmax.f32 %v1520_v6, %v10199_v27  ;;  %v1544_v6 = vmax.f32 %v10101_v38, %v10109_v42 }
 0x5cb   : > { %16018 = vst [vmem:[#allocation71_spill] sm:$0xff] %v10227_v13  ;;  %16024 = vst [vmem:[#allocation77_spill] sm:$0xff] %v10261_v5  ;;  %v1515_v33 = vmax.f32 %v1513_v22, %v10151_v10  ;;  %v10289_v52 = vpop.trf.xlu0 }
 0x5cc   : > { %v10229_v36 = vpop.f32.mrf.mxu0  ;;  %16027 = vst [vmem:[#allocation80_spill] sm:$0xff] %v10289_v52  ;;  %v1524_v12 = vmax.f32 %v1522_v58, %v10211_v25  ;;  %v10310_v25 = vpop.f32.mrf.mxu1 }
 0x5cd   : > { %v1517_v62 = vmax.f32 %v1515_v33, %v10165_v20  ;;  %16031 = vst [vmem:[#allocation84_spill] sm:$0xff] %v10310_v25 }
 0x5ce   : > { %v10231_v17 = vpop.f32.mrf.mxu0  ;;  %v10277_v5 = vpop.trf.xlu1 }
 0x5cf   : > { %16026 = vst [vmem:[#allocation79_spill] sm:$0xff] %v10277_v5  ;;  %v1519_v55 = vmax.f32 %v1517_v62, %v10179_v35  ;;  %v1545_v62 = vmax.f32 %v10105_v40, %v10116_v46  ;;  %v1546_v46 = vmax.f32 %v1544_v6, %v10123_v51 }
 0x5d0   : > { %v10237_v4 = vpop.f32.mrf.mxu0 }
 0x5d1   : > { %v1521_v22 = vmax.f32 %v1519_v55, %v10191_v29  ;;  %v1526_v55 = vmax.f32 %v1524_v12, %v10227_v13 }
 0x5d2   : > { %v10239_v57 = vpop.f32.mrf.mxu0  ;;  %v10293_v5 = vpop.trf.xlu1 }
 0x5d3   : > { %16029 = vst [vmem:[#allocation82_spill] sm:$0xff] %v10293_v5  ;;  %v1523_v33 = vmax.f32 %v1521_v22, %v10207_v59  ;;  %v1547_v5 = vmax.f32 %v1545_v62, %v10127_v54  ;;  %v1528_v58 = vmax.f32 %v1526_v55, %v10239_v57  ;;  %v10312_v59 = vpop.trf.xlu0 }
 0x5d4   : > { %v10241_v9 = vpop.f32.mrf.mxu0  ;;  %16032 = vst [vmem:[#allocation85_spill] sm:$0xff] %v10312_v59 }
 0x5d5   : > { %v1525_v19 = vmax.f32 %v1523_v33, %v10219_v30  ;;  %v1549_v13 = vmax.f32 %v1547_v5, %v10135_v1 }
 0x5d6   : > { %v10247_v53 = vpop.f32.mrf.mxu0  ;;  %v10317_v12 = vpop.trf.xlu1 }
 0x5d7   : > { %v1527_v22 = vmax.f32 %v1525_v19, %v10231_v17  ;;  %16033 = vst [vmem:[#allocation86_spill] sm:$0xff] %v10317_v12  ;;  %v1548_v19 = vmax.f32 %v1546_v46, %v10131_v2  ;;  %v1551_v55 = vmax.f32 %v1549_v13, %v10147_v3  ;;  %v1055_v12 = vpop.f32.mrf.mxu1  ;;  %v10334_v46 = vpop.trf.xlu0 }
 0x5d8   : > { %v10253_v44 = vpop.f32.mrf.mxu0  ;;  %16034 = vst [vmem:[#allocation87_spill] sm:$0xff] %v10334_v46 }
 0x5d9   : > { %v1529_v30 = vmax.f32 %v1527_v22, %v10247_v53  ;;  %v1550_v59 = vmax.f32 %v1548_v19, %v10141_v61  ;;  %v1553_v5 = vmax.f32 %v1551_v55, %v10161_v18 }
 0x5da   : > { %v10257_v7 = vpop.f32.mrf.mxu0 }
 0x5db   : > { %v1530_v62 = vmax.f32 %v1528_v58, %v10257_v7  ;;  %v1552_v1 = vmax.f32 %v1550_v59, %v10155_v15  ;;  %v10349_v15 = vpop.trf.xlu0 }
 0x5dc   : > { %v10265_v11 = vpop.f32.mrf.mxu0  ;;  %16036 = vst [vmem:[#allocation89_spill] sm:$0xff] %v10349_v15 }
 0x5df   : > { %v10269_v45 = vpop.f32.mrf.mxu0 }
 0x5e0   : > { %v1531_v25 = vmax.f32 %v1529_v30, %v10269_v45 }
 0x5e1   : > { %v10275_v21 = vpop.f32.mrf.mxu0 }
 0x5e3   : > { %v10281_v0 = vpop.f32.mrf.mxu0 }
 0x5e4   : > { %v1532_v6 = vmax.f32 %v1530_v62, %v10281_v0  ;;  %v1555_v62 = vmax.f32 %v1553_v5, %v10177_v34 }
 0x5e5   : > { %v10285_v8 = vpop.f32.mrf.mxu0 }
 0x5e7   : > { %v10291_v16 = vpop.f32.mrf.mxu0 }
 0x5e8   : > { %16028 = vst [vmem:[#allocation81_spill] sm:$0xff] %v10291_v16  ;;  %v1533_v22 = vmax.f32 %v1531_v25, %v10291_v16  ;;  %v1554_v25 = vmax.f32 %v1552_v1, %v10169_v43 }
 0x5e9   : > { %v10297_v48 = vpop.f32.mrf.mxu0 }
 0x5ea   : > { %v1556_v59 = vmax.f32 %v1554_v25, %v10181_v32 }
 0x5eb   : > { %v10305_v52 = vpop.f32.mrf.mxu0 }
 0x5ec   : > { %16030 = vst [vmem:[#allocation83_spill] sm:$0xff] %v10305_v52  ;;  %v1534_v58 = vmax.f32 %v1532_v6, %v10305_v52  ;;  %v1557_v6 = vmax.f32 %v1555_v62, %v10189_v28  ;;  %v1558_v5 = vmax.f32 %v1556_v59, %v10197_v26 }
 0x5ed   : > { %v10315_v33 = vpop.f32.mrf.mxu0 }
 0x5ee   : > { %v1559_v16 = vmax.f32 %v1557_v6, %v10201_v14 }
 0x5ef   : > { %v10323_v54 = vpop.f32.mrf.mxu0 }
 0x5f0   : > { %v1535_v19 = vmax.f32 %v1533_v22, %v10323_v54  ;;  %v1561_v22 = vmax.f32 %v1559_v16, %v10217_v63 }
 0x5f1   : > { %v10329_v51 = vpop.f32.mrf.mxu0 }
 0x5f2   : > { %v1563_v1 = vmax.f32 %v1561_v22, %v10229_v36 }
 0x5f3   : > { %v10337_v13 = vpop.f32.mrf.mxu0  ;;  %v10339_v30 = vpop.permute.xlu1 %806 }
 0x5f4   : > { %16035 = vst [vmem:[#allocation88_spill] sm:$0xff] %v10339_v30  ;;  %v1536_v3 = vmax.f32 %v1534_v58, %v10337_v13  ;;  %v1056_v55 = vadd.f32 %v1055_v12, %v10339_v30  ;;  %v1560_v12 = vmax.f32 %v1558_v5, %v10209_v23 }
 0x5f5   : > { %v10363_v22 = vpop.f32.mrf.mxu0 }
 0x5f6   : > { %v1537_v52 = vmax.f32 %v1535_v19, %v1536_v3  ;;  %v2690_v46 = vpack.c.bf16 %v1056_v55, %v1056_v55  ;;  %v1562_v3 = vmax.f32 %v1560_v12, %v10221_v24  ;;  %v1565_v19 = vmax.f32 %v1563_v1, %v10241_v9 }
 0x5f8   : > { %v1538_v18 = vrot.slane %v1537_v52, 4  ;;  %2755 = vmatprep.mubr.bf16.mxu0 %v2690_v46  ;;  %v1564_v59 = vmax.f32 %v1562_v3, %v10237_v4  ;;  %v1567_v16 = vmax.f32 %v1565_v19, %v10265_v11 }
 0x5fa   : > { %v1539_v58 = vmax.f32 %v1537_v52, %v1538_v18  ;;  %v1566_v18 = vmax.f32 %v1564_v59, %v10253_v44  ;;  %v1569_v5 = vmax.f32 %v1567_v16, %v10285_v8 }
 0x5fc   : > { %v1540_v62 = vrot.slane %v1539_v58, 2  ;;  %v1571_v12 = vmax.f32 %v1569_v5, %v10315_v33 }
 0x5fe   : > { %v1541_v55 = vmax.f32 %v1539_v58, %v1540_v62  ;;  %v772_v25 = vpop.permute.xlu0 %771  ;;  %v1568_v58 = vmax.f32 %v1566_v18, %v10275_v21  ;;  %v1573_v1 = vmax.f32 %v1571_v12, %v10363_v22 }
 0x5ff   : > { %v1020_v46 = vadd.f32 %v9992_v47, %v772_v25  ;;  %v1022_v6 = vadd.f32 %v9996_v50, %v772_v25 }
 0x600   : > { %v1542_v52 = vrot.slane %v1541_v55, 1  ;;  %v1570_v50 = vmax.f32 %v1568_v58, %v10297_v48 }
 0x601   : > { %2806 = vxpose.xlu0.b32.start.end [1/1] (short) %v1022_v6, 128  ;;  %2774 = vxpose.xlu1.b32.start.end [1/1] (short) %v1020_v46, 128  ;;  %v16037_v6 = vld [vmem:[#allocation36_spill] sm:$0xff] }
 0x602   : > { %v10367_v47 = vmax.f32 %v1541_v55, %v1542_v52  ;;  %v1572_v62 = vmax.f32 %v1570_v50, %v10329_v51 }
 0x604   : > { %v1581_v3 = vsub.f32 %v10099_v37, %v10367_v47  ;;  %v1583_v19 = vsub.f32 %v10103_v39, %v10367_v47  ;;  %v1585_v25 = vsub.f32 %v10107_v41, %v10367_v47  ;;  %v1574_v46 = vmax.f32 %v1572_v62, %v1573_v1  ;;  %v16038_v37 = vld [vmem:[#allocation39_spill] sm:$0xff]  ;;  %v16039_v1 = vld [vmem:[#allocation41_spill] sm:$0xff] }
 0x605   : > { %v1587_v55 = vsub.f32 %v16037_v6, %v10367_v47  ;;  %v1589_v52 = vsub.f32 %v10121_v49, %v10367_v47  ;;  %v1591_v58 = vsub.f32 %v16038_v37, %v10367_v47  ;;  %v1593_v41 = vsub.f32 %v10129_v56, %v10367_v47 }
 0x606   : > { %v1645_v59 = vmul.f32 1.442695, %v1581_v3  ;;  %v1649_v16 = vmul.f32 1.442695, %v1583_v19  ;;  %v1653_v18 = vmul.f32 1.442695, %v1585_v25  ;;  %v1595_v62 = vsub.f32 %v16039_v1, %v10367_v47 }
 0x607   : > { %v1575_v5 = vrot.slane %v1574_v46, 4  ;;  %v1657_v39 = vmul.f32 1.442695, %v1587_v55  ;;  %v1661_v12 = vmul.f32 1.442695, %v1589_v52  ;;  %v1597_v49 = vsub.f32 %v10139_v60, %v10367_v47  ;;  %v16040_v25 = vld [vmem:[#allocation44_spill] sm:$0xff] }
 0x608   : > { %8470 = vpow2.f32 %v1645_v59  ;;  %v1665_v3 = vmul.f32 1.442695, %v1591_v58  ;;  %v1669_v19 = vmul.f32 1.442695, %v1593_v41  ;;  %v1599_v6 = vsub.f32 %v16040_v25, %v10367_v47  ;;  %v16042_v60 = vld [vmem:[#allocation55_spill] sm:$0xff] }
 0x609   : > { %8472 = vpow2.f32 %v1649_v16  ;;  %v1576_v50 = vmax.f32 %v1574_v46, %v1575_v5  ;;  %v1601_v56 = vsub.f32 %v10151_v10, %v10367_v47  ;;  %v1673_v59 = vmul.f32 1.442695, %v1595_v62  ;;  %v16041_v46 = vld [vmem:[#allocation50_spill] sm:$0xff] }
 0x60a   : > { %8474 = vpow2.f32 %v1653_v18  ;;  %v1603_v16 = vsub.f32 %v16041_v46, %v10367_v47  ;;  %v1605_v52 = vsub.f32 %v10165_v20, %v10367_v47  ;;  %v1677_v18 = vmul.f32 1.442695, %v1597_v49 }
 0x60b   : > { %8476 = vpow2.f32 %v1657_v39  ;;  %v1577_v55 = vrot.slane %v1576_v50, 2  ;;  %v1607_v5 = vsub.f32 %v16042_v60, %v10367_v47  ;;  %v1681_v37 = vmul.f32 1.442695, %v1599_v6 }
 0x60c   : > { %8478 = vpow2.f32 %v1661_v12  ;;  %v1609_v10 = vsub.f32 %v10179_v35, %v10367_v47  ;;  %v1685_v41 = vmul.f32 1.442695, %v1601_v56  ;;  %v1625_v1 = vsub.f32 %v10231_v17, %v10367_v47 }
 0x60d   : > { %8480 = vpow2.f32 %v1665_v3  ;;  %v1578_v58 = vmax.f32 %v1576_v50, %v1577_v55  ;;  %v1689_v20 = vmul.f32 1.442695, %v1603_v16  ;;  %v1627_v62 = vsub.f32 %v10239_v57, %v10367_v47 }
 0x60e   : > { %8482 = vpow2.f32 %v1669_v19  ;;  %v1693_v3 = vmul.f32 1.442695, %v1605_v52  ;;  %v1629_v35 = vsub.f32 %v10247_v53, %v10367_v47  ;;  %v1697_v19 = vmul.f32 1.442695, %v1607_v5 }
 0x60f   : > { %8484 = vpow2.f32 %v1673_v59  ;;  %v1579_v25 = vrot.slane %v1578_v58, 1  ;;  %v1631_v17 = vsub.f32 %v10257_v7, %v10367_v47  ;;  %v1701_v6 = vmul.f32 1.442695, %v1609_v10 }
 0x610   : > { %8486 = vpow2.f32 %v1677_v18  ;;  %v1633_v56 = vsub.f32 %v10269_v45, %v10367_v47  ;;  %v1733_v59 = vmul.f32 1.442695, %v1625_v1  ;;  %v1635_v53 = vsub.f32 %v10281_v0, %v10367_v47 }
 0x611   : > { %8488 = vpow2.f32 %v1681_v37  ;;  %v1737_v46 = vmul.f32 1.442695, %v1627_v62  ;;  %v1611_v7 = vsub.f32 %v10187_v31, %v10367_v47  ;;  %v1741_v18 = vmul.f32 1.442695, %v1629_v35  ;;  %v16044_v31 = vld [vmem:[#allocation64_spill] sm:$0xff] }
 0x612   : > { %8490 = vpow2.f32 %v1685_v41  ;;  %v10430_v60 = vmax.f32 %v1578_v58, %v1579_v25  ;;  %v1613_v45 = vsub.f32 %v10191_v29, %v10367_v47  ;;  %v1745_v5 = vmul.f32 1.442695, %v1631_v17  ;;  %v16045_v25 = vld [vmem:[#allocation65_spill] sm:$0xff] }
 0x613   : > { %8492 = vpow2.f32 %v1689_v20  ;;  %v1615_v10 = vsub.f32 %v10199_v27, %v10367_v47  ;;  %v1749_v41 = vmul.f32 1.442695, %v1633_v56  ;;  %v1617_v1 = vsub.f32 %v16044_v31, %v10367_v47 }
 0x614   : > { %8494 = vpow2.f32 %v1693_v3  ;;  %v1753_v58 = vmul.f32 1.442695, %v1635_v53  ;;  %v1705_v29 = vmul.f32 1.442695, %v1611_v7  ;;  %v1582_v3 = vsub.f32 %v10101_v38, %v10430_v60  ;;  %v16046_v53 = vld [vmem:[#allocation68_spill] sm:$0xff] }
 0x615   : > { %v10400_v39 = vpop.eup %8470  ;;  %8496 = vpow2.f32 %v1697_v19  ;;  %v1584_v35 = vsub.f32 %v10105_v40, %v10430_v60  ;;  %v1619_v17 = vsub.f32 %v16045_v25, %v10367_v47  ;;  %v1586_v38 = vsub.f32 %v10109_v42, %v10430_v60  ;;  %v16048_v42 = vld [vmem:[#allocation71_spill] sm:$0xff] }
 0x616   : > { %v10404_v12 = vpop.eup %8472  ;;  %8498 = vpow2.f32 %v1701_v6  ;;  %v1713_v6 = vmul.f32 1.442695, %v1615_v10  ;;  %v1647_v40 = vmul.f32 1.442695, %v1582_v3  ;;  %v1623_v10 = vsub.f32 %v16048_v42, %v10367_v47 }
 0x617   : > { %16043 = vst [vmem:[#allocation36_spill] sm:$0xff] %v10404_v12  ;;  %v1773_v50 = vadd.f32 %v10404_v12, %v10400_v39  ;;  %v10412_v49 = vpop.eup %8474  ;;  %8500 = vpow2.f32 %v1733_v59 }
 0x618   : > { %v10419_v55 = vpop.eup %8476  ;;  %8502 = vpow2.f32 %v1737_v46  ;;  %v1621_v46 = vsub.f32 %v16046_v53, %v10367_v47  ;;  %v16051_v53 = vld [vmem:[#allocation42_spill] sm:$0xff] }
 0x619   : > { %v1774_v57 = vadd.f32 %v10412_v49, %v1773_v50  ;;  %v10426_v52 = vpop.eup %8478  ;;  %8504 = vpow2.f32 %v1741_v18  ;;  %v1709_v50 = vmul.f32 1.442695, %v1613_v45  ;;  %v16047_v18 = vld [vmem:[#allocation37_spill] sm:$0xff] }
 0x61a   : > { %v10435_v37 = vpop.eup %8480  ;;  %8506 = vpow2.f32 %v1745_v5  ;;  %v1588_v45 = vsub.f32 %v16047_v18, %v10430_v60  ;;  %v1651_v5 = vmul.f32 1.442695, %v1584_v35  ;;  %v1598_v18 = vsub.f32 %v10141_v61, %v10430_v60 }
 0x61b   : > { %v1775_v16 = vadd.f32 %v10419_v55, %v1774_v57  ;;  %v10442_v62 = vpop.eup %8482  ;;  %8508 = vpow2.f32 %v1749_v41  ;;  %v1717_v57 = vmul.f32 1.442695, %v1617_v1  ;;  %v1721_v41 = vmul.f32 1.442695, %v1619_v17 }
 0x61c   : > { %v10449_v19 = vpop.eup %8484  ;;  %8510 = vpow2.f32 %v1753_v58  ;;  %v16049_v58 = vld [vmem:[#allocation38_spill] sm:$0xff] }
 0x61d   : > { %v1776_v0 = vadd.f32 %v10426_v52, %v1775_v16  ;;  %v10456_v59 = vpop.eup %8486  ;;  %8512 = vpow2.f32 %v1705_v29  ;;  %v1655_v29 = vmul.f32 1.442695, %v1586_v38  ;;  %v1729_v38 = vmul.f32 1.442695, %v1623_v10 }
 0x61e   : > { %v10460_v16 = vpop.eup %8488  ;;  %8514 = vpow2.f32 %v1709_v50  ;;  %v1725_v50 = vmul.f32 1.442695, %v1621_v46  ;;  %v1596_v46 = vsub.f32 %v16051_v53, %v10430_v60 }
 0x61f   : > { %v1777_v20 = vadd.f32 %v10435_v37, %v1776_v0  ;;  %v10465_v0 = vpop.eup %8490  ;;  %8516 = vpow2.f32 %v1713_v6  ;;  %v1594_v6 = vsub.f32 %v10131_v2, %v10430_v60  ;;  %v1606_v2 = vsub.f32 %v10169_v43, %v10430_v60 }
 0x620   : > { %v10469_v31 = vpop.eup %8492  ;;  %8518 = vpow2.f32 %v1717_v57  ;;  %v1659_v57 = vmul.f32 1.442695, %v1588_v45  ;;  %v1608_v45 = vsub.f32 %v10177_v34, %v10430_v60  ;;  %v1612_v43 = vsub.f32 %v10189_v28, %v10430_v60 }
 0x621   : > { %v1778_v27 = vadd.f32 %v10442_v62, %v1777_v20  ;;  %v1590_v20 = vsub.f32 %v16049_v58, %v10430_v60  ;;  %v10474_v3 = vpop.eup %8494  ;;  %8520 = vpow2.f32 %v1647_v40  ;;  %v1671_v58 = vmul.f32 1.442695, %v1594_v6 }
 0x622   : > { %v10478_v25 = vpop.eup %8496  ;;  %8522 = vpow2.f32 %v1651_v5  ;;  %v1675_v34 = vmul.f32 1.442695, %v1596_v46  ;;  %v1699_v46 = vmul.f32 1.442695, %v1608_v45 }
 0x623   : > { %v1779_v56 = vadd.f32 %v10449_v19, %v1778_v27  ;;  %v16050_v27 = vld [vmem:[#allocation40_spill] sm:$0xff]  ;;  %8524 = vpow2.f32 %v1721_v41  ;;  %v1663_v42 = vmul.f32 1.442695, %v1590_v20 }
 0x624   : > { %v1592_v35 = vsub.f32 %v16050_v27, %v10430_v60  ;;  %8526 = vpow2.f32 %v1655_v29  ;;  %v1610_v29 = vsub.f32 %v10181_v32, %v10430_v60  ;;  %v1695_v32 = vmul.f32 1.442695, %v1606_v2 }
 0x625   : > { %v1780_v7 = vadd.f32 %v10456_v59, %v1779_v56  ;;  %v10483_v56 = vpop.eup %8498  ;;  %8528 = vpow2.f32 %v1725_v50 }
 0x626   : > { %v1667_v5 = vmul.f32 1.442695, %v1592_v35  ;;  %8530 = vpow2.f32 %v1659_v57  ;;  %v1679_v35 = vmul.f32 1.442695, %v1598_v18  ;;  %v16053_v57 = vld [vmem:[#allocation46_spill] sm:$0xff] }
 0x627   : > { %v1781_v1 = vadd.f32 %v10460_v16, %v1780_v7  ;;  %v10487_v7 = vpop.eup %8500  ;;  %8532 = vpow2.f32 %v1729_v38  ;;  %v1600_v38 = vsub.f32 %v16053_v57, %v10430_v60  ;;  %v1703_v61 = vmul.f32 1.442695, %v1610_v29  ;;  %v16059_v29 = vld [vmem:[#allocation81_spill] sm:$0xff] }
 0x628   : > { %16052 = vst [vmem:[#allocation39_spill] sm:$0xff] %v10487_v7 }
 0x629   : > { %v1782_v17 = vadd.f32 %v10465_v0, %v1781_v1  ;;  %v10492_v1 = vpop.eup %8502  ;;  %8534 = vpow2.f32 %v1663_v42  ;;  %v16055_v42 = vld [vmem:[#allocation49_spill] sm:$0xff]  ;;  %v1683_v30 = vmul.f32 1.442695, %v1600_v38 }
 0x62a   : > { %v10498_v10 = vpop.eup %8504  ;;  %8536 = vpow2.f32 %v1667_v5  ;;  %v16057_v5 = vld [vmem:[#allocation52_spill] sm:$0xff] }
 0x62b   : > { %v1783_v40 = vadd.f32 %v10469_v31, %v1782_v17  ;;  %v10503_v20 = vpop.eup %8506  ;;  %8538 = vpow2.f32 %v1671_v58  ;;  %v1604_v57 = vsub.f32 %v16057_v5, %v10430_v60  ;;  %v1707_v58 = vmul.f32 1.442695, %v1612_v43 }
 0x62c   : > { %v10509_v50 = vpop.eup %8508  ;;  %8540 = vpow2.f32 %v1675_v34 }
 0x62d   : > { %v1784_v41 = vadd.f32 %v10474_v3, %v1783_v40  ;;  %v10514_v6 = vpop.eup %8510  ;;  %8542 = vpow2.f32 %v1679_v35  ;;  %v1691_v35 = vmul.f32 1.442695, %v1604_v57 }
 0x62e   : > { %v10518_v53 = vpop.eup %8512  ;;  %8544 = vpow2.f32 %v1695_v32 }
 0x62f   : > { %v1785_v27 = vadd.f32 %v10478_v25, %v1784_v41  ;;  %v10523_v18 = vpop.eup %8514  ;;  %v1602_v41 = vsub.f32 %v16055_v42, %v10430_v60  ;;  %8546 = vpow2.f32 %v1699_v46  ;;  %v1637_v42 = vsub.f32 %v16059_v29, %v10367_v47  ;;  %v16062_v46 = vld [vmem:[#allocation83_spill] sm:$0xff] }
 0x630   : > { %16054 = vst [vmem:[#allocation41_spill] sm:$0xff] %v10523_v18  ;;  %v10527_v17 = vpop.eup %8516  ;;  %8548 = vpow2.f32 %v1703_v61 }
 0x631   : > { %v1786_v28 = vadd.f32 %v10483_v56, %v1785_v27  ;;  %16056 = vst [vmem:[#allocation44_spill] sm:$0xff] %v10527_v17  ;;  %v10532_v45 = vpop.eup %8518  ;;  %8550 = vpow2.f32 %v1707_v58  ;;  %v1757_v58 = vmul.f32 1.442695, %v1637_v42 }
 0x632   : > { %16058 = vst [vmem:[#allocation50_spill] sm:$0xff] %v10532_v45  ;;  %v10534_v27 = vpop.eup %8520  ;;  %8552 = vpow2.f32 %v1683_v30  ;;  %v1643_v30 = vsub.f32 %v10337_v13, %v10367_v47  ;;  %v1616_v13 = vsub.f32 %v10201_v14, %v10430_v60 }
 0x633   : > { %v1787_v2 = vadd.f32 %v10518_v53, %v1786_v28  ;;  %v10537_v34 = vpop.eup %8522  ;;  %v1687_v28 = vmul.f32 1.442695, %v1602_v41 }
 0x634   : > { %v10541_v15 = vpop.eup %8524  ;;  %v1810_v32 = vadd.f32 %v10537_v34, %v10534_v27 }
 0x635   : > { %v1788_v40 = vadd.f32 %v10523_v18, %v1787_v2  ;;  %16060 = vst [vmem:[#allocation55_spill] sm:$0xff] %v10541_v15  ;;  %v10546_v5 = vpop.eup %8526  ;;  %v1639_v2 = vsub.f32 %v16062_v46, %v10367_v47  ;;  %8554 = vpow2.f32 %v1687_v28 }
 0x636   : > { %v10548_v38 = vpop.eup %8528  ;;  %v1811_v61 = vadd.f32 %v10546_v5, %v1810_v32  ;;  %8556 = vpow2.f32 %v1691_v35 }
 0x637   : > { %v1789_v43 = vadd.f32 %v10527_v17, %v1788_v40  ;;  %16061 = vst [vmem:[#allocation64_spill] sm:$0xff] %v10548_v38  ;;  %v10554_v41 = vpop.eup %8530  ;;  %v1641_v40 = vsub.f32 %v10323_v54, %v10367_v47  ;;  %v1761_v32 = vmul.f32 1.442695, %v1639_v2  ;;  %8558 = vpow2.f32 %v1757_v58 }
 0x638   : > { %v10558_v57 = vpop.eup %8532  ;;  %v1812_v18 = vadd.f32 %v10554_v41, %v1811_v61 }
 0x639   : > { %v1790_v29 = vadd.f32 %v10532_v45, %v1789_v43  ;;  %16063 = vst [vmem:[#allocation65_spill] sm:$0xff] %v10558_v57  ;;  %v10562_v46 = vpop.eup %8534  ;;  %v1765_v42 = vmul.f32 1.442695, %v1641_v40  ;;  %8560 = vpow2.f32 %v1761_v32  ;;  %v1715_v32 = vmul.f32 1.442695, %v1616_v13 }
 0x63a   : > { %v10564_v43 = vpop.eup %8536  ;;  %v1813_v54 = vadd.f32 %v10562_v46, %v1812_v18 }
 0x63b   : > { %v1791_v17 = vadd.f32 %v10541_v15, %v1790_v29  ;;  %v10570_v28 = vpop.eup %8538  ;;  %v1614_v29 = vsub.f32 %v10197_v26, %v10430_v60  ;;  %8562 = vpow2.f32 %v1765_v42 }
 0x63c   : > { %v10572_v12 = vpop.eup %8540  ;;  %v1814_v61 = vadd.f32 %v10564_v43, %v1813_v54 }
 0x63d   : > { %v1792_v45 = vadd.f32 %v10548_v38, %v1791_v17  ;;  %v10578_v15 = vpop.eup %8542  ;;  %v1769_v17 = vmul.f32 1.442695, %v1643_v30  ;;  %v1711_v54 = vmul.f32 1.442695, %v1614_v29  ;;  %v1620_v30 = vsub.f32 %v10217_v63, %v10430_v60 }
 0x63e   : > { %v8545_v47 = vpop.eup %8544  ;;  %v1815_v2 = vadd.f32 %v10570_v28, %v1814_v61  ;;  %v1622_v29 = vsub.f32 %v10221_v24, %v10430_v60  ;;  %v1628_v24 = vsub.f32 %v10241_v9, %v10430_v60 }
 0x63f   : > { %v1793_v35 = vadd.f32 %v10558_v57, %v1792_v45  ;;  %v8547_v40 = vpop.eup %8546  ;;  %v1618_v45 = vsub.f32 %v10209_v23, %v10430_v60  ;;  %8564 = vpow2.f32 %v1769_v17 }
 0x640   : > { %v10586_v58 = vpop.eup %8548  ;;  %v1816_v57 = vadd.f32 %v10572_v12, %v1815_v2  ;;  %v1863_v2 = vpack.c.bf16 %v10518_v53, %v10483_v56  ;;  %8566 = vpow2.f32 %v1711_v54  ;;  %v1862_v17 = vpack.c.bf16 %v8547_v40, %v8545_v47 }
 0x641   : > { %v1794_v18 = vadd.f32 %v10487_v7, %v1793_v35  ;;  %v10590_v14 = vpop.eup %8550  ;;  %v1626_v7 = vsub.f32 %v10237_v4, %v10430_v60  ;;  %8568 = vpow2.f32 %v1715_v32  ;;  %v1723_v53 = vmul.f32 1.442695, %v1620_v30 }
 0x642   : > { %v1817_v61 = vadd.f32 %v10578_v15, %v1816_v57  ;;  %v1864_v23 = vpack.c.bf16 %v10590_v14, %v10586_v58  ;;  %v8553_v42 = vpop.eup %8552  ;;  %v1624_v57 = vsub.f32 %v10229_v36, %v10430_v60  ;;  %v1642_v54 = vsub.f32 %v10329_v51, %v10430_v60 }
 0x643   : > { %v1795_v26 = vadd.f32 %v10492_v1, %v1794_v18  ;;  %v1719_v18 = vmul.f32 1.442695, %v1618_v45  ;;  %v8555_v38 = vpop.eup %8554  ;;  %v1727_v36 = vmul.f32 1.442695, %v1622_v29  ;;  %v1861_v4 = vpack.c.bf16 %v10478_v25, %v10474_v3 }
 0x644   : > { %v1818_v13 = vadd.f32 %v8553_v42, %v1817_v61  ;;  %1881 = vmatprep.subr.bf16.mxu1 %v1864_v23  ;;  %v1630_v30 = vsub.f32 %v10253_v44, %v10430_v60  ;;  %v1632_v51 = vsub.f32 %v10265_v11, %v10430_v60  ;;  %v1731_v32 = vmul.f32 1.442695, %v1624_v57 }
 0x645   : > { %v1796_v35 = vadd.f32 %v10498_v10, %v1795_v26  ;;  %v8557_v26 = vpop.eup %8556  ;;  %1882 = vmatpush1.bf16.msra.mxu1 %v1863_v2  ;;  %8570 = vpow2.f32 %v1719_v18  ;;  %v1735_v25 = vmul.f32 1.442695, %v1626_v7  ;;  %v1640_v18 = vsub.f32 %v10315_v33, %v10430_v60 }
 0x646   : > { %v1819_v45 = vadd.f32 %v8555_v38, %v1818_v13  ;;  %1883 = vmatprep.subr.bf16.mxu1 %v1862_v17  ;;  %v1860_v23 = vpack.c.bf16 %v8557_v26, %v8555_v38  ;;  %v10617_v2 = vpop.eup %8558  ;;  %8572 = vpow2.f32 %v1723_v53  ;;  %v1767_v44 = vmul.f32 1.442695, %v1642_v54 }
 0x647   : > { %v1797_v63 = vadd.f32 %v10503_v20, %v1796_v35  ;;  %v1644_v35 = vsub.f32 %v10363_v22, %v10430_v60  ;;  %v1638_v22 = vsub.f32 %v10297_v48, %v10430_v60  ;;  %v10626_v38 = vpop.eup %8560  ;;  %v1859_v11 = vpack.c.bf16 %v10469_v31, %v10465_v0 }
 0x648   : > { %v1820_v9 = vadd.f32 %v8557_v26, %v1819_v45  ;;  %8574 = vpow2.f32 %v1727_v36  ;;  %v1858_v17 = vpack.c.bf16 %v8553_v42, %v10578_v15  ;;  %v10634_v26 = vpop.eup %8562  ;;  %v1634_v7 = vsub.f32 %v10275_v21, %v10430_v60 }
 0x649   : > { %v1798_v56 = vadd.f32 %v10509_v50, %v1797_v63  ;;  %1884 = vmatpush1.bf16.msra.mxu1 %v1861_v4  ;;  %v1771_v63 = vmul.f32 1.442695, %v1644_v35  ;;  %8576 = vpow2.f32 %v1731_v32  ;;  %v1739_v33 = vmul.f32 1.442695, %v1628_v24 }
 0x64a   : > { %v1821_v29 = vadd.f32 %v8545_v47, %v1820_v9  ;;  %1885 = vmatprep.subr.bf16.mxu1 %v1860_v23  ;;  %v1636_v47 = vsub.f32 %v10285_v8, %v10430_v60  ;;  %8578 = vpow2.f32 %v1735_v25  ;;  %v1743_v0 = vmul.f32 1.442695, %v1630_v30  ;;  %v713_v8 = vld [vmem:[%s15721_s5 + $0x90] sm:$0xff]  ;;  %v706_v30 = vld [vmem:[%s15721_s5 + $0x58] sm:$0xff] }
 0x64b   : > { %v1799_v61 = vadd.f32 %v10514_v6, %v1798_v56  ;;  %v1759_v15 = vmul.f32 1.442695, %v1638_v22  ;;  %v1763_v42 = vmul.f32 1.442695, %v1640_v18  ;;  %8580 = vpow2.f32 %v1767_v44 }
 0x64c   : > { %v1822_v13 = vadd.f32 %v8547_v40, %v1821_v29  ;;  %v10642_v40 = vpop.eup %8564  ;;  %v1857_v21 = vpack.c.bf16 %v10460_v16, %v10456_v59  ;;  %8582 = vpow2.f32 %v1771_v63  ;;  %v1747_v53 = vmul.f32 1.442695, %v1632_v51  ;;  %v16064_v29 = vld [vmem:[#allocation36_spill] sm:$0xff] }
 0x64d   : > { %v1800_v3 = vadd.f32 %v10617_v2, %v1799_v61  ;;  %1886 = vmatpush1.bf16.msra.mxu1 %v1859_v11  ;;  %v10655_v56 = vpop.eup %8566  ;;  %8584 = vpow2.f32 %v1739_v33  ;;  %v1751_v45 = vmul.f32 1.442695, %v1634_v7  ;;  %v1854_v35 = vpack.c.bf16 %v10564_v43, %v10562_v46 }
 0x64e   : > { %v1823_v31 = vadd.f32 %v10586_v58, %v1822_v13  ;;  %1887 = vmatprep.subr.bf16.mxu1 %v1858_v17  ;;  %v1856_v58 = vpack.c.bf16 %v10572_v12, %v10570_v28  ;;  %8586 = vpow2.f32 %v1743_v0  ;;  %v10658_v16 = vpop.eup %8568  ;;  %v698_v12 = vld [vmem:[%s15721_s5 + $0x18] sm:$0xff]  ;;  %v1755_v28 = vmul.f32 1.442695, %v1636_v47 }
 0x64f   : > { %v1801_v48 = vadd.f32 %v10626_v38, %v1800_v3  ;;  %8588 = vpow2.f32 %v1759_v15  ;;  %v1852_v46 = vpack.c.bf16 %v10554_v41, %v10546_v5  ;;  %v1851_v22 = vpack.c.bf16 %v10419_v55, %v10412_v49 }
 0x650   : > { %v1824_v24 = vadd.f32 %v10590_v14, %v1823_v31  ;;  %v1855_v14 = vpack.c.bf16 %v10449_v19, %v10442_v62  ;;  %8590 = vpow2.f32 %v1763_v42  ;;  %v1853_v19 = vpack.c.bf16 %v10435_v37, %v10426_v52 }
 0x651   : > { %v1802_v57 = vadd.f32 %v10634_v26, %v1801_v48  ;;  %1888 = vmatpush1.bf16.msra.mxu1 %v1857_v21  ;;  %8592 = vpow2.f32 %v1747_v53  ;;  %v1850_v32 = vpack.c.bf16 %v10537_v34, %v10534_v27  ;;  %v1849_v18 = vpack.c.bf16 %v16064_v29, %v10400_v39 }
 0x652   : > { %v1825_v59 = vadd.f32 %v10655_v56, %v1824_v24  ;;  %1889 = vmatprep.subr.bf16.mxu1 %v1856_v58  ;;  %v10668_v36 = vpop.eup %8570  ;;  %8594 = vpow2.f32 %v1751_v45  ;;  %v1879_v27 = vpack.c.bf16 %v10642_v40, %v10634_v26  ;;  %v1877_v39 = vpack.c.bf16 %v10626_v38, %v10617_v2  ;;  %v10699_v2 = vpop.permute.xlu0 %731  ;;  %v16069_v24 = vld [vmem:[#allocation39_spill] sm:$0xff] }
 0x653   : > { %v10650_v60 = vadd.f32 %v10642_v40, %v1802_v57  ;;  %v10671_v62 = vpop.eup %8572  ;;  %8596 = vpow2.f32 %v1755_v28  ;;  %v16065_v26 = vpack.c.bf16 %v10514_v6, %v10509_v50  ;;  %16068 = vst [vmem:[#allocation37_spill] sm:$0xff] %v10699_v2  ;;  %v16070_v58 = vpack.c.bf16 %v10492_v1, %v16069_v24  ;;  %v16071_v50 = vld [vmem:[#allocation64_spill] sm:$0xff]  ;;  %v16072_v6 = vld [vmem:[#allocation65_spill] sm:$0xff]  ;;  %v16077_v28 = vld [vmem:[#allocation23_spill] sm:$0xff] }
 0x654   : > { %v1826_v54 = vadd.f32 %v10658_v16, %v1825_v59  ;;  %v1869_v53 = vpack.c.bf16 %v16072_v6, %v16071_v50  ;;  %v1868_v59 = vpack.c.bf16 %v10671_v62, %v10668_v36  ;;  %v1866_v1 = vpack.c.bf16 %v10658_v16, %v10655_v56  ;;  %v16119_v24 = vld [vmem:[#allocation89_spill] sm:$0xff] }
 0x655   : > { %1890 = vmatpush1.bf16.msra.mxu1 %v1855_v14  ;;  %v8575_v43 = vpop.eup %8574  ;;  %v16085_v16 = vmov 0.0   ;;  %v16121_v50 = vld [vmem:[#allocation45_spill] sm:$0xff] }
 0x656   : > { %v1827_v4 = vadd.f32 %v10668_v36, %v1826_v54  ;;  %1891 = vmatprep.subr.bf16.mxu1 %v1854_v35  ;;  %v8577_v9 = vpop.eup %8576  ;;  %v16078_v35 = vld [vmem:[#allocation21_spill] sm:$0xff]  ;;  %v16081_v36 = vld [vmem:[#allocation22_spill] sm:$0xff] }
 0x657   : > { %v8579_v51 = vpop.eup %8578  ;;  %v1870_v38 = vpack.c.bf16 %v8577_v9, %v8575_v43 }
 0x658   : > { %v1828_v61 = vadd.f32 %v10671_v62, %v1827_v4  ;;  %v8581_v52 = vpop.eup %8580  ;;  %v16079_v4 = vld [vmem:[#allocation20_spill] sm:$0xff] }
 0x659   : > { %1892 = vmatpush1.bf16.msra.mxu1 %v1853_v19  ;;  %v8583_v3 = vpop.eup %8582  ;;  %v1050_v19 = vadd.f32 %v16079_v4, %v16078_v35  ;;  %v16130_v35 = vld [vmem:[#allocation11_spill] sm:$0xff] }
 0x65a   : > { %v1829_v23 = vadd.f32 %v8575_v43, %v1828_v61  ;;  %1893 = vmatprep.subr.bf16.mxu1 %v1852_v46  ;;  %v8585_v5 = vpop.eup %8584  ;;  %v1880_v11 = vpack.c.bf16 %v8583_v3, %v8581_v52  ;;  %v16082_v46 = vld [vmem:[#allocation41_spill] sm:$0xff]  ;;  %v16083_v43 = vld [vmem:[#allocation44_spill] sm:$0xff] }
 0x65b   : > { %811 = vperm.xlu1 %8447, %v713_v8   ;;  %v8587_v25 = vpop.eup %8586  ;;  %v1872_v21 = vpack.c.bf16 %v8585_v5, %v8579_v51  ;;  %v16067_v8 = vpack.c.bf16 %v10503_v20, %v10498_v10  ;;  %v16074_v10 = vld [vmem:[#allocation50_spill] sm:$0xff]  ;;  %v16075_v20 = vld [vmem:[#allocation55_spill] sm:$0xff] }
 0x65c   : > { %v1830_v37 = vadd.f32 %v8577_v9, %v1829_v23  ;;  %v8589_v44 = vpop.eup %8588  ;;  %v1867_v14 = vpack.c.bf16 %v16075_v20, %v16074_v10  ;;  %v1865_v9 = vpack.c.bf16 %v16083_v43, %v16082_v46  ;;  %v16126_v20 = vld [vmem:[#allocation51_spill] sm:$0xff]  ;;  %v16135_v43 = vld [vmem:[#allocation61_spill] sm:$0xff] }
 0x65d   : > { %1894 = vmatpush1.bf16.msra.mxu1 %v1851_v22  ;;  %v8591_v48 = vpop.eup %8590 }
 0x65e   : > { %v1831_v41 = vadd.f32 %v8579_v51, %v1830_v37  ;;  %1895 = vmatprep.subr.bf16.mxu1 %v1850_v32  ;;  %v8593_v55 = vpop.eup %8592  ;;  %v1878_v17 = vpack.c.bf16 %v8591_v48, %v8589_v44  ;;  %v16088_v37 = vld [vmem:[#allocation53_spill] sm:$0xff] }
 0x65f   : > { %736 = vperm.xlu1 %8447, %v698_v12   ;;  %v8595_v34 = vpop.eup %8594  ;;  %v1874_v15 = vpack.c.bf16 %v8593_v55, %v8587_v25  ;;  %v16076_v12 = vld [vmem:[#allocation43_spill] sm:$0xff] }
 0x660   : > { %v1832_v63 = vadd.f32 %v8585_v5, %v1831_v41  ;;  %v8597_v7 = vpop.eup %8596  ;;  %v976_v54 = vadd.f32 %v16077_v28, %v16076_v12  ;;  %v974_v62 = vadd.f32 %v16081_v36, %v16076_v12  ;;  %v16092_v41 = vld [vmem:[#allocation58_spill] sm:$0xff] }
 0x661   : > { %1896 = vmatpush1.bf16.msra.mxu1 %v1849_v18  ;;  %v1876_v57 = vpack.c.bf16 %v8597_v7, %v8595_v34  ;;  %v16095_v18 = vld [vmem:[#allocation62_spill] sm:$0xff] }
 0x662   : > { %v1833_v49 = vadd.f32 %v8587_v25, %v1832_v63  ;;  %1897 = vmatprep.subr.bf16.mxu1 %v1880_v11  ;;  %v1931_v23 = vmul.f32 0.5, %v976_v54  ;;  %v1930_v51 = vmul.f32 0.5, %v974_v62  ;;  %v16093_v25 = vld [vmem:[#allocation60_spill] sm:$0xff]  ;;  %v16098_v11 = vld [vmem:[#allocation66_spill] sm:$0xff]  ;;  %v16133_v62 = vld [vmem:[#allocation59_spill] sm:$0xff] }
 0x663   : > { %v16128_v12 = vld [vmem:[#allocation54_spill] sm:$0xff] }
 0x664   : > { %v1834_v13 = vadd.f32 %v8593_v55, %v1833_v49  ;;  %v16100_v49 = vld [vmem:[#allocation69_spill] sm:$0xff]  ;;  %v16129_v54 = vld [vmem:[#allocation10_spill] sm:$0xff] }
 0x665   : > { %1898 = vmatpush2.bf16.msra.mxu1 %v1879_v27  ;;  %v16102_v27 = vld [vmem:[#allocation72_spill] sm:$0xff] }
 0x666   : > { %776 = vperm.xlu0 %8446, %v706_v30   ;;  %v1835_v47 = vadd.f32 %v8595_v34, %v1834_v13  ;;  %1899 = vmatprep.subr.bf16.mxu1 %v1878_v17  ;;  %v1847_v30 = vpack.c.bf16 %v1050_v19, %v1050_v19  ;;  %v16105_v17 = vld [vmem:[#allocation74_spill] sm:$0xff]  ;;  %v16131_v19 = vld [vmem:[#allocation57_spill] sm:$0xff] }
 0x668   : > { %v1836_v33 = vadd.f32 %v8597_v7, %v1835_v47  ;;  %v16107_v47 = vld [vmem:[#allocation76_spill] sm:$0xff] }
 0x669   : > { %1900 = vmatpush2.bf16.msra.mxu1 %v1877_v39 }
 0x66a   : > { %v1837_v0 = vadd.f32 %v8589_v44, %v1836_v33  ;;  %1901 = vmatprep.subr.bf16.mxu1 %v1876_v57  ;;  %v16109_v33 = vld [vmem:[#allocation78_spill] sm:$0xff] }
 0x66c   : > { %v1838_v31 = vadd.f32 %v8591_v48, %v1837_v0 }
 0x66d   : > { %1902 = vmatpush2.bf16.msra.mxu1 %v16065_v26  ;;  %v16114_v26 = vld [vmem:[#allocation85_spill] sm:$0xff] }
 0x66e   : > { %v1839_v40 = vadd.f32 %v8581_v52, %v1838_v31  ;;  %1903 = vmatprep.subr.bf16.mxu1 %v1874_v15  ;;  %v16087_v52 = vld [vmem:[#allocation47_spill] sm:$0xff]  ;;  %v16112_v31 = vld [vmem:[#allocation80_spill] sm:$0xff] }
 0x670   : > { %v10694_v42 = vadd.f32 %v8583_v3, %v1839_v40  ;;  %v16090_v3 = vld [vmem:[#allocation56_spill] sm:$0xff] }
 0x671   : > { %1904 = vmatpush2.bf16.msra.mxu1 %v16067_v8 }
 0x672   : > { %16066 = vst [vmem:[#allocation68_spill] sm:$0xff] %v10694_v42  ;;  %1905 = vmatprep.subr.bf16.mxu1 %v1872_v21  ;;  %v16116_v21 = vld [vmem:[#allocation87_spill] sm:$0xff] }
 0x675   : > { %1906 = vmatpush2.bf16.msra.mxu1 %v16070_v58 }
 0x676   : > { %1907 = vmatprep.subr.bf16.mxu1 %v1870_v38 }
 0x679   : > { %1908 = vmatpush2.bf16.msra.mxu1 %v1869_v53  ;;  %v16123_v53 = vld [vmem:[#allocation48_spill] sm:$0xff] }
 0x67a   : > { %1909 = vmatprep.subr.bf16.mxu1 %v1868_v59 }
 0x67d   : > { %v10708_v45 = vpop.trf.xlu0  ;;  %1910 = vmatpush2.bf16.msra.mxu1 %v1867_v14  ;;  %v10752_v44 = vpop.trf.xlu1 }
 0x67e   : > { %16073 = vst [vmem:[#allocation71_spill] sm:$0xff] %v10708_v45  ;;  %1911 = vmatprep.subr.bf16.mxu1 %v1866_v1  ;;  %16096 = vst [vmem:[#allocation81_spill] sm:$0xff] %v10752_v44 }
 0x681   : > { %v10718_v61 = vpop.trf.xlu0  ;;  %1912 = vmatpush2.bf16.msra.mxu1 %v1865_v9  ;;  %v10760_v48 = vpop.trf.xlu1  ;;  %v16136_v9 = vld [vmem:[#allocation63_spill] sm:$0xff] }
 0x682   : > { %16080 = vst [vmem:[#allocation38_spill] sm:$0xff] %v10718_v61  ;;  %2122 = vmatprep.subr.mxu1 %v1931_v23  ;;  %16099 = vst [vmem:[#allocation36_spill] sm:$0xff] %v10760_v48 }
 0x684   : > { %1914 = vmatmul.mubr.bf16.vlgmr.msra.gmra.mxu1 %v1847_v30  ;;  %v16138_v30 = vld [vmem:[#allocation67_spill] sm:$0xff] }
 0x685   : > { %v10724_v56 = vpop.trf.xlu0  ;;  %2123 = vmatpush1.msra.mxu1 %v1930_v51  ;;  %2156 = vmatprep.mubr.f32.mxu1 %v16085_v16  ;;  %v10769_v34 = vpop.trf.xlu1 }
 0x686   : > { %16084 = vst [vmem:[#allocation40_spill] sm:$0xff] %v10724_v56  ;;  %16103 = vst [vmem:[#allocation64_spill] sm:$0xff] %v10769_v34 }
 0x689   : > { %v10727_v22 = vpop.trf.xlu0  ;;  %v10777_v7 = vpop.trf.xlu1 }
 0x68a   : > { %16086 = vst [vmem:[#allocation42_spill] sm:$0xff] %v10727_v22  ;;  %16106 = vst [vmem:[#allocation50_spill] sm:$0xff] %v10777_v7 }
 0x68c   : > { %8119 = vmatmul.mubr.msk.f32.vlgmr.msra.gmra.mxu1 %vm449_vm3, %v16087_v52  ;;  %v16140_v52 = vld [vmem:[#allocation70_spill] sm:$0xff] }
 0x68d   : > { %2162 = vmatprep.mubr.f32.mxu1 %v16085_v16  ;;  %v10734_v32 = vpop.trf.xlu0  ;;  %v10786_v57 = vpop.trf.xlu1 }
 0x68e   : > { %16089 = vst [vmem:[#allocation46_spill] sm:$0xff] %v10734_v32  ;;  %16110 = vst [vmem:[#allocation43_spill] sm:$0xff] %v10786_v57 }
 0x690   : > { %8120 = vmatmul.mubr.msk.f32.gmra.mxu1 %vm449_vm3, %v16088_v37  ;;  %v16141_v37 = vld [vmem:[#allocation73_spill] sm:$0xff] }
 0x691   : > { %2168 = vmatprep.mubr.f32.mxu1 %v16085_v16  ;;  %v10740_v5 = vpop.trf.xlu0  ;;  %v10794_v15 = vpop.trf.xlu1 }
 0x692   : > { %16091 = vst [vmem:[#allocation49_spill] sm:$0xff] %v10740_v5  ;;  %16113 = vst [vmem:[#allocation21_spill] sm:$0xff] %v10794_v15 }
 0x694   : > { %8121 = vmatmul.mubr.msk.f32.gmra.mxu1 %vm449_vm3, %v16090_v3 }
 0x695   : > { %2174 = vmatprep.mubr.f32.mxu1 %v16085_v16  ;;  %v10747_v29 = vpop.trf.xlu0  ;;  %v10803_v8 = vpop.trf.xlu1 }
 0x696   : > { %16094 = vst [vmem:[#allocation52_spill] sm:$0xff] %v10747_v29  ;;  %16117 = vst [vmem:[#allocation22_spill] sm:$0xff] %v10803_v8 }
 0x698   : > { %8122 = vmatmul.mubr.msk.f32.gmra.mxu1 %vm449_vm3, %v16092_v41  ;;  %v16143_v41 = vld [vmem:[#allocation75_spill] sm:$0xff] }
 0x699   : > { %2180 = vmatprep.mubr.f32.mxu1 %v16085_v16  ;;  %v10755_v63 = vpop.trf.xlu0  ;;  %v10811_v58 = vpop.trf.xlu1 }
 0x69a   : > { %16097 = vst [vmem:[#allocation83_spill] sm:$0xff] %v10755_v63  ;;  %16120 = vst [vmem:[#allocation44_spill] sm:$0xff] %v10811_v58 }
 0x69c   : > { %8123 = vmatmul.mubr.msk.f32.gmra.mxu1 %vm449_vm3, %v16093_v25 }
 0x69d   : > { %2186 = vmatprep.mubr.f32.mxu1 %v16085_v16  ;;  %v10764_v55 = vpop.trf.xlu0  ;;  %v10820_v59 = vpop.trf.xlu1 }
 0x69e   : > { %16101 = vst [vmem:[#allocation39_spill] sm:$0xff] %v10764_v55  ;;  %16124 = vst [vmem:[#allocation53_spill] sm:$0xff] %v10820_v59 }
 0x6a0   : > { %8124 = vmatmul.mubr.msk.f32.gmra.mxu1 %vm449_vm3, %v16095_v18  ;;  %v16145_v18 = vld [vmem:[#allocation77_spill] sm:$0xff] }
 0x6a1   : > { %2192 = vmatprep.mubr.f32.mxu1 %v16085_v16  ;;  %v10772_v13 = vpop.trf.xlu0  ;;  %v10828_v14 = vpop.trf.xlu1 }
 0x6a2   : > { %16104 = vst [vmem:[#allocation65_spill] sm:$0xff] %v10772_v13  ;;  %16127 = vst [vmem:[#allocation58_spill] sm:$0xff] %v10828_v14 }
 0x6a4   : > { %8125 = vmatmul.mubr.msk.f32.gmra.mxu1 %vm449_vm3, %v16098_v11  ;;  %v10873_v11 = vpop.f32.mrf.mxu1 }
 0x6a5   : > { %2198 = vmatprep.mubr.f32.mxu1 %v16085_v16  ;;  %v10781_v39 = vpop.trf.xlu0  ;;  %v10837_v36 = vpop.trf.xlu1  ;;  %16146 = vst [vmem:[#allocation76_spill] sm:$0xff] %v10873_v11 }
 0x6a6   : > { %16108 = vst [vmem:[#allocation55_spill] sm:$0xff] %v10781_v39  ;;  %16132 = vst [vmem:[#allocation60_spill] sm:$0xff] %v10837_v36 }
 0x6a8   : > { %8126 = vmatmul.mubr.msk.f32.gmra.mxu1 %vm449_vm3, %v16100_v49  ;;  %v16147_v49 = vld [vmem:[#allocation79_spill] sm:$0xff] }
 0x6a9   : > { %2204 = vmatprep.mubr.f32.mxu1 %v16085_v16  ;;  %v10789_v0 = vpop.trf.xlu0  ;;  %v10843_v46 = vpop.trf.xlu1 }
 0x6aa   : > { %16111 = vst [vmem:[#allocation23_spill] sm:$0xff] %v10789_v0  ;;  %16134 = vst [vmem:[#allocation62_spill] sm:$0xff] %v10843_v46 }
 0x6ac   : > { %8127 = vmatmul.mubr.msk.f32.gmra.mxu1 %vm449_vm3, %v16102_v27  ;;  %v1061_v27 = vpop.f32.mrf.mxu1 }
 0x6ad   : > { %2210 = vmatprep.mubr.f32.mxu1 %v16085_v16  ;;  %v10798_v40 = vpop.trf.xlu0  ;;  %v10850_v23 = vpop.trf.xlu1 }
 0x6ae   : > { %16115 = vst [vmem:[#allocation20_spill] sm:$0xff] %v10798_v40  ;;  %16137 = vst [vmem:[#allocation66_spill] sm:$0xff] %v10850_v23 }
 0x6b0   : > { %8128 = vmatmul.mubr.msk.f32.gmra.mxu1 %vm449_vm3, %v16105_v17 }
 0x6b1   : > { %2216 = vmatprep.mubr.f32.mxu1 %v16085_v16  ;;  %v10806_v38 = vpop.trf.xlu0  ;;  %v10856_v51 = vpop.trf.xlu1 }
 0x6b2   : > { %16118 = vst [vmem:[#allocation41_spill] sm:$0xff] %v10806_v38  ;;  %16139 = vst [vmem:[#allocation69_spill] sm:$0xff] %v10856_v51 }
 0x6b4   : > { %8129 = vmatmul.mubr.msk.f32.gmra.mxu1 %vm449_vm3, %v16107_v47 }
 0x6b5   : > { %2222 = vmatprep.mubr.f32.mxu1 %v16085_v16  ;;  %v10815_v6 = vpop.trf.xlu0  ;;  %v10863_v3 = vpop.trf.xlu1 }
 0x6b6   : > { %16122 = vst [vmem:[#allocation47_spill] sm:$0xff] %v10815_v6  ;;  %16142 = vst [vmem:[#allocation72_spill] sm:$0xff] %v10863_v3 }
 0x6b8   : > { %8130 = vmatmul.mubr.msk.f32.gmra.mxu1 %vm449_vm3, %v16109_v33  ;;  %v16149_v33 = vld [vmem:[#allocation82_spill] sm:$0xff] }
 0x6b9   : > { %2228 = vmatprep.mubr.f32.mxu1 %v16085_v16  ;;  %v10823_v10 = vpop.trf.xlu0  ;;  %v10869_v25 = vpop.trf.xlu1 }
 0x6ba   : > { %16125 = vst [vmem:[#allocation56_spill] sm:$0xff] %v10823_v10  ;;  %16144 = vst [vmem:[#allocation74_spill] sm:$0xff] %v10869_v25 }
 0x6bc   : > { %8131 = vmatmul.mubr.msk.f32.gmra.mxu1 %vm449_vm3, %v16112_v31 }
 0x6bd   : > { %2234 = vmatprep.mubr.f32.mxu1 %v16085_v16 }
 0x6c0   : > { %8132 = vmatmul.mubr.msk.f32.gmra.mxu1 %vm449_vm3, %v16114_v26  ;;  %v16150_v26 = vld [vmem:[#allocation86_spill] sm:$0xff] }
 0x6c1   : > { %2240 = vmatprep.mubr.f32.mxu1 %v16085_v16 }
 0x6c4   : > { %8133 = vmatmul.mubr.msk.f32.gmra.mxu1 %vm449_vm3, %v16116_v21  ;;  %v10887_v21 = vpop.f32.mrf.mxu1 }
 0x6c5   : > { %2246 = vmatprep.mubr.f32.mxu1 %v16085_v16  ;;  %16151 = vst [vmem:[#allocation80_spill] sm:$0xff] %v10887_v21 }
 0x6c8   : > { %8134 = vmatmul.mubr.msk.f32.gmra.mxu1 %vm449_vm3, %v16119_v24  ;;  %v1804_v24 = vrot.slane %v10650_v60, 4 }
 0x6c9   : > { %2252 = vmatprep.mubr.f32.mxu1 %v16085_v16 }
 0x6cc   : > { %8135 = vmatmul.mubr.msk.f32.gmra.mxu1 %vm449_vm3, %v16121_v50  ;;  %v10890_v50 = vpop.f32.mrf.mxu1 }
 0x6cd   : > { %2258 = vmatprep.mubr.f32.mxu1 %v16085_v16  ;;  %16152 = vst [vmem:[#allocation85_spill] sm:$0xff] %v10890_v50 }
 0x6d0   : > { %8136 = vmatmul.mubr.msk.f32.gmra.mxu1 %vm449_vm3, %v16123_v53  ;;  %v1805_v53 = vadd.f32 %v1804_v24, %v10650_v60 }
 0x6d1   : > { %2264 = vmatprep.mubr.f32.mxu1 %v16085_v16 }
 0x6d4   : > { %8137 = vmatmul.mubr.msk.f32.gmra.mxu1 %vm449_vm3, %v16126_v20  ;;  %v10893_v20 = vpop.f32.mrf.mxu1 }
 0x6d5   : > { %2270 = vmatprep.mubr.f32.mxu1 %v16085_v16  ;;  %16153 = vst [vmem:[#allocation87_spill] sm:$0xff] %v10893_v20 }
 0x6d6   : > { %v10878_v17 = vpop.permute.xlu1 %811 }
 0x6d7   : > { %16148 = vst [vmem:[#allocation78_spill] sm:$0xff] %v10878_v17  ;;  %v1062_v47 = vadd.f32 %v1061_v27, %v10878_v17 }
 0x6d8   : > { %8138 = vmatmul.mubr.msk.f32.gmra.mxu1 %vm449_vm3, %v16128_v12  ;;  %v1806_v12 = vrot.slane %v1805_v53, 2 }
 0x6d9   : > { %2276 = vmatprep.mubr.f32.mxu1 %v16085_v16  ;;  %v3532_v31 = vpack.c.bf16 %v1062_v47, %v1062_v47 }
 0x6dc   : > { %8139 = vmatmul.mubr.msk.f32.gmra.mxu1 %vm449_vm3, %v16131_v19  ;;  %v714_v19 = vld [vmem:[%s15721_s5 + $0x98] sm:$0xff] }
 0x6dd   : > { %2282 = vmatprep.mubr.f32.mxu1 %v16085_v16 }
 0x6e0   : > { %8140 = vmatmul.mubr.msk.f32.gmra.mxu1 %vm449_vm3, %v16133_v62 }
 0x6e1   : > { %v777_v28 = vpop.permute.xlu0 %776  ;;  %2288 = vmatprep.mubr.f32.mxu1 %v16085_v16 }
 0x6e2   : > { %v1024_v1 = vadd.f32 %v16129_v54, %v777_v28  ;;  %v1026_v4 = vadd.f32 %v16130_v35, %v777_v28  ;;  %v10895_v28 = vpop.f32.mrf.mxu1  ;;  %v1807_v54 = vadd.f32 %v1806_v12, %v1805_v53 }
 0x6e3   : > { %16154 = vst [vmem:[#allocation89_spill] sm:$0xff] %v10895_v28 }
 0x6e4   : > { %3616 = vxpose.xlu0.b32.start.end [1/1] (short) %v1024_v1, 128  ;;  %3648 = vxpose.xlu1.b32.start.end [1/1] (short) %v1026_v4, 128  ;;  %v10897_v1 = vpop.f32.mrf.mxu1  ;;  %v1808_v35 = vrot.slane %v1807_v54, 1 }
 0x6e5   : > { %8141 = vmatmul.mubr.msk.f32.gmra.mxu1 %vm449_vm3, %v16135_v43  ;;  %16155 = vst [vmem:[#allocation45_spill] sm:$0xff] %v10897_v1 }
 0x6e6   : > { %2294 = vmatprep.mubr.f32.mxu1 %v16085_v16  ;;  %v10899_v4 = vpop.f32.mrf.mxu1  ;;  %v1809_v62 = vadd.f32 %v1808_v35, %v1807_v54 }
 0x6e7   : > { %16156 = vst [vmem:[#allocation48_spill] sm:$0xff] %v10899_v4 }
 0x6e8   : > { %v10904_v43 = vpop.f32.mrf.mxu1  ;;  %8598 = vrcp.f32 %v1809_v62 }
 0x6e9   : > { %8142 = vmatmul.mubr.msk.f32.gmra.mxu1 %vm449_vm3, %v16136_v9  ;;  %16157 = vst [vmem:[#allocation51_spill] sm:$0xff] %v10904_v43  ;;  %v707_v9 = vld [vmem:[%s15721_s5 + $0x60] sm:$0xff] }
 0x6ea   : > { %2300 = vmatprep.mubr.f32.mxu1 %v16085_v16  ;;  %v10906_v60 = vpop.f32.mrf.mxu1 }
 0x6eb   : > { %16158 = vst [vmem:[#allocation54_spill] sm:$0xff] %v10906_v60 }
 0x6ed   : > { %8143 = vmatmul.mubr.msk.f32.gmra.mxu1 %vm449_vm3, %v16138_v30  ;;  %v10911_v30 = vpop.f32.mrf.mxu1 }
 0x6ee   : > { %2306 = vmatprep.mubr.f32.mxu1 %v16085_v16  ;;  %16159 = vst [vmem:[#allocation10_spill] sm:$0xff] %v10911_v30 }
 0x6f1   : > { %8144 = vmatmul.mubr.msk.f32.gmra.mxu1 %vm449_vm3, %v16140_v52  ;;  %v699_v52 = vld [vmem:[%s15721_s5 + $0x20] sm:$0xff] }
 0x6f2   : > { %2312 = vmatprep.mubr.f32.mxu1 %v16085_v16 }
 0x6f5   : > { %8145 = vmatmul.mubr.msk.f32.gmra.mxu1 %vm449_vm3, %v16141_v37  ;;  %v10916_v37 = vpop.f32.mrf.mxu1 }
 0x6f6   : > { %2318 = vmatprep.mubr.f32.mxu1 %v16085_v16  ;;  %16160 = vst [vmem:[#allocation11_spill] sm:$0xff] %v10916_v37 }
 0x6f9   : > { %8146 = vmatmul.mubr.msk.f32.gmra.mxu1 %vm449_vm3, %v16143_v41  ;;  %v8599_v41 = vpop.eup %8598 }
 0x6fa   : > { %2324 = vmatprep.mubr.f32.mxu1 %v16085_v16 }
 0x6fd   : > { %8147 = vmatmul.mubr.msk.f32.gmra.mxu1 %vm449_vm3, %v16145_v18 }
 0x6fe   : > { %2330 = vmatprep.mubr.f32.mxu1 %v16085_v16 }
 0x701   : > { %8148 = vmatmul.mubr.msk.f32.gmra.mxu1 %vm449_vm3, %v16147_v49 }
 0x702   : > { %2336 = vmatprep.mubr.f32.mxu1 %v16085_v16 }
 0x705   : > { %8149 = vmatmul.mubr.msk.f32.gmra.mxu1 %vm449_vm3, %v16149_v33 }
 0x706   : > { %2342 = vmatprep.mubr.f32.mxu1 %v16085_v16 }
 0x709   : > { %8150 = vmatmul.mubr.msk.f32.gmra.mxu1 %vm449_vm3, %v16150_v26 }
 0x70a   : > { %3597 = vmatprep.mubr.bf16.mxu1 %v3532_v31 }
 0x73e   : > { %816 = vperm.xlu1 %8447, %v714_v19  }
 0x744   : > { %v1915_v18 = vpop.f32.mrf.mxu1 }
 0x745   : > { %v10918_v49 = vmul.f32 %v8599_v41, %v1915_v18 }
 0x746   : > { %v10920_v27 = vpop.f32.mrf.mxu1 }
 0x747   : > { %16161 = vst [vmem:[#allocation57_spill] sm:$0xff] %v10918_v49  ;;  %16162 = vst [vmem:[#allocation59_spill] sm:$0xff] %v10920_v27 }
 0x748   : > { %v1919_v47 = vpop.f32.mrf.mxu1 }
 0x749   : > { %781 = vperm.xlu0 %8446, %v707_v9  }
 0x74a   : > { %v1920_v33 = vpop.f32.mrf.mxu1 }
 0x74c   : > { %v10922_v31 = vpop.f32.mrf.mxu1 }
 0x74d   : > { %741 = vperm.xlu0 %8446, %v699_v52  }
 0x74e   : > { %v10924_v26 = vpop.f32.mrf.mxu1 }
 0x750   : > { %v10926_v24 = vpop.f32.mrf.mxu1 }
 0x752   : > { %v10928_v53 = vpop.f32.mrf.mxu1 }
 0x754   : > { %v10930_v12 = vpop.f32.mrf.mxu1 }
 0x756   : > { %v10932_v54 = vpop.f32.mrf.mxu1 }
 0x758   : > { %v10934_v35 = vpop.f32.mrf.mxu1 }
 0x759   : > { %v2350_v14 = vmax.f32 %v10926_v24, %v10934_v35 }
 0x75a   : > { %v10936_v19 = vpop.f32.mrf.mxu1 }
 0x75b   : > { %16163 = vst [vmem:[#allocation61_spill] sm:$0xff] %v10936_v19 }
 0x75c   : > { %v10938_v62 = vpop.f32.mrf.mxu1 }
 0x75e   : > { %v10940_v9 = vpop.f32.mrf.mxu1 }
 0x760   : > { %v10942_v52 = vpop.f32.mrf.mxu1  ;;  %v10948_v47 = vpop.trf.xlu0 }
 0x761   : > { %16165 = vst [vmem:[#allocation67_spill] sm:$0xff] %v10948_v47  ;;  %v2352_v58 = vmax.f32 %v2350_v14, %v10942_v52 }
 0x762   : > { %v10944_v41 = vpop.f32.mrf.mxu1 }
 0x763   : > { %16164 = vst [vmem:[#allocation63_spill] sm:$0xff] %v10944_v41 }
 0x764   : > { %v10946_v18 = vpop.f32.mrf.mxu1  ;;  %v10956_v37 = vpop.trf.xlu0 }
 0x765   : > { %16167 = vst [vmem:[#allocation73_spill] sm:$0xff] %v10956_v37 }
 0x766   : > { %v10950_v33 = vpop.f32.mrf.mxu1 }
 0x768   : > { %v10952_v30 = vpop.f32.mrf.mxu1  ;;  %v10964_v4 = vpop.trf.xlu0 }
 0x769   : > { %16171 = vst [vmem:[#allocation82_spill] sm:$0xff] %v10964_v4  ;;  %v2354_v57 = vmax.f32 %v2352_v58, %v10952_v30 }
 0x76a   : > { %v10954_v43 = vpop.f32.mrf.mxu1 }
 0x76b   : > { %16166 = vst [vmem:[#allocation70_spill] sm:$0xff] %v10954_v43 }
 0x76c   : > { %v10958_v1 = vpop.f32.mrf.mxu1  ;;  %v10972_v11 = vpop.trf.xlu0 }
 0x76d   : > { %16168 = vst [vmem:[#allocation75_spill] sm:$0xff] %v10958_v1  ;;  %16174 = vst [vmem:[#allocation91_spill] sm:$0xff] %v10972_v11 }
 0x76e   : > { %v10960_v60 = vpop.f32.mrf.mxu1 }
 0x76f   : > { %16169 = vst [vmem:[#allocation77_spill] sm:$0xff] %v10960_v60 }
 0x770   : > { %v10962_v20 = vpop.f32.mrf.mxu1  ;;  %v10980_v27 = vpop.trf.xlu0 }
 0x771   : > { %16170 = vst [vmem:[#allocation79_spill] sm:$0xff] %v10962_v20  ;;  %16177 = vst [vmem:[#allocation94_spill] sm:$0xff] %v10980_v27  ;;  %v2356_v48 = vmax.f32 %v2354_v57, %v10962_v20 }
 0x772   : > { %v10966_v21 = vpop.f32.mrf.mxu1 }
 0x773   : > { %16172 = vst [vmem:[#allocation86_spill] sm:$0xff] %v10966_v21 }
 0x774   : > { %v10968_v28 = vpop.f32.mrf.mxu1  ;;  %v10988_v6 = vpop.trf.xlu0 }
 0x775   : > { %16173 = vst [vmem:[#allocation90_spill] sm:$0xff] %v10968_v28  ;;  %16179 = vst [vmem:[#allocation96_spill] sm:$0xff] %v10988_v6 }
 0x776   : > { %v10970_v47 = vpop.f32.mrf.mxu1 }
 0x778   : > { %v10974_v17 = vpop.f32.mrf.mxu1  ;;  %v10996_v40 = vpop.trf.xlu0 }
 0x779   : > { %16175 = vst [vmem:[#allocation92_spill] sm:$0xff] %v10974_v17  ;;  %16180 = vst [vmem:[#allocation97_spill] sm:$0xff] %v10996_v40  ;;  %v2358_v14 = vmax.f32 %v2356_v48, %v10974_v17 }
 0x77a   : > { %v10976_v49 = vpop.f32.mrf.mxu1 }
 0x77c   : > { %v10978_v37 = vpop.f32.mrf.mxu1  ;;  %v11004_v13 = vpop.trf.xlu0 }
 0x77d   : > { %16176 = vst [vmem:[#allocation93_spill] sm:$0xff] %v10978_v37  ;;  %16181 = vst [vmem:[#allocation98_spill] sm:$0xff] %v11004_v13 }
 0x77e   : > { %v10982_v42 = vpop.f32.mrf.mxu1 }
 0x780   : > { %v10984_v10 = vpop.f32.mrf.mxu1  ;;  %v11010_v6 = vpop.trf.xlu0 }
 0x781   : > { %16178 = vst [vmem:[#allocation95_spill] sm:$0xff] %v10984_v10  ;;  %16183 = vst [vmem:[#allocation100_spill] sm:$0xff] %v11010_v6  ;;  %v2360_v58 = vmax.f32 %v2358_v14, %v10984_v10 }
 0x782   : > { %v10986_v4 = vpop.f32.mrf.mxu1 }
 0x784   : > { %v10990_v50 = vpop.f32.mrf.mxu1  ;;  %v11016_v32 = vpop.trf.xlu0 }
 0x785   : > { %16184 = vst [vmem:[#allocation101_spill] sm:$0xff] %v11016_v32 }
 0x786   : > { %v10992_v38 = vpop.f32.mrf.mxu1 }
 0x788   : > { %v10994_v11 = vpop.f32.mrf.mxu1  ;;  %v11022_v56 = vpop.trf.xlu0 }
 0x789   : > { %16185 = vst [vmem:[#allocation102_spill] sm:$0xff] %v11022_v56  ;;  %v2362_v57 = vmax.f32 %v2360_v58, %v10994_v11  ;;  %v2387_v58 = vmax.f32 %v10928_v53, %v10936_v19 }
 0x78a   : > { %v10998_v0 = vpop.f32.mrf.mxu1 }
 0x78c   : > { %v11000_v39 = vpop.f32.mrf.mxu1  ;;  %v11028_v45 = vpop.trf.xlu0 }
 0x78d   : > { %16186 = vst [vmem:[#allocation103_spill] sm:$0xff] %v11028_v45  ;;  %v2349_v45 = vmax.f32 %v10922_v31, %v10930_v12 }
 0x78e   : > { %v11002_v27 = vpop.f32.mrf.mxu1 }
 0x790   : > { %v11006_v55 = vpop.f32.mrf.mxu1  ;;  %v11034_v3 = vpop.trf.xlu0 }
 0x791   : > { %16182 = vst [vmem:[#allocation99_spill] sm:$0xff] %v11006_v55  ;;  %16188 = vst [vmem:[#allocation105_spill] sm:$0xff] %v11034_v3  ;;  %v2351_v3 = vmax.f32 %v2349_v45, %v10938_v62  ;;  %v2364_v48 = vmax.f32 %v2362_v57, %v11006_v55 }
 0x792   : > { %v11008_v63 = vpop.f32.mrf.mxu1 }
 0x794   : > { %v11012_v29 = vpop.f32.mrf.mxu1  ;;  %v11042_v46 = vpop.trf.xlu0 }
 0x795   : > { %16189 = vst [vmem:[#allocation106_spill] sm:$0xff] %v11042_v46  ;;  %v2353_v46 = vmax.f32 %v2351_v3, %v10946_v18 }
 0x796   : > { %v11014_v5 = vpop.f32.mrf.mxu1 }
 0x797   : > { %v2355_v34 = vmax.f32 %v2353_v46, %v10958_v1 }
 0x798   : > { %v11018_v40 = vpop.f32.mrf.mxu1  ;;  %v11056_v8 = vpop.trf.xlu0 }
 0x799   : > { %16190 = vst [vmem:[#allocation107_spill] sm:$0xff] %v11056_v8  ;;  %v2357_v45 = vmax.f32 %v2355_v34, %v10968_v28  ;;  %v16193_v28 = vld [vmem:[#allocation12_spill] sm:$0xff]  ;;  %v2366_v10 = vmax.f32 %v2364_v48, %v11018_v40 }
 0x79a   : > { %v11020_v22 = vpop.f32.mrf.mxu1 }
 0x79b   : > { %v2359_v3 = vmax.f32 %v2357_v45, %v10978_v37  ;;  %v16194_v45 = vld [vmem:[#allocation13_spill] sm:$0xff] }
 0x79c   : > { %v11024_v61 = vpop.f32.mrf.mxu1  ;;  %v11070_v16 = vpop.trf.xlu0 }
 0x79d   : > { %16191 = vst [vmem:[#allocation108_spill] sm:$0xff] %v11070_v16  ;;  %v2361_v46 = vmax.f32 %v2359_v3, %v10990_v50 }
 0x79e   : > { %v11026_v13 = vpop.f32.mrf.mxu1 }
 0x79f   : > { %v2363_v34 = vmax.f32 %v2361_v46, %v11000_v39 }
 0x7a0   : > { %v11030_v25 = vpop.f32.mrf.mxu1 }
 0x7a1   : > { %16187 = vst [vmem:[#allocation104_spill] sm:$0xff] %v11030_v25  ;;  %v2365_v14 = vmax.f32 %v2363_v34, %v11012_v29  ;;  %v2368_v57 = vmax.f32 %v2366_v10, %v11030_v25 }
 0x7a2   : > { %v11032_v6 = vpop.f32.mrf.mxu1 }
 0x7a3   : > { %v2367_v46 = vmax.f32 %v2365_v14, %v11024_v61 }
 0x7a5   : > { %v11036_v51 = vpop.f32.mrf.mxu1 }
 0x7a6   : > { %v2369_v34 = vmax.f32 %v2367_v46, %v11036_v51 }
 0x7a7   : > { %v11038_v32 = vpop.f32.mrf.mxu1 }
 0x7a9   : > { %v11040_v23 = vpop.f32.mrf.mxu1 }
 0x7aa   : > { %v2370_v48 = vmax.f32 %v2368_v57, %v11040_v23 }
 0x7ab   : > { %v11044_v56 = vpop.f32.mrf.mxu1 }
 0x7ad   : > { %v11046_v36 = vpop.f32.mrf.mxu1 }
 0x7ae   : > { %v2371_v14 = vmax.f32 %v2369_v34, %v11046_v36 }
 0x7af   : > { %v11052_v59 = vpop.f32.mrf.mxu1 }
 0x7b1   : > { %v11058_v15 = vpop.f32.mrf.mxu1 }
 0x7b2   : > { %v2372_v10 = vmax.f32 %v2370_v48, %v11058_v15 }
 0x7b3   : > { %v11062_v7 = vpop.f32.mrf.mxu1 }
 0x7b5   : > { %v11066_v44 = vpop.f32.mrf.mxu1 }
 0x7b6   : > { %v2373_v46 = vmax.f32 %v2371_v14, %v11066_v44 }
 0x7b7   : > { %v11072_v8 = vpop.f32.mrf.mxu1 }
 0x7b9   : > { %v11076_v2 = vpop.f32.mrf.mxu1 }
 0x7ba   : > { %v2374_v57 = vmax.f32 %v2372_v10, %v11076_v2 }
 0x7bb   : > { %v11080_v20 = vpop.f32.mrf.mxu1 }
 0x7bd   : > { %v11084_v16 = vpop.f32.mrf.mxu1 }
 0x7be   : > { %16192 = vst [vmem:[#allocation109_spill] sm:$0xff] %v11084_v16  ;;  %v2375_v34 = vmax.f32 %v2373_v46, %v11084_v16 }
 0x7bf   : > { %v11090_v3 = vpop.f32.mrf.mxu1 }
 0x7c1   : > { %v11096_v55 = vpop.f32.mrf.mxu1 }
 0x7c2   : > { %16195 = vst [vmem:[#allocation12_spill] sm:$0xff] %v11096_v55  ;;  %v2376_v48 = vmax.f32 %v2374_v57, %v11096_v55 }
 0x7c4   : > { %v782_v17 = vpop.permute.xlu0 %781 }
 0x7c5   : > { %v1030_v1 = vadd.f32 %v16193_v28, %v782_v17  ;;  %v1032_v37 = vadd.f32 %v16194_v45, %v782_v17  ;;  %v2386_v17 = vmax.f32 %v10924_v26, %v10932_v54  ;;  %v2389_v28 = vmax.f32 %v2387_v58, %v10944_v41 }
 0x7c7   : > { %4490 = vxpose.xlu0.b32.start.end [1/1] (short) %v1032_v37, 128  ;;  %4458 = vxpose.xlu1.b32.start.end [1/1] (short) %v1030_v1, 128  ;;  %v11103_v37 = vpop.f32.mrf.mxu1  ;;  %v2388_v1 = vmax.f32 %v2386_v17, %v10940_v9  ;;  %v2391_v45 = vmax.f32 %v2389_v28, %v10954_v43 }
 0x7c9   : > { %v11109_v25 = vpop.f32.mrf.mxu1  ;;  %v2390_v19 = vmax.f32 %v2388_v1, %v10950_v33  ;;  %v2393_v58 = vmax.f32 %v2391_v45, %v10966_v21 }
 0x7ca   : > { %v2377_v14 = vmax.f32 %v2375_v34, %v11109_v25 }
 0x7cb   : > { %v11115_v41 = vpop.f32.mrf.mxu1  ;;  %v2392_v17 = vmax.f32 %v2390_v19, %v10960_v60  ;;  %v2395_v28 = vmax.f32 %v2393_v58, %v10976_v49 }
 0x7cd   : > { %v11121_v43 = vpop.f32.mrf.mxu1  ;;  %v2394_v1 = vmax.f32 %v2392_v17, %v10970_v47  ;;  %v2397_v45 = vmax.f32 %v2395_v28, %v10986_v4 }
 0x7ce   : > { %v2378_v10 = vmax.f32 %v2376_v48, %v11121_v43 }
 0x7cf   : > { %v2396_v21 = vmax.f32 %v2394_v1, %v10982_v42  ;;  %v2399_v19 = vmax.f32 %v2397_v45, %v10998_v0 }
 0x7d0   : > { %v2379_v60 = vmax.f32 %v2377_v14, %v2378_v10 }
 0x7d1   : > { %v2398_v58 = vmax.f32 %v2396_v21, %v10992_v38  ;;  %v2401_v46 = vmax.f32 %v2399_v19, %v11008_v63 }
 0x7d2   : > { %v2380_v57 = vrot.slane %v2379_v60, 4 }
 0x7d3   : > { %v2400_v55 = vmax.f32 %v2398_v58, %v11002_v27  ;;  %v2403_v17 = vmax.f32 %v2401_v46, %v11020_v22 }
 0x7d4   : > { %v2381_v16 = vmax.f32 %v2379_v60, %v2380_v57  ;;  %v11141_v60 = vpop.f32.mrf.mxu1 }
 0x7d5   : > { %v2402_v28 = vmax.f32 %v2400_v55, %v11014_v5  ;;  %v2405_v34 = vmax.f32 %v2403_v17, %v11032_v6 }
 0x7d6   : > { %v2382_v48 = vrot.slane %v2381_v16, 2 }
 0x7d7   : > { %v2404_v1 = vmax.f32 %v2402_v28, %v11026_v13  ;;  %v2407_v45 = vmax.f32 %v2405_v34, %v11044_v56 }
 0x7d8   : > { %v2383_v14 = vmax.f32 %v2381_v16, %v2382_v48 }
 0x7d9   : > { %v2406_v21 = vmax.f32 %v2404_v1, %v11038_v32  ;;  %v2409_v10 = vmax.f32 %v2407_v45, %v11062_v7 }
 0x7da   : > { %v2384_v19 = vrot.slane %v2383_v14, 1 }
 0x7db   : > { %v2408_v58 = vmax.f32 %v2406_v21, %v11052_v59  ;;  %v2411_v46 = vmax.f32 %v2409_v10, %v11080_v20 }
 0x7dc   : > { %v11145_v17 = vmax.f32 %v2383_v14, %v2384_v19 }
 0x7dd   : > { %v2410_v55 = vmax.f32 %v2408_v58, %v11072_v8  ;;  %v2413_v57 = vmax.f32 %v2411_v46, %v11103_v37 }
 0x7de   : > { %v2423_v48 = vsub.f32 %v10922_v31, %v11145_v17  ;;  %v2425_v1 = vsub.f32 %v10926_v24, %v11145_v17  ;;  %v2427_v45 = vsub.f32 %v10930_v12, %v11145_v17  ;;  %v2429_v14 = vsub.f32 %v10934_v35, %v11145_v17 }
 0x7df   : > { %v2412_v28 = vmax.f32 %v2410_v55, %v11090_v3  ;;  %v2415_v16 = vmax.f32 %v2413_v57, %v11141_v60  ;;  %v2431_v58 = vsub.f32 %v10938_v62, %v11145_v17  ;;  %v2433_v31 = vsub.f32 %v10942_v52, %v11145_v17  ;;  %v16196_v62 = vld [vmem:[#allocation75_spill] sm:$0xff] }
 0x7e0   : > { %v2487_v10 = vmul.f32 1.442695, %v2423_v48  ;;  %v2491_v19 = vmul.f32 1.442695, %v2425_v1  ;;  %v2495_v46 = vmul.f32 1.442695, %v2427_v45  ;;  %v2435_v12 = vsub.f32 %v10946_v18, %v11145_v17 }
 0x7e1   : > { %v2414_v34 = vmax.f32 %v2412_v28, %v11115_v41  ;;  %v2499_v24 = vmul.f32 1.442695, %v2429_v14  ;;  %v2503_v57 = vmul.f32 1.442695, %v2431_v58  ;;  %v2437_v35 = vsub.f32 %v10952_v30, %v11145_v17  ;;  %v16197_v52 = vld [vmem:[#allocation79_spill] sm:$0xff]  ;;  %v16198_v14 = vld [vmem:[#allocation90_spill] sm:$0xff] }
 0x7e2   : > { %8600 = vpow2.f32 %v2487_v10  ;;  %v2511_v48 = vmul.f32 1.442695, %v2435_v12  ;;  %v2441_v1 = vsub.f32 %v16197_v52, %v11145_v17  ;;  %v2443_v18 = vsub.f32 %v16198_v14, %v11145_v17  ;;  %v16200_v30 = vld [vmem:[#allocation93_spill] sm:$0xff] }
 0x7e3   : > { %v2416_v21 = vmax.f32 %v2414_v34, %v2415_v16  ;;  %8602 = vpow2.f32 %v2491_v19  ;;  %v2507_v16 = vmul.f32 1.442695, %v2433_v31  ;;  %v2439_v34 = vsub.f32 %v16196_v62, %v11145_v17 }
 0x7e4   : > { %8604 = vpow2.f32 %v2495_v46  ;;  %v2515_v10 = vmul.f32 1.442695, %v2437_v35  ;;  %v2447_v58 = vsub.f32 %v16200_v30, %v11145_v17  ;;  %v2451_v62 = vsub.f32 %v10990_v50, %v11145_v17 }
 0x7e5   : > { %v2417_v55 = vrot.slane %v2416_v21, 4  ;;  %8606 = vpow2.f32 %v2499_v24  ;;  %v2519_v46 = vmul.f32 1.442695, %v2439_v34  ;;  %v2523_v24 = vmul.f32 1.442695, %v2441_v1 }
 0x7e6   : > { %8608 = vpow2.f32 %v2503_v57  ;;  %v2527_v35 = vmul.f32 1.442695, %v2443_v18  ;;  %v2467_v52 = vsub.f32 %v11036_v51, %v11145_v17  ;;  %v2469_v34 = vsub.f32 %v11040_v23, %v11145_v17 }
 0x7e7   : > { %v2418_v28 = vmax.f32 %v2416_v21, %v2417_v55  ;;  %8610 = vpow2.f32 %v2507_v16  ;;  %v16199_v21 = vld [vmem:[#allocation92_spill] sm:$0xff]  ;;  %v16201_v55 = vld [vmem:[#allocation95_spill] sm:$0xff]  ;;  %v2471_v50 = vsub.f32 %v11046_v36, %v11145_v17  ;;  %v2473_v51 = vsub.f32 %v11058_v15, %v11145_v17 }
 0x7e8   : > { %v2445_v19 = vsub.f32 %v16199_v21, %v11145_v17  ;;  %8612 = vpow2.f32 %v2511_v48  ;;  %v2449_v31 = vsub.f32 %v16201_v55, %v11145_v17  ;;  %v2535_v48 = vmul.f32 1.442695, %v2447_v58 }
 0x7e9   : > { %v2419_v45 = vrot.slane %v2418_v28, 2  ;;  %8614 = vpow2.f32 %v2515_v10  ;;  %v2543_v10 = vmul.f32 1.442695, %v2451_v62  ;;  %v2575_v30 = vmul.f32 1.442695, %v2467_v52  ;;  %v16203_v52 = vld [vmem:[#allocation99_spill] sm:$0xff] }
 0x7ea   : > { %v2531_v14 = vmul.f32 1.442695, %v2445_v19  ;;  %8616 = vpow2.f32 %v2519_v46  ;;  %v2475_v19 = vsub.f32 %v11066_v44, %v11145_v17  ;;  %v2477_v36 = vsub.f32 %v11076_v2, %v11145_v17 }
 0x7eb   : > { %v2420_v12 = vmax.f32 %v2418_v28, %v2419_v45  ;;  %8618 = vpow2.f32 %v2523_v24  ;;  %v2539_v45 = vmul.f32 1.442695, %v2449_v31  ;;  %v2579_v58 = vmul.f32 1.442695, %v2469_v34 }
 0x7ec   : > { %8620 = vpow2.f32 %v2527_v35  ;;  %v2453_v15 = vsub.f32 %v10994_v11, %v11145_v17  ;;  %v2583_v31 = vmul.f32 1.442695, %v2471_v50  ;;  %v2455_v44 = vsub.f32 %v11000_v39, %v11145_v17 }
 0x7ed   : > { %v2421_v18 = vrot.slane %v2420_v12, 1  ;;  %8622 = vpow2.f32 %v2531_v14  ;;  %v2587_v62 = vmul.f32 1.442695, %v2473_v51  ;;  %v2457_v14 = vsub.f32 %v16203_v52, %v11145_v17 }
 0x7ee   : > { %8624 = vpow2.f32 %v2535_v48  ;;  %v2591_v34 = vmul.f32 1.442695, %v2475_v19  ;;  %v2459_v11 = vsub.f32 %v11012_v29, %v11145_v17  ;;  %v2547_v39 = vmul.f32 1.442695, %v2453_v15  ;;  %v16204_v15 = vld [vmem:[#allocation61_spill] sm:$0xff] }
 0x7ef   : > { %v11178_v57 = vpop.eup %8600  ;;  %8626 = vpow2.f32 %v2539_v45  ;;  %v11208_v24 = vmax.f32 %v2420_v12, %v2421_v18  ;;  %v2595_v12 = vmul.f32 1.442695, %v2477_v36  ;;  %v2551_v45 = vmul.f32 1.442695, %v2455_v44 }
 0x7f0   : > { %v11182_v16 = vpop.eup %8602  ;;  %8628 = vpow2.f32 %v2543_v10  ;;  %v2461_v29 = vsub.f32 %v11018_v40, %v11145_v17  ;;  %v2559_v19 = vmul.f32 1.442695, %v2459_v11 }
 0x7f1   : > { %16202 = vst [vmem:[#allocation13_spill] sm:$0xff] %v11182_v16  ;;  %v2615_v28 = vadd.f32 %v11182_v16, %v11178_v57  ;;  %v11190_v1 = vpop.eup %8604  ;;  %8630 = vpow2.f32 %v2575_v30  ;;  %v2424_v50 = vsub.f32 %v10924_v26, %v11208_v24  ;;  %v2426_v51 = vsub.f32 %v10928_v53, %v11208_v24 }
 0x7f2   : > { %v11197_v21 = vpop.eup %8606  ;;  %8632 = vpow2.f32 %v2579_v58  ;;  %v2428_v26 = vsub.f32 %v10932_v54, %v11208_v24  ;;  %v2463_v58 = vsub.f32 %v11024_v61, %v11145_v17  ;;  %v16205_v54 = vld [vmem:[#allocation104_spill] sm:$0xff]  ;;  %v2563_v52 = vmul.f32 1.442695, %v2461_v29 }
 0x7f3   : > { %v2616_v23 = vadd.f32 %v11190_v1, %v2615_v28  ;;  %v11204_v55 = vpop.eup %8608  ;;  %8634 = vpow2.f32 %v2583_v31  ;;  %v2489_v53 = vmul.f32 1.442695, %v2424_v50  ;;  %v2430_v31 = vsub.f32 %v16204_v15, %v11208_v24 }
 0x7f4   : > { %v11213_v35 = vpop.eup %8610  ;;  %8636 = vpow2.f32 %v2587_v62  ;;  %v2493_v44 = vmul.f32 1.442695, %v2426_v51  ;;  %v2497_v11 = vmul.f32 1.442695, %v2428_v26  ;;  %v2436_v51 = vsub.f32 %v10950_v33, %v11208_v24 }
 0x7f5   : > { %v2617_v46 = vadd.f32 %v11197_v21, %v2616_v23  ;;  %v11220_v28 = vpop.eup %8612  ;;  %v2555_v23 = vmul.f32 1.442695, %v2457_v14  ;;  %8638 = vpow2.f32 %v2591_v34  ;;  %v2432_v34 = vsub.f32 %v10940_v9, %v11208_v24 }
 0x7f6   : > { %v11227_v10 = vpop.eup %8614  ;;  %8640 = vpow2.f32 %v2595_v12  ;;  %v2501_v29 = vmul.f32 1.442695, %v2430_v31  ;;  %v2448_v33 = vsub.f32 %v10982_v42, %v11208_v24  ;;  %v2450_v31 = vsub.f32 %v10986_v4, %v11208_v24 }
 0x7f7   : > { %v2618_v2 = vadd.f32 %v11204_v55, %v2617_v46  ;;  %v11234_v36 = vpop.eup %8616  ;;  %8642 = vpow2.f32 %v2547_v39  ;;  %v16206_v39 = vld [vmem:[#allocation63_spill] sm:$0xff]  ;;  %v2505_v15 = vmul.f32 1.442695, %v2432_v34  ;;  %v2454_v42 = vsub.f32 %v10998_v0, %v11208_v24 }
 0x7f8   : > { %v11238_v46 = vpop.eup %8618  ;;  %8644 = vpow2.f32 %v2551_v45  ;;  %v2434_v50 = vsub.f32 %v16206_v39, %v11208_v24 }
 0x7f9   : > { %v2619_v48 = vadd.f32 %v11213_v35, %v2618_v2  ;;  %v11243_v62 = vpop.eup %8620  ;;  %v2465_v2 = vsub.f32 %v16205_v54, %v11145_v17  ;;  %8646 = vpow2.f32 %v2555_v23 }
 0x7fa   : > { %v11247_v14 = vpop.eup %8622  ;;  %8648 = vpow2.f32 %v2559_v19  ;;  %v16207_v19 = vld [vmem:[#allocation70_spill] sm:$0xff] }
 0x7fb   : > { %v2620_v18 = vadd.f32 %v11220_v28, %v2619_v48  ;;  %v11252_v12 = vpop.eup %8624  ;;  %v2567_v48 = vmul.f32 1.442695, %v2463_v58  ;;  %8650 = vpow2.f32 %v2489_v53  ;;  %v2571_v9 = vmul.f32 1.442695, %v2465_v2  ;;  %v16209_v53 = vld [vmem:[#allocation77_spill] sm:$0xff] }
 0x7fc   : > { %v11256_v45 = vpop.eup %8626  ;;  %8652 = vpow2.f32 %v2493_v44  ;;  %v2509_v44 = vmul.f32 1.442695, %v2434_v50 }
 0x7fd   : > { %v2621_v30 = vadd.f32 %v11227_v10, %v2620_v18  ;;  %v11261_v23 = vpop.eup %8628  ;;  %8654 = vpow2.f32 %v2563_v52 }
 0x7fe   : > { %v11265_v26 = vpop.eup %8630  ;;  %8656 = vpow2.f32 %v2497_v11 }
 0x7ff   : > { %v2622_v40 = vadd.f32 %v11234_v36, %v2621_v30  ;;  %v2438_v30 = vsub.f32 %v16207_v19, %v11208_v24  ;;  %16208 = vst [vmem:[#allocation75_spill] sm:$0xff] %v11265_v26  ;;  %v11270_v54 = vpop.eup %8632  ;;  %8658 = vpow2.f32 %v2567_v48  ;;  %v2452_v48 = vsub.f32 %v10992_v38, %v11208_v24 }
 0x800   : > { %16210 = vst [vmem:[#allocation79_spill] sm:$0xff] %v11270_v54  ;;  %v11276_v2 = vpop.eup %8634  ;;  %8660 = vpow2.f32 %v2501_v29  ;;  %v2537_v38 = vmul.f32 1.442695, %v2448_v33 }
 0x801   : > { %v2623_v61 = vadd.f32 %v11238_v46, %v2622_v40  ;;  %v2440_v40 = vsub.f32 %v16209_v53, %v11208_v24  ;;  %v11281_v34 = vpop.eup %8636  ;;  %8662 = vpow2.f32 %v2571_v9  ;;  %v2517_v4 = vmul.f32 1.442695, %v2438_v30  ;;  %v16211_v9 = vld [vmem:[#allocation86_spill] sm:$0xff] }
 0x802   : > { %v11287_v39 = vpop.eup %8638  ;;  %8664 = vpow2.f32 %v2505_v15  ;;  %v2442_v19 = vsub.f32 %v16211_v9, %v11208_v24  ;;  %v2541_v30 = vmul.f32 1.442695, %v2450_v31  ;;  %v2444_v15 = vsub.f32 %v10970_v47, %v11208_v24 }
 0x803   : > { %v2624_v18 = vadd.f32 %v11243_v62, %v2623_v61  ;;  %v2513_v61 = vmul.f32 1.442695, %v2436_v51  ;;  %v11292_v29 = vpop.eup %8640  ;;  %8666 = vpow2.f32 %v2509_v44  ;;  %v2446_v44 = vsub.f32 %v10976_v49, %v11208_v24 }
 0x804   : > { %v2525_v51 = vmul.f32 1.442695, %v2442_v19 }
 0x805   : > { %v2625_v58 = vadd.f32 %v11247_v14, %v2624_v18  ;;  %v2521_v18 = vmul.f32 1.442695, %v2440_v40  ;;  %8668 = vpow2.f32 %v2513_v61  ;;  %v2549_v61 = vmul.f32 1.442695, %v2454_v42 }
 0x806   : > { %8670 = vpow2.f32 %v2517_v4  ;;  %v2533_v42 = vmul.f32 1.442695, %v2446_v44  ;;  %v2483_v44 = vsub.f32 %v11109_v25, %v11145_v17  ;;  %v2485_v25 = vsub.f32 %v11121_v43, %v11145_v17 }
 0x807   : > { %v2626_v52 = vadd.f32 %v11252_v12, %v2625_v58  ;;  %v11296_v58 = vpop.eup %8642  ;;  %8672 = vpow2.f32 %v2521_v18  ;;  %v2456_v43 = vsub.f32 %v11002_v27, %v11208_v24 }
 0x808   : > { %v11301_v40 = vpop.eup %8644  ;;  %8674 = vpow2.f32 %v2537_v38 }
 0x809   : > { %v2627_v50 = vadd.f32 %v11256_v45, %v2626_v52  ;;  %16212 = vst [vmem:[#allocation90_spill] sm:$0xff] %v11301_v40  ;;  %v2545_v52 = vmul.f32 1.442695, %v2452_v48  ;;  %v11305_v11 = vpop.eup %8646  ;;  %8676 = vpow2.f32 %v2541_v30  ;;  %v16215_v48 = vld [vmem:[#allocation109_spill] sm:$0xff]  ;;  %v16218_v30 = vld [vmem:[#allocation12_spill] sm:$0xff] }
 0x80a   : > { %16213 = vst [vmem:[#allocation92_spill] sm:$0xff] %v11305_v11  ;;  %v11310_v31 = vpop.eup %8648  ;;  %v2479_v4 = vsub.f32 %v16215_v48, %v11145_v17 }
 0x80b   : > { %v2628_v0 = vadd.f32 %v11261_v23, %v2627_v50  ;;  %16214 = vst [vmem:[#allocation93_spill] sm:$0xff] %v11310_v31  ;;  %v11312_v50 = vpop.eup %8650  ;;  %8678 = vpow2.f32 %v2545_v52 }
 0x80c   : > { %v11315_v47 = vpop.eup %8652  ;;  %8680 = vpow2.f32 %v2549_v61  ;;  %v715_v61 = vld [vmem:[%s15721_s5 + $0xa0] sm:$0xff] }
 0x80d   : > { %v2629_v33 = vadd.f32 %v11296_v58, %v2628_v0  ;;  %v2529_v0 = vmul.f32 1.442695, %v2444_v15  ;;  %v11319_v53 = vpop.eup %8654  ;;  %v2652_v18 = vadd.f32 %v11315_v47, %v11312_v50  ;;  %8682 = vpow2.f32 %v2525_v51 }
 0x80e   : > { %16216 = vst [vmem:[#allocation95_spill] sm:$0xff] %v11319_v53  ;;  %v11324_v38 = vpop.eup %8656 }
 0x80f   : > { %v2630_v9 = vadd.f32 %v11301_v40, %v2629_v33  ;;  %v11326_v19 = vpop.eup %8658  ;;  %v2481_v33 = vsub.f32 %v16218_v30, %v11145_v17  ;;  %v2653_v15 = vadd.f32 %v11324_v38, %v2652_v18  ;;  %8684 = vpow2.f32 %v2529_v0 }
 0x810   : > { %16217 = vst [vmem:[#allocation99_spill] sm:$0xff] %v11326_v19  ;;  %v11332_v52 = vpop.eup %8660  ;;  %8686 = vpow2.f32 %v2533_v42  ;;  %v700_v42 = vld [vmem:[%s15721_s5 + $0x28] sm:$0xff] }
 0x811   : > { %v2631_v49 = vadd.f32 %v11305_v11, %v2630_v9  ;;  %v11339_v9 = vpop.eup %8662  ;;  %v2599_v11 = vmul.f32 1.442695, %v2479_v4  ;;  %v2654_v51 = vadd.f32 %v11332_v52, %v2653_v15  ;;  %v2603_v0 = vmul.f32 1.442695, %v2481_v33 }
 0x812   : > { %16219 = vst [vmem:[#allocation61_spill] sm:$0xff] %v11339_v9  ;;  %v2607_v4 = vmul.f32 1.442695, %v2483_v44 }
 0x813   : > { %v2632_v48 = vadd.f32 %v11310_v31, %v2631_v49  ;;  %v11343_v49 = vpop.eup %8664  ;;  %8688 = vpow2.f32 %v2599_v11 }
 0x814   : > { %v11345_v18 = vpop.eup %8666  ;;  %v2655_v31 = vadd.f32 %v11343_v49, %v2654_v51  ;;  %8690 = vpow2.f32 %v2603_v0 }
 0x815   : > { %v2633_v30 = vadd.f32 %v11319_v53, %v2632_v48  ;;  %v11351_v16 = vpop.eup %8668  ;;  %8692 = vpow2.f32 %v2607_v4  ;;  %v708_v4 = vld [vmem:[%s15721_s5 + $0x68] sm:$0xff] }
 0x816   : > { %v11356_v48 = vpop.eup %8670  ;;  %v2656_v17 = vadd.f32 %v11345_v18, %v2655_v31 }
 0x817   : > { %v2634_v40 = vadd.f32 %v11326_v19, %v2633_v30  ;;  %v11362_v33 = vpop.eup %8672  ;;  %v2611_v30 = vmul.f32 1.442695, %v2485_v25  ;;  %v2462_v25 = vsub.f32 %v11020_v22, %v11208_v24  ;;  %v2705_v22 = vpack.c.bf16 %v11296_v58, %v11261_v23 }
 0x818   : > { %v8675_v44 = vpop.eup %8674  ;;  %v2657_v53 = vadd.f32 %v11351_v16, %v2656_v17 }
 0x819   : > { %v2635_v15 = vadd.f32 %v11339_v9, %v2634_v40  ;;  %v8677_v11 = vpop.eup %8676  ;;  %v2460_v40 = vsub.f32 %v11014_v5, %v11208_v24  ;;  %v2553_v9 = vmul.f32 1.442695, %v2456_v43  ;;  %8694 = vpow2.f32 %v2611_v30 }
 0x81a   : > { %v11370_v27 = vpop.eup %8678  ;;  %v2565_v58 = vmul.f32 1.442695, %v2462_v25  ;;  %v2472_v25 = vsub.f32 %v11052_v59, %v11208_v24 }
 0x81b   : > { %v2636_v51 = vadd.f32 %v11265_v26, %v2635_v15  ;;  %v11374_v19 = vpop.eup %8680  ;;  %v2561_v17 = vmul.f32 1.442695, %v2460_v40  ;;  %8696 = vpow2.f32 %v2553_v9  ;;  %v2466_v26 = vsub.f32 %v11032_v6, %v11208_v24 }
 0x81c   : > { %v2706_v5 = vpack.c.bf16 %v11374_v19, %v11370_v27  ;;  %v8683_v43 = vpop.eup %8682  ;;  %v2484_v40 = vsub.f32 %v11115_v41, %v11208_v24  ;;  %v2486_v6 = vsub.f32 %v11141_v60, %v11208_v24  ;;  %v2474_v41 = vsub.f32 %v11062_v7, %v11208_v24 }
 0x81d   : > { %v2637_v31 = vadd.f32 %v11270_v54, %v2636_v51  ;;  %v2468_v54 = vsub.f32 %v11038_v32, %v11208_v24  ;;  %v2703_v32 = vpack.c.bf16 %v11256_v45, %v11252_v12  ;;  %v2480_v60 = vsub.f32 %v11090_v3, %v11208_v24 }
 0x81e   : > { %2723 = vmatprep.subr.bf16.mxu0 %v2706_v5  ;;  %v2609_v59 = vmul.f32 1.442695, %v2484_v40  ;;  %v2701_v7 = vpack.c.bf16 %v11247_v14, %v11243_v62  ;;  %v2585_v62 = vmul.f32 1.442695, %v2472_v25 }
 0x81f   : > { %2724 = vmatpush1.bf16.msra.mxu0 %v2705_v22  ;;  %v2577_v45 = vmul.f32 1.442695, %v2468_v54  ;;  %v2482_v22 = vsub.f32 %v11103_v37, %v11208_v24  ;;  %v2476_v54 = vsub.f32 %v11072_v8, %v11208_v24  ;;  %v2699_v8 = vpack.c.bf16 %v11238_v46, %v11234_v36 }
 0x820   : > { %v2697_v46 = vpack.c.bf16 %v11227_v10, %v11220_v28  ;;  %v2695_v28 = vpack.c.bf16 %v11213_v35, %v11204_v55  ;;  %v2692_v55 = vpack.c.bf16 %v11315_v47, %v11312_v50 }
 0x821   : > { %821 = vperm.xlu1 %8447, %v715_v61   ;;  %v2458_v61 = vsub.f32 %v11008_v63, %v11208_v24  ;;  %v2658_v63 = vadd.f32 %v11356_v48, %v2657_v53  ;;  %v2464_v53 = vsub.f32 %v11026_v13, %v11208_v24  ;;  %v2470_v13 = vsub.f32 %v11044_v56, %v11208_v24 }
 0x822   : > { %v2593_v36 = vmul.f32 1.442695, %v2476_v54 }
 0x823   : > { %v2557_v0 = vmul.f32 1.442695, %v2458_v61  ;;  %v2659_v15 = vadd.f32 %v11362_v33, %v2658_v63  ;;  %v8685_v61 = vpop.eup %8684  ;;  %v2581_v37 = vmul.f32 1.442695, %v2470_v13 }
 0x824   : > { %v8687_v63 = vpop.eup %8686 }
 0x825   : > { %746 = vperm.xlu1 %8447, %v700_v42   ;;  %v2638_v42 = vadd.f32 %v11276_v2, %v2637_v31  ;;  %v2660_v51 = vadd.f32 %v8683_v43, %v2659_v15  ;;  %v2704_v31 = vpack.c.bf16 %v8677_v11, %v8675_v44  ;;  %8698 = vpow2.f32 %v2557_v0 }
 0x826   : > { %8700 = vpow2.f32 %v2561_v17  ;;  %v2702_v5 = vpack.c.bf16 %v8687_v63, %v8685_v61  ;;  %v2573_v0 = vmul.f32 1.442695, %v2466_v26 }
 0x827   : > { %v2639_v30 = vadd.f32 %v11281_v34, %v2638_v42  ;;  %v2661_v9 = vadd.f32 %v8685_v61, %v2660_v51  ;;  %2725 = vmatprep.subr.bf16.mxu0 %v2704_v31  ;;  %v2569_v42 = vmul.f32 1.442695, %v2464_v53  ;;  %8702 = vpow2.f32 %v2565_v58 }
 0x828   : > { %2726 = vmatpush1.bf16.msra.mxu0 %v2703_v32  ;;  %v2613_v61 = vmul.f32 1.442695, %v2486_v6 }
 0x829   : > { %v2640_v23 = vadd.f32 %v11287_v39, %v2639_v30  ;;  %v2662_v15 = vadd.f32 %v8687_v63, %v2661_v9  ;;  %2727 = vmatprep.subr.bf16.mxu0 %v2702_v5  ;;  %8704 = vpow2.f32 %v2569_v42  ;;  %v2700_v30 = vpack.c.bf16 %v8683_v43, %v11362_v33 }
 0x82a   : > { %8706 = vpow2.f32 %v2573_v0  ;;  %v2601_v33 = vmul.f32 1.442695, %v2480_v60  ;;  %v2605_v43 = vmul.f32 1.442695, %v2482_v22  ;;  %v2698_v63 = vpack.c.bf16 %v11356_v48, %v11351_v16 }
 0x82b   : > { %v2641_v56 = vadd.f32 %v11292_v29, %v2640_v23  ;;  %v2663_v53 = vadd.f32 %v8675_v44, %v2662_v15  ;;  %v2478_v44 = vsub.f32 %v11080_v20, %v11208_v24  ;;  %8708 = vpow2.f32 %v2577_v45 }
 0x82c   : > { %786 = vperm.xlu0 %8446, %v708_v4   ;;  %v11404_v4 = vpop.eup %8688  ;;  %2728 = vmatpush1.bf16.msra.mxu0 %v2701_v7  ;;  %8710 = vpow2.f32 %v2609_v59  ;;  %v2696_v48 = vpack.c.bf16 %v11345_v18, %v11343_v49  ;;  %v2694_v42 = vpack.c.bf16 %v11332_v52, %v11324_v38  ;;  %v2693_v15 = vpack.c.bf16 %v11197_v21, %v11190_v1  ;;  %v16220_v52 = vld [vmem:[#allocation13_spill] sm:$0xff] }
 0x82d   : > { %v2642_v12 = vadd.f32 %v11404_v4, %v2641_v56  ;;  %v11413_v17 = vpop.eup %8690  ;;  %v2664_v26 = vadd.f32 %v8677_v11, %v2663_v53  ;;  %2729 = vmatprep.subr.bf16.mxu0 %v2700_v30  ;;  %8712 = vpow2.f32 %v2613_v61  ;;  %v2691_v0 = vpack.c.bf16 %v16220_v52, %v11178_v57  ;;  %v11465_v53 = vpop.permute.xlu0 %741 }
 0x82e   : > { %v11421_v51 = vpop.eup %8692  ;;  %8714 = vpow2.f32 %v2581_v37  ;;  %16221 = vst [vmem:[#allocation104_spill] sm:$0xff] %v11465_v53  ;;  %v2719_v30 = vpack.c.bf16 %v11413_v17, %v11404_v4 }
 0x82f   : > { %v2643_v3 = vadd.f32 %v11413_v17, %v2642_v12  ;;  %v2665_v14 = vadd.f32 %v11370_v27, %v2664_v26  ;;  %v11429_v11 = vpop.eup %8694  ;;  %8716 = vpow2.f32 %v2585_v62  ;;  %v2589_v27 = vmul.f32 1.442695, %v2474_v41 }
 0x830   : > { %v11439_v13 = vpop.eup %8696  ;;  %2730 = vmatpush1.bf16.msra.mxu0 %v2699_v8  ;;  %8718 = vpow2.f32 %v2601_v33  ;;  %v2721_v50 = vpack.c.bf16 %v11429_v11, %v11421_v51  ;;  %v16226_v17 = vpack.c.bf16 %v11281_v34, %v11276_v2  ;;  %v16234_v2 = vld [vmem:[#allocation93_spill] sm:$0xff]  ;;  %v16235_v34 = vld [vmem:[#allocation95_spill] sm:$0xff] }
 0x831   : > { %v2644_v31 = vadd.f32 %v11421_v51, %v2643_v3  ;;  %v2666_v24 = vadd.f32 %v11374_v19, %v2665_v14  ;;  %2731 = vmatprep.subr.bf16.mxu0 %v2698_v63  ;;  %v2597_v19 = vmul.f32 1.442695, %v2478_v44  ;;  %8720 = vpow2.f32 %v2605_v43  ;;  %v16228_v63 = vld [vmem:[#allocation79_spill] sm:$0xff] }
 0x832   : > { %v11442_v58 = vpop.eup %8698  ;;  %8722 = vpow2.f32 %v2589_v27  ;;  %v16229_v27 = vld [vmem:[#allocation75_spill] sm:$0xff] }
 0x833   : > { %v11434_v20 = vadd.f32 %v11429_v11, %v2644_v31  ;;  %v2667_v23 = vadd.f32 %v11439_v13, %v2666_v24  ;;  %v11449_v9 = vpop.eup %8700  ;;  %8724 = vpow2.f32 %v2593_v36  ;;  %v16225_v11 = vpack.c.bf16 %v11292_v29, %v11287_v39  ;;  %v16231_v39 = vld [vmem:[#allocation99_spill] sm:$0xff]  ;;  %v16232_v29 = vld [vmem:[#allocation61_spill] sm:$0xff] }
 0x834   : > { %2732 = vmatpush1.bf16.msra.mxu0 %v2697_v46  ;;  %v11452_v6 = vpop.eup %8702  ;;  %8726 = vpow2.f32 %v2597_v19  ;;  %v2711_v36 = vpack.c.bf16 %v16232_v29, %v16231_v39  ;;  %v16276_v39 = vld [vmem:[#allocation14_spill] sm:$0xff] }
 0x835   : > { %v2668_v16 = vadd.f32 %v11442_v58, %v2667_v23  ;;  %2733 = vmatprep.subr.bf16.mxu0 %v2696_v48  ;;  %v16230_v23 = vpack.c.bf16 %v16228_v63, %v16229_v27  ;;  %v2710_v46 = vpack.c.bf16 %v11452_v6, %v11449_v9  ;;  %v16236_v48 = vld [vmem:[#allocation37_spill] sm:$0xff] }
 0x836   : > { %v8705_v49 = vpop.eup %8704  ;;  %v16275_v27 = vld [vmem:[#allocation69_spill] sm:$0xff] }
 0x837   : > { %v2669_v40 = vadd.f32 %v11449_v9, %v2668_v16  ;;  %v8707_v18 = vpop.eup %8706  ;;  %v2709_v16 = vpack.c.bf16 %v16235_v34, %v16234_v2  ;;  %v16241_v9 = vld [vmem:[#allocation24_spill] sm:$0xff] }
 0x838   : > { %2734 = vmatpush1.bf16.msra.mxu0 %v2695_v28  ;;  %v8709_v56 = vpop.eup %8708  ;;  %v2712_v24 = vpack.c.bf16 %v8707_v18, %v8705_v49  ;;  %v16279_v34 = vld [vmem:[#allocation72_spill] sm:$0xff] }
 0x839   : > { %v2670_v10 = vadd.f32 %v11452_v6, %v2669_v40  ;;  %2735 = vmatprep.subr.bf16.mxu0 %v2694_v42  ;;  %v8711_v5 = vpop.eup %8710  ;;  %v16237_v40 = vld [vmem:[#allocation25_spill] sm:$0xff]  ;;  %v16238_v42 = vld [vmem:[#allocation88_spill] sm:$0xff]  ;;  %v980_v6 = vadd.f32 %v16241_v9, %v16236_v48 }
 0x83a   : > { %v8713_v35 = vpop.eup %8712  ;;  %v982_v28 = vadd.f32 %v16237_v40, %v16236_v48  ;;  %v16282_v40 = vld [vmem:[#allocation71_spill] sm:$0xff] }
 0x83b   : > { %v2671_v32 = vadd.f32 %v8705_v49, %v2670_v10  ;;  %v8715_v41 = vpop.eup %8714  ;;  %v2722_v22 = vpack.c.bf16 %v8713_v35, %v8711_v5  ;;  %v2708_v10 = vpack.c.bf16 %v11442_v58, %v11439_v13  ;;  %v16239_v49 = vld [vmem:[#allocation84_spill] sm:$0xff]  ;;  %v16245_v58 = vmov 0.0  }
 0x83c   : > { %2736 = vmatpush1.bf16.msra.mxu0 %v2693_v15  ;;  %v8717_v38 = vpop.eup %8716  ;;  %v2714_v4 = vpack.c.bf16 %v8715_v41, %v8709_v56  ;;  %v16243_v15 = vld [vmem:[#allocation92_spill] sm:$0xff] }
 0x83d   : > { %v2672_v25 = vadd.f32 %v8707_v18, %v2671_v32  ;;  %2737 = vmatprep.subr.bf16.mxu0 %v2692_v55  ;;  %v8719_v12 = vpop.eup %8718  ;;  %v1054_v18 = vadd.f32 %v16239_v49, %v16238_v42  ;;  %v16285_v42 = vld [vmem:[#allocation40_spill] sm:$0xff] }
 0x83e   : > { %v8721_v1 = vpop.eup %8720 }
 0x83f   : > { %v2673_v60 = vadd.f32 %v8709_v56, %v2672_v25  ;;  %v8723_v59 = vpop.eup %8722  ;;  %v2720_v7 = vpack.c.bf16 %v8721_v1, %v8719_v12  ;;  %v16242_v56 = vld [vmem:[#allocation90_spill] sm:$0xff]  ;;  %v2773_v25 = vmul.f32 0.5, %v982_v28  ;;  %v2689_v55 = vpack.c.bf16 %v1054_v18, %v1054_v18 }
 0x840   : > { %2738 = vmatpush1.bf16.msra.mxu0 %v2691_v0  ;;  %v8725_v47 = vpop.eup %8724  ;;  %v2716_v62 = vpack.c.bf16 %v8723_v59, %v8717_v38  ;;  %v16250_v0 = vld [vmem:[#allocation64_spill] sm:$0xff]  ;;  %v16287_v18 = vld [vmem:[#allocation42_spill] sm:$0xff] }
 0x841   : > { %v2674_v45 = vadd.f32 %v8715_v41, %v2673_v60  ;;  %2739 = vmatprep.subr.bf16.mxu0 %v2722_v22  ;;  %v8727_v26 = vpop.eup %8726  ;;  %v16247_v60 = vld [vmem:[#allocation81_spill] sm:$0xff]  ;;  %v11531_v22 = vpop.permute.xlu1 %736 }
 0x842   : > { %v2718_v44 = vpack.c.bf16 %v8727_v26, %v8725_v47  ;;  %16253 = vst [vmem:[#allocation61_spill] sm:$0xff] %v11531_v22 }
 0x843   : > { %v2675_v21 = vadd.f32 %v8717_v38, %v2674_v45  ;;  %v11469_v3 = vpop.trf.xlu0  ;;  %v16248_v38 = vld [vmem:[#allocation36_spill] sm:$0xff]  ;;  %v16252_v45 = vld [vmem:[#allocation50_spill] sm:$0xff] }
 0x844   : > { %16222 = vst [vmem:[#allocation63_spill] sm:$0xff] %v11469_v3  ;;  %2740 = vmatpush2.bf16.msra.mxu0 %v2721_v50  ;;  %v16257_v50 = vld [vmem:[#allocation21_spill] sm:$0xff] }
 0x845   : > { %v2676_v61 = vadd.f32 %v8723_v59, %v2675_v21  ;;  %2741 = vmatprep.subr.bf16.mxu0 %v2720_v7  ;;  %v11538_v59 = vpop.trf.xlu1 }
 0x846   : > { %16256 = vst [vmem:[#allocation95_spill] sm:$0xff] %v11538_v59 }
 0x847   : > { %v2677_v57 = vadd.f32 %v8725_v47, %v2676_v61  ;;  %v11473_v37 = vpop.trf.xlu0  ;;  %v16259_v61 = vld [vmem:[#allocation22_spill] sm:$0xff] }
 0x848   : > { %16223 = vst [vmem:[#allocation70_spill] sm:$0xff] %v11473_v37  ;;  %2742 = vmatpush2.bf16.msra.mxu0 %v2719_v30 }
 0x849   : > { %v2678_v54 = vadd.f32 %v8727_v26, %v2677_v57  ;;  %2743 = vmatprep.subr.bf16.mxu0 %v2718_v44  ;;  %v11548_v7 = vpop.trf.xlu1  ;;  %v16261_v26 = vld [vmem:[#allocation44_spill] sm:$0xff] }
 0x84a   : > { %16260 = vst [vmem:[#allocation25_spill] sm:$0xff] %v11548_v7 }
 0x84b   : > { %v2679_v31 = vadd.f32 %v8719_v12, %v2678_v54  ;;  %v11475_v14 = vpop.trf.xlu0  ;;  %v16264_v54 = vld [vmem:[#allocation53_spill] sm:$0xff] }
 0x84c   : > { %16224 = vst [vmem:[#allocation77_spill] sm:$0xff] %v11475_v14  ;;  %2744 = vmatpush2.bf16.msra.mxu0 %v16225_v11 }
 0x84d   : > { %v2680_v51 = vadd.f32 %v8721_v1, %v2679_v31  ;;  %2745 = vmatprep.subr.bf16.mxu0 %v2716_v62  ;;  %v16254_v1 = vld [vmem:[#allocation43_spill] sm:$0xff]  ;;  %v11555_v30 = vpop.trf.xlu1  ;;  %v16266_v31 = vld [vmem:[#allocation58_spill] sm:$0xff]  ;;  %v16268_v62 = vld [vmem:[#allocation60_spill] sm:$0xff] }
 0x84e   : > { %16263 = vst [vmem:[#allocation84_spill] sm:$0xff] %v11555_v30 }
 0x84f   : > { %v2681_v33 = vadd.f32 %v8711_v5, %v2680_v51  ;;  %v11485_v8 = vpop.trf.xlu0  ;;  %v2707_v5 = vpack.c.bf16 %v16243_v15, %v16242_v56  ;;  %v16290_v56 = vld [vmem:[#allocation49_spill] sm:$0xff] }
 0x850   : > { %2746 = vmatpush2.bf16.msra.mxu0 %v16226_v17  ;;  %16227 = vst [vmem:[#allocation86_spill] sm:$0xff] %v11485_v8 }
 0x851   : > { %v11480_v43 = vadd.f32 %v8713_v35, %v2681_v33  ;;  %2747 = vmatprep.subr.bf16.mxu0 %v2714_v4  ;;  %v2772_v35 = vmul.f32 0.5, %v980_v6  ;;  %v11565_v51 = vpop.trf.xlu1  ;;  %v16271_v4 = vld [vmem:[#allocation62_spill] sm:$0xff] }
 0x852   : > { %16267 = vst [vmem:[#allocation90_spill] sm:$0xff] %v11565_v51  ;;  %v16289_v6 = vld [vmem:[#allocation46_spill] sm:$0xff] }
 0x853   : > { %v11494_v19 = vpop.trf.xlu0 }
 0x854   : > { %2748 = vmatpush2.bf16.msra.mxu0 %v16230_v23  ;;  %16233 = vst [vmem:[#allocation109_spill] sm:$0xff] %v11494_v19 }
 0x855   : > { %2749 = vmatprep.subr.bf16.mxu0 %v2712_v24  ;;  %v11572_v33 = vpop.trf.xlu1  ;;  %v16273_v24 = vld [vmem:[#allocation66_spill] sm:$0xff] }
 0x856   : > { %16270 = vst [vmem:[#allocation81_spill] sm:$0xff] %v11572_v33 }
 0x857   : > { %v11504_v32 = vpop.trf.xlu0 }
 0x858   : > { %2750 = vmatpush2.bf16.msra.mxu0 %v2711_v36  ;;  %16240 = vst [vmem:[#allocation12_spill] sm:$0xff] %v11504_v32  ;;  %v16277_v36 = vld [vmem:[#allocation15_spill] sm:$0xff] }
 0x859   : > { %2751 = vmatprep.subr.bf16.mxu0 %v2710_v46  ;;  %v11582_v63 = vpop.trf.xlu1 }
 0x85a   : > { %16274 = vst [vmem:[#allocation64_spill] sm:$0xff] %v11582_v63 }
 0x85b   : > { %v11510_v13 = vpop.trf.xlu0 }
 0x85c   : > { %2752 = vmatpush2.bf16.msra.mxu0 %v2709_v16  ;;  %16244 = vst [vmem:[#allocation13_spill] sm:$0xff] %v11510_v13  ;;  %v16280_v16 = vld [vmem:[#allocation74_spill] sm:$0xff] }
 0x85d   : > { %2753 = vmatprep.subr.bf16.mxu0 %v2708_v10  ;;  %v11589_v2 = vpop.trf.xlu1  ;;  %v16284_v10 = vld [vmem:[#allocation38_spill] sm:$0xff] }
 0x85e   : > { %16278 = vst [vmem:[#allocation50_spill] sm:$0xff] %v11589_v2 }
 0x85f   : > { %v11513_v41 = vpop.trf.xlu0 }
 0x860   : > { %2754 = vmatpush2.bf16.msra.mxu0 %v2707_v5  ;;  %16246 = vst [vmem:[#allocation79_spill] sm:$0xff] %v11513_v41  ;;  %v16292_v5 = vld [vmem:[#allocation52_spill] sm:$0xff] }
 0x861   : > { %2964 = vmatprep.subr.mxu0 %v2773_v25  ;;  %v11597_v48 = vpop.trf.xlu1 }
 0x862   : > { %16281 = vst [vmem:[#allocation43_spill] sm:$0xff] %v11597_v48 }
 0x863   : > { %2756 = vmatmul.mubr.bf16.vlgmr.msra.gmra.mxu0 %v2689_v55  ;;  %v11520_v52 = vpop.trf.xlu0  ;;  %v16294_v55 = vld [vmem:[#allocation83_spill] sm:$0xff] }
 0x864   : > { %2965 = vmatpush1.msra.mxu0 %v2772_v35  ;;  %2998 = vmatprep.mubr.f32.mxu0 %v16245_v58  ;;  %16249 = vst [vmem:[#allocation75_spill] sm:$0xff] %v11520_v52  ;;  %v16295_v35 = vld [vmem:[#allocation39_spill] sm:$0xff] }
 0x865   : > { %v11602_v28 = vpop.trf.xlu1 }
 0x866   : > { %16283 = vst [vmem:[#allocation21_spill] sm:$0xff] %v11602_v28 }
 0x867   : > { %v11526_v12 = vpop.trf.xlu0 }
 0x868   : > { %16251 = vst [vmem:[#allocation99_spill] sm:$0xff] %v11526_v12 }
 0x869   : > { %v11610_v49 = vpop.trf.xlu1 }
 0x86a   : > { %16286 = vst [vmem:[#allocation22_spill] sm:$0xff] %v11610_v49 }
 0x86b   : > { %8151 = vmatmul.mubr.msk.f32.vlgmr.msra.gmra.mxu0 %vm449_vm3, %v16247_v60  ;;  %v11535_v21 = vpop.trf.xlu0 }
 0x86c   : > { %3004 = vmatprep.mubr.f32.mxu0 %v16245_v58  ;;  %16255 = vst [vmem:[#allocation93_spill] sm:$0xff] %v11535_v21 }
 0x86d   : > { %v11615_v9 = vpop.trf.xlu1 }
 0x86e   : > { %16288 = vst [vmem:[#allocation44_spill] sm:$0xff] %v11615_v9 }
 0x86f   : > { %8152 = vmatmul.mubr.msk.f32.gmra.mxu0 %vm449_vm3, %v16248_v38  ;;  %v11543_v47 = vpop.trf.xlu0  ;;  %v16297_v38 = vld [vmem:[#allocation65_spill] sm:$0xff] }
 0x870   : > { %3010 = vmatprep.mubr.f32.mxu0 %v16245_v58  ;;  %16258 = vst [vmem:[#allocation37_spill] sm:$0xff] %v11543_v47 }
 0x871   : > { %v11623_v15 = vpop.trf.xlu1 }
 0x872   : > { %16291 = vst [vmem:[#allocation53_spill] sm:$0xff] %v11623_v15 }
 0x873   : > { %8153 = vmatmul.mubr.msk.f32.gmra.mxu0 %vm449_vm3, %v16250_v0  ;;  %v11552_v57 = vpop.trf.xlu0 }
 0x874   : > { %3016 = vmatprep.mubr.f32.mxu0 %v16245_v58  ;;  %16262 = vst [vmem:[#allocation88_spill] sm:$0xff] %v11552_v57 }
 0x875   : > { %v11628_v25 = vpop.trf.xlu1 }
 0x876   : > { %16293 = vst [vmem:[#allocation58_spill] sm:$0xff] %v11628_v25 }
 0x877   : > { %8154 = vmatmul.mubr.msk.f32.gmra.mxu0 %vm449_vm3, %v16252_v45  ;;  %v11560_v44 = vpop.trf.xlu0  ;;  %v16299_v45 = vld [vmem:[#allocation55_spill] sm:$0xff] }
 0x878   : > { %3022 = vmatprep.mubr.f32.mxu0 %v16245_v58  ;;  %16265 = vst [vmem:[#allocation24_spill] sm:$0xff] %v11560_v44 }
 0x879   : > { %v11636_v60 = vpop.trf.xlu1 }
 0x87a   : > { %16296 = vst [vmem:[#allocation60_spill] sm:$0xff] %v11636_v60 }
 0x87b   : > { %8155 = vmatmul.mubr.msk.f32.gmra.mxu0 %vm449_vm3, %v16254_v1  ;;  %v11569_v11 = vpop.trf.xlu0  ;;  %v16300_v1 = vld [vmem:[#allocation23_spill] sm:$0xff] }
 0x87c   : > { %3028 = vmatprep.mubr.f32.mxu0 %v16245_v58  ;;  %16269 = vst [vmem:[#allocation92_spill] sm:$0xff] %v11569_v11 }
 0x87d   : > { %v11641_v0 = vpop.trf.xlu1 }
 0x87e   : > { %16298 = vst [vmem:[#allocation62_spill] sm:$0xff] %v11641_v0 }
 0x87f   : > { %8156 = vmatmul.mubr.msk.f32.gmra.mxu0 %vm449_vm3, %v16257_v50  ;;  %v11577_v17 = vpop.trf.xlu0 }
 0x880   : > { %3034 = vmatprep.mubr.f32.mxu0 %v16245_v58  ;;  %16272 = vst [vmem:[#allocation36_spill] sm:$0xff] %v11577_v17 }
 0x881   : > { %v11649_v50 = vpop.trf.xlu1 }
 0x882   : > { %16301 = vst [vmem:[#allocation66_spill] sm:$0xff] %v11649_v50 }
 0x883   : > { %8157 = vmatmul.mubr.msk.f32.gmra.mxu0 %vm449_vm3, %v16259_v61  ;;  %v16302_v61 = vld [vmem:[#allocation20_spill] sm:$0xff] }
 0x884   : > { %3040 = vmatprep.mubr.f32.mxu0 %v16245_v58 }
 0x887   : > { %8158 = vmatmul.mubr.msk.f32.gmra.mxu0 %vm449_vm3, %v16261_v26  ;;  %v11654_v26 = vpop.permute.xlu1 %816 }
 0x888   : > { %3046 = vmatprep.mubr.f32.mxu0 %v16245_v58  ;;  %16303 = vst [vmem:[#allocation69_spill] sm:$0xff] %v11654_v26 }
 0x88b   : > { %8159 = vmatmul.mubr.msk.f32.gmra.mxu0 %vm449_vm3, %v16264_v54  ;;  %v16304_v54 = vld [vmem:[#allocation41_spill] sm:$0xff] }
 0x88c   : > { %3052 = vmatprep.mubr.f32.mxu0 %v16245_v58 }
 0x88f   : > { %8160 = vmatmul.mubr.msk.f32.gmra.mxu0 %vm449_vm3, %v16266_v31  ;;  %v16305_v31 = vld [vmem:[#allocation85_spill] sm:$0xff] }
 0x890   : > { %3058 = vmatprep.mubr.f32.mxu0 %v16245_v58 }
 0x893   : > { %8161 = vmatmul.mubr.msk.f32.gmra.mxu0 %vm449_vm3, %v16268_v62  ;;  %v1066_v62 = vadd.f32 %v16305_v31, %v11654_v26 }
 0x894   : > { %3064 = vmatprep.mubr.f32.mxu0 %v16245_v58 }
 0x897   : > { %8162 = vmatmul.mubr.msk.f32.gmra.mxu0 %vm449_vm3, %v16271_v4  ;;  %v16306_v4 = vld [vmem:[#allocation47_spill] sm:$0xff] }
 0x898   : > { %3070 = vmatprep.mubr.f32.mxu0 %v16245_v58 }
 0x89b   : > { %8163 = vmatmul.mubr.msk.f32.gmra.mxu0 %vm449_vm3, %v16273_v24  ;;  %v4374_v24 = vpack.c.bf16 %v1066_v62, %v1066_v62 }
 0x89c   : > { %3076 = vmatprep.mubr.f32.mxu0 %v16245_v58 }
 0x89f   : > { %8164 = vmatmul.mubr.msk.f32.gmra.mxu0 %vm449_vm3, %v16275_v27  ;;  %v16307_v27 = vld [vmem:[#allocation56_spill] sm:$0xff] }
 0x8a0   : > { %3082 = vmatprep.mubr.f32.mxu0 %v16245_v58 }
 0x8a3   : > { %8165 = vmatmul.mubr.msk.f32.gmra.mxu0 %vm449_vm3, %v16279_v34 }
 0x8a4   : > { %3088 = vmatprep.mubr.f32.mxu0 %v16245_v58 }
 0x8a7   : > { %v787_v23 = vpop.permute.xlu0 %786  ;;  %8166 = vmatmul.mubr.msk.f32.gmra.mxu0 %vm449_vm3, %v16280_v16 }
 0x8a8   : > { %v1034_v29 = vadd.f32 %v16276_v39, %v787_v23  ;;  %v1036_v46 = vadd.f32 %v16277_v36, %v787_v23  ;;  %3094 = vmatprep.mubr.f32.mxu0 %v16245_v58  ;;  %v716_v23 = vld [vmem:[%s15721_s5 + $0xa8] sm:$0xff]  ;;  %v2646_v39 = vrot.slane %v11434_v20, 4 }
 0x8aa   : > { %5300 = vxpose.xlu0.b32.start.end [1/1] (short) %v1034_v29, 128  ;;  %5332 = vxpose.xlu1.b32.start.end [1/1] (short) %v1036_v46, 128  ;;  %v16308_v29 = vld [vmem:[#allocation68_spill] sm:$0xff]  ;;  %v2683_v46 = vrot.slane %v11480_v43, 4  ;;  %v2647_v34 = vadd.f32 %v2646_v39, %v11434_v20 }
 0x8ab   : > { %8167 = vmatmul.mubr.msk.f32.gmra.mxu0 %vm449_vm3, %v16282_v40  ;;  %v1841_v36 = vrot.slane %v16308_v29, 4 }
 0x8ac   : > { %3100 = vmatprep.mubr.f32.mxu0 %v16245_v58  ;;  %v2684_v40 = vadd.f32 %v2683_v46, %v11480_v43 }
 0x8ad   : > { %v1842_v16 = vadd.f32 %v1841_v36, %v16308_v29 }
 0x8af   : > { %8168 = vmatmul.mubr.msk.f32.gmra.mxu0 %vm449_vm3, %v16284_v10  ;;  %v709_v10 = vld [vmem:[%s15721_s5 + $0x70] sm:$0xff] }
 0x8b0   : > { %3106 = vmatprep.mubr.f32.mxu0 %v16245_v58 }
 0x8b3   : > { %8169 = vmatmul.mubr.msk.f32.gmra.mxu0 %vm449_vm3, %v16285_v42  ;;  %v2648_v42 = vrot.slane %v2647_v34, 2 }
 0x8b4   : > { %3112 = vmatprep.mubr.f32.mxu0 %v16245_v58 }
 0x8b7   : > { %8170 = vmatmul.mubr.msk.f32.gmra.mxu0 %vm449_vm3, %v16287_v18  ;;  %v1843_v18 = vrot.slane %v1842_v16, 2 }
 0x8b8   : > { %3118 = vmatprep.mubr.f32.mxu0 %v16245_v58 }
 0x8bb   : > { %8171 = vmatmul.mubr.msk.f32.gmra.mxu0 %vm449_vm3, %v16289_v6  ;;  %v2685_v6 = vrot.slane %v2684_v40, 2 }
 0x8bc   : > { %3124 = vmatprep.mubr.f32.mxu0 %v16245_v58 }
 0x8bd   : > { %v2686_v20 = vadd.f32 %v2685_v6, %v2684_v40 }
 0x8bf   : > { %8172 = vmatmul.mubr.msk.f32.gmra.mxu0 %vm449_vm3, %v16290_v56  ;;  %v701_v56 = vld [vmem:[%s15721_s5 + $0x30] sm:$0xff] }
 0x8c0   : > { %3130 = vmatprep.mubr.f32.mxu0 %v16245_v58 }
 0x8c3   : > { %8173 = vmatmul.mubr.msk.f32.gmra.mxu0 %vm449_vm3, %v16292_v5  ;;  %v2649_v5 = vadd.f32 %v2648_v42, %v2647_v34 }
 0x8c4   : > { %3136 = vmatprep.mubr.f32.mxu0 %v16245_v58 }
 0x8c7   : > { %8174 = vmatmul.mubr.msk.f32.gmra.mxu0 %vm449_vm3, %v16294_v55  ;;  %v1844_v55 = vadd.f32 %v1843_v18, %v1842_v16 }
 0x8c8   : > { %3142 = vmatprep.mubr.f32.mxu0 %v16245_v58 }
 0x8cb   : > { %8175 = vmatmul.mubr.msk.f32.gmra.mxu0 %vm449_vm3, %v16295_v35  ;;  %v2650_v35 = vrot.slane %v2649_v5, 1 }
 0x8cc   : > { %3148 = vmatprep.mubr.f32.mxu0 %v16245_v58 }
 0x8cd   : > { %v2651_v43 = vadd.f32 %v2650_v35, %v2649_v5 }
 0x8cf   : > { %8176 = vmatmul.mubr.msk.f32.gmra.mxu0 %vm449_vm3, %v16297_v38  ;;  %v1845_v38 = vrot.slane %v1844_v55, 1  ;;  %8728 = vrcp.f32 %v2651_v43 }
 0x8d0   : > { %3154 = vmatprep.mubr.f32.mxu0 %v16245_v58 }
 0x8d3   : > { %8177 = vmatmul.mubr.msk.f32.gmra.mxu0 %vm449_vm3, %v16299_v45  ;;  %v2687_v45 = vrot.slane %v2686_v20, 1 }
 0x8d4   : > { %3160 = vmatprep.mubr.f32.mxu0 %v16245_v58 }
 0x8d7   : > { %8178 = vmatmul.mubr.msk.f32.gmra.mxu0 %vm449_vm3, %v16300_v1  ;;  %v1846_v1 = vadd.f32 %v1845_v38, %v1844_v55 }
 0x8d8   : > { %3166 = vmatprep.mubr.f32.mxu0 %v16245_v58 }
 0x8d9   : > { %8730 = vrcp.f32 %v1846_v1 }
 0x8db   : > { %8179 = vmatmul.mubr.msk.f32.gmra.mxu0 %vm449_vm3, %v16302_v61  ;;  %v2688_v61 = vadd.f32 %v2687_v45, %v2686_v20 }
 0x8dc   : > { %3172 = vmatprep.mubr.f32.mxu0 %v16245_v58 }
 0x8dd   : > { %8732 = vrcp.f32 %v2688_v61 }
 0x8df   : > { %8180 = vmatmul.mubr.msk.f32.gmra.mxu0 %vm449_vm3, %v16304_v54  ;;  %v8729_v54 = vpop.eup %8728 }
 0x8e0   : > { %3178 = vmatprep.mubr.f32.mxu0 %v16245_v58 }
 0x8e3   : > { %8181 = vmatmul.mubr.msk.f32.gmra.mxu0 %vm449_vm3, %v16306_v4 }
 0x8e4   : > { %3184 = vmatprep.mubr.f32.mxu0 %v16245_v58 }
 0x8e6   : > { %v8731_v62 = vpop.eup %8730 }
 0x8e7   : > { %8182 = vmatmul.mubr.msk.f32.gmra.mxu0 %vm449_vm3, %v16307_v27 }
 0x8e8   : > { %4439 = vmatprep.mubr.bf16.mxu0 %v4374_v24 }
 0x8ea   : > { %v8733_v24 = vpop.eup %8732 }
 0x904   : > { %826 = vperm.xlu1 %8447, %v716_v23   ;;  %v16310_v23 = vld [vmem:[#allocation59_spill] sm:$0xff] }
 0x905   : > { %v11684_v39 = vmul.f32 %v8731_v62, %v16310_v23 }
 0x907   : > { %16311 = vst [vmem:[#allocation15_spill] sm:$0xff] %v11684_v39 }
 0x90f   : > { %791 = vperm.xlu0 %8446, %v709_v10  }
 0x913   : > { %751 = vperm.xlu0 %8446, %v701_v56  }
 0x923   : > { %v2757_v31 = vpop.f32.mrf.mxu0 }
 0x924   : > { %v11681_v4 = vmul.f32 %v8729_v54, %v2757_v31 }
 0x925   : > { %v2759_v27 = vpop.f32.mrf.mxu0 }
 0x926   : > { %16309 = vst [vmem:[#allocation14_spill] sm:$0xff] %v11681_v4  ;;  %v11688_v46 = vmul.f32 %v8733_v24, %v2759_v27  ;;  %v11756_v47 = vpop.trf.xlu0 }
 0x927   : > { %v2761_v34 = vpop.f32.mrf.mxu0  ;;  %16324 = vst [vmem:[#allocation65_spill] sm:$0xff] %v11756_v47 }
 0x928   : > { %16313 = vst [vmem:[#allocation72_spill] sm:$0xff] %v11688_v46 }
 0x929   : > { %v2762_v40 = vpop.f32.mrf.mxu0 }
 0x92a   : > { %v11764_v41 = vpop.trf.xlu0 }
 0x92b   : > { %v11692_v10 = vpop.f32.mrf.mxu0  ;;  %16325 = vst [vmem:[#allocation55_spill] sm:$0xff] %v11764_v41 }
 0x92d   : > { %v11694_v42 = vpop.f32.mrf.mxu0 }
 0x92e   : > { %v11770_v19 = vpop.trf.xlu0 }
 0x92f   : > { %v11696_v18 = vpop.f32.mrf.mxu0  ;;  %16327 = vst [vmem:[#allocation20_spill] sm:$0xff] %v11770_v19 }
 0x931   : > { %v11698_v6 = vpop.f32.mrf.mxu0 }
 0x932   : > { %v11776_v37 = vpop.trf.xlu0 }
 0x933   : > { %v11700_v56 = vpop.f32.mrf.mxu0  ;;  %16329 = vst [vmem:[#allocation85_spill] sm:$0xff] %v11776_v37 }
 0x934   : > { %v3191_v49 = vmax.f32 %v11692_v10, %v11700_v56 }
 0x935   : > { %v11702_v5 = vpop.f32.mrf.mxu0 }
 0x936   : > { %16314 = vst [vmem:[#allocation74_spill] sm:$0xff] %v11702_v5  ;;  %v11782_v26 = vpop.trf.xlu0 }
 0x937   : > { %v11704_v55 = vpop.f32.mrf.mxu0  ;;  %16331 = vst [vmem:[#allocation56_spill] sm:$0xff] %v11782_v26 }
 0x939   : > { %v11706_v20 = vpop.f32.mrf.mxu0 }
 0x93a   : > { %16315 = vst [vmem:[#allocation71_spill] sm:$0xff] %v11706_v20  ;;  %v11788_v50 = vpop.trf.xlu0 }
 0x93b   : > { %v11708_v35 = vpop.f32.mrf.mxu0  ;;  %16333 = vst [vmem:[#allocation59_spill] sm:$0xff] %v11788_v50  ;;  %v3192_v50 = vmax.f32 %v11696_v18, %v11704_v55 }
 0x93d   : > { %v11710_v38 = vpop.f32.mrf.mxu0 }
 0x93e   : > { %v11794_v60 = vpop.trf.xlu0 }
 0x93f   : > { %v11712_v45 = vpop.f32.mrf.mxu0  ;;  %16334 = vst [vmem:[#allocation110_spill] sm:$0xff] %v11794_v60  ;;  %v3193_v60 = vmax.f32 %v3191_v49, %v11708_v35 }
 0x940   : > { %v3194_v2 = vmax.f32 %v3192_v50, %v11712_v45 }
 0x941   : > { %v11714_v43 = vpop.f32.mrf.mxu0 }
 0x942   : > { %16316 = vst [vmem:[#allocation38_spill] sm:$0xff] %v11714_v43  ;;  %v11800_v15 = vpop.trf.xlu0 }
 0x943   : > { %v11716_v1 = vpop.f32.mrf.mxu0  ;;  %16335 = vst [vmem:[#allocation111_spill] sm:$0xff] %v11800_v15 }
 0x944   : > { %v3195_v15 = vmax.f32 %v3193_v60, %v11716_v1 }
 0x945   : > { %v11718_v61 = vpop.f32.mrf.mxu0 }
 0x946   : > { %v11810_v28 = vpop.trf.xlu0 }
 0x947   : > { %v11720_v54 = vpop.f32.mrf.mxu0  ;;  %16336 = vst [vmem:[#allocation112_spill] sm:$0xff] %v11810_v28 }
 0x948   : > { %v3196_v33 = vmax.f32 %v3194_v2, %v11720_v54 }
 0x949   : > { %v11722_v31 = vpop.f32.mrf.mxu0 }
 0x94a   : > { %16317 = vst [vmem:[#allocation40_spill] sm:$0xff] %v11722_v31  ;;  %v11820_v51 = vpop.trf.xlu0 }
 0x94b   : > { %v11724_v62 = vpop.f32.mrf.mxu0  ;;  %16337 = vst [vmem:[#allocation113_spill] sm:$0xff] %v11820_v51 }
 0x94c   : > { %16318 = vst [vmem:[#allocation42_spill] sm:$0xff] %v11724_v62  ;;  %v3197_v7 = vmax.f32 %v3195_v15, %v11724_v62 }
 0x94d   : > { %v11726_v24 = vpop.f32.mrf.mxu0 }
 0x94e   : > { %v11830_v58 = vpop.trf.xlu0 }
 0x94f   : > { %v11728_v27 = vpop.f32.mrf.mxu0  ;;  %16338 = vst [vmem:[#allocation114_spill] sm:$0xff] %v11830_v58 }
 0x950   : > { %16319 = vst [vmem:[#allocation46_spill] sm:$0xff] %v11728_v27  ;;  %v3198_v28 = vmax.f32 %v3196_v33, %v11728_v27 }
 0x951   : > { %v11730_v23 = vpop.f32.mrf.mxu0 }
 0x952   : > { %16320 = vst [vmem:[#allocation49_spill] sm:$0xff] %v11730_v23  ;;  %v11840_v27 = vpop.trf.xlu0 }
 0x953   : > { %v11732_v34 = vpop.f32.mrf.mxu0  ;;  %16339 = vst [vmem:[#allocation115_spill] sm:$0xff] %v11840_v27 }
 0x954   : > { %v3199_v49 = vmax.f32 %v3197_v7, %v11732_v34 }
 0x955   : > { %v11734_v40 = vpop.f32.mrf.mxu0 }
 0x957   : > { %v11736_v36 = vpop.f32.mrf.mxu0 }
 0x958   : > { %v3200_v50 = vmax.f32 %v3198_v28, %v11736_v36 }
 0x959   : > { %v11738_v16 = vpop.f32.mrf.mxu0 }
 0x95a   : > { %16321 = vst [vmem:[#allocation52_spill] sm:$0xff] %v11738_v16 }
 0x95b   : > { %v11740_v29 = vpop.f32.mrf.mxu0 }
 0x95c   : > { %16322 = vst [vmem:[#allocation83_spill] sm:$0xff] %v11740_v29  ;;  %v3201_v2 = vmax.f32 %v3199_v49, %v11740_v29 }
 0x95d   : > { %v11742_v4 = vpop.f32.mrf.mxu0 }
 0x95f   : > { %v11744_v39 = vpop.f32.mrf.mxu0 }
 0x960   : > { %16323 = vst [vmem:[#allocation39_spill] sm:$0xff] %v11744_v39  ;;  %v3202_v60 = vmax.f32 %v3200_v50, %v11744_v39  ;;  %v11850_v39 = vpop.trf.xlu0 }
 0x961   : > { %v11746_v46 = vpop.f32.mrf.mxu0  ;;  %16341 = vst [vmem:[#allocation117_spill] sm:$0xff] %v11850_v39 }
 0x963   : > { %v11748_v17 = vpop.f32.mrf.mxu0 }
 0x964   : > { %v3203_v15 = vmax.f32 %v3201_v2, %v11748_v17  ;;  %v3229_v2 = vmax.f32 %v11698_v6, %v11706_v20 }
 0x965   : > { %v11750_v11 = vpop.f32.mrf.mxu0 }
 0x967   : > { %v11752_v44 = vpop.f32.mrf.mxu0 }
 0x968   : > { %v3204_v33 = vmax.f32 %v3202_v60, %v11752_v44 }
 0x969   : > { %v11754_v57 = vpop.f32.mrf.mxu0 }
 0x96b   : > { %v11758_v21 = vpop.f32.mrf.mxu0 }
 0x96c   : > { %v3205_v7 = vmax.f32 %v3203_v15, %v11758_v21 }
 0x96d   : > { %v11760_v12 = vpop.f32.mrf.mxu0 }
 0x96f   : > { %v11762_v52 = vpop.f32.mrf.mxu0 }
 0x970   : > { %v3206_v28 = vmax.f32 %v3204_v33, %v11762_v52  ;;  %v3228_v33 = vmax.f32 %v11694_v42, %v11702_v5 }
 0x971   : > { %v11766_v13 = vpop.f32.mrf.mxu0 }
 0x972   : > { %v3230_v20 = vmax.f32 %v3228_v33, %v11710_v38 }
 0x973   : > { %v11768_v32 = vpop.f32.mrf.mxu0 }
 0x974   : > { %16326 = vst [vmem:[#allocation23_spill] sm:$0xff] %v11768_v32  ;;  %v3207_v49 = vmax.f32 %v3205_v7, %v11768_v32  ;;  %v3231_v7 = vmax.f32 %v3229_v2, %v11714_v43  ;;  %v3232_v2 = vmax.f32 %v3230_v20, %v11718_v61 }
 0x975   : > { %v11772_v8 = vpop.f32.mrf.mxu0 }
 0x976   : > { %v3234_v33 = vmax.f32 %v3232_v2, %v11726_v24 }
 0x977   : > { %v11774_v14 = vpop.f32.mrf.mxu0 }
 0x978   : > { %16328 = vst [vmem:[#allocation41_spill] sm:$0xff] %v11774_v14  ;;  %v3208_v50 = vmax.f32 %v3206_v28, %v11774_v14  ;;  %v11865_v14 = vpop.trf.xlu0  ;;  %v3236_v20 = vmax.f32 %v3234_v33, %v11734_v40 }
 0x979   : > { %v11778_v47 = vpop.f32.mrf.mxu0  ;;  %16343 = vst [vmem:[#allocation119_spill] sm:$0xff] %v11865_v14 }
 0x97a   : > { %v3238_v2 = vmax.f32 %v3236_v20, %v11742_v4 }
 0x97b   : > { %v11780_v3 = vpop.f32.mrf.mxu0 }
 0x97c   : > { %16330 = vst [vmem:[#allocation47_spill] sm:$0xff] %v11780_v3  ;;  %v3209_v60 = vmax.f32 %v3207_v49, %v11780_v3  ;;  %v3233_v49 = vmax.f32 %v3231_v7, %v11722_v31  ;;  %v11879_v43 = vpop.trf.xlu0 }
 0x97d   : > { %v11784_v53 = vpop.f32.mrf.mxu0  ;;  %16345 = vst [vmem:[#allocation121_spill] sm:$0xff] %v11879_v43 }
 0x97f   : > { %v11786_v41 = vpop.f32.mrf.mxu0 }
 0x980   : > { %16332 = vst [vmem:[#allocation68_spill] sm:$0xff] %v11786_v41  ;;  %v3210_v27 = vmax.f32 %v3208_v50, %v11786_v41  ;;  %v11893_v43 = vpop.trf.xlu0 }
 0x981   : > { %v11790_v0 = vpop.f32.mrf.mxu0  ;;  %16347 = vst [vmem:[#allocation123_spill] sm:$0xff] %v11893_v43 }
 0x983   : > { %v11792_v19 = vpop.f32.mrf.mxu0 }
 0x984   : > { %v3211_v28 = vmax.f32 %v3209_v60, %v11792_v19  ;;  %v3235_v60 = vmax.f32 %v3233_v49, %v11730_v23  ;;  %v11895_v23 = vpop.trf.xlu1 }
 0x985   : > { %v11796_v25 = vpop.f32.mrf.mxu0  ;;  %16348 = vst [vmem:[#allocation124_spill] sm:$0xff] %v11895_v23 }
 0x986   : > { %v3237_v7 = vmax.f32 %v3235_v60, %v11738_v16 }
 0x987   : > { %v11798_v37 = vpop.f32.mrf.mxu0 }
 0x988   : > { %v3212_v39 = vmax.f32 %v3210_v27, %v11798_v37  ;;  %v3239_v49 = vmax.f32 %v3237_v7, %v11746_v46  ;;  %v16349_v7 = vld [vmem:[#allocation16_spill] sm:$0xff] }
 0x989   : > { %v11802_v9 = vpop.f32.mrf.mxu0 }
 0x98a   : > { %v3241_v60 = vmax.f32 %v3239_v49, %v11754_v57 }
 0x98b   : > { %v11804_v26 = vpop.f32.mrf.mxu0 }
 0x98c   : > { %v3213_v50 = vmax.f32 %v3211_v28, %v11804_v26 }
 0x98d   : > { %v11812_v48 = vpop.f32.mrf.mxu0 }
 0x98f   : > { %v11816_v63 = vpop.f32.mrf.mxu0 }
 0x990   : > { %v3214_v41 = vmax.f32 %v3212_v39, %v11816_v63 }
 0x991   : > { %v11822_v30 = vpop.f32.mrf.mxu0 }
 0x993   : > { %v11826_v59 = vpop.f32.mrf.mxu0 }
 0x994   : > { %v3215_v27 = vmax.f32 %v3213_v50, %v11826_v59 }
 0x995   : > { %v11832_v22 = vpop.f32.mrf.mxu0 }
 0x997   : > { %v11836_v51 = vpop.f32.mrf.mxu0 }
 0x998   : > { %v3216_v14 = vmax.f32 %v3214_v41, %v11836_v51 }
 0x999   : > { %v11842_v62 = vpop.f32.mrf.mxu0 }
 0x99b   : > { %v11846_v58 = vpop.f32.mrf.mxu0 }
 0x99c   : > { %16340 = vst [vmem:[#allocation116_spill] sm:$0xff] %v11846_v58  ;;  %v3217_v39 = vmax.f32 %v3215_v27, %v11846_v58  ;;  %v792_v58 = vpop.permute.xlu0 %791 }
 0x99d   : > { %v11852_v29 = vpop.f32.mrf.mxu0  ;;  %v1040_v16 = vadd.f32 %v16349_v7, %v792_v58 }
 0x99f   : > { %v11858_v15 = vpop.f32.mrf.mxu0 }
 0x9a0   : > { %16342 = vst [vmem:[#allocation118_spill] sm:$0xff] %v11858_v15  ;;  %v3218_v28 = vmax.f32 %v3216_v14, %v11858_v15  ;;  %v3240_v14 = vmax.f32 %v3238_v2, %v11750_v11  ;;  %v3243_v15 = vmax.f32 %v3241_v60, %v11766_v13 }
 0x9a1   : > { %v11867_v32 = vpop.f32.mrf.mxu0 }
 0x9a2   : > { %v3245_v43 = vmax.f32 %v3243_v15, %v11778_v47 }
 0x9a3   : > { %v11873_v3 = vpop.f32.mrf.mxu0 }
 0x9a4   : > { %16344 = vst [vmem:[#allocation120_spill] sm:$0xff] %v11873_v3  ;;  %v3219_v41 = vmax.f32 %v3217_v39, %v11873_v3  ;;  %v16350_v39 = vld [vmem:[#allocation17_spill] sm:$0xff]  ;;  %v3247_v49 = vmax.f32 %v3245_v43, %v11790_v0 }
 0x9a5   : > { %v11881_v5 = vpop.f32.mrf.mxu0  ;;  %v1042_v3 = vadd.f32 %v16350_v39, %v792_v58 }
 0x9a6   : > { %v3249_v2 = vmax.f32 %v3247_v49, %v11802_v9 }
 0x9a7   : > { %v11887_v31 = vpop.f32.mrf.mxu0  ;;  %6174 = vxpose.xlu0.b32.start.end [1/1] (short) %v1042_v3, 128 }
 0x9a8   : > { %16346 = vst [vmem:[#allocation122_spill] sm:$0xff] %v11887_v31  ;;  %v3220_v50 = vmax.f32 %v3218_v28, %v11887_v31  ;;  %v3242_v28 = vmax.f32 %v3240_v14, %v11760_v12  ;;  %v11905_v31 = vpop.trf.xlu1  ;;  %6142 = vxpose.xlu1.b32.start.end [1/1] (short) %v1040_v16, 128  ;;  %v3251_v14 = vmax.f32 %v3249_v2, %v11822_v30 }
 0x9a9   : > { %16351 = vst [vmem:[#allocation16_spill] sm:$0xff] %v11905_v31  ;;  %v11915_v16 = vpop.f32.mrf.mxu0 }
 0x9aa   : > { %v3221_v27 = vmax.f32 %v3219_v41, %v3220_v50  ;;  %v3244_v20 = vmax.f32 %v3242_v28, %v11772_v8  ;;  %v3253_v3 = vmax.f32 %v3251_v14, %v11842_v62 }
 0x9ac   : > { %v3222_v33 = vrot.slane %v3221_v27, 4  ;;  %v3246_v50 = vmax.f32 %v3244_v20, %v11784_v53  ;;  %v3255_v43 = vmax.f32 %v3253_v3, %v11867_v32 }
 0x9ae   : > { %v3223_v23 = vmax.f32 %v3221_v27, %v3222_v33  ;;  %v3248_v58 = vmax.f32 %v3246_v50, %v11796_v25 }
 0x9b0   : > { %v3224_v41 = vrot.slane %v3223_v23, 2  ;;  %v3250_v27 = vmax.f32 %v3248_v58, %v11812_v48 }
 0x9b2   : > { %v3225_v60 = vmax.f32 %v3223_v23, %v3224_v41  ;;  %v3252_v33 = vmax.f32 %v3250_v27, %v11832_v22  ;;  %v3257_v23 = vmax.f32 %v3255_v43, %v11915_v16 }
 0x9b4   : > { %v3226_v15 = vrot.slane %v3225_v60, 1  ;;  %v3254_v39 = vmax.f32 %v3252_v33, %v11852_v29 }
 0x9b6   : > { %v11919_v7 = vmax.f32 %v3225_v60, %v3226_v15  ;;  %v3256_v28 = vmax.f32 %v3254_v39, %v11881_v5 }
 0x9b8   : > { %v3265_v20 = vsub.f32 %v11692_v10, %v11919_v7  ;;  %v3267_v49 = vsub.f32 %v11696_v18, %v11919_v7  ;;  %v3269_v41 = vsub.f32 %v11700_v56, %v11919_v7  ;;  %v3258_v50 = vmax.f32 %v3256_v28, %v3257_v23 }
 0x9b9   : > { %v3271_v2 = vsub.f32 %v11704_v55, %v11919_v7  ;;  %v3273_v14 = vsub.f32 %v11708_v35, %v11919_v7  ;;  %v3275_v10 = vsub.f32 %v11712_v45, %v11919_v7  ;;  %v3277_v56 = vsub.f32 %v11716_v1, %v11919_v7  ;;  %v16352_v35 = vld [vmem:[#allocation42_spill] sm:$0xff] }
 0x9ba   : > { %v3329_v60 = vmul.f32 1.442695, %v3265_v20  ;;  %v3333_v58 = vmul.f32 1.442695, %v3267_v49  ;;  %v3337_v15 = vmul.f32 1.442695, %v3269_v41  ;;  %v3279_v55 = vsub.f32 %v11720_v54, %v11919_v7 }
 0x9bb   : > { %v3259_v27 = vrot.slane %v3258_v50, 4  ;;  %v3341_v18 = vmul.f32 1.442695, %v3271_v2  ;;  %v3345_v3 = vmul.f32 1.442695, %v3273_v14  ;;  %v3281_v39 = vsub.f32 %v16352_v35, %v11919_v7  ;;  %v16353_v45 = vld [vmem:[#allocation46_spill] sm:$0xff] }
 0x9bc   : > { %8734 = vpow2.f32 %v3329_v60  ;;  %v3349_v43 = vmul.f32 1.442695, %v3275_v10  ;;  %v3353_v23 = vmul.f32 1.442695, %v3277_v56  ;;  %v3283_v28 = vsub.f32 %v16353_v45, %v11919_v7  ;;  %v16354_v54 = vld [vmem:[#allocation83_spill] sm:$0xff] }
 0x9bd   : > { %8736 = vpow2.f32 %v3333_v58  ;;  %v3260_v33 = vmax.f32 %v3258_v50, %v3259_v27  ;;  %v3285_v1 = vsub.f32 %v11732_v34, %v11919_v7  ;;  %v3357_v49 = vmul.f32 1.442695, %v3279_v55  ;;  %v16355_v60 = vld [vmem:[#allocation39_spill] sm:$0xff] }
 0x9be   : > { %8738 = vpow2.f32 %v3337_v15  ;;  %v3287_v41 = vsub.f32 %v11736_v36, %v11919_v7  ;;  %v3289_v50 = vsub.f32 %v16354_v54, %v11919_v7  ;;  %v3361_v2 = vmul.f32 1.442695, %v3281_v39 }
 0x9bf   : > { %8740 = vpow2.f32 %v3341_v18  ;;  %v3261_v20 = vrot.slane %v3260_v33, 2  ;;  %v3291_v58 = vsub.f32 %v16355_v60, %v11919_v7  ;;  %v3365_v14 = vmul.f32 1.442695, %v3283_v28 }
 0x9c0   : > { %8742 = vpow2.f32 %v3345_v3  ;;  %v3293_v34 = vsub.f32 %v11748_v17, %v11919_v7  ;;  %v3369_v10 = vmul.f32 1.442695, %v3285_v1  ;;  %v3309_v36 = vsub.f32 %v11792_v19, %v11919_v7 }
 0x9c1   : > { %8744 = vpow2.f32 %v3349_v43  ;;  %v3262_v15 = vmax.f32 %v3260_v33, %v3261_v20  ;;  %v3373_v56 = vmul.f32 1.442695, %v3287_v41  ;;  %v3311_v3 = vsub.f32 %v11798_v37, %v11919_v7 }
 0x9c2   : > { %8746 = vpow2.f32 %v3353_v23  ;;  %v3377_v55 = vmul.f32 1.442695, %v3289_v50  ;;  %v3313_v17 = vsub.f32 %v11804_v26, %v11919_v7  ;;  %v3381_v35 = vmul.f32 1.442695, %v3291_v58 }
 0x9c3   : > { %8748 = vpow2.f32 %v3357_v49  ;;  %v3263_v39 = vrot.slane %v3262_v15, 1  ;;  %v3315_v19 = vsub.f32 %v11816_v63, %v11919_v7  ;;  %v3385_v23 = vmul.f32 1.442695, %v3293_v34 }
 0x9c4   : > { %8750 = vpow2.f32 %v3361_v2  ;;  %v3317_v28 = vsub.f32 %v11826_v59, %v11919_v7  ;;  %v3417_v20 = vmul.f32 1.442695, %v3309_v36  ;;  %v3319_v26 = vsub.f32 %v11836_v51, %v11919_v7 }
 0x9c5   : > { %8752 = vpow2.f32 %v3365_v14  ;;  %v3421_v1 = vmul.f32 1.442695, %v3311_v3  ;;  %v3295_v63 = vsub.f32 %v11752_v44, %v11919_v7  ;;  %v3425_v54 = vmul.f32 1.442695, %v3313_v17  ;;  %v16357_v44 = vld [vmem:[#allocation23_spill] sm:$0xff]  ;;  %v16358_v17 = vld [vmem:[#allocation41_spill] sm:$0xff] }
 0x9c6   : > { %8754 = vpow2.f32 %v3369_v10  ;;  %v11982_v50 = vmax.f32 %v3262_v15, %v3263_v39  ;;  %v3297_v59 = vsub.f32 %v11758_v21, %v11919_v7  ;;  %v3429_v2 = vmul.f32 1.442695, %v3315_v19 }
 0x9c7   : > { %8756 = vpow2.f32 %v3373_v56  ;;  %v3299_v58 = vsub.f32 %v11762_v52, %v11919_v7  ;;  %v3433_v14 = vmul.f32 1.442695, %v3317_v28  ;;  %v3301_v34 = vsub.f32 %v16357_v44, %v11919_v7 }
 0x9c8   : > { %8758 = vpow2.f32 %v3377_v55  ;;  %v3437_v15 = vmul.f32 1.442695, %v3319_v26  ;;  %v3389_v21 = vmul.f32 1.442695, %v3295_v63  ;;  %v3266_v56 = vsub.f32 %v11694_v42, %v11982_v50  ;;  %v16359_v42 = vld [vmem:[#allocation74_spill] sm:$0xff]  ;;  %v16361_v63 = vld [vmem:[#allocation71_spill] sm:$0xff] }
 0x9c9   : > { %v11952_v27 = vpop.eup %8734  ;;  %8760 = vpow2.f32 %v3381_v35  ;;  %v3393_v3 = vmul.f32 1.442695, %v3297_v59  ;;  %v3268_v55 = vsub.f32 %v11698_v6, %v11982_v50  ;;  %v3303_v35 = vsub.f32 %v16358_v17, %v11919_v7 }
 0x9ca   : > { %v11956_v18 = vpop.eup %8736  ;;  %8762 = vpow2.f32 %v3385_v23  ;;  %v3397_v39 = vmul.f32 1.442695, %v3299_v58  ;;  %v3401_v19 = vmul.f32 1.442695, %v3301_v34  ;;  %v3331_v6 = vmul.f32 1.442695, %v3266_v56 }
 0x9cb   : > { %16356 = vst [vmem:[#allocation17_spill] sm:$0xff] %v11956_v18  ;;  %v3457_v33 = vadd.f32 %v11956_v18, %v11952_v27  ;;  %v11964_v43 = vpop.eup %8738  ;;  %8764 = vpow2.f32 %v3417_v20  ;;  %v16360_v20 = vld [vmem:[#allocation47_spill] sm:$0xff]  ;;  %v3335_v59 = vmul.f32 1.442695, %v3268_v55 }
 0x9cc   : > { %v11971_v45 = vpop.eup %8740  ;;  %8766 = vpow2.f32 %v3421_v1  ;;  %v3305_v26 = vsub.f32 %v16360_v20, %v11919_v7 }
 0x9cd   : > { %v3458_v37 = vadd.f32 %v11964_v43, %v3457_v33  ;;  %v11978_v41 = vpop.eup %8742  ;;  %8768 = vpow2.f32 %v3425_v54  ;;  %v3272_v54 = vsub.f32 %v16361_v63, %v11982_v50  ;;  %v3292_v63 = vsub.f32 %v11746_v46, %v11982_v50 }
 0x9ce   : > { %v11987_v60 = vpop.eup %8744  ;;  %8770 = vpow2.f32 %v3429_v2  ;;  %v3409_v56 = vmul.f32 1.442695, %v3305_v26  ;;  %v3282_v26 = vsub.f32 %v11726_v24, %v11982_v50 }
 0x9cf   : > { %v3459_v49 = vadd.f32 %v11971_v45, %v3458_v37  ;;  %v11994_v36 = vpop.eup %8746  ;;  %8772 = vpow2.f32 %v3433_v14  ;;  %v3270_v37 = vsub.f32 %v16359_v42, %v11982_v50  ;;  %v3405_v14 = vmul.f32 1.442695, %v3303_v35 }
 0x9d0   : > { %v12001_v33 = vpop.eup %8748  ;;  %8774 = vpow2.f32 %v3437_v15  ;;  %v3274_v15 = vsub.f32 %v11710_v38, %v11982_v50  ;;  %v3278_v35 = vsub.f32 %v11718_v61, %v11982_v50  ;;  %v3290_v61 = vsub.f32 %v11742_v4, %v11982_v50 }
 0x9d1   : > { %v3460_v51 = vadd.f32 %v11978_v41, %v3459_v49  ;;  %v12008_v28 = vpop.eup %8750  ;;  %8776 = vpow2.f32 %v3389_v21  ;;  %v3296_v4 = vsub.f32 %v11754_v57, %v11982_v50 }
 0x9d2   : > { %v12012_v1 = vpop.eup %8752  ;;  %8778 = vpow2.f32 %v3393_v3  ;;  %v16363_v3 = vld [vmem:[#allocation38_spill] sm:$0xff] }
 0x9d3   : > { %v3461_v10 = vadd.f32 %v11987_v60, %v3460_v51  ;;  %v12017_v2 = vpop.eup %8754  ;;  %v16362_v51 = vld [vmem:[#allocation68_spill] sm:$0xff]  ;;  %8780 = vpow2.f32 %v3397_v39  ;;  %v3343_v39 = vmul.f32 1.442695, %v3272_v54 }
 0x9d4   : > { %v3307_v58 = vsub.f32 %v16362_v51, %v11919_v7  ;;  %v12021_v44 = vpop.eup %8756  ;;  %8782 = vpow2.f32 %v3401_v19 }
 0x9d5   : > { %v3462_v52 = vadd.f32 %v11994_v36, %v3461_v10  ;;  %v3339_v10 = vmul.f32 1.442695, %v3270_v37  ;;  %v12026_v21 = vpop.eup %8758  ;;  %8784 = vpow2.f32 %v3331_v6  ;;  %v3347_v6 = vmul.f32 1.442695, %v3274_v15 }
 0x9d6   : > { %v12030_v55 = vpop.eup %8760  ;;  %8786 = vpow2.f32 %v3335_v59  ;;  %v3413_v38 = vmul.f32 1.442695, %v3307_v58  ;;  %v3355_v58 = vmul.f32 1.442695, %v3278_v35 }
 0x9d7   : > { %v3463_v23 = vadd.f32 %v12001_v33, %v3462_v52  ;;  %v3276_v52 = vsub.f32 %v16363_v3, %v11982_v50  ;;  %v12035_v19 = vpop.eup %8762  ;;  %8788 = vpow2.f32 %v3405_v14 }
 0x9d8   : > { %v12039_v37 = vpop.eup %8764  ;;  %8790 = vpow2.f32 %v3339_v10 }
 0x9d9   : > { %v3464_v49 = vadd.f32 %v12008_v28, %v3463_v23  ;;  %v16364_v23 = vld [vmem:[#allocation40_spill] sm:$0xff]  ;;  %16365 = vst [vmem:[#allocation42_spill] sm:$0xff] %v12039_v37  ;;  %8792 = vpow2.f32 %v3409_v56  ;;  %v3351_v54 = vmul.f32 1.442695, %v3276_v52  ;;  %v3363_v56 = vmul.f32 1.442695, %v3282_v26 }
 0x9da   : > { %v3280_v42 = vsub.f32 %v16364_v23, %v11982_v50  ;;  %8794 = vpow2.f32 %v3343_v39 }
 0x9db   : > { %v3465_v34 = vadd.f32 %v12012_v1, %v3464_v49  ;;  %v12044_v49 = vpop.eup %8766  ;;  %8796 = vpow2.f32 %v3413_v38  ;;  %v3383_v38 = vmul.f32 1.442695, %v3292_v63 }
 0x9dc   : > { %v12050_v59 = vpop.eup %8768  ;;  %v3359_v46 = vmul.f32 1.442695, %v3280_v42  ;;  %8798 = vpow2.f32 %v3347_v6 }
 0x9dd   : > { %v3466_v17 = vadd.f32 %v12017_v2, %v3465_v34  ;;  %v12055_v14 = vpop.eup %8770  ;;  %v3294_v34 = vsub.f32 %v11750_v11, %v11982_v50  ;;  %8800 = vpow2.f32 %v3351_v54  ;;  %v3379_v11 = vmul.f32 1.442695, %v3290_v61  ;;  %v16369_v54 = vld [vmem:[#allocation52_spill] sm:$0xff] }
 0x9de   : > { %v12061_v15 = vpop.eup %8772  ;;  %8802 = vpow2.f32 %v3355_v58  ;;  %v3391_v58 = vmul.f32 1.442695, %v3296_v4 }
 0x9df   : > { %v3467_v20 = vadd.f32 %v12021_v44, %v3466_v17  ;;  %v12066_v52 = vpop.eup %8774  ;;  %v16366_v17 = vld [vmem:[#allocation49_spill] sm:$0xff]  ;;  %8804 = vpow2.f32 %v3359_v46  ;;  %v3387_v26 = vmul.f32 1.442695, %v3294_v34  ;;  %v16371_v34 = vld [vmem:[#allocation116_spill] sm:$0xff] }
 0x9e0   : > { %v3284_v35 = vsub.f32 %v16366_v17, %v11982_v50  ;;  %v12070_v39 = vpop.eup %8776  ;;  %8806 = vpow2.f32 %v3363_v56  ;;  %v3321_v46 = vsub.f32 %v16371_v34, %v11919_v7 }
 0x9e1   : > { %v3468_v51 = vadd.f32 %v12026_v21, %v3467_v20  ;;  %v12075_v42 = vpop.eup %8778  ;;  %v3286_v20 = vsub.f32 %v11734_v40, %v11982_v50  ;;  %8808 = vpow2.f32 %v3379_v11 }
 0x9e2   : > { %16367 = vst [vmem:[#allocation46_spill] sm:$0xff] %v12075_v42  ;;  %v12079_v6 = vpop.eup %8780  ;;  %v3367_v24 = vmul.f32 1.442695, %v3284_v35  ;;  %8810 = vpow2.f32 %v3383_v38  ;;  %v16374_v38 = vld [vmem:[#allocation118_spill] sm:$0xff]  ;;  %v3441_v23 = vmul.f32 1.442695, %v3321_v46 }
 0x9e3   : > { %v3469_v10 = vadd.f32 %v12030_v55, %v3468_v51  ;;  %16368 = vst [vmem:[#allocation83_spill] sm:$0xff] %v12079_v6  ;;  %v3288_v51 = vsub.f32 %v16369_v54, %v11982_v50  ;;  %v12084_v63 = vpop.eup %8782  ;;  %8812 = vpow2.f32 %v3387_v26 }
 0x9e4   : > { %16370 = vst [vmem:[#allocation39_spill] sm:$0xff] %v12084_v63  ;;  %8814 = vpow2.f32 %v3391_v58 }
 0x9e5   : > { %v3470_v57 = vadd.f32 %v12035_v19, %v3469_v10  ;;  %v12086_v10 = vpop.eup %8784  ;;  %v3375_v56 = vmul.f32 1.442695, %v3288_v51  ;;  %8816 = vpow2.f32 %v3367_v24  ;;  %v16375_v51 = vld [vmem:[#allocation120_spill] sm:$0xff]  ;;  %v16377_v24 = vld [vmem:[#allocation122_spill] sm:$0xff] }
 0x9e6   : > { %v12089_v40 = vpop.eup %8786  ;;  %v3325_v58 = vsub.f32 %v16375_v51, %v11919_v7 }
 0x9e7   : > { %v3471_v61 = vadd.f32 %v12070_v39, %v3470_v57  ;;  %v3371_v57 = vmul.f32 1.442695, %v3286_v20  ;;  %v12093_v3 = vpop.eup %8788  ;;  %v3494_v11 = vadd.f32 %v12089_v40, %v12086_v10 }
 0x9e8   : > { %16372 = vst [vmem:[#allocation23_spill] sm:$0xff] %v12093_v3  ;;  %v12098_v54 = vpop.eup %8790  ;;  %v3449_v46 = vmul.f32 1.442695, %v3325_v58 }
 0x9e9   : > { %v3472_v17 = vadd.f32 %v12075_v42, %v3471_v61  ;;  %v12100_v35 = vpop.eup %8792  ;;  %v3323_v61 = vsub.f32 %v16374_v38, %v11919_v7  ;;  %v3495_v20 = vadd.f32 %v12098_v54, %v3494_v11  ;;  %8818 = vpow2.f32 %v3371_v57 }
 0x9ea   : > { %16373 = vst [vmem:[#allocation41_spill] sm:$0xff] %v12100_v35  ;;  %v12106_v26 = vpop.eup %8794  ;;  %8820 = vpow2.f32 %v3375_v56  ;;  %v3327_v11 = vsub.f32 %v16377_v24, %v11919_v7 }
 0x9eb   : > { %v3473_v4 = vadd.f32 %v12079_v6, %v3472_v17  ;;  %v12110_v17 = vpop.eup %8796  ;;  %v3496_v6 = vadd.f32 %v12106_v26, %v3495_v20  ;;  %v3445_v42 = vmul.f32 1.442695, %v3323_v61  ;;  %8822 = vpow2.f32 %v3441_v23 }
 0x9ec   : > { %16376 = vst [vmem:[#allocation74_spill] sm:$0xff] %v12110_v17  ;;  %v12114_v38 = vpop.eup %8798 }
 0x9ed   : > { %v3474_v34 = vadd.f32 %v12084_v63, %v3473_v4  ;;  %v12116_v4 = vpop.eup %8800  ;;  %v3497_v57 = vadd.f32 %v12114_v38, %v3496_v6  ;;  %8824 = vpow2.f32 %v3445_v42  ;;  %v3453_v6 = vmul.f32 1.442695, %v3327_v11 }
 0x9ee   : > { %v12122_v51 = vpop.eup %8802  ;;  %8826 = vpow2.f32 %v3449_v46  ;;  %v3304_v42 = vsub.f32 %v11778_v47, %v11982_v50 }
 0x9ef   : > { %v3475_v31 = vadd.f32 %v12093_v3, %v3474_v34  ;;  %v12124_v18 = vpop.eup %8804  ;;  %v3298_v34 = vsub.f32 %v11760_v12, %v11982_v50  ;;  %v3498_v20 = vadd.f32 %v12116_v4, %v3497_v57  ;;  %8828 = vpow2.f32 %v3453_v6 }
 0x9f0   : > { %v12130_v3 = vpop.eup %8806 }
 0x9f1   : > { %v3476_v63 = vadd.f32 %v12100_v35, %v3475_v31  ;;  %v3300_v31 = vsub.f32 %v11766_v13, %v11982_v50  ;;  %v8809_v7 = vpop.eup %8808  ;;  %v3499_v58 = vadd.f32 %v12122_v51, %v3498_v20  ;;  %v3395_v57 = vmul.f32 1.442695, %v3298_v34 }
 0x9f2   : > { %v8811_v23 = vpop.eup %8810  ;;  %v3306_v34 = vsub.f32 %v11784_v53, %v11982_v50  ;;  %v3312_v53 = vsub.f32 %v11802_v9, %v11982_v50 }
 0x9f3   : > { %v3477_v56 = vadd.f32 %v12110_v17, %v3476_v63  ;;  %v3302_v63 = vsub.f32 %v11772_v8, %v11982_v50  ;;  %v12138_v24 = vpop.eup %8812  ;;  %v3500_v17 = vadd.f32 %v12124_v18, %v3499_v58  ;;  %v3399_v11 = vmul.f32 1.442695, %v3300_v31 }
 0x9f4   : > { %v12142_v13 = vpop.eup %8814  ;;  %v3547_v58 = vpack.c.bf16 %v12070_v39, %v12035_v19  ;;  %8830 = vpow2.f32 %v3395_v57  ;;  %v3546_v6 = vpack.c.bf16 %v8811_v23, %v8809_v7  ;;  %v3407_v39 = vmul.f32 1.442695, %v3304_v42 }
 0x9f5   : > { %v3478_v61 = vadd.f32 %v12039_v37, %v3477_v56  ;;  %v3501_v20 = vadd.f32 %v12130_v3, %v3500_v17  ;;  %v3548_v8 = vpack.c.bf16 %v12142_v13, %v12138_v24  ;;  %v8817_v46 = vpop.eup %8816  ;;  %v3308_v17 = vsub.f32 %v11790_v0, %v11982_v50 }
 0x9f6   : > { %v8819_v35 = vpop.eup %8818  ;;  %v3310_v37 = vsub.f32 %v11796_v25, %v11982_v50  ;;  %8832 = vpow2.f32 %v3399_v11  ;;  %v3326_v57 = vsub.f32 %v11881_v5, %v11982_v50  ;;  %v3411_v0 = vmul.f32 1.442695, %v3306_v34 }
 0x9f7   : > { %v3479_v12 = vadd.f32 %v12044_v49, %v3478_v61  ;;  %v3403_v61 = vmul.f32 1.442695, %v3302_v63  ;;  %v3502_v31 = vadd.f32 %v8817_v46, %v3501_v20  ;;  %3565 = vmatprep.subr.bf16.mxu1 %v3548_v8  ;;  %v3545_v25 = vpack.c.bf16 %v12030_v55, %v12026_v21  ;;  %v717_v21 = vld [vmem:[%s15721_s5 + $0xb0] sm:$0xff]  ;;  %v12180_v55 = vpop.trf.xlu1 }
 0x9f8   : > { %3566 = vmatpush1.bf16.msra.mxu1 %v3547_v58  ;;  %v3314_v42 = vsub.f32 %v11812_v48, %v11982_v50  ;;  %v3316_v5 = vsub.f32 %v11822_v30, %v11982_v50  ;;  %v3415_v11 = vmul.f32 1.442695, %v3308_v17  ;;  %16378 = vst [vmem:[#allocation47_spill] sm:$0xff] %v12180_v55  ;;  %v3419_v34 = vmul.f32 1.442695, %v3310_v37 }
 0x9f9   : > { %v3480_v56 = vadd.f32 %v12050_v59, %v3479_v12  ;;  %v8821_v12 = vpop.eup %8820  ;;  %v3503_v63 = vadd.f32 %v8819_v35, %v3502_v31  ;;  %3567 = vmatprep.subr.bf16.mxu1 %v3546_v6  ;;  %8834 = vpow2.f32 %v3403_v61  ;;  %v3324_v30 = vsub.f32 %v11867_v32, %v11982_v50 }
 0x9fa   : > { %v3544_v8 = vpack.c.bf16 %v8821_v12, %v8819_v35  ;;  %v12169_v58 = vpop.eup %8822  ;;  %8836 = vpow2.f32 %v3407_v39  ;;  %v3543_v31 = vpack.c.bf16 %v12021_v44, %v12017_v2  ;;  %v3542_v17 = vpack.c.bf16 %v8817_v46, %v12130_v3  ;;  %v702_v2 = vld [vmem:[%s15721_s5 + $0x38] sm:$0xff] }
 0x9fb   : > { %v3481_v47 = vadd.f32 %v12055_v14, %v3480_v56  ;;  %v3328_v56 = vsub.f32 %v11915_v16, %v11982_v50  ;;  %v3504_v9 = vadd.f32 %v8821_v12, %v3503_v63  ;;  %v3322_v16 = vsub.f32 %v11852_v29, %v11982_v50  ;;  %v12183_v48 = vpop.eup %8824 }
 0x9fc   : > { %3568 = vmatpush1.bf16.msra.mxu1 %v3545_v25  ;;  %v3451_v29 = vmul.f32 1.442695, %v3326_v57  ;;  %8838 = vpow2.f32 %v3411_v0  ;;  %v12191_v37 = vpop.eup %8826  ;;  %v3320_v32 = vsub.f32 %v11842_v62, %v11982_v50  ;;  %v3427_v3 = vmul.f32 1.442695, %v3314_v42 }
 0x9fd   : > { %v3482_v19 = vadd.f32 %v12061_v15, %v3481_v47  ;;  %v3505_v61 = vadd.f32 %v8809_v7, %v3504_v9  ;;  %3569 = vmatprep.subr.bf16.mxu1 %v3544_v8  ;;  %v3455_v47 = vmul.f32 1.442695, %v3328_v56  ;;  %v3318_v7 = vsub.f32 %v11832_v22, %v11982_v50  ;;  %v12202_v46 = vpop.eup %8828  ;;  %v12206_v50 = vpop.trf.xlu1 }
 0x9fe   : > { %8840 = vpow2.f32 %v3415_v11  ;;  %v3443_v22 = vmul.f32 1.442695, %v3322_v16  ;;  %v3447_v39 = vmul.f32 1.442695, %v3324_v30  ;;  %v3541_v62 = vpack.c.bf16 %v12012_v1, %v12008_v28  ;;  %16379 = vst [vmem:[#allocation71_spill] sm:$0xff] %v12206_v50 }
 0x9ff   : > { %v3483_v20 = vadd.f32 %v12066_v52, %v3482_v19  ;;  %v3506_v12 = vadd.f32 %v8811_v23, %v3505_v61  ;;  %v3423_v19 = vmul.f32 1.442695, %v3312_v53  ;;  %8842 = vpow2.f32 %v3419_v34 }
 0xa00   : > { %3570 = vmatpush1.bf16.msra.mxu1 %v3543_v31  ;;  %8844 = vpow2.f32 %v3451_v29  ;;  %v3431_v56 = vmul.f32 1.442695, %v3316_v5  ;;  %v3435_v0 = vmul.f32 1.442695, %v3318_v7  ;;  %v3439_v25 = vmul.f32 1.442695, %v3320_v32 }
 0xa01   : > { %v3484_v35 = vadd.f32 %v12169_v58, %v3483_v20  ;;  %v3507_v23 = vadd.f32 %v12138_v24, %v3506_v12  ;;  %3571 = vmatprep.subr.bf16.mxu1 %v3542_v17  ;;  %8846 = vpow2.f32 %v3455_v47  ;;  %v3540_v24 = vpack.c.bf16 %v12124_v18, %v12122_v51  ;;  %v12214_v57 = vpop.eup %8830  ;;  %v710_v20 = vld [vmem:[%s15721_s5 + $0x78] sm:$0xff] }
 0xa02   : > { %831 = vperm.xlu1 %8447, %v717_v21   ;;  %8848 = vpow2.f32 %v3423_v19  ;;  %v3538_v51 = vpack.c.bf16 %v12116_v4, %v12114_v38  ;;  %v3536_v38 = vpack.c.bf16 %v12106_v26, %v12098_v54  ;;  %v3535_v21 = vpack.c.bf16 %v11971_v45, %v11964_v43  ;;  %v16380_v26 = vld [vmem:[#allocation17_spill] sm:$0xff] }
 0xa03   : > { %v3485_v6 = vadd.f32 %v12183_v48, %v3484_v35  ;;  %v3508_v63 = vadd.f32 %v12142_v13, %v3507_v23  ;;  %8850 = vpow2.f32 %v3427_v3  ;;  %v12217_v1 = vpop.eup %8832  ;;  %v3539_v13 = vpack.c.bf16 %v12001_v33, %v11994_v36 }
 0xa04   : > { %3572 = vmatpush1.bf16.msra.mxu1 %v3541_v62  ;;  %8852 = vpow2.f32 %v3443_v22  ;;  %v3537_v36 = vpack.c.bf16 %v11987_v60, %v11978_v41  ;;  %v3534_v41 = vpack.c.bf16 %v12089_v40, %v12086_v10  ;;  %v3533_v29 = vpack.c.bf16 %v16380_v26, %v11952_v27  ;;  %v16408_v26 = vld [vmem:[#allocation73_spill] sm:$0xff] }
 0xa05   : > { %v3486_v44 = vadd.f32 %v12191_v37, %v3485_v6  ;;  %v3509_v28 = vadd.f32 %v12214_v57, %v3508_v63  ;;  %3573 = vmatprep.subr.bf16.mxu1 %v3540_v24  ;;  %8854 = vpow2.f32 %v3447_v39  ;;  %v3563_v10 = vpack.c.bf16 %v12202_v46, %v12191_v37 }
 0xa06   : > { %756 = vperm.xlu1 %8447, %v702_v2   ;;  %v12227_v9 = vpop.eup %8834  ;;  %8856 = vpow2.f32 %v3431_v56  ;;  %v3561_v27 = vpack.c.bf16 %v12183_v48, %v12169_v58  ;;  %v16381_v37 = vpack.c.bf16 %v12066_v52, %v12061_v15  ;;  %v16383_v63 = vpack.c.bf16 %v12055_v14, %v12050_v59  ;;  %v16384_v48 = vld [vmem:[#allocation42_spill] sm:$0xff]  ;;  %v16386_v56 = vld [vmem:[#allocation41_spill] sm:$0xff]  ;;  %v16391_v59 = vld [vmem:[#allocation27_spill] sm:$0xff] }
 0xa07   : > { %v12209_v53 = vadd.f32 %v12202_v46, %v3486_v44  ;;  %v3510_v18 = vadd.f32 %v12217_v1, %v3509_v28  ;;  %v8837_v42 = vpop.eup %8836  ;;  %8858 = vpow2.f32 %v3435_v0  ;;  %v16385_v24 = vpack.c.bf16 %v12044_v49, %v16384_v48  ;;  %v16387_v28 = vld [vmem:[#allocation74_spill] sm:$0xff]  ;;  %v16388_v0 = vld [vmem:[#allocation39_spill] sm:$0xff] }
 0xa08   : > { %3574 = vmatpush1.bf16.msra.mxu1 %v3539_v13  ;;  %8860 = vpow2.f32 %v3439_v25  ;;  %v3553_v15 = vpack.c.bf16 %v16387_v28, %v16386_v56  ;;  %v3552_v52 = vpack.c.bf16 %v8837_v42, %v12227_v9  ;;  %v16389_v13 = vld [vmem:[#allocation23_spill] sm:$0xff]  ;;  %v3550_v49 = vpack.c.bf16 %v12217_v1, %v12214_v57  ;;  %v16435_v56 = vld [vmem:[#allocation105_spill] sm:$0xff] }
 0xa09   : > { %v3511_v8 = vadd.f32 %v12227_v9, %v3510_v18  ;;  %3575 = vmatprep.subr.bf16.mxu1 %v3538_v51  ;;  %v8839_v4 = vpop.eup %8838  ;;  %v3551_v25 = vpack.c.bf16 %v16389_v13, %v16388_v0  ;;  %v16390_v18 = vld [vmem:[#allocation61_spill] sm:$0xff]  ;;  %v12262_v51 = vpop.permute.xlu0 %751  ;;  %v16396_v9 = vld [vmem:[#allocation26_spill] sm:$0xff]  ;;  %v16439_v0 = vld [vmem:[#allocation107_spill] sm:$0xff] }
 0xa0a   : > { %v986_v14 = vadd.f32 %v16391_v59, %v16390_v18  ;;  %16392 = vst [vmem:[#allocation38_spill] sm:$0xff] %v12262_v51 }
 0xa0b   : > { %v3512_v33 = vadd.f32 %v8837_v42, %v3511_v8  ;;  %v8841_v5 = vpop.eup %8840  ;;  %v16394_v8 = vld [vmem:[#allocation76_spill] sm:$0xff]  ;;  %v984_v42 = vadd.f32 %v16396_v9, %v16390_v18  ;;  %v16448_v9 = vld [vmem:[#allocation18_spill] sm:$0xff] }
 0xa0c   : > { %796 = vperm.xlu0 %8446, %v710_v20   ;;  %3576 = vmatpush1.bf16.msra.mxu1 %v3537_v36  ;;  %v8843_v11 = vpop.eup %8842  ;;  %v3554_v58 = vpack.c.bf16 %v8841_v5, %v8839_v4  ;;  %v16393_v20 = vld [vmem:[#allocation78_spill] sm:$0xff]  ;;  %v16442_v18 = vld [vmem:[#allocation108_spill] sm:$0xff] }
 0xa0d   : > { %v3513_v16 = vadd.f32 %v8839_v4, %v3512_v33  ;;  %3577 = vmatprep.subr.bf16.mxu1 %v3536_v38  ;;  %v8845_v35 = vpop.eup %8844  ;;  %v1060_v36 = vadd.f32 %v16394_v8, %v16393_v20  ;;  %v12268_v33 = vpop.trf.xlu1  ;;  %v16397_v38 = vld [vmem:[#allocation46_spill] sm:$0xff]  ;;  %v16398_v4 = vld [vmem:[#allocation83_spill] sm:$0xff]  ;;  %v3614_v57 = vmul.f32 0.5, %v984_v42  ;;  %v16447_v8 = vld [vmem:[#allocation25_spill] sm:$0xff] }
 0xa0e   : > { %v8847_v60 = vpop.eup %8846  ;;  %16395 = vst [vmem:[#allocation40_spill] sm:$0xff] %v12268_v33 }
 0xa0f   : > { %v3514_v34 = vadd.f32 %v8841_v5, %v3513_v16  ;;  %v8849_v61 = vpop.eup %8848  ;;  %v3564_v6 = vpack.c.bf16 %v8847_v60, %v8845_v35  ;;  %v3549_v5 = vpack.c.bf16 %v16398_v4, %v16397_v38  ;;  %v3615_v16 = vmul.f32 0.5, %v986_v14  ;;  %v16444_v14 = vld [vmem:[#allocation95_spill] sm:$0xff] }
 0xa10   : > { %3578 = vmatpush1.bf16.msra.mxu1 %v3535_v21  ;;  %v8851_v54 = vpop.eup %8850  ;;  %v3556_v62 = vpack.c.bf16 %v8849_v61, %v8843_v11  ;;  %v3531_v21 = vpack.c.bf16 %v1060_v36, %v1060_v36  ;;  %v16449_v38 = vld [vmem:[#allocation19_spill] sm:$0xff] }
 0xa11   : > { %v3515_v30 = vadd.f32 %v8843_v11, %v3514_v34  ;;  %3579 = vmatprep.subr.bf16.mxu1 %v3534_v41  ;;  %v8853_v47 = vpop.eup %8852  ;;  %v12276_v1 = vpop.trf.xlu1  ;;  %v16402_v34 = vmov 0.0  }
 0xa12   : > { %v8855_v12 = vpop.eup %8854  ;;  %16400 = vst [vmem:[#allocation52_spill] sm:$0xff] %v12276_v1 }
 0xa13   : > { %v3516_v31 = vadd.f32 %v8849_v61, %v3515_v30  ;;  %v8857_v45 = vpop.eup %8856  ;;  %v3562_v7 = vpack.c.bf16 %v8855_v12, %v8853_v47  ;;  %v16405_v61 = vld [vmem:[#allocation67_spill] sm:$0xff] }
 0xa14   : > { %3580 = vmatpush1.bf16.msra.mxu1 %v3533_v29  ;;  %v8859_v40 = vpop.eup %8858  ;;  %v3558_v22 = vpack.c.bf16 %v8857_v45, %v8851_v54 }
 0xa15   : > { %v3517_v43 = vadd.f32 %v8851_v54, %v3516_v31  ;;  %3581 = vmatprep.subr.bf16.mxu1 %v3564_v6  ;;  %v8861_v32 = vpop.eup %8860 }
 0xa16   : > { %v3560_v44 = vpack.c.bf16 %v8861_v32, %v8859_v40 }
 0xa17   : > { %v3518_v17 = vadd.f32 %v8857_v45, %v3517_v43 }
 0xa18   : > { %3582 = vmatpush2.bf16.msra.mxu1 %v3563_v10  ;;  %v16416_v10 = vld [vmem:[#allocation94_spill] sm:$0xff] }
 0xa19   : > { %v3519_v19 = vadd.f32 %v8859_v40, %v3518_v17  ;;  %3583 = vmatprep.subr.bf16.mxu1 %v3562_v7  ;;  %v16418_v17 = vld [vmem:[#allocation96_spill] sm:$0xff] }
 0xa1b   : > { %v3520_v2 = vadd.f32 %v8861_v32, %v3519_v19  ;;  %v16421_v19 = vld [vmem:[#allocation97_spill] sm:$0xff] }
 0xa1c   : > { %3584 = vmatpush2.bf16.msra.mxu1 %v3561_v27 }
 0xa1d   : > { %v3521_v3 = vadd.f32 %v8853_v47, %v3520_v2  ;;  %3585 = vmatprep.subr.bf16.mxu1 %v3560_v44  ;;  %v16410_v47 = vld [vmem:[#allocation82_spill] sm:$0xff] }
 0xa1e   : > { %v16423_v2 = vld [vmem:[#allocation98_spill] sm:$0xff] }
 0xa1f   : > { %v3522_v23 = vadd.f32 %v8855_v12, %v3521_v3  ;;  %v16413_v12 = vld [vmem:[#allocation91_spill] sm:$0xff]  ;;  %v16425_v3 = vld [vmem:[#allocation100_spill] sm:$0xff] }
 0xa20   : > { %3586 = vmatpush2.bf16.msra.mxu1 %v16381_v37  ;;  %v16428_v37 = vld [vmem:[#allocation101_spill] sm:$0xff] }
 0xa21   : > { %v3523_v46 = vadd.f32 %v8845_v35, %v3522_v23  ;;  %3587 = vmatprep.subr.bf16.mxu1 %v3558_v22 }
 0xa23   : > { %v12247_v39 = vadd.f32 %v8847_v60, %v3523_v46  ;;  %v12274_v11 = vpop.trf.xlu0  ;;  %v12283_v60 = vpop.trf.xlu1 }
 0xa24   : > { %3588 = vmatpush2.bf16.msra.mxu1 %v16383_v63  ;;  %16399 = vst [vmem:[#allocation49_spill] sm:$0xff] %v12274_v11  ;;  %16404 = vst [vmem:[#allocation120_spill] sm:$0xff] %v12283_v60 }
 0xa25   : > { %16382 = vst [vmem:[#allocation68_spill] sm:$0xff] %v12247_v39  ;;  %3589 = vmatprep.subr.bf16.mxu1 %v3556_v62  ;;  %v16430_v62 = vld [vmem:[#allocation102_spill] sm:$0xff] }
 0xa27   : > { %v12278_v35 = vpop.trf.xlu0  ;;  %v12290_v54 = vpop.trf.xlu1 }
 0xa28   : > { %3590 = vmatpush2.bf16.msra.mxu1 %v16385_v24  ;;  %16401 = vst [vmem:[#allocation116_spill] sm:$0xff] %v12278_v35  ;;  %16407 = vst [vmem:[#allocation17_spill] sm:$0xff] %v12290_v54 }
 0xa29   : > { %3591 = vmatprep.subr.bf16.mxu1 %v3554_v58  ;;  %v16432_v58 = vld [vmem:[#allocation103_spill] sm:$0xff] }
 0xa2b   : > { %v12281_v41 = vpop.trf.xlu0  ;;  %v12302_v6 = vpop.trf.xlu1 }
 0xa2c   : > { %3592 = vmatpush2.bf16.msra.mxu1 %v3553_v15  ;;  %16403 = vst [vmem:[#allocation118_spill] sm:$0xff] %v12281_v41  ;;  %16412 = vst [vmem:[#allocation74_spill] sm:$0xff] %v12302_v6  ;;  %v16437_v15 = vld [vmem:[#allocation106_spill] sm:$0xff] }
 0xa2d   : > { %3593 = vmatprep.subr.bf16.mxu1 %v3552_v52 }
 0xa2f   : > { %v12288_v30 = vpop.trf.xlu0  ;;  %v12309_v45 = vpop.trf.xlu1 }
 0xa30   : > { %3594 = vmatpush2.bf16.msra.mxu1 %v3551_v25  ;;  %16406 = vst [vmem:[#allocation122_spill] sm:$0xff] %v12288_v30  ;;  %16415 = vst [vmem:[#allocation23_spill] sm:$0xff] %v12309_v45 }
 0xa31   : > { %3595 = vmatprep.subr.bf16.mxu1 %v3550_v49 }
 0xa33   : > { %v12295_v29 = vpop.trf.xlu0  ;;  %v12319_v7 = vpop.trf.xlu1 }
 0xa34   : > { %3596 = vmatpush2.bf16.msra.mxu1 %v3549_v5  ;;  %16409 = vst [vmem:[#allocation42_spill] sm:$0xff] %v12295_v29  ;;  %16419 = vst [vmem:[#allocation27_spill] sm:$0xff] %v12319_v7  ;;  %v16450_v5 = vld [vmem:[#allocation84_spill] sm:$0xff] }
 0xa35   : > { %3806 = vmatprep.subr.mxu1 %v3615_v16 }
 0xa37   : > { %3598 = vmatmul.mubr.bf16.vlgmr.msra.gmra.mxu1 %v3531_v21  ;;  %v12300_v31 = vpop.trf.xlu0  ;;  %v12326_v27 = vpop.trf.xlu1  ;;  %v16452_v21 = vld [vmem:[#allocation90_spill] sm:$0xff] }
 0xa38   : > { %3807 = vmatpush1.msra.mxu1 %v3614_v57  ;;  %3840 = vmatprep.mubr.f32.mxu1 %v16402_v34  ;;  %16411 = vst [vmem:[#allocation41_spill] sm:$0xff] %v12300_v31  ;;  %16422 = vst [vmem:[#allocation76_spill] sm:$0xff] %v12326_v27  ;;  %v16453_v57 = vld [vmem:[#allocation81_spill] sm:$0xff] }
 0xa3b   : > { %v12307_v43 = vpop.trf.xlu0  ;;  %v12336_v23 = vpop.trf.xlu1 }
 0xa3c   : > { %16414 = vst [vmem:[#allocation39_spill] sm:$0xff] %v12307_v43  ;;  %16426 = vst [vmem:[#allocation46_spill] sm:$0xff] %v12336_v23 }
 0xa3f   : > { %8183 = vmatmul.mubr.msk.f32.vlgmr.msra.gmra.mxu1 %vm449_vm3, %v16405_v61  ;;  %v12314_v40 = vpop.trf.xlu0  ;;  %v12343_v46 = vpop.trf.xlu1  ;;  %v16454_v61 = vld [vmem:[#allocation64_spill] sm:$0xff] }
 0xa40   : > { %3846 = vmatprep.mubr.f32.mxu1 %v16402_v34  ;;  %16417 = vst [vmem:[#allocation61_spill] sm:$0xff] %v12314_v40  ;;  %16429 = vst [vmem:[#allocation67_spill] sm:$0xff] %v12343_v46 }
 0xa43   : > { %8184 = vmatmul.mubr.msk.f32.gmra.mxu1 %vm449_vm3, %v16408_v26  ;;  %v12321_v32 = vpop.trf.xlu0  ;;  %v12353_v48 = vpop.trf.xlu1  ;;  %v16455_v26 = vld [vmem:[#allocation50_spill] sm:$0xff] }
 0xa44   : > { %3852 = vmatprep.mubr.f32.mxu1 %v16402_v34  ;;  %16420 = vst [vmem:[#allocation78_spill] sm:$0xff] %v12321_v32  ;;  %16433 = vst [vmem:[#allocation82_spill] sm:$0xff] %v12353_v48 }
 0xa47   : > { %8185 = vmatmul.mubr.msk.f32.gmra.mxu1 %vm449_vm3, %v16410_v47  ;;  %v12330_v44 = vpop.trf.xlu0  ;;  %v12360_v28 = vpop.trf.xlu1  ;;  %v16456_v47 = vld [vmem:[#allocation43_spill] sm:$0xff] }
 0xa48   : > { %3858 = vmatprep.mubr.f32.mxu1 %v16402_v34  ;;  %16424 = vst [vmem:[#allocation26_spill] sm:$0xff] %v12330_v44  ;;  %16436 = vst [vmem:[#allocation94_spill] sm:$0xff] %v12360_v28 }
 0xa4b   : > { %8186 = vmatmul.mubr.msk.f32.gmra.mxu1 %vm449_vm3, %v16413_v12  ;;  %v12338_v22 = vpop.trf.xlu0  ;;  %v12370_v13 = vpop.permute.xlu1 %821  ;;  %v16457_v12 = vld [vmem:[#allocation21_spill] sm:$0xff] }
 0xa4c   : > { %3864 = vmatprep.mubr.f32.mxu1 %v16402_v34  ;;  %16427 = vst [vmem:[#allocation83_spill] sm:$0xff] %v12338_v22  ;;  %16440 = vst [vmem:[#allocation97_spill] sm:$0xff] %v12370_v13 }
 0xa4f   : > { %8187 = vmatmul.mubr.msk.f32.gmra.mxu1 %vm449_vm3, %v16416_v10  ;;  %v12347_v63 = vpop.trf.xlu0  ;;  %v12377_v59 = vpop.permute.xlu1 %746  ;;  %v16458_v10 = vld [vmem:[#allocation22_spill] sm:$0xff] }
 0xa50   : > { %3870 = vmatprep.mubr.f32.mxu1 %v16402_v34  ;;  %16431 = vst [vmem:[#allocation73_spill] sm:$0xff] %v12347_v63  ;;  %16443 = vst [vmem:[#allocation100_spill] sm:$0xff] %v12377_v59 }
 0xa53   : > { %8188 = vmatmul.mubr.msk.f32.gmra.mxu1 %vm449_vm3, %v16418_v17  ;;  %v12355_v24 = vpop.trf.xlu0  ;;  %v12384_v20 = vpop.trf.xlu1  ;;  %v16459_v17 = vld [vmem:[#allocation44_spill] sm:$0xff] }
 0xa54   : > { %3876 = vmatprep.mubr.f32.mxu1 %v16402_v34  ;;  %16434 = vst [vmem:[#allocation91_spill] sm:$0xff] %v12355_v24  ;;  %16446 = vst [vmem:[#allocation102_spill] sm:$0xff] %v12384_v20 }
 0xa57   : > { %8189 = vmatmul.mubr.msk.f32.gmra.mxu1 %vm449_vm3, %v16421_v19  ;;  %v12364_v52 = vpop.trf.xlu0  ;;  %v12394_v16 = vpop.trf.xlu1  ;;  %v16460_v19 = vld [vmem:[#allocation53_spill] sm:$0xff] }
 0xa58   : > { %3882 = vmatprep.mubr.f32.mxu1 %v16402_v34  ;;  %16438 = vst [vmem:[#allocation96_spill] sm:$0xff] %v12364_v52  ;;  %16451 = vst [vmem:[#allocation103_spill] sm:$0xff] %v12394_v16 }
 0xa5b   : > { %8190 = vmatmul.mubr.msk.f32.gmra.mxu1 %vm449_vm3, %v16423_v2  ;;  %v12372_v25 = vpop.trf.xlu0  ;;  %v16461_v2 = vld [vmem:[#allocation58_spill] sm:$0xff] }
 0xa5c   : > { %3888 = vmatprep.mubr.f32.mxu1 %v16402_v34  ;;  %16441 = vst [vmem:[#allocation98_spill] sm:$0xff] %v12372_v25 }
 0xa5f   : > { %8191 = vmatmul.mubr.msk.f32.gmra.mxu1 %vm449_vm3, %v16425_v3  ;;  %v12381_v49 = vpop.trf.xlu0  ;;  %v16462_v3 = vld [vmem:[#allocation60_spill] sm:$0xff] }
 0xa60   : > { %3894 = vmatprep.mubr.f32.mxu1 %v16402_v34  ;;  %16445 = vst [vmem:[#allocation101_spill] sm:$0xff] %v12381_v49 }
 0xa63   : > { %8192 = vmatmul.mubr.msk.f32.gmra.mxu1 %vm449_vm3, %v16428_v37  ;;  %v16463_v37 = vld [vmem:[#allocation89_spill] sm:$0xff] }
 0xa64   : > { %3900 = vmatprep.mubr.f32.mxu1 %v16402_v34 }
 0xa67   : > { %8193 = vmatmul.mubr.msk.f32.gmra.mxu1 %vm449_vm3, %v16430_v62  ;;  %v1072_v62 = vadd.f32 %v16463_v37, %v12370_v13 }
 0xa68   : > { %3906 = vmatprep.mubr.f32.mxu1 %v16402_v34 }
 0xa6b   : > { %8194 = vmatmul.mubr.msk.f32.gmra.mxu1 %vm449_vm3, %v16432_v58  ;;  %v16464_v58 = vld [vmem:[#allocation62_spill] sm:$0xff] }
 0xa6c   : > { %3912 = vmatprep.mubr.f32.mxu1 %v16402_v34 }
 0xa6f   : > { %8195 = vmatmul.mubr.msk.f32.gmra.mxu1 %vm449_vm3, %v16435_v56  ;;  %v5216_v56 = vpack.c.bf16 %v1072_v62, %v1072_v62 }
 0xa70   : > { %3918 = vmatprep.mubr.f32.mxu1 %v16402_v34 }
 0xa73   : > { %8196 = vmatmul.mubr.msk.f32.gmra.mxu1 %vm449_vm3, %v16437_v15  ;;  %v16465_v15 = vld [vmem:[#allocation66_spill] sm:$0xff] }
 0xa74   : > { %3924 = vmatprep.mubr.f32.mxu1 %v16402_v34 }
 0xa77   : > { %8197 = vmatmul.mubr.msk.f32.gmra.mxu1 %vm449_vm3, %v16439_v0  ;;  %v3488_v0 = vrot.slane %v12209_v53, 4 }
 0xa78   : > { %3930 = vmatprep.mubr.f32.mxu1 %v16402_v34 }
 0xa7b   : > { %8198 = vmatmul.mubr.msk.f32.gmra.mxu1 %vm449_vm3, %v16442_v18  ;;  %v3489_v18 = vadd.f32 %v3488_v0, %v12209_v53  ;;  %v718_v53 = vld [vmem:[%s15721_s5 + $0xb8] sm:$0xff] }
 0xa7c   : > { %3936 = vmatprep.mubr.f32.mxu1 %v16402_v34 }
 0xa7f   : > { %8199 = vmatmul.mubr.msk.f32.gmra.mxu1 %vm449_vm3, %v16444_v14  ;;  %v3490_v14 = vrot.slane %v3489_v18, 2 }
 0xa80   : > { %3942 = vmatprep.mubr.f32.mxu1 %v16402_v34 }
 0xa83   : > { %8200 = vmatmul.mubr.msk.f32.gmra.mxu1 %vm449_vm3, %v16447_v8  ;;  %v3491_v8 = vadd.f32 %v3490_v14, %v3489_v18 }
 0xa84   : > { %3948 = vmatprep.mubr.f32.mxu1 %v16402_v34 }
 0xa87   : > { %v797_v36 = vpop.permute.xlu0 %796  ;;  %8201 = vmatmul.mubr.msk.f32.gmra.mxu1 %vm449_vm3, %v16450_v5 }
 0xa88   : > { %v1044_v42 = vadd.f32 %v16448_v9, %v797_v36  ;;  %v1046_v4 = vadd.f32 %v16449_v38, %v797_v36  ;;  %3954 = vmatprep.mubr.f32.mxu1 %v16402_v34  ;;  %v7852_v36 = vld [vmem:[%s15723_s7] sm:$0xff]  ;;  %v12441_v9 = vpop.trf.xlu1  ;;  %v7854_v38 = vld [vmem:[%s15723_s7 + $0x10] sm:$0xff] }
 0xa89   : > { %16466 = vst [vmem:[#allocation105_spill] sm:$0xff] %v12441_v9 }
 0xa8a   : > { %6984 = vxpose.xlu0.b32.start.end [1/1] (short) %v1044_v42, 128  ;;  %7016 = vxpose.xlu1.b32.start.end [1/1] (short) %v1046_v4, 128  ;;  %v3492_v42 = vrot.slane %v3491_v8, 1 }
 0xa8b   : > { %8202 = vmatmul.mubr.msk.f32.gmra.mxu1 %vm449_vm3, %v16452_v21  ;;  %v7853_v21 = vld [vmem:[%s15723_s7 + $0x8] sm:$0xff] }
 0xa8c   : > { %3960 = vmatprep.mubr.f32.mxu1 %v16402_v34  ;;  %v3493_v4 = vadd.f32 %v3492_v42, %v3491_v8  ;;  %v12446_v5 = vpop.trf.xlu1 }
 0xa8d   : > { %16467 = vst [vmem:[#allocation106_spill] sm:$0xff] %v12446_v5 }
 0xa8e   : > { %8862 = vrcp.f32 %v3493_v4 }
 0xa8f   : > { %8203 = vmatmul.mubr.msk.f32.gmra.mxu1 %vm449_vm3, %v16453_v57  ;;  %v7855_v57 = vld [vmem:[%s15723_s7 + $0x18] sm:$0xff] }
 0xa90   : > { %3966 = vmatprep.mubr.f32.mxu1 %v16402_v34 }
 0xa93   : > { %8204 = vmatmul.mubr.msk.f32.gmra.mxu1 %vm449_vm3, %v16454_v61 }
 0xa94   : > { %3972 = vmatprep.mubr.f32.mxu1 %v16402_v34 }
 0xa97   : > { %8205 = vmatmul.mubr.msk.f32.gmra.mxu1 %vm449_vm3, %v16455_v26 }
 0xa98   : > { %3978 = vmatprep.mubr.f32.mxu1 %v16402_v34 }
 0xa9b   : > { %8206 = vmatmul.mubr.msk.f32.gmra.mxu1 %vm449_vm3, %v16456_v47  ;;  %v8863_v61 = vpop.eup %8862 }
 0xa9c   : > { %3984 = vmatprep.mubr.f32.mxu1 %v16402_v34 }
 0xa9f   : > { %8207 = vmatmul.mubr.msk.f32.gmra.mxu1 %vm449_vm3, %v16457_v12 }
 0xaa0   : > { %3990 = vmatprep.mubr.f32.mxu1 %v16402_v34 }
 0xaa3   : > { %8208 = vmatmul.mubr.msk.f32.gmra.mxu1 %vm449_vm3, %v16458_v10 }
 0xaa4   : > { %3996 = vmatprep.mubr.f32.mxu1 %v16402_v34 }
 0xaa7   : > { %8209 = vmatmul.mubr.msk.f32.gmra.mxu1 %vm449_vm3, %v16459_v17 }
 0xaa8   : > { %4002 = vmatprep.mubr.f32.mxu1 %v16402_v34 }
 0xaab   : > { %8210 = vmatmul.mubr.msk.f32.gmra.mxu1 %vm449_vm3, %v16460_v19 }
 0xaac   : > { %4008 = vmatprep.mubr.f32.mxu1 %v16402_v34 }
 0xaaf   : > { %8211 = vmatmul.mubr.msk.f32.gmra.mxu1 %vm449_vm3, %v16461_v2 }
 0xab0   : > { %4014 = vmatprep.mubr.f32.mxu1 %v16402_v34 }
 0xab3   : > { %8212 = vmatmul.mubr.msk.f32.gmra.mxu1 %vm449_vm3, %v16462_v3 }
 0xab4   : > { %4020 = vmatprep.mubr.f32.mxu1 %v16402_v34 }
 0xab7   : > { %8213 = vmatmul.mubr.msk.f32.gmra.mxu1 %vm449_vm3, %v16464_v58 }
 0xab8   : > { %4026 = vmatprep.mubr.f32.mxu1 %v16402_v34 }
 0xabb   : > { %8214 = vmatmul.mubr.msk.f32.gmra.mxu1 %vm449_vm3, %v16465_v15 }
 0xabc   : > { %5281 = vmatprep.mubr.bf16.mxu1 %v5216_v56 }
 0xae4   : > { %7858 = vperm.xlu1 %8447, %v7852_v36  }
 0xae8   : > { %7868 = vperm.xlu1 %8447, %v7854_v38  }
 0xaef   : > { %836 = vperm.xlu0 %8446, %v718_v53  }
 0xaf3   : > { %7863 = vperm.xlu0 %8446, %v7853_v21  }
 0xaf7   : > { %7873 = vperm.xlu0 %8446, %v7855_v57   ;;  %v3599_v26 = vpop.f32.mrf.mxu1 }
 0xaf8   : > { %v12457_v47 = vmul.f32 %v8863_v61, %v3599_v26 }
 0xaf9   : > { %v12459_v12 = vpop.f32.mrf.mxu1 }
 0xafa   : > { %16468 = vst [vmem:[#allocation107_spill] sm:$0xff] %v12457_v47  ;;  %16469 = vst [vmem:[#allocation108_spill] sm:$0xff] %v12459_v12 }
 0xafb   : > { %v3603_v10 = vpop.f32.mrf.mxu1 }
 0xafd   : > { %v3604_v17 = vpop.f32.mrf.mxu1 }
 0xaff   : > { %v12461_v19 = vpop.f32.mrf.mxu1 }
 0xb01   : > { %v12463_v2 = vpop.f32.mrf.mxu1 }
 0xb03   : > { %v12465_v3 = vpop.f32.mrf.mxu1 }
 0xb05   : > { %v12467_v37 = vpop.f32.mrf.mxu1 }
 0xb07   : > { %v12469_v62 = vpop.f32.mrf.mxu1 }
 0xb08   : > { %v4033_v28 = vmax.f32 %v12461_v19, %v12469_v62 }
 0xb09   : > { %v12471_v58 = vpop.f32.mrf.mxu1 }
 0xb0b   : > { %v12473_v56 = vpop.f32.mrf.mxu1 }
 0xb0c   : > { %v4034_v48 = vmax.f32 %v12465_v3, %v12473_v56 }
 0xb0d   : > { %v12475_v15 = vpop.f32.mrf.mxu1 }
 0xb0e   : > { %16470 = vst [vmem:[#allocation95_spill] sm:$0xff] %v12475_v15 }
 0xb0f   : > { %v12477_v0 = vpop.f32.mrf.mxu1 }
 0xb10   : > { %v4035_v23 = vmax.f32 %v4033_v28, %v12477_v0 }
 0xb11   : > { %v12479_v18 = vpop.f32.mrf.mxu1 }
 0xb13   : > { %v12481_v14 = vpop.f32.mrf.mxu1 }
 0xb14   : > { %v4036_v27 = vmax.f32 %v4034_v48, %v12481_v14 }
 0xb15   : > { %v12483_v8 = vpop.f32.mrf.mxu1 }
 0xb16   : > { %16471 = vst [vmem:[#allocation25_spill] sm:$0xff] %v12483_v8 }
 0xb17   : > { %v12485_v36 = vpop.f32.mrf.mxu1 }
 0xb18   : > { %v4037_v45 = vmax.f32 %v4035_v23, %v12485_v36 }
 0xb19   : > { %v12487_v42 = vpop.f32.mrf.mxu1 }
 0xb1b   : > { %v12489_v38 = vpop.f32.mrf.mxu1 }
 0xb1c   : > { %v4038_v6 = vmax.f32 %v4036_v27, %v12489_v38 }
 0xb1d   : > { %v12491_v4 = vpop.f32.mrf.mxu1 }
 0xb1e   : > { %16472 = vst [vmem:[#allocation18_spill] sm:$0xff] %v12491_v4 }
 0xb1f   : > { %v12493_v53 = vpop.f32.mrf.mxu1 }
 0xb20   : > { %16473 = vst [vmem:[#allocation19_spill] sm:$0xff] %v12493_v53  ;;  %v4039_v60 = vmax.f32 %v4037_v45, %v12493_v53 }
 0xb21   : > { %v12495_v21 = vpop.f32.mrf.mxu1 }
 0xb22   : > { %16474 = vst [vmem:[#allocation84_spill] sm:$0xff] %v12495_v21 }
 0xb23   : > { %v12497_v57 = vpop.f32.mrf.mxu1 }
 0xb24   : > { %v4040_v1 = vmax.f32 %v4038_v6, %v12497_v57 }
 0xb25   : > { %v12499_v61 = vpop.f32.mrf.mxu1 }
 0xb26   : > { %16475 = vst [vmem:[#allocation90_spill] sm:$0xff] %v12499_v61 }
 0xb27   : > { %v12501_v26 = vpop.f32.mrf.mxu1 }
 0xb28   : > { %16476 = vst [vmem:[#allocation81_spill] sm:$0xff] %v12501_v26  ;;  %v4041_v50 = vmax.f32 %v4039_v60, %v12501_v26 }
 0xb29   : > { %v12503_v10 = vpop.f32.mrf.mxu1 }
 0xb2b   : > { %v12505_v17 = vpop.f32.mrf.mxu1 }
 0xb2c   : > { %v4042_v28 = vmax.f32 %v4040_v1, %v12505_v17 }
 0xb2d   : > { %v12507_v49 = vpop.f32.mrf.mxu1 }
 0xb2f   : > { %v12509_v25 = vpop.f32.mrf.mxu1 }
 0xb30   : > { %16477 = vst [vmem:[#allocation64_spill] sm:$0xff] %v12509_v25  ;;  %v4043_v48 = vmax.f32 %v4041_v50, %v12509_v25 }
 0xb31   : > { %v12511_v52 = vpop.f32.mrf.mxu1 }
 0xb33   : > { %v12513_v24 = vpop.f32.mrf.mxu1 }
 0xb34   : > { %v4044_v23 = vmax.f32 %v4042_v28, %v12513_v24  ;;  %v4071_v28 = vmax.f32 %v12467_v37, %v12475_v15 }
 0xb35   : > { %v12515_v63 = vpop.f32.mrf.mxu1 }
 0xb37   : > { %v12517_v22 = vpop.f32.mrf.mxu1 }
 0xb38   : > { %v4045_v27 = vmax.f32 %v4043_v48, %v12517_v22 }
 0xb39   : > { %v12519_v44 = vpop.f32.mrf.mxu1 }
 0xb3b   : > { %v12521_v32 = vpop.f32.mrf.mxu1 }
 0xb3c   : > { %16478 = vst [vmem:[#allocation50_spill] sm:$0xff] %v12521_v32  ;;  %v4046_v45 = vmax.f32 %v4044_v23, %v12521_v32 }
 0xb3d   : > { %v12523_v40 = vpop.f32.mrf.mxu1 }
 0xb3f   : > { %v12525_v43 = vpop.f32.mrf.mxu1 }
 0xb40   : > { %v4047_v6 = vmax.f32 %v4045_v27, %v12525_v43  ;;  %v4070_v27 = vmax.f32 %v12463_v2, %v12471_v58 }
 0xb41   : > { %v12527_v31 = vpop.f32.mrf.mxu1 }
 0xb43   : > { %v12529_v29 = vpop.f32.mrf.mxu1 }
 0xb44   : > { %v4048_v60 = vmax.f32 %v4046_v45, %v12529_v29  ;;  %v4073_v45 = vmax.f32 %v4071_v28, %v12483_v8 }
 0xb45   : > { %v12531_v30 = vpop.f32.mrf.mxu1 }
 0xb46   : > { %v4075_v15 = vmax.f32 %v4073_v45, %v12491_v4 }
 0xb47   : > { %v12533_v41 = vpop.f32.mrf.mxu1 }
 0xb48   : > { %16479 = vst [vmem:[#allocation43_spill] sm:$0xff] %v12533_v41  ;;  %v4049_v1 = vmax.f32 %v4047_v6, %v12533_v41  ;;  %v4072_v41 = vmax.f32 %v4070_v27, %v12479_v18  ;;  %v4077_v28 = vmax.f32 %v4075_v15, %v12499_v61 }
 0xb49   : > { %v12535_v35 = vpop.f32.mrf.mxu1 }
 0xb4a   : > { %v4079_v45 = vmax.f32 %v4077_v28, %v12507_v49 }
 0xb4b   : > { %v12537_v11 = vpop.f32.mrf.mxu1 }
 0xb4c   : > { %16480 = vst [vmem:[#allocation21_spill] sm:$0xff] %v12537_v11  ;;  %v4050_v50 = vmax.f32 %v4048_v60, %v12537_v11  ;;  %v4081_v15 = vmax.f32 %v4079_v45, %v12515_v63 }
 0xb4d   : > { %v12539_v51 = vpop.f32.mrf.mxu1 }
 0xb4f   : > { %v12541_v5 = vpop.f32.mrf.mxu1 }
 0xb50   : > { %16481 = vst [vmem:[#allocation22_spill] sm:$0xff] %v12541_v5  ;;  %v4051_v48 = vmax.f32 %v4049_v1, %v12541_v5  ;;  %v4074_v5 = vmax.f32 %v4072_v41, %v12487_v42 }
 0xb51   : > { %v12543_v9 = vpop.f32.mrf.mxu1 }
 0xb52   : > { %v4076_v27 = vmax.f32 %v4074_v5, %v12495_v21  ;;  %v4083_v5 = vmax.f32 %v4081_v15, %v12523_v40 }
 0xb53   : > { %v12545_v16 = vpop.f32.mrf.mxu1 }
 0xb54   : > { %16482 = vst [vmem:[#allocation44_spill] sm:$0xff] %v12545_v16  ;;  %v4052_v23 = vmax.f32 %v4050_v50, %v12545_v16  ;;  %v4078_v41 = vmax.f32 %v4076_v27, %v12503_v10 }
 0xb55   : > { %v12547_v20 = vpop.f32.mrf.mxu1 }
 0xb56   : > { %v4080_v61 = vmax.f32 %v4078_v41, %v12511_v52 }
 0xb57   : > { %v12549_v13 = vpop.f32.mrf.mxu1 }
 0xb58   : > { %v4053_v6 = vmax.f32 %v4051_v48, %v12549_v13  ;;  %v4082_v28 = vmax.f32 %v4080_v61, %v12519_v44 }
 0xb59   : > { %v12551_v59 = vpop.f32.mrf.mxu1 }
 0xb5b   : > { %v12553_v47 = vpop.f32.mrf.mxu1 }
 0xb5c   : > { %v4054_v60 = vmax.f32 %v4052_v23, %v12553_v47 }
 0xb5d   : > { %v12555_v12 = vpop.f32.mrf.mxu1 }
 0xb5f   : > { %v12557_v39 = vpop.f32.mrf.mxu1 }
 0xb60   : > { %v4055_v1 = vmax.f32 %v4053_v6, %v12557_v39 }
 0xb61   : > { %v12563_v46 = vpop.f32.mrf.mxu1 }
 0xb63   : > { %v12567_v7 = vpop.f32.mrf.mxu1 }
 0xb64   : > { %v4056_v50 = vmax.f32 %v4054_v60, %v12567_v7 }
 0xb65   : > { %v12571_v54 = vpop.f32.mrf.mxu1 }
 0xb67   : > { %v12575_v33 = vpop.f32.mrf.mxu1 }
 0xb68   : > { %v4057_v48 = vmax.f32 %v4055_v1, %v12575_v33 }
 0xb69   : > { %v12579_v55 = vpop.f32.mrf.mxu1 }
 0xb6b   : > { %v12583_v34 = vpop.f32.mrf.mxu1 }
 0xb6c   : > { %v4058_v23 = vmax.f32 %v4056_v50, %v12583_v34 }
 0xb6d   : > { %v12587_v53 = vpop.f32.mrf.mxu1 }
 0xb6f   : > { %v12591_v26 = vpop.f32.mrf.mxu1 }
 0xb70   : > { %16483 = vst [vmem:[#allocation53_spill] sm:$0xff] %v12591_v26  ;;  %v4059_v6 = vmax.f32 %v4057_v48, %v12591_v26  ;;  %v4085_v48 = vmax.f32 %v4083_v5, %v12531_v30 }
 0xb71   : > { %v12595_v25 = vpop.f32.mrf.mxu1 }
 0xb72   : > { %v4087_v27 = vmax.f32 %v4085_v48, %v12539_v51 }
 0xb73   : > { %v12601_v32 = vpop.f32.mrf.mxu1 }
 0xb74   : > { %16484 = vst [vmem:[#allocation58_spill] sm:$0xff] %v12601_v32  ;;  %v4060_v60 = vmax.f32 %v4058_v23, %v12601_v32  ;;  %v4084_v32 = vmax.f32 %v4082_v28, %v12527_v31 }
 0xb75   : > { %v12608_v11 = vpop.f32.mrf.mxu1 }
 0xb76   : > { %v4086_v45 = vmax.f32 %v4084_v32, %v12535_v35 }
 0xb77   : > { %v12614_v16 = vpop.f32.mrf.mxu1 }
 0xb78   : > { %v4061_v1 = vmax.f32 %v4059_v6, %v12614_v16  ;;  %v4089_v6 = vmax.f32 %v4087_v27, %v12547_v20  ;;  %v4088_v41 = vmax.f32 %v4086_v45, %v12543_v9 }
 0xb79   : > { %v12620_v8 = vpop.f32.mrf.mxu1 }
 0xb7a   : > { %v4091_v15 = vmax.f32 %v4089_v6, %v12555_v12  ;;  %v4090_v61 = vmax.f32 %v4088_v41, %v12551_v59 }
 0xb7b   : > { %v12626_v4 = vpop.f32.mrf.mxu1 }
 0xb7c   : > { %v4062_v50 = vmax.f32 %v4060_v60, %v12626_v4  ;;  %v4092_v28 = vmax.f32 %v4090_v61, %v12563_v46 }
 0xb7e   : > { %v4063_v21 = vmax.f32 %v4061_v1, %v4062_v50  ;;  %v4093_v50 = vmax.f32 %v4091_v15, %v12571_v54  ;;  %v4094_v32 = vmax.f32 %v4092_v28, %v12579_v55 }
 0xb80   : > { %v4064_v23 = vrot.slane %v4063_v21, 4  ;;  %v4095_v48 = vmax.f32 %v4093_v50, %v12587_v53  ;;  %v4096_v45 = vmax.f32 %v4094_v32, %v12595_v25 }
 0xb82   : > { %v4065_v26 = vmax.f32 %v4063_v21, %v4064_v23  ;;  %v12646_v21 = vpop.f32.mrf.mxu1  ;;  %v4097_v23 = vmax.f32 %v4095_v48, %v12608_v11  ;;  %v4098_v6 = vmax.f32 %v4096_v45, %v12620_v8 }
 0xb84   : > { %v4066_v60 = vrot.slane %v4065_v26, 2 }
 0xb86   : > { %v4067_v1 = vmax.f32 %v4065_v26, %v4066_v60  ;;  %v4099_v26 = vmax.f32 %v4097_v23, %v12646_v21 }
 0xb88   : > { %v4068_v5 = vrot.slane %v4067_v1, 1  ;;  %v4100_v61 = vmax.f32 %v4098_v6, %v4099_v26 }
 0xb8a   : > { %v12650_v27 = vmax.f32 %v4067_v1, %v4068_v5  ;;  %v4101_v32 = vrot.slane %v4100_v61, 4 }
 0xb8c   : > { %v4107_v60 = vsub.f32 %v12461_v19, %v12650_v27  ;;  %v4109_v41 = vsub.f32 %v12465_v3, %v12650_v27  ;;  %v4111_v15 = vsub.f32 %v12469_v62, %v12650_v27  ;;  %v4113_v1 = vsub.f32 %v12473_v56, %v12650_v27 }
 0xb8d   : > { %v4115_v28 = vsub.f32 %v12477_v0, %v12650_v27  ;;  %v4117_v19 = vsub.f32 %v12481_v14, %v12650_v27  ;;  %v4119_v62 = vsub.f32 %v12485_v36, %v12650_v27  ;;  %v4102_v45 = vmax.f32 %v4100_v61, %v4101_v32  ;;  %v16485_v0 = vld [vmem:[#allocation19_spill] sm:$0xff] }
 0xb8e   : > { %v4171_v50 = vmul.f32 1.442695, %v4107_v60  ;;  %v4175_v5 = vmul.f32 1.442695, %v4109_v41  ;;  %v4179_v48 = vmul.f32 1.442695, %v4111_v15  ;;  %v4121_v56 = vsub.f32 %v12489_v38, %v12650_v27 }
 0xb8f   : > { %v4183_v3 = vmul.f32 1.442695, %v4113_v1  ;;  %v4187_v23 = vmul.f32 1.442695, %v4115_v28  ;;  %v4191_v26 = vmul.f32 1.442695, %v4117_v19  ;;  %v4123_v6 = vsub.f32 %v16485_v0, %v12650_v27 }
 0xb90   : > { %8864 = vpow2.f32 %v4171_v50  ;;  %v4195_v60 = vmul.f32 1.442695, %v4119_v62  ;;  %v4125_v14 = vsub.f32 %v12497_v57, %v12650_v27  ;;  %v4103_v41 = vrot.slane %v4102_v45, 2  ;;  %v16486_v15 = vld [vmem:[#allocation81_spill] sm:$0xff]  ;;  %v16487_v38 = vld [vmem:[#allocation64_spill] sm:$0xff] }
 0xb91   : > { %8866 = vpow2.f32 %v4175_v5  ;;  %v4127_v36 = vsub.f32 %v16486_v15, %v12650_v27  ;;  %v4199_v1 = vmul.f32 1.442695, %v4121_v56  ;;  %v4129_v61 = vsub.f32 %v12505_v17, %v12650_v27 }
 0xb92   : > { %8868 = vpow2.f32 %v4179_v48  ;;  %v4131_v50 = vsub.f32 %v16487_v38, %v12650_v27  ;;  %v4203_v5 = vmul.f32 1.442695, %v4123_v6  ;;  %v4133_v28 = vsub.f32 %v12513_v24, %v12650_v27 }
 0xb93   : > { %8870 = vpow2.f32 %v4183_v3  ;;  %v4207_v48 = vmul.f32 1.442695, %v4125_v14  ;;  %v4104_v32 = vmax.f32 %v4102_v45, %v4103_v41  ;;  %v4135_v19 = vsub.f32 %v12517_v22, %v12650_v27 }
 0xb94   : > { %8872 = vpow2.f32 %v4187_v23  ;;  %v4211_v3 = vmul.f32 1.442695, %v4127_v36  ;;  %v4151_v17 = vsub.f32 %v12549_v13, %v12650_v27  ;;  %v4215_v23 = vmul.f32 1.442695, %v4129_v61 }
 0xb95   : > { %8874 = vpow2.f32 %v4191_v26  ;;  %v4153_v56 = vsub.f32 %v12553_v47, %v12650_v27  ;;  %v4219_v24 = vmul.f32 1.442695, %v4131_v50  ;;  %v4155_v22 = vsub.f32 %v12557_v39, %v12650_v27 }
 0xb96   : > { %8876 = vpow2.f32 %v4195_v60  ;;  %v4223_v0 = vmul.f32 1.442695, %v4133_v28  ;;  %v4105_v6 = vrot.slane %v4104_v32, 1  ;;  %v4157_v13 = vsub.f32 %v12567_v7, %v12650_v27  ;;  %v16489_v7 = vld [vmem:[#allocation50_spill] sm:$0xff] }
 0xb97   : > { %8878 = vpow2.f32 %v4199_v1  ;;  %v4227_v60 = vmul.f32 1.442695, %v4135_v19  ;;  %v4159_v41 = vsub.f32 %v12575_v33, %v12650_v27  ;;  %v4259_v15 = vmul.f32 1.442695, %v4151_v17  ;;  %v16490_v17 = vld [vmem:[#allocation43_spill] sm:$0xff] }
 0xb98   : > { %8880 = vpow2.f32 %v4203_v5  ;;  %v4161_v39 = vsub.f32 %v12583_v34, %v12650_v27  ;;  %v4263_v36 = vmul.f32 1.442695, %v4153_v56  ;;  %v4137_v38 = vsub.f32 %v16489_v7, %v12650_v27 }
 0xb99   : > { %8882 = vpow2.f32 %v4207_v48  ;;  %v4267_v50 = vmul.f32 1.442695, %v4155_v22  ;;  %v12713_v5 = vmax.f32 %v4104_v32, %v4105_v6  ;;  %v4139_v33 = vsub.f32 %v12525_v43, %v12650_v27 }
 0xb9a   : > { %8884 = vpow2.f32 %v4211_v3  ;;  %v4271_v28 = vmul.f32 1.442695, %v4157_v13  ;;  %v4141_v19 = vsub.f32 %v12529_v29, %v12650_v27  ;;  %v4275_v3 = vmul.f32 1.442695, %v4159_v41  ;;  %v16491_v13 = vld [vmem:[#allocation21_spill] sm:$0xff] }
 0xb9b   : > { %8886 = vpow2.f32 %v4215_v23  ;;  %v4143_v23 = vsub.f32 %v16490_v17, %v12650_v27  ;;  %v4279_v32 = vmul.f32 1.442695, %v4161_v39  ;;  %v4231_v43 = vmul.f32 1.442695, %v4137_v38 }
 0xb9c   : > { %8888 = vpow2.f32 %v4219_v24  ;;  %v4235_v22 = vmul.f32 1.442695, %v4139_v33 }
 0xb9d   : > { %v12683_v57 = vpop.eup %8864  ;;  %8890 = vpow2.f32 %v4223_v0  ;;  %v4110_v0 = vsub.f32 %v12467_v37, %v12713_v5  ;;  %v4243_v41 = vmul.f32 1.442695, %v4143_v23 }
 0xb9e   : > { %v12687_v62 = vpop.eup %8866  ;;  %8892 = vpow2.f32 %v4227_v60  ;;  %v4145_v60 = vsub.f32 %v16491_v13, %v12650_v27 }
 0xb9f   : > { %16488 = vst [vmem:[#allocation60_spill] sm:$0xff] %v12687_v62  ;;  %v4299_v45 = vadd.f32 %v12687_v62, %v12683_v57  ;;  %v12695_v26 = vpop.eup %8868  ;;  %8894 = vpow2.f32 %v4259_v15 }
 0xba0   : > { %v12702_v14 = vpop.eup %8870  ;;  %8896 = vpow2.f32 %v4263_v36  ;;  %v16492_v36 = vld [vmem:[#allocation22_spill] sm:$0xff] }
 0xba1   : > { %v4300_v47 = vadd.f32 %v12695_v26, %v4299_v45  ;;  %v12709_v61 = vpop.eup %8872  ;;  %8898 = vpow2.f32 %v4267_v50  ;;  %v4108_v45 = vsub.f32 %v12463_v2, %v12713_v5  ;;  %v4112_v2 = vsub.f32 %v12471_v58, %v12713_v5  ;;  %v16493_v50 = vld [vmem:[#allocation95_spill] sm:$0xff]  ;;  %v16494_v58 = vld [vmem:[#allocation44_spill] sm:$0xff] }
 0xba2   : > { %v12718_v48 = vpop.eup %8874  ;;  %8900 = vpow2.f32 %v4271_v28  ;;  %v4114_v33 = vsub.f32 %v16493_v50, %v12713_v5  ;;  %v4177_v28 = vmul.f32 1.442695, %v4110_v0 }
 0xba3   : > { %v4301_v1 = vadd.f32 %v12702_v14, %v4300_v47  ;;  %v12725_v24 = vpop.eup %8876  ;;  %v4239_v47 = vmul.f32 1.442695, %v4141_v19  ;;  %8902 = vpow2.f32 %v4275_v3  ;;  %v4173_v37 = vmul.f32 1.442695, %v4108_v45 }
 0xba4   : > { %v12732_v6 = vpop.eup %8878  ;;  %8904 = vpow2.f32 %v4279_v32  ;;  %v4149_v19 = vsub.f32 %v16494_v58, %v12650_v27  ;;  %v4247_v3 = vmul.f32 1.442695, %v4145_v60  ;;  %v4116_v32 = vsub.f32 %v12479_v18, %v12713_v5 }
 0xba5   : > { %v4302_v34 = vadd.f32 %v12709_v61, %v4301_v1  ;;  %v12739_v39 = vpop.eup %8880  ;;  %v4147_v1 = vsub.f32 %v16492_v36, %v12650_v27  ;;  %8906 = vpow2.f32 %v4231_v43  ;;  %v4120_v60 = vsub.f32 %v12487_v42, %v12713_v5 }
 0xba6   : > { %v12743_v7 = vpop.eup %8882  ;;  %8908 = vpow2.f32 %v4235_v22  ;;  %v16495_v22 = vld [vmem:[#allocation25_spill] sm:$0xff]  ;;  %v4255_v18 = vmul.f32 1.442695, %v4149_v19  ;;  %v4189_v50 = vmul.f32 1.442695, %v4116_v32  ;;  %v4132_v42 = vsub.f32 %v12511_v52, %v12713_v5 }
 0xba7   : > { %v4303_v56 = vadd.f32 %v12718_v48, %v4302_v34  ;;  %v12748_v34 = vpop.eup %8884  ;;  %8910 = vpow2.f32 %v4239_v47  ;;  %v4251_v45 = vmul.f32 1.442695, %v4147_v1  ;;  %v4185_v47 = vmul.f32 1.442695, %v4114_v33 }
 0xba8   : > { %v12752_v17 = vpop.eup %8886  ;;  %8912 = vpow2.f32 %v4243_v41  ;;  %v4134_v33 = vsub.f32 %v12515_v63, %v12713_v5  ;;  %v4138_v52 = vsub.f32 %v12523_v40, %v12713_v5 }
 0xba9   : > { %v4304_v29 = vadd.f32 %v12725_v24, %v4303_v56  ;;  %v4181_v56 = vmul.f32 1.442695, %v4112_v2  ;;  %v12757_v43 = vpop.eup %8888  ;;  %8914 = vpow2.f32 %v4173_v37  ;;  %v16498_v37 = vld [vmem:[#allocation84_spill] sm:$0xff] }
 0xbaa   : > { %v12761_v0 = vpop.eup %8890  ;;  %8916 = vpow2.f32 %v4177_v28 }
 0xbab   : > { %v4305_v15 = vadd.f32 %v12732_v6, %v4304_v29  ;;  %v4118_v29 = vsub.f32 %v16495_v22, %v12713_v5  ;;  %v12766_v41 = vpop.eup %8892  ;;  %8918 = vpow2.f32 %v4247_v3 }
 0xbac   : > { %v12770_v36 = vpop.eup %8894  ;;  %8920 = vpow2.f32 %v4181_v56 }
 0xbad   : > { %v4306_v38 = vadd.f32 %v12739_v39, %v4305_v15  ;;  %v16496_v15 = vld [vmem:[#allocation18_spill] sm:$0xff]  ;;  %16497 = vst [vmem:[#allocation89_spill] sm:$0xff] %v12770_v36  ;;  %v12775_v58 = vpop.eup %8896  ;;  %8922 = vpow2.f32 %v4251_v45  ;;  %v4193_v28 = vmul.f32 1.442695, %v4118_v29  ;;  %v4136_v45 = vsub.f32 %v12519_v44, %v12713_v5 }
 0xbae   : > { %v4122_v2 = vsub.f32 %v16496_v15, %v12713_v5  ;;  %v12781_v19 = vpop.eup %8898  ;;  %8924 = vpow2.f32 %v4185_v47  ;;  %v4221_v44 = vmul.f32 1.442695, %v4132_v42 }
 0xbaf   : > { %v4307_v23 = vadd.f32 %v12743_v7, %v4306_v38  ;;  %v4124_v38 = vsub.f32 %v16498_v37, %v12713_v5  ;;  %v12786_v32 = vpop.eup %8900  ;;  %8926 = vpow2.f32 %v4255_v18  ;;  %v16499_v18 = vld [vmem:[#allocation90_spill] sm:$0xff] }
 0xbb0   : > { %v4201_v63 = vmul.f32 1.442695, %v4122_v2  ;;  %v12792_v22 = vpop.eup %8902  ;;  %8928 = vpow2.f32 %v4189_v50  ;;  %v4126_v15 = vsub.f32 %v16499_v18, %v12713_v5  ;;  %v4225_v2 = vmul.f32 1.442695, %v4134_v33 }
 0xbb1   : > { %v4308_v13 = vadd.f32 %v12748_v34, %v4307_v23  ;;  %v4197_v23 = vmul.f32 1.442695, %v4120_v60  ;;  %v12797_v47 = vpop.eup %8904  ;;  %8930 = vpow2.f32 %v4193_v28  ;;  %v4128_v50 = vsub.f32 %v12503_v10, %v12713_v5 }
 0xbb2   : > { %v4130_v28 = vsub.f32 %v12507_v49, %v12713_v5  ;;  %v4209_v60 = vmul.f32 1.442695, %v4126_v15 }
 0xbb3   : > { %v4309_v1 = vadd.f32 %v12752_v17, %v4308_v13  ;;  %v4205_v13 = vmul.f32 1.442695, %v4124_v38  ;;  %8932 = vpow2.f32 %v4197_v23  ;;  %v4233_v23 = vmul.f32 1.442695, %v4138_v52 }
 0xbb4   : > { %8934 = vpow2.f32 %v4201_v63  ;;  %v4217_v52 = vmul.f32 1.442695, %v4130_v28  ;;  %v4167_v28 = vsub.f32 %v12614_v16, %v12650_v27 }
 0xbb5   : > { %v4310_v3 = vadd.f32 %v12757_v43, %v4309_v1  ;;  %v12801_v1 = vpop.eup %8906  ;;  %8936 = vpow2.f32 %v4205_v13 }
 0xbb6   : > { %v12806_v38 = vpop.eup %8908  ;;  %8938 = vpow2.f32 %v4221_v44 }
 0xbb7   : > { %v4311_v29 = vadd.f32 %v12761_v0, %v4310_v3  ;;  %16500 = vst [vmem:[#allocation62_spill] sm:$0xff] %v12806_v38  ;;  %v4229_v3 = vmul.f32 1.442695, %v4136_v45  ;;  %v12810_v56 = vpop.eup %8910  ;;  %8940 = vpow2.f32 %v4225_v2  ;;  %v16503_v45 = vld [vmem:[#allocation53_spill] sm:$0xff]  ;;  %v16506_v2 = vld [vmem:[#allocation58_spill] sm:$0xff] }
 0xbb8   : > { %16501 = vst [vmem:[#allocation66_spill] sm:$0xff] %v12810_v56  ;;  %v12815_v33 = vpop.eup %8912  ;;  %v4163_v63 = vsub.f32 %v16503_v45, %v12650_v27 }
 0xbb9   : > { %v4312_v40 = vadd.f32 %v12766_v41, %v4311_v29  ;;  %16502 = vst [vmem:[#allocation19_spill] sm:$0xff] %v12815_v33  ;;  %v12817_v29 = vpop.eup %8914  ;;  %8942 = vpow2.f32 %v4229_v3 }
 0xbba   : > { %v12820_v10 = vpop.eup %8916  ;;  %8944 = vpow2.f32 %v4233_v23 }
 0xbbb   : > { %v4313_v42 = vadd.f32 %v12801_v1, %v4312_v40  ;;  %v4213_v40 = vmul.f32 1.442695, %v4128_v50  ;;  %v12824_v37 = vpop.eup %8918  ;;  %v4336_v13 = vadd.f32 %v12820_v10, %v12817_v29  ;;  %8946 = vpow2.f32 %v4209_v60 }
 0xbbc   : > { %16504 = vst [vmem:[#allocation81_spill] sm:$0xff] %v12824_v37  ;;  %v12829_v44 = vpop.eup %8920  ;;  %v4169_v60 = vsub.f32 %v12626_v4, %v12650_v27  ;;  %v4142_v4 = vsub.f32 %v12531_v30, %v12713_v5 }
 0xbbd   : > { %v4314_v18 = vadd.f32 %v12806_v38, %v4313_v42  ;;  %v12831_v15 = vpop.eup %8922  ;;  %v4165_v42 = vsub.f32 %v16506_v2, %v12650_v27  ;;  %v4337_v50 = vadd.f32 %v12829_v44, %v4336_v13  ;;  %8948 = vpow2.f32 %v4213_v40 }
 0xbbe   : > { %16505 = vst [vmem:[#allocation64_spill] sm:$0xff] %v12831_v15  ;;  %v12837_v3 = vpop.eup %8924  ;;  %8950 = vpow2.f32 %v4217_v52 }
 0xbbf   : > { %v4315_v49 = vadd.f32 %v12810_v56, %v4314_v18  ;;  %v12841_v23 = vpop.eup %8926  ;;  %v4283_v18 = vmul.f32 1.442695, %v4163_v63  ;;  %v4338_v38 = vadd.f32 %v12837_v3, %v4337_v50  ;;  %v4287_v13 = vmul.f32 1.442695, %v4165_v42 }
 0xbc0   : > { %16507 = vst [vmem:[#allocation50_spill] sm:$0xff] %v12841_v23  ;;  %v12845_v2 = vpop.eup %8928  ;;  %v4291_v63 = vmul.f32 1.442695, %v4167_v28 }
 0xbc1   : > { %v4316_v45 = vadd.f32 %v12815_v33, %v4315_v49  ;;  %v12847_v49 = vpop.eup %8930  ;;  %v4339_v16 = vadd.f32 %v12845_v2, %v4338_v38  ;;  %8952 = vpow2.f32 %v4283_v18 }
 0xbc2   : > { %v12853_v40 = vpop.eup %8932  ;;  %8954 = vpow2.f32 %v4287_v13  ;;  %v4241_v13 = vmul.f32 1.442695, %v4142_v4 }
 0xbc3   : > { %v4317_v56 = vadd.f32 %v12824_v37, %v4316_v45  ;;  %v12855_v62 = vpop.eup %8934  ;;  %v4140_v45 = vsub.f32 %v12527_v31, %v12713_v5  ;;  %v4340_v50 = vadd.f32 %v12847_v49, %v4339_v16  ;;  %8956 = vpow2.f32 %v4291_v63 }
 0xbc4   : > { %v12861_v37 = vpop.eup %8936 }
 0xbc5   : > { %v4318_v33 = vadd.f32 %v12831_v15, %v4317_v56  ;;  %v8939_v27 = vpop.eup %8938  ;;  %v4295_v56 = vmul.f32 1.442695, %v4169_v60  ;;  %v4341_v42 = vadd.f32 %v12853_v40, %v4340_v50  ;;  %v4237_v16 = vmul.f32 1.442695, %v4140_v45 }
 0xbc6   : > { %v8941_v28 = vpop.eup %8940  ;;  %v4146_v60 = vsub.f32 %v12539_v51, %v12713_v5  ;;  %v4148_v45 = vsub.f32 %v12543_v9, %v12713_v5  ;;  %v4154_v9 = vsub.f32 %v12555_v12, %v12713_v5 }
 0xbc7   : > { %v4319_v52 = vadd.f32 %v12841_v23, %v4318_v33  ;;  %v4144_v33 = vsub.f32 %v12535_v35, %v12713_v5  ;;  %v12869_v18 = vpop.eup %8942  ;;  %v4342_v23 = vadd.f32 %v12855_v62, %v4341_v42  ;;  %8958 = vpow2.f32 %v4295_v56 }
 0xbc8   : > { %v12873_v30 = vpop.eup %8944  ;;  %v4389_v42 = vpack.c.bf16 %v12801_v1, %v12766_v41  ;;  %8960 = vpow2.f32 %v4237_v16  ;;  %v4388_v56 = vpack.c.bf16 %v8941_v28, %v8939_v27  ;;  %v4249_v1 = vmul.f32 1.442695, %v4146_v60 }
 0xbc9   : > { %v4320_v38 = vadd.f32 %v12770_v36, %v4319_v52  ;;  %v4343_v50 = vadd.f32 %v12861_v37, %v4342_v23  ;;  %v4390_v35 = vpack.c.bf16 %v12873_v30, %v12869_v18  ;;  %v8947_v63 = vpop.eup %8946  ;;  %v4150_v23 = vsub.f32 %v12547_v20, %v12713_v5 }
 0xbca   : > { %v8949_v15 = vpop.eup %8948  ;;  %v4152_v36 = vsub.f32 %v12551_v59, %v12713_v5  ;;  %8962 = vpow2.f32 %v4241_v13  ;;  %v4168_v16 = vsub.f32 %v12620_v8, %v12713_v5  ;;  %v4253_v20 = vmul.f32 1.442695, %v4148_v45 }
 0xbcb   : > { %v4321_v31 = vadd.f32 %v12775_v58, %v4320_v38  ;;  %v4245_v38 = vmul.f32 1.442695, %v4144_v33  ;;  %v4344_v4 = vadd.f32 %v8947_v63, %v4343_v50  ;;  %4407 = vmatprep.subr.bf16.mxu0 %v4390_v35  ;;  %v4387_v59 = vpack.c.bf16 %v12761_v0, %v12757_v43 }
 0xbcc   : > { %4408 = vmatpush1.bf16.msra.mxu0 %v4389_v42  ;;  %v4156_v60 = vsub.f32 %v12563_v46, %v12713_v5  ;;  %v4158_v8 = vsub.f32 %v12571_v54, %v12713_v5  ;;  %v4257_v13 = vmul.f32 1.442695, %v4150_v23  ;;  %v4261_v0 = vmul.f32 1.442695, %v4152_v36 }
 0xbcd   : > { %v4322_v52 = vadd.f32 %v12781_v19, %v4321_v31  ;;  %v8951_v31 = vpop.eup %8950  ;;  %v4345_v33 = vadd.f32 %v8949_v15, %v4344_v4  ;;  %4409 = vmatprep.subr.bf16.mxu0 %v4388_v56  ;;  %8964 = vpow2.f32 %v4245_v38  ;;  %v4166_v38 = vsub.f32 %v12608_v11, %v12713_v5 }
 0xbce   : > { %v4386_v35 = vpack.c.bf16 %v8951_v31, %v8949_v15  ;;  %v12900_v42 = vpop.eup %8952  ;;  %8966 = vpow2.f32 %v4249_v1  ;;  %v4293_v46 = vmul.f32 1.442695, %v4168_v16  ;;  %v4385_v54 = vpack.c.bf16 %v12752_v17, %v12748_v34 }
 0xbcf   : > { %v4323_v51 = vadd.f32 %v12786_v32, %v4322_v52  ;;  %v4170_v52 = vsub.f32 %v12646_v21, %v12713_v5  ;;  %v4346_v12 = vadd.f32 %v8951_v31, %v4345_v33  ;;  %v4164_v21 = vsub.f32 %v12595_v25, %v12713_v5  ;;  %v12909_v15 = vpop.eup %8954 }
 0xbd0   : > { %4410 = vmatpush1.bf16.msra.mxu0 %v4387_v59  ;;  %8968 = vpow2.f32 %v4253_v20  ;;  %v4384_v56 = vpack.c.bf16 %v8947_v63, %v12861_v37  ;;  %v12917_v31 = vpop.eup %8956  ;;  %v4160_v36 = vsub.f32 %v12579_v55, %v12713_v5  ;;  %v4265_v11 = vmul.f32 1.442695, %v4154_v9 }
 0xbd1   : > { %v4324_v41 = vadd.f32 %v12792_v22, %v4323_v51  ;;  %v4347_v45 = vadd.f32 %v8939_v27, %v4346_v12  ;;  %4411 = vmatprep.subr.bf16.mxu0 %v4386_v35  ;;  %v4297_v51 = vmul.f32 1.442695, %v4170_v52  ;;  %v4162_v27 = vsub.f32 %v12587_v53, %v12713_v5 }
 0xbd2   : > { %8970 = vpow2.f32 %v4257_v13  ;;  %v4269_v34 = vmul.f32 1.442695, %v4156_v60  ;;  %v4285_v37 = vmul.f32 1.442695, %v4164_v21  ;;  %v4289_v63 = vmul.f32 1.442695, %v4166_v38 }
 0xbd3   : > { %v4325_v50 = vadd.f32 %v12797_v47, %v4324_v41  ;;  %v4348_v4 = vadd.f32 %v8941_v28, %v4347_v45  ;;  %8972 = vpow2.f32 %v4261_v0  ;;  %v4383_v55 = vpack.c.bf16 %v12743_v7, %v12739_v39 }
 0xbd4   : > { %4412 = vmatpush1.bf16.msra.mxu0 %v4385_v54  ;;  %v12925_v28 = vpop.eup %8958  ;;  %8974 = vpow2.f32 %v4293_v46  ;;  %v4382_v9 = vpack.c.bf16 %v12855_v62, %v12853_v40  ;;  %v4277_v39 = vmul.f32 1.442695, %v4160_v36  ;;  %v4381_v7 = vpack.c.bf16 %v12732_v6, %v12725_v24 }
 0xbd5   : > { %v4326_v43 = vadd.f32 %v12900_v42, %v4325_v50  ;;  %v4349_v17 = vadd.f32 %v12869_v18, %v4348_v4  ;;  %4413 = vmatprep.subr.bf16.mxu0 %v4384_v56  ;;  %8976 = vpow2.f32 %v4297_v51  ;;  %v12935_v41 = vpop.eup %8960  ;;  %v4273_v18 = vmul.f32 1.442695, %v4158_v8 }
 0xbd6   : > { %8978 = vpow2.f32 %v4265_v11  ;;  %v4380_v40 = vpack.c.bf16 %v12847_v49, %v12845_v2  ;;  %v4379_v59 = vpack.c.bf16 %v12718_v48, %v12709_v61  ;;  %v4378_v6 = vpack.c.bf16 %v12837_v3, %v12829_v44  ;;  %v16508_v3 = vld [vmem:[#allocation60_spill] sm:$0xff] }
 0xbd7   : > { %v4327_v25 = vadd.f32 %v12909_v15, %v4326_v43  ;;  %v4350_v5 = vadd.f32 %v12873_v30, %v4349_v17  ;;  %8980 = vpow2.f32 %v4269_v34  ;;  %v12938_v33 = vpop.eup %8962  ;;  %v4281_v30 = vmul.f32 1.442695, %v4162_v27 }
 0xbd8   : > { %4414 = vmatpush1.bf16.msra.mxu0 %v4383_v55  ;;  %8982 = vpow2.f32 %v4285_v37  ;;  %v4377_v35 = vpack.c.bf16 %v12702_v14, %v12695_v26  ;;  %v4376_v21 = vpack.c.bf16 %v12820_v10, %v12817_v29  ;;  %v4375_v43 = vpack.c.bf16 %v16508_v3, %v12683_v57  ;;  %v16513_v55 = vld [vmem:[#allocation64_spill] sm:$0xff] }
 0xbd9   : > { %v4328_v23 = vadd.f32 %v12917_v31, %v4327_v25  ;;  %v4351_v1 = vadd.f32 %v12935_v41, %v4350_v5  ;;  %4415 = vmatprep.subr.bf16.mxu0 %v4382_v9  ;;  %8984 = vpow2.f32 %v4289_v63  ;;  %v4405_v29 = vpack.c.bf16 %v12925_v28, %v12917_v31  ;;  %v16514_v5 = vld [vmem:[#allocation50_spill] sm:$0xff]  ;;  %v16515_v9 = vld [vmem:[#allocation19_spill] sm:$0xff]  ;;  %v16537_v3 = vld [vmem:[#allocation76_spill] sm:$0xff] }
 0xbda   : > { %v12945_v16 = vpop.eup %8964  ;;  %8986 = vpow2.f32 %v4273_v18  ;;  %v4403_v57 = vpack.c.bf16 %v12909_v15, %v12900_v42  ;;  %v16509_v31 = vpack.c.bf16 %v12797_v47, %v12792_v22  ;;  %v16510_v37 = vpack.c.bf16 %v12786_v32, %v12781_v19  ;;  %v16511_v15 = vld [vmem:[#allocation89_spill] sm:$0xff] }
 0xbdb   : > { %v12930_v53 = vadd.f32 %v12925_v28, %v4328_v23  ;;  %v4352_v62 = vadd.f32 %v12938_v33, %v4351_v1  ;;  %v8967_v20 = vpop.eup %8966  ;;  %8988 = vpow2.f32 %v4277_v39  ;;  %v16512_v63 = vpack.c.bf16 %v12775_v58, %v16511_v15  ;;  %v16516_v18 = vld [vmem:[#allocation81_spill] sm:$0xff]  ;;  %v16517_v39 = vld [vmem:[#allocation104_spill] sm:$0xff] }
 0xbdc   : > { %4416 = vmatpush1.bf16.msra.mxu0 %v4381_v7  ;;  %8990 = vpow2.f32 %v4281_v30  ;;  %v4395_v22 = vpack.c.bf16 %v16514_v5, %v16513_v55  ;;  %v4394_v47 = vpack.c.bf16 %v8967_v20, %v12945_v16  ;;  %v4393_v1 = vpack.c.bf16 %v16516_v18, %v16515_v9  ;;  %v16518_v19 = vld [vmem:[#allocation29_spill] sm:$0xff]  ;;  %v16520_v30 = vld [vmem:[#allocation80_spill] sm:$0xff] }
 0xbdd   : > { %v4353_v52 = vadd.f32 %v12945_v16, %v4352_v62  ;;  %4417 = vmatprep.subr.bf16.mxu0 %v4380_v40  ;;  %v8969_v50 = vpop.eup %8968  ;;  %v992_v32 = vadd.f32 %v16518_v19, %v16517_v39  ;;  %v4392_v7 = vpack.c.bf16 %v12938_v33, %v12935_v41  ;;  %v16519_v58 = vld [vmem:[#allocation69_spill] sm:$0xff]  ;;  %v16521_v40 = vld [vmem:[#allocation28_spill] sm:$0xff]  ;;  %v16522_v16 = vld [vmem:[#allocation62_spill] sm:$0xff] }
 0xbde   : > { %v1064_v62 = vadd.f32 %v16520_v30, %v16519_v58  ;;  %v16525_v41 = vld [vmem:[#allocation124_spill] sm:$0xff]  ;;  %v16562_v15 = vld [vmem:[#allocation93_spill] sm:$0xff] }
 0xbdf   : > { %v4354_v24 = vadd.f32 %v8967_v20, %v4353_v52  ;;  %v8971_v2 = vpop.eup %8970  ;;  %v990_v52 = vadd.f32 %v16521_v40, %v16517_v39  ;;  %v16523_v20 = vld [vmem:[#allocation66_spill] sm:$0xff]  ;;  %v16526_v33 = vld [vmem:[#allocation16_spill] sm:$0xff] }
 0xbe0   : > { %4418 = vmatpush1.bf16.msra.mxu0 %v4379_v59  ;;  %v8973_v12 = vpop.eup %8972  ;;  %v4396_v42 = vpack.c.bf16 %v8971_v2, %v8969_v50  ;;  %v4391_v59 = vpack.c.bf16 %v16523_v20, %v16522_v16  ;;  %v16565_v5 = vld [vmem:[#allocation88_spill] sm:$0xff] }
 0xbe1   : > { %v4355_v49 = vadd.f32 %v8969_v50, %v4354_v24  ;;  %4419 = vmatprep.subr.bf16.mxu0 %v4378_v6  ;;  %v8975_v60 = vpop.eup %8974  ;;  %v4457_v24 = vmul.f32 0.5, %v992_v32  ;;  %v4373_v6 = vpack.c.bf16 %v1064_v62, %v1064_v62  ;;  %v4456_v50 = vmul.f32 0.5, %v990_v52  ;;  %v16568_v9 = vld [vmem:[#allocation48_spill] sm:$0xff] }
 0xbe2   : > { %v8977_v61 = vpop.eup %8976  ;;  %v16570_v19 = vld [vmem:[#allocation36_spill] sm:$0xff]  ;;  %v4330_v32 = vrot.slane %v12930_v53, 4 }
 0xbe3   : > { %v4356_v8 = vadd.f32 %v8971_v2, %v4355_v49  ;;  %v8979_v48 = vpop.eup %8978  ;;  %v4406_v38 = vpack.c.bf16 %v8977_v61, %v8975_v60  ;;  %v16524_v2 = vmov 0.0   ;;  %v16527_v49 = vld [vmem:[#allocation47_spill] sm:$0xff] }
 0xbe4   : > { %4420 = vmatpush1.bf16.msra.mxu0 %v4377_v35  ;;  %v8981_v44 = vpop.eup %8980  ;;  %v4398_v28 = vpack.c.bf16 %v8979_v48, %v8973_v12  ;;  %v16529_v35 = vld [vmem:[#allocation40_spill] sm:$0xff]  ;;  %v4331_v62 = vadd.f32 %v4330_v32, %v12930_v53 }
 0xbe5   : > { %v4357_v13 = vadd.f32 %v8973_v12, %v4356_v8  ;;  %4421 = vmatprep.subr.bf16.mxu0 %v4376_v21  ;;  %v8983_v0 = vpop.eup %8982  ;;  %v16528_v12 = vld [vmem:[#allocation71_spill] sm:$0xff]  ;;  %v16531_v8 = vld [vmem:[#allocation120_spill] sm:$0xff]  ;;  %v16532_v21 = vld [vmem:[#allocation17_spill] sm:$0xff] }
 0xbe6   : > { %v8985_v46 = vpop.eup %8984  ;;  %v4332_v16 = vrot.slane %v4331_v62, 2 }
 0xbe7   : > { %v4358_v45 = vadd.f32 %v8979_v48, %v4357_v13  ;;  %v8987_v14 = vpop.eup %8986  ;;  %v4404_v54 = vpack.c.bf16 %v8985_v46, %v8983_v0  ;;  %v16534_v48 = vld [vmem:[#allocation23_spill] sm:$0xff] }
 0xbe8   : > { %4422 = vmatpush1.bf16.msra.mxu0 %v4375_v43  ;;  %v8989_v10 = vpop.eup %8988  ;;  %v4400_v23 = vpack.c.bf16 %v8987_v14, %v8981_v44  ;;  %v16535_v13 = vld [vmem:[#allocation27_spill] sm:$0xff]  ;;  %v16538_v43 = vld [vmem:[#allocation46_spill] sm:$0xff] }
 0xbe9   : > { %v4359_v26 = vadd.f32 %v8981_v44, %v4358_v45  ;;  %4423 = vmatprep.subr.bf16.mxu0 %v4406_v38  ;;  %v8991_v25 = vpop.eup %8990  ;;  %v13022_v44 = vpop.trf.xlu1  ;;  %v16540_v45 = vld [vmem:[#allocation67_spill] sm:$0xff] }
 0xbea   : > { %v4402_v36 = vpack.c.bf16 %v8991_v25, %v8989_v10  ;;  %16536 = vst [vmem:[#allocation43_spill] sm:$0xff] %v13022_v44 }
 0xbeb   : > { %v4360_v51 = vadd.f32 %v8987_v14, %v4359_v26  ;;  %v16543_v26 = vld [vmem:[#allocation94_spill] sm:$0xff] }
 0xbec   : > { %4424 = vmatpush2.bf16.msra.mxu0 %v4405_v29  ;;  %v16545_v29 = vld [vmem:[#allocation63_spill] sm:$0xff] }
 0xbed   : > { %v4361_v4 = vadd.f32 %v8989_v10, %v4360_v51  ;;  %4425 = vmatprep.subr.bf16.mxu0 %v4404_v54  ;;  %v16547_v51 = vld [vmem:[#allocation70_spill] sm:$0xff]  ;;  %v16548_v54 = vld [vmem:[#allocation77_spill] sm:$0xff] }
 0xbef   : > { %v4362_v56 = vadd.f32 %v8991_v25, %v4361_v4  ;;  %v16550_v4 = vld [vmem:[#allocation86_spill] sm:$0xff] }
 0xbf0   : > { %4426 = vmatpush2.bf16.msra.mxu0 %v4403_v57 }
 0xbf1   : > { %v4363_v27 = vadd.f32 %v8983_v0, %v4362_v56  ;;  %4427 = vmatprep.subr.bf16.mxu0 %v4402_v36  ;;  %v13030_v0 = vpop.trf.xlu1  ;;  %v16552_v56 = vld [vmem:[#allocation109_spill] sm:$0xff]  ;;  %v16553_v36 = vld [vmem:[#allocation12_spill] sm:$0xff] }
 0xbf2   : > { %16539 = vst [vmem:[#allocation21_spill] sm:$0xff] %v13030_v0 }
 0xbf3   : > { %v4364_v11 = vadd.f32 %v8985_v46, %v4363_v27  ;;  %v16542_v46 = vld [vmem:[#allocation82_spill] sm:$0xff] }
 0xbf4   : > { %4428 = vmatpush2.bf16.msra.mxu0 %v16509_v31  ;;  %v16557_v31 = vld [vmem:[#allocation79_spill] sm:$0xff] }
 0xbf5   : > { %v4365_v34 = vadd.f32 %v8975_v60, %v4364_v11  ;;  %4429 = vmatprep.subr.bf16.mxu0 %v4400_v23  ;;  %v16530_v60 = vld [vmem:[#allocation52_spill] sm:$0xff]  ;;  %v13035_v38 = vpop.trf.xlu1  ;;  %v16555_v11 = vld [vmem:[#allocation13_spill] sm:$0xff] }
 0xbf6   : > { %16541 = vst [vmem:[#allocation22_spill] sm:$0xff] %v13035_v38 }
 0xbf7   : > { %v12965_v17 = vadd.f32 %v8977_v61, %v4365_v34  ;;  %v16533_v61 = vld [vmem:[#allocation74_spill] sm:$0xff]  ;;  %v16558_v34 = vld [vmem:[#allocation75_spill] sm:$0xff] }
 0xbf8   : > { %4430 = vmatpush2.bf16.msra.mxu0 %v16510_v37  ;;  %v16560_v37 = vld [vmem:[#allocation99_spill] sm:$0xff] }
 0xbf9   : > { %4431 = vmatprep.subr.bf16.mxu0 %v4398_v28  ;;  %v13043_v14 = vpop.trf.xlu1  ;;  %v4367_v30 = vrot.slane %v12965_v17, 4 }
 0xbfa   : > { %16544 = vst [vmem:[#allocation95_spill] sm:$0xff] %v13043_v14 }
 0xbfb   : > { %v4368_v52 = vadd.f32 %v4367_v30, %v12965_v17 }
 0xbfc   : > { %4432 = vmatpush2.bf16.msra.mxu0 %v16512_v63  ;;  %v16563_v63 = vld [vmem:[#allocation37_spill] sm:$0xff] }
 0xbfd   : > { %4433 = vmatprep.subr.bf16.mxu0 %v4396_v42  ;;  %v13048_v10 = vpop.trf.xlu1 }
 0xbfe   : > { %16546 = vst [vmem:[#allocation44_spill] sm:$0xff] %v13048_v10 }
 0xc00   : > { %4434 = vmatpush2.bf16.msra.mxu0 %v4395_v22 }
 0xc01   : > { %4435 = vmatprep.subr.bf16.mxu0 %v4394_v47  ;;  %v13056_v25 = vpop.trf.xlu1  ;;  %v16567_v47 = vld [vmem:[#allocation24_spill] sm:$0xff] }
 0xc02   : > { %16549 = vst [vmem:[#allocation25_spill] sm:$0xff] %v13056_v25 }
 0xc04   : > { %4436 = vmatpush2.bf16.msra.mxu0 %v4393_v1  ;;  %v16569_v1 = vld [vmem:[#allocation92_spill] sm:$0xff] }
 0xc05   : > { %4437 = vmatprep.subr.bf16.mxu0 %v4392_v7  ;;  %v13061_v57 = vpop.trf.xlu1  ;;  %v16571_v7 = vld [vmem:[#allocation68_spill] sm:$0xff] }
 0xc06   : > { %16551 = vst [vmem:[#allocation18_spill] sm:$0xff] %v13061_v57  ;;  %v3525_v58 = vrot.slane %v16571_v7, 4 }
 0xc08   : > { %4438 = vmatpush2.bf16.msra.mxu0 %v4391_v59  ;;  %v3526_v40 = vadd.f32 %v3525_v58, %v16571_v7  ;;  %v4369_v59 = vrot.slane %v4368_v52, 2 }
 0xc09   : > { %4648 = vmatprep.subr.mxu0 %v4457_v24  ;;  %v13069_v27 = vpop.trf.xlu1  ;;  %v4333_v24 = vadd.f32 %v4332_v16, %v4331_v62 }
 0xc0a   : > { %16554 = vst [vmem:[#allocation84_spill] sm:$0xff] %v13069_v27  ;;  %v3527_v20 = vrot.slane %v3526_v40, 2 }
 0xc0b   : > { %4440 = vmatmul.mubr.bf16.vlgmr.msra.gmra.mxu0 %v4373_v6 }
 0xc0c   : > { %4649 = vmatpush1.msra.mxu0 %v4456_v50  ;;  %4682 = vmatprep.mubr.f32.mxu0 %v16524_v2  ;;  %v3528_v6 = vadd.f32 %v3527_v20, %v3526_v40  ;;  %v4370_v50 = vadd.f32 %v4369_v59, %v4368_v52 }
 0xc0d   : > { %v13074_v23 = vpop.trf.xlu1 }
 0xc0e   : > { %16556 = vst [vmem:[#allocation90_spill] sm:$0xff] %v13074_v23 }
 0xc11   : > { %v13082_v28 = vpop.trf.xlu1 }
 0xc12   : > { %16559 = vst [vmem:[#allocation53_spill] sm:$0xff] %v13082_v28 }
 0xc13   : > { %8215 = vmatmul.mubr.msk.f32.vlgmr.msra.gmra.mxu0 %vm449_vm3, %v16525_v41  ;;  %v4334_v41 = vrot.slane %v4333_v24, 1 }
 0xc14   : > { %4688 = vmatprep.mubr.f32.mxu0 %v16524_v2 }
 0xc15   : > { %v13087_v42 = vpop.trf.xlu1 }
 0xc16   : > { %16561 = vst [vmem:[#allocation58_spill] sm:$0xff] %v13087_v42 }
 0xc17   : > { %8216 = vmatmul.mubr.msk.f32.gmra.mxu0 %vm449_vm3, %v16526_v33  ;;  %v3529_v33 = vrot.slane %v3528_v6, 1 }
 0xc18   : > { %4694 = vmatprep.mubr.f32.mxu0 %v16524_v2 }
 0xc19   : > { %v13095_v55 = vpop.trf.xlu1 }
 0xc1a   : > { %16564 = vst [vmem:[#allocation60_spill] sm:$0xff] %v13095_v55 }
 0xc1b   : > { %8217 = vmatmul.mubr.msk.f32.gmra.mxu0 %vm449_vm3, %v16527_v49  ;;  %v4371_v49 = vrot.slane %v4370_v50, 1 }
 0xc1c   : > { %4700 = vmatprep.mubr.f32.mxu0 %v16524_v2 }
 0xc1d   : > { %v13100_v22 = vpop.permute.xlu1 %826 }
 0xc1e   : > { %16566 = vst [vmem:[#allocation89_spill] sm:$0xff] %v13100_v22  ;;  %v1076_v18 = vadd.f32 %v16568_v9, %v13100_v22 }
 0xc1f   : > { %8218 = vmatmul.mubr.msk.f32.gmra.mxu0 %vm449_vm3, %v16528_v12  ;;  %v4335_v12 = vadd.f32 %v4334_v41, %v4333_v24 }
 0xc20   : > { %4706 = vmatprep.mubr.f32.mxu0 %v16524_v2  ;;  %v6058_v39 = vpack.c.bf16 %v1076_v18, %v1076_v18 }
 0xc21   : > { %8992 = vrcp.f32 %v4335_v12 }
 0xc23   : > { %8219 = vmatmul.mubr.msk.f32.gmra.mxu0 %vm449_vm3, %v16529_v35  ;;  %v3530_v35 = vadd.f32 %v3529_v33, %v3528_v6 }
 0xc24   : > { %4712 = vmatprep.mubr.f32.mxu0 %v16524_v2 }
 0xc25   : > { %8994 = vrcp.f32 %v3530_v35 }
 0xc27   : > { %8220 = vmatmul.mubr.msk.f32.gmra.mxu0 %vm449_vm3, %v16530_v60  ;;  %v4372_v60 = vadd.f32 %v4371_v49, %v4370_v50 }
 0xc28   : > { %4718 = vmatprep.mubr.f32.mxu0 %v16524_v2 }
 0xc29   : > { %8996 = vrcp.f32 %v4372_v60 }
 0xc2b   : > { %8221 = vmatmul.mubr.msk.f32.gmra.mxu0 %vm449_vm3, %v16531_v8 }
 0xc2c   : > { %4724 = vmatprep.mubr.f32.mxu0 %v16524_v2 }
 0xc2e   : > { %v8993_v53 = vpop.eup %8992 }
 0xc2f   : > { %8222 = vmatmul.mubr.msk.f32.gmra.mxu0 %vm449_vm3, %v16532_v21 }
 0xc30   : > { %4730 = vmatprep.mubr.f32.mxu0 %v16524_v2 }
 0xc32   : > { %v8995_v21 = vpop.eup %8994 }
 0xc33   : > { %8223 = vmatmul.mubr.msk.f32.gmra.mxu0 %vm449_vm3, %v16533_v61 }
 0xc34   : > { %4736 = vmatprep.mubr.f32.mxu0 %v16524_v2 }
 0xc36   : > { %v8997_v17 = vpop.eup %8996 }
 0xc37   : > { %8224 = vmatmul.mubr.msk.f32.gmra.mxu0 %vm449_vm3, %v16534_v48 }
 0xc38   : > { %4742 = vmatprep.mubr.f32.mxu0 %v16524_v2 }
 0xc3b   : > { %8225 = vmatmul.mubr.msk.f32.gmra.mxu0 %vm449_vm3, %v16535_v13  ;;  %v16573_v13 = vld [vmem:[#allocation108_spill] sm:$0xff] }
 0xc3c   : > { %4748 = vmatprep.mubr.f32.mxu0 %v16524_v2 }
 0xc3f   : > { %8226 = vmatmul.mubr.msk.f32.gmra.mxu0 %vm449_vm3, %v16537_v3  ;;  %v13121_v3 = vmul.f32 %v8995_v21, %v16573_v13 }
 0xc40   : > { %4754 = vmatprep.mubr.f32.mxu0 %v16524_v2 }
 0xc41   : > { %16574 = vst [vmem:[#allocation50_spill] sm:$0xff] %v13121_v3 }
 0xc43   : > { %8227 = vmatmul.mubr.msk.f32.gmra.mxu0 %vm449_vm3, %v16538_v43 }
 0xc44   : > { %4760 = vmatprep.mubr.f32.mxu0 %v16524_v2 }
 0xc47   : > { %8228 = vmatmul.mubr.msk.f32.gmra.mxu0 %vm449_vm3, %v16540_v45 }
 0xc48   : > { %4766 = vmatprep.mubr.f32.mxu0 %v16524_v2 }
 0xc4b   : > { %8229 = vmatmul.mubr.msk.f32.gmra.mxu0 %vm449_vm3, %v16542_v46 }
 0xc4c   : > { %4772 = vmatprep.mubr.f32.mxu0 %v16524_v2 }
 0xc4f   : > { %8230 = vmatmul.mubr.msk.f32.gmra.mxu0 %vm449_vm3, %v16543_v26 }
 0xc50   : > { %4778 = vmatprep.mubr.f32.mxu0 %v16524_v2 }
 0xc53   : > { %8231 = vmatmul.mubr.msk.f32.gmra.mxu0 %vm449_vm3, %v16545_v29 }
 0xc54   : > { %4784 = vmatprep.mubr.f32.mxu0 %v16524_v2 }
 0xc57   : > { %8232 = vmatmul.mubr.msk.f32.gmra.mxu0 %vm449_vm3, %v16547_v51 }
 0xc58   : > { %4790 = vmatprep.mubr.f32.mxu0 %v16524_v2 }
 0xc5b   : > { %8233 = vmatmul.mubr.msk.f32.gmra.mxu0 %vm449_vm3, %v16548_v54 }
 0xc5c   : > { %4796 = vmatprep.mubr.f32.mxu0 %v16524_v2 }
 0xc5f   : > { %8234 = vmatmul.mubr.msk.f32.gmra.mxu0 %vm449_vm3, %v16550_v4 }
 0xc60   : > { %4802 = vmatprep.mubr.f32.mxu0 %v16524_v2 }
 0xc63   : > { %8235 = vmatmul.mubr.msk.f32.gmra.mxu0 %vm449_vm3, %v16552_v56 }
 0xc64   : > { %4808 = vmatprep.mubr.f32.mxu0 %v16524_v2 }
 0xc67   : > { %8236 = vmatmul.mubr.msk.f32.gmra.mxu0 %vm449_vm3, %v16553_v36 }
 0xc68   : > { %4814 = vmatprep.mubr.f32.mxu0 %v16524_v2 }
 0xc6b   : > { %8237 = vmatmul.mubr.msk.f32.gmra.mxu0 %vm449_vm3, %v16555_v11 }
 0xc6c   : > { %4820 = vmatprep.mubr.f32.mxu0 %v16524_v2 }
 0xc6f   : > { %8238 = vmatmul.mubr.msk.f32.gmra.mxu0 %vm449_vm3, %v16557_v31 }
 0xc70   : > { %4826 = vmatprep.mubr.f32.mxu0 %v16524_v2 }
 0xc73   : > { %8239 = vmatmul.mubr.msk.f32.gmra.mxu0 %vm449_vm3, %v16558_v34 }
 0xc74   : > { %4832 = vmatprep.mubr.f32.mxu0 %v16524_v2 }
 0xc77   : > { %8240 = vmatmul.mubr.msk.f32.gmra.mxu0 %vm449_vm3, %v16560_v37 }
 0xc78   : > { %4838 = vmatprep.mubr.f32.mxu0 %v16524_v2 }
 0xc7b   : > { %8241 = vmatmul.mubr.msk.f32.gmra.mxu0 %vm449_vm3, %v16562_v15 }
 0xc7c   : > { %4844 = vmatprep.mubr.f32.mxu0 %v16524_v2 }
 0xc7f   : > { %8242 = vmatmul.mubr.msk.f32.gmra.mxu0 %vm449_vm3, %v16563_v63 }
 0xc80   : > { %4850 = vmatprep.mubr.f32.mxu0 %v16524_v2 }
 0xc83   : > { %8243 = vmatmul.mubr.msk.f32.gmra.mxu0 %vm449_vm3, %v16565_v5 }
 0xc84   : > { %4856 = vmatprep.mubr.f32.mxu0 %v16524_v2 }
 0xc87   : > { %8244 = vmatmul.mubr.msk.f32.gmra.mxu0 %vm449_vm3, %v16567_v47 }
 0xc88   : > { %4862 = vmatprep.mubr.f32.mxu0 %v16524_v2 }
 0xc8b   : > { %8245 = vmatmul.mubr.msk.f32.gmra.mxu0 %vm449_vm3, %v16569_v1 }
 0xc8c   : > { %4868 = vmatprep.mubr.f32.mxu0 %v16524_v2 }
 0xc8f   : > { %8246 = vmatmul.mubr.msk.f32.gmra.mxu0 %vm449_vm3, %v16570_v19 }
 0xc90   : > { %6123 = vmatprep.mubr.bf16.mxu0 %v6058_v39 }
 0xccb   : > { %v4441_v8 = vpop.f32.mrf.mxu0 }
 0xccc   : > { %v13118_v61 = vmul.f32 %v8993_v53, %v4441_v8 }
 0xccd   : > { %v4443_v48 = vpop.f32.mrf.mxu0 }
 0xcce   : > { %16572 = vst [vmem:[#allocation64_spill] sm:$0xff] %v13118_v61  ;;  %v13125_v46 = vmul.f32 %v8997_v17, %v4443_v48 }
 0xccf   : > { %v4445_v26 = vpop.f32.mrf.mxu0 }
 0xcd0   : > { %16576 = vst [vmem:[#allocation19_spill] sm:$0xff] %v13125_v46 }
 0xcd1   : > { %v4446_v51 = vpop.f32.mrf.mxu0 }
 0xcd3   : > { %v13129_v54 = vpop.f32.mrf.mxu0 }
 0xcd5   : > { %v13131_v4 = vpop.f32.mrf.mxu0 }
 0xcd7   : > { %v13133_v56 = vpop.f32.mrf.mxu0 }
 0xcd9   : > { %v13135_v36 = vpop.f32.mrf.mxu0 }
 0xcdb   : > { %v13137_v11 = vpop.f32.mrf.mxu0 }
 0xcdc   : > { %v4875_v46 = vmax.f32 %v13129_v54, %v13137_v11 }
 0xcdd   : > { %v13139_v31 = vpop.f32.mrf.mxu0 }
 0xcdf   : > { %v13141_v34 = vpop.f32.mrf.mxu0 }
 0xce0   : > { %v4876_v22 = vmax.f32 %v13133_v56, %v13141_v34 }
 0xce1   : > { %v13143_v37 = vpop.f32.mrf.mxu0 }
 0xce2   : > { %16577 = vst [vmem:[#allocation81_spill] sm:$0xff] %v13143_v37 }
 0xce3   : > { %v13145_v15 = vpop.f32.mrf.mxu0 }
 0xce4   : > { %v4877_v42 = vmax.f32 %v4875_v46, %v13145_v15 }
 0xce5   : > { %v13147_v63 = vpop.f32.mrf.mxu0 }
 0xce7   : > { %v13149_v5 = vpop.f32.mrf.mxu0 }
 0xce8   : > { %v4878_v28 = vmax.f32 %v4876_v22, %v13149_v5 }
 0xce9   : > { %v13151_v47 = vpop.f32.mrf.mxu0 }
 0xcea   : > { %16578 = vst [vmem:[#allocation104_spill] sm:$0xff] %v13151_v47 }
 0xceb   : > { %v13153_v9 = vpop.f32.mrf.mxu0 }
 0xcec   : > { %v4879_v27 = vmax.f32 %v4877_v42, %v13153_v9 }
 0xced   : > { %v13155_v18 = vpop.f32.mrf.mxu0 }
 0xcef   : > { %v13157_v1 = vpop.f32.mrf.mxu0 }
 0xcf0   : > { %v4880_v57 = vmax.f32 %v4878_v28, %v13157_v1 }
 0xcf1   : > { %v13159_v39 = vpop.f32.mrf.mxu0 }
 0xcf2   : > { %16579 = vst [vmem:[#allocation29_spill] sm:$0xff] %v13159_v39 }
 0xcf3   : > { %v13161_v19 = vpop.f32.mrf.mxu0 }
 0xcf4   : > { %16580 = vst [vmem:[#allocation69_spill] sm:$0xff] %v13161_v19  ;;  %v4881_v10 = vmax.f32 %v4879_v27, %v13161_v19 }
 0xcf5   : > { %v13163_v32 = vpop.f32.mrf.mxu0 }
 0xcf6   : > { %16581 = vst [vmem:[#allocation80_spill] sm:$0xff] %v13163_v32 }
 0xcf7   : > { %v13165_v7 = vpop.f32.mrf.mxu0 }
 0xcf8   : > { %v4882_v14 = vmax.f32 %v4880_v57, %v13165_v7 }
 0xcf9   : > { %v13167_v58 = vpop.f32.mrf.mxu0 }
 0xcfa   : > { %16582 = vst [vmem:[#allocation28_spill] sm:$0xff] %v13167_v58 }
 0xcfb   : > { %v13169_v30 = vpop.f32.mrf.mxu0 }
 0xcfc   : > { %16583 = vst [vmem:[#allocation62_spill] sm:$0xff] %v13169_v30  ;;  %v4883_v0 = vmax.f32 %v4881_v10, %v13169_v30 }
 0xcfd   : > { %v13171_v62 = vpop.f32.mrf.mxu0 }
 0xcff   : > { %v13173_v40 = vpop.f32.mrf.mxu0 }
 0xd00   : > { %v4884_v46 = vmax.f32 %v4882_v14, %v13173_v40 }
 0xd01   : > { %v13175_v52 = vpop.f32.mrf.mxu0 }
 0xd03   : > { %v13177_v16 = vpop.f32.mrf.mxu0 }
 0xd04   : > { %16584 = vst [vmem:[#allocation66_spill] sm:$0xff] %v13177_v16  ;;  %v4885_v22 = vmax.f32 %v4883_v0, %v13177_v16 }
 0xd05   : > { %v13179_v20 = vpop.f32.mrf.mxu0 }
 0xd07   : > { %v13181_v59 = vpop.f32.mrf.mxu0 }
 0xd08   : > { %v4886_v42 = vmax.f32 %v4884_v46, %v13181_v59  ;;  %v4913_v46 = vmax.f32 %v13135_v36, %v13143_v37 }
 0xd09   : > { %v13183_v24 = vpop.f32.mrf.mxu0 }
 0xd0b   : > { %v13185_v6 = vpop.f32.mrf.mxu0 }
 0xd0c   : > { %v4887_v28 = vmax.f32 %v4885_v22, %v13185_v6 }
 0xd0d   : > { %v13187_v50 = vpop.f32.mrf.mxu0 }
 0xd0f   : > { %v13189_v41 = vpop.f32.mrf.mxu0 }
 0xd10   : > { %16585 = vst [vmem:[#allocation124_spill] sm:$0xff] %v13189_v41  ;;  %v4888_v27 = vmax.f32 %v4886_v42, %v13189_v41 }
 0xd11   : > { %v13191_v33 = vpop.f32.mrf.mxu0 }
 0xd13   : > { %v13193_v49 = vpop.f32.mrf.mxu0 }
 0xd14   : > { %v4889_v57 = vmax.f32 %v4887_v28, %v13193_v49  ;;  %v4912_v28 = vmax.f32 %v13131_v4, %v13139_v31 }
 0xd15   : > { %v13195_v12 = vpop.f32.mrf.mxu0 }
 0xd17   : > { %v13197_v35 = vpop.f32.mrf.mxu0 }
 0xd18   : > { %v4890_v10 = vmax.f32 %v4888_v27, %v13197_v35  ;;  %v4915_v27 = vmax.f32 %v4913_v46, %v13151_v47 }
 0xd19   : > { %v13199_v60 = vpop.f32.mrf.mxu0 }
 0xd1a   : > { %v4917_v37 = vmax.f32 %v4915_v27, %v13159_v39 }
 0xd1b   : > { %v13201_v53 = vpop.f32.mrf.mxu0 }
 0xd1c   : > { %16586 = vst [vmem:[#allocation16_spill] sm:$0xff] %v13201_v53  ;;  %v4891_v14 = vmax.f32 %v4889_v57, %v13201_v53  ;;  %v4914_v53 = vmax.f32 %v4912_v28, %v13147_v63  ;;  %v4919_v46 = vmax.f32 %v4917_v37, %v13167_v58 }
 0xd1d   : > { %v13203_v8 = vpop.f32.mrf.mxu0 }
 0xd1e   : > { %v4921_v27 = vmax.f32 %v4919_v46, %v13175_v52 }
 0xd1f   : > { %v13205_v21 = vpop.f32.mrf.mxu0 }
 0xd20   : > { %16587 = vst [vmem:[#allocation47_spill] sm:$0xff] %v13205_v21  ;;  %v4892_v0 = vmax.f32 %v4890_v10, %v13205_v21  ;;  %v4923_v37 = vmax.f32 %v4921_v27, %v13183_v24 }
 0xd21   : > { %v13207_v17 = vpop.f32.mrf.mxu0 }
 0xd23   : > { %v13209_v48 = vpop.f32.mrf.mxu0 }
 0xd24   : > { %16588 = vst [vmem:[#allocation71_spill] sm:$0xff] %v13209_v48  ;;  %v4893_v22 = vmax.f32 %v4891_v14, %v13209_v48  ;;  %v4916_v48 = vmax.f32 %v4914_v53, %v13155_v18 }
 0xd25   : > { %v13211_v13 = vpop.f32.mrf.mxu0 }
 0xd26   : > { %v4918_v28 = vmax.f32 %v4916_v48, %v13163_v32  ;;  %v4925_v48 = vmax.f32 %v4923_v37, %v13191_v33 }
 0xd27   : > { %v13213_v26 = vpop.f32.mrf.mxu0 }
 0xd28   : > { %16589 = vst [vmem:[#allocation40_spill] sm:$0xff] %v13213_v26  ;;  %v4894_v42 = vmax.f32 %v4892_v0, %v13213_v26  ;;  %v4920_v53 = vmax.f32 %v4918_v28, %v13171_v62 }
 0xd29   : > { %v13215_v51 = vpop.f32.mrf.mxu0 }
 0xd2a   : > { %v4922_v58 = vmax.f32 %v4920_v53, %v13179_v20 }
 0xd2b   : > { %v13217_v45 = vpop.f32.mrf.mxu0 }
 0xd2c   : > { %v4895_v57 = vmax.f32 %v4893_v22, %v13217_v45  ;;  %v4924_v46 = vmax.f32 %v4922_v58, %v13187_v50 }
 0xd2d   : > { %v13219_v29 = vpop.f32.mrf.mxu0 }
 0xd2f   : > { %v13221_v43 = vpop.f32.mrf.mxu0 }
 0xd30   : > { %v4896_v10 = vmax.f32 %v4894_v42, %v13221_v43 }
 0xd31   : > { %v13223_v61 = vpop.f32.mrf.mxu0 }
 0xd33   : > { %v13225_v3 = vpop.f32.mrf.mxu0 }
 0xd34   : > { %v4897_v14 = vmax.f32 %v4895_v57, %v13225_v3 }
 0xd35   : > { %v13231_v55 = vpop.f32.mrf.mxu0 }
 0xd37   : > { %v13235_v23 = vpop.f32.mrf.mxu0 }
 0xd38   : > { %v4898_v0 = vmax.f32 %v4896_v10, %v13235_v23 }
 0xd39   : > { %v13239_v25 = vpop.f32.mrf.mxu0 }
 0xd3b   : > { %v13243_v38 = vpop.f32.mrf.mxu0 }
 0xd3c   : > { %v4899_v22 = vmax.f32 %v4897_v14, %v13243_v38 }
 0xd3d   : > { %v13247_v44 = vpop.f32.mrf.mxu0 }
 0xd3f   : > { %v13251_v2 = vpop.f32.mrf.mxu0 }
 0xd40   : > { %v4900_v42 = vmax.f32 %v4898_v0, %v13251_v2 }
 0xd41   : > { %v13255_v19 = vpop.f32.mrf.mxu0 }
 0xd43   : > { %v13259_v30 = vpop.f32.mrf.mxu0 }
 0xd44   : > { %16590 = vst [vmem:[#allocation52_spill] sm:$0xff] %v13259_v30  ;;  %v4901_v57 = vmax.f32 %v4899_v22, %v13259_v30  ;;  %v4927_v22 = vmax.f32 %v4925_v48, %v13199_v60 }
 0xd45   : > { %v13263_v16 = vpop.f32.mrf.mxu0 }
 0xd46   : > { %v4929_v28 = vmax.f32 %v4927_v22, %v13207_v17 }
 0xd47   : > { %v13269_v41 = vpop.f32.mrf.mxu0 }
 0xd48   : > { %16591 = vst [vmem:[#allocation120_spill] sm:$0xff] %v13269_v41  ;;  %v4902_v10 = vmax.f32 %v4900_v42, %v13269_v41  ;;  %v4926_v41 = vmax.f32 %v4924_v46, %v13195_v12 }
 0xd49   : > { %v13276_v21 = vpop.f32.mrf.mxu0 }
 0xd4a   : > { %v4928_v27 = vmax.f32 %v4926_v41, %v13203_v8 }
 0xd4b   : > { %v13282_v26 = vpop.f32.mrf.mxu0 }
 0xd4c   : > { %v4903_v14 = vmax.f32 %v4901_v57, %v13282_v26  ;;  %v4931_v57 = vmax.f32 %v4929_v28, %v13215_v51  ;;  %v4930_v53 = vmax.f32 %v4928_v27, %v13211_v13 }
 0xd4d   : > { %v13288_v47 = vpop.f32.mrf.mxu0 }
 0xd4e   : > { %v4933_v37 = vmax.f32 %v4931_v57, %v13223_v61  ;;  %v4932_v58 = vmax.f32 %v4930_v53, %v13219_v29 }
 0xd4f   : > { %v13294_v39 = vpop.f32.mrf.mxu0 }
 0xd50   : > { %v4904_v0 = vmax.f32 %v4902_v10, %v13294_v39  ;;  %v4934_v46 = vmax.f32 %v4932_v58, %v13231_v55 }
 0xd52   : > { %v4905_v32 = vmax.f32 %v4903_v14, %v4904_v0  ;;  %v4935_v0 = vmax.f32 %v4933_v37, %v13239_v25  ;;  %v4936_v41 = vmax.f32 %v4934_v46, %v13247_v44 }
 0xd54   : > { %v4906_v42 = vrot.slane %v4905_v32, 4  ;;  %v4937_v22 = vmax.f32 %v4935_v0, %v13255_v19  ;;  %v4938_v27 = vmax.f32 %v4936_v41, %v13263_v16 }
 0xd56   : > { %v4907_v30 = vmax.f32 %v4905_v32, %v4906_v42  ;;  %v13314_v32 = vpop.f32.mrf.mxu0  ;;  %v4939_v42 = vmax.f32 %v4937_v22, %v13276_v21  ;;  %v4940_v57 = vmax.f32 %v4938_v27, %v13288_v47 }
 0xd58   : > { %v4908_v10 = vrot.slane %v4907_v30, 2 }
 0xd5a   : > { %v4909_v14 = vmax.f32 %v4907_v30, %v4908_v10  ;;  %v4941_v30 = vmax.f32 %v4939_v42, %v13314_v32 }
 0xd5c   : > { %v4910_v48 = vrot.slane %v4909_v14, 1  ;;  %v4942_v58 = vmax.f32 %v4940_v57, %v4941_v30 }
 0xd5e   : > { %v13318_v28 = vmax.f32 %v4909_v14, %v4910_v48  ;;  %v4943_v41 = vrot.slane %v4942_v58, 4 }
 0xd60   : > { %v4949_v10 = vsub.f32 %v13129_v54, %v13318_v28  ;;  %v4951_v53 = vsub.f32 %v13133_v56, %v13318_v28  ;;  %v4953_v37 = vsub.f32 %v13137_v11, %v13318_v28  ;;  %v4955_v14 = vsub.f32 %v13141_v34, %v13318_v28 }
 0xd61   : > { %v4957_v46 = vsub.f32 %v13145_v15, %v13318_v28  ;;  %v4959_v54 = vsub.f32 %v13149_v5, %v13318_v28  ;;  %v4961_v11 = vsub.f32 %v13153_v9, %v13318_v28  ;;  %v4944_v27 = vmax.f32 %v4942_v58, %v4943_v41  ;;  %v16592_v15 = vld [vmem:[#allocation69_spill] sm:$0xff] }
 0xd62   : > { %v5013_v0 = vmul.f32 1.442695, %v4949_v10  ;;  %v5017_v48 = vmul.f32 1.442695, %v4951_v53  ;;  %v5021_v22 = vmul.f32 1.442695, %v4953_v37  ;;  %v4963_v34 = vsub.f32 %v13157_v1, %v13318_v28 }
 0xd63   : > { %v5025_v56 = vmul.f32 1.442695, %v4955_v14  ;;  %v5029_v42 = vmul.f32 1.442695, %v4957_v46  ;;  %v5033_v30 = vmul.f32 1.442695, %v4959_v54  ;;  %v4965_v57 = vsub.f32 %v16592_v15, %v13318_v28 }
 0xd64   : > { %8998 = vpow2.f32 %v5013_v0  ;;  %v5037_v10 = vmul.f32 1.442695, %v4961_v11  ;;  %v4967_v5 = vsub.f32 %v13165_v7, %v13318_v28  ;;  %v4945_v53 = vrot.slane %v4944_v27, 2  ;;  %v16593_v37 = vld [vmem:[#allocation62_spill] sm:$0xff] }
 0xd65   : > { %9000 = vpow2.f32 %v5017_v48  ;;  %v4969_v9 = vsub.f32 %v16593_v37, %v13318_v28  ;;  %v5041_v14 = vmul.f32 1.442695, %v4963_v34  ;;  %v4971_v58 = vsub.f32 %v13173_v40, %v13318_v28  ;;  %v16594_v1 = vld [vmem:[#allocation66_spill] sm:$0xff] }
 0xd66   : > { %9002 = vpow2.f32 %v5021_v22  ;;  %v4973_v0 = vsub.f32 %v16594_v1, %v13318_v28  ;;  %v5045_v48 = vmul.f32 1.442695, %v4965_v57  ;;  %v4975_v46 = vsub.f32 %v13181_v59, %v13318_v28 }
 0xd67   : > { %9004 = vpow2.f32 %v5025_v56  ;;  %v5049_v22 = vmul.f32 1.442695, %v4967_v5  ;;  %v4946_v41 = vmax.f32 %v4944_v27, %v4945_v53  ;;  %v4977_v54 = vsub.f32 %v13185_v6, %v13318_v28 }
 0xd68   : > { %9006 = vpow2.f32 %v5029_v42  ;;  %v5053_v56 = vmul.f32 1.442695, %v4969_v9  ;;  %v4993_v40 = vsub.f32 %v13217_v45, %v13318_v28  ;;  %v5057_v42 = vmul.f32 1.442695, %v4971_v58 }
 0xd69   : > { %9008 = vpow2.f32 %v5033_v30  ;;  %v4995_v34 = vsub.f32 %v13221_v43, %v13318_v28  ;;  %v5061_v59 = vmul.f32 1.442695, %v4973_v0  ;;  %v4997_v6 = vsub.f32 %v13225_v3, %v13318_v28 }
 0xd6a   : > { %9010 = vpow2.f32 %v5037_v10  ;;  %v5065_v15 = vmul.f32 1.442695, %v4975_v46  ;;  %v4947_v57 = vrot.slane %v4946_v41, 1  ;;  %v4999_v45 = vsub.f32 %v13235_v23, %v13318_v28  ;;  %v16596_v23 = vld [vmem:[#allocation124_spill] sm:$0xff] }
 0xd6b   : > { %9012 = vpow2.f32 %v5041_v14  ;;  %v5069_v10 = vmul.f32 1.442695, %v4977_v54  ;;  %v5001_v53 = vsub.f32 %v13243_v38, %v13318_v28  ;;  %v5101_v37 = vmul.f32 1.442695, %v4993_v40  ;;  %v16597_v40 = vld [vmem:[#allocation16_spill] sm:$0xff] }
 0xd6c   : > { %9014 = vpow2.f32 %v5045_v48  ;;  %v5003_v3 = vsub.f32 %v13251_v2, %v13318_v28  ;;  %v5105_v9 = vmul.f32 1.442695, %v4995_v34  ;;  %v4979_v1 = vsub.f32 %v16596_v23, %v13318_v28 }
 0xd6d   : > { %9016 = vpow2.f32 %v5049_v22  ;;  %v5109_v0 = vmul.f32 1.442695, %v4997_v6  ;;  %v13381_v48 = vmax.f32 %v4946_v41, %v4947_v57  ;;  %v4981_v38 = vsub.f32 %v13193_v49, %v13318_v28 }
 0xd6e   : > { %9018 = vpow2.f32 %v5053_v56  ;;  %v5113_v46 = vmul.f32 1.442695, %v4999_v45  ;;  %v4983_v54 = vsub.f32 %v13197_v35, %v13318_v28  ;;  %v5117_v56 = vmul.f32 1.442695, %v5001_v53  ;;  %v16598_v45 = vld [vmem:[#allocation47_spill] sm:$0xff] }
 0xd6f   : > { %9020 = vpow2.f32 %v5057_v42  ;;  %v4985_v42 = vsub.f32 %v16597_v40, %v13318_v28  ;;  %v5121_v41 = vmul.f32 1.442695, %v5003_v3  ;;  %v5073_v49 = vmul.f32 1.442695, %v4979_v1 }
 0xd70   : > { %9022 = vpow2.f32 %v5061_v59  ;;  %v5077_v6 = vmul.f32 1.442695, %v4981_v38 }
 0xd71   : > { %v13351_v7 = vpop.eup %8998  ;;  %9024 = vpow2.f32 %v5065_v15  ;;  %v4952_v15 = vsub.f32 %v13135_v36, %v13381_v48  ;;  %v5085_v53 = vmul.f32 1.442695, %v4985_v42 }
 0xd72   : > { %v13355_v11 = vpop.eup %9000  ;;  %9026 = vpow2.f32 %v5069_v10  ;;  %v4987_v10 = vsub.f32 %v16598_v45, %v13318_v28 }
 0xd73   : > { %16595 = vst [vmem:[#allocation17_spill] sm:$0xff] %v13355_v11  ;;  %v5141_v27 = vadd.f32 %v13355_v11, %v13351_v7  ;;  %v13363_v30 = vpop.eup %9002  ;;  %9028 = vpow2.f32 %v5101_v37 }
 0xd74   : > { %v13370_v5 = vpop.eup %9004  ;;  %9030 = vpow2.f32 %v5105_v9  ;;  %v16599_v9 = vld [vmem:[#allocation71_spill] sm:$0xff] }
 0xd75   : > { %v5142_v43 = vadd.f32 %v13363_v30, %v5141_v27  ;;  %v13377_v58 = vpop.eup %9006  ;;  %9032 = vpow2.f32 %v5109_v0  ;;  %v4950_v27 = vsub.f32 %v13131_v4, %v13381_v48  ;;  %v4954_v4 = vsub.f32 %v13139_v31, %v13381_v48  ;;  %v16600_v0 = vld [vmem:[#allocation81_spill] sm:$0xff]  ;;  %v16601_v31 = vld [vmem:[#allocation40_spill] sm:$0xff] }
 0xd76   : > { %v13386_v22 = vpop.eup %9008  ;;  %9034 = vpow2.f32 %v5113_v46  ;;  %v4956_v38 = vsub.f32 %v16600_v0, %v13381_v48  ;;  %v5019_v46 = vmul.f32 1.442695, %v4952_v15 }
 0xd77   : > { %v5143_v14 = vadd.f32 %v13370_v5, %v5142_v43  ;;  %v13393_v59 = vpop.eup %9010  ;;  %v5081_v43 = vmul.f32 1.442695, %v4983_v54  ;;  %9036 = vpow2.f32 %v5117_v56  ;;  %v5015_v36 = vmul.f32 1.442695, %v4950_v27 }
 0xd78   : > { %v13400_v57 = vpop.eup %9012  ;;  %9038 = vpow2.f32 %v5121_v41  ;;  %v4991_v54 = vsub.f32 %v16601_v31, %v13318_v28  ;;  %v5089_v56 = vmul.f32 1.442695, %v4987_v10  ;;  %v4958_v41 = vsub.f32 %v13147_v63, %v13381_v48 }
 0xd79   : > { %v5144_v2 = vadd.f32 %v13377_v58, %v5143_v14  ;;  %v13407_v3 = vpop.eup %9014  ;;  %v4989_v14 = vsub.f32 %v16599_v9, %v13318_v28  ;;  %9040 = vpow2.f32 %v5073_v49  ;;  %v4962_v10 = vsub.f32 %v13155_v18, %v13381_v48 }
 0xd7a   : > { %v13411_v23 = vpop.eup %9016  ;;  %9042 = vpow2.f32 %v5077_v6  ;;  %v16602_v6 = vld [vmem:[#allocation104_spill] sm:$0xff]  ;;  %v5097_v63 = vmul.f32 1.442695, %v4991_v54  ;;  %v5031_v0 = vmul.f32 1.442695, %v4958_v41  ;;  %v4974_v18 = vsub.f32 %v13179_v20, %v13381_v48 }
 0xd7b   : > { %v5145_v34 = vadd.f32 %v13386_v22, %v5144_v2  ;;  %v13416_v2 = vpop.eup %9018  ;;  %9044 = vpow2.f32 %v5081_v43  ;;  %v5093_v27 = vmul.f32 1.442695, %v4989_v14  ;;  %v5027_v43 = vmul.f32 1.442695, %v4956_v38 }
 0xd7c   : > { %v13420_v40 = vpop.eup %9020  ;;  %9046 = vpow2.f32 %v5085_v53  ;;  %v4976_v38 = vsub.f32 %v13183_v24, %v13381_v48  ;;  %v4980_v20 = vsub.f32 %v13191_v33, %v13381_v48 }
 0xd7d   : > { %v5146_v35 = vadd.f32 %v13393_v59, %v5145_v34  ;;  %v5023_v34 = vmul.f32 1.442695, %v4954_v4  ;;  %v13425_v49 = vpop.eup %9022  ;;  %9048 = vpow2.f32 %v5015_v36  ;;  %v16604_v36 = vld [vmem:[#allocation80_spill] sm:$0xff] }
 0xd7e   : > { %v13429_v15 = vpop.eup %9024  ;;  %9050 = vpow2.f32 %v5019_v46 }
 0xd7f   : > { %v5147_v37 = vadd.f32 %v13400_v57, %v5146_v35  ;;  %v4960_v35 = vsub.f32 %v16602_v6, %v13381_v48  ;;  %v13434_v53 = vpop.eup %9026  ;;  %9052 = vpow2.f32 %v5089_v56 }
 0xd80   : > { %v13438_v9 = vpop.eup %9028  ;;  %9054 = vpow2.f32 %v5023_v34 }
 0xd81   : > { %v5148_v1 = vadd.f32 %v13407_v3, %v5147_v37  ;;  %v16603_v37 = vld [vmem:[#allocation29_spill] sm:$0xff]  ;;  %v13443_v31 = vpop.eup %9030  ;;  %9056 = vpow2.f32 %v5093_v27  ;;  %v5035_v46 = vmul.f32 1.442695, %v4960_v35  ;;  %v4978_v27 = vsub.f32 %v13187_v50, %v13381_v48 }
 0xd82   : > { %v4964_v4 = vsub.f32 %v16603_v37, %v13381_v48  ;;  %v13449_v54 = vpop.eup %9032  ;;  %9058 = vpow2.f32 %v5027_v43  ;;  %v5063_v50 = vmul.f32 1.442695, %v4974_v18 }
 0xd83   : > { %v5149_v42 = vadd.f32 %v13411_v23, %v5148_v1  ;;  %v4966_v1 = vsub.f32 %v16604_v36, %v13381_v48  ;;  %v13454_v41 = vpop.eup %9034  ;;  %9060 = vpow2.f32 %v5097_v63  ;;  %v16605_v63 = vld [vmem:[#allocation28_spill] sm:$0xff] }
 0xd84   : > { %v5043_v24 = vmul.f32 1.442695, %v4964_v4  ;;  %v13460_v6 = vpop.eup %9036  ;;  %9062 = vpow2.f32 %v5031_v0  ;;  %v4968_v37 = vsub.f32 %v16605_v63, %v13381_v48  ;;  %v5067_v4 = vmul.f32 1.442695, %v4976_v38 }
 0xd85   : > { %v5150_v45 = vadd.f32 %v13416_v2, %v5149_v42  ;;  %v5039_v42 = vmul.f32 1.442695, %v4962_v10  ;;  %v13465_v43 = vpop.eup %9038  ;;  %9064 = vpow2.f32 %v5035_v46  ;;  %v4970_v0 = vsub.f32 %v13171_v62, %v13381_v48 }
 0xd86   : > { %v4972_v46 = vsub.f32 %v13175_v52, %v13381_v48  ;;  %v5051_v10 = vmul.f32 1.442695, %v4968_v37  ;;  %v16611_v37 = vld [vmem:[#allocation120_spill] sm:$0xff] }
 0xd87   : > { %v5151_v14 = vadd.f32 %v13420_v40, %v5150_v45  ;;  %v5047_v45 = vmul.f32 1.442695, %v4966_v1  ;;  %9066 = vpow2.f32 %v5039_v42  ;;  %v5075_v42 = vmul.f32 1.442695, %v4980_v20 }
 0xd88   : > { %9068 = vpow2.f32 %v5043_v24  ;;  %v5059_v20 = vmul.f32 1.442695, %v4972_v46 }
 0xd89   : > { %v5152_v56 = vadd.f32 %v13425_v49, %v5151_v14  ;;  %v13469_v14 = vpop.eup %9040  ;;  %9070 = vpow2.f32 %v5047_v45 }
 0xd8a   : > { %v13474_v1 = vpop.eup %9042  ;;  %9072 = vpow2.f32 %v5063_v50 }
 0xd8b   : > { %v5153_v35 = vadd.f32 %v13429_v15, %v5152_v56  ;;  %16606 = vst [vmem:[#allocation74_spill] sm:$0xff] %v13474_v1  ;;  %v5071_v56 = vmul.f32 1.442695, %v4978_v27  ;;  %v13478_v34 = vpop.eup %9044  ;;  %9074 = vpow2.f32 %v5067_v4  ;;  %v16609_v27 = vld [vmem:[#allocation52_spill] sm:$0xff]  ;;  %v5007_v4 = vsub.f32 %v16611_v37, %v13318_v28 }
 0xd8c   : > { %16607 = vst [vmem:[#allocation23_spill] sm:$0xff] %v13478_v34  ;;  %v13483_v38 = vpop.eup %9046  ;;  %v5005_v24 = vsub.f32 %v16609_v27, %v13318_v28  ;;  %v5002_v27 = vsub.f32 %v13247_v44, %v13381_v48 }
 0xd8d   : > { %v5154_v33 = vadd.f32 %v13434_v53, %v5153_v35  ;;  %16608 = vst [vmem:[#allocation27_spill] sm:$0xff] %v13483_v38  ;;  %v13485_v35 = vpop.eup %9048  ;;  %9076 = vpow2.f32 %v5071_v56 }
 0xd8e   : > { %v13488_v62 = vpop.eup %9050  ;;  %9078 = vpow2.f32 %v5075_v42  ;;  %v5125_v42 = vmul.f32 1.442695, %v5005_v24  ;;  %v5011_v24 = vsub.f32 %v13294_v39, %v13318_v28 }
 0xd8f   : > { %v5155_v18 = vadd.f32 %v13469_v14, %v5154_v33  ;;  %v5055_v33 = vmul.f32 1.442695, %v4970_v0  ;;  %v13492_v36 = vpop.eup %9052  ;;  %v5178_v45 = vadd.f32 %v13488_v62, %v13485_v35  ;;  %v5009_v0 = vsub.f32 %v13282_v26, %v13318_v28 }
 0xd90   : > { %16610 = vst [vmem:[#allocation76_spill] sm:$0xff] %v13492_v36  ;;  %v13497_v50 = vpop.eup %9054  ;;  %9080 = vpow2.f32 %v5051_v10  ;;  %v4984_v28 = vsub.f32 %v13199_v60, %v13381_v48 }
 0xd91   : > { %v5156_v63 = vadd.f32 %v13474_v1, %v5155_v18  ;;  %v13501_v18 = vpop.eup %9056  ;;  %9082 = vpow2.f32 %v5055_v33  ;;  %v5004_v1 = vsub.f32 %v13255_v19, %v13381_v48  ;;  %v5133_v44 = vmul.f32 1.442695, %v5009_v0 }
 0xd92   : > { %v13507_v46 = vpop.eup %9058  ;;  %9084 = vpow2.f32 %v5059_v20  ;;  %v4982_v19 = vsub.f32 %v13195_v12, %v13381_v48  ;;  %v5119_v20 = vmul.f32 1.442695, %v5002_v27 }
 0xd93   : > { %v5157_v52 = vadd.f32 %v13478_v34, %v5156_v63  ;;  %v5179_v63 = vadd.f32 %v13497_v50, %v5178_v45  ;;  %v13511_v34 = vpop.eup %9060  ;;  %9086 = vpow2.f32 %v5125_v42  ;;  %v4986_v42 = vsub.f32 %v13203_v8, %v13381_v48 }
 0xd94   : > { %16612 = vst [vmem:[#allocation46_spill] sm:$0xff] %v13511_v34  ;;  %v13517_v10 = vpop.eup %9062 }
 0xd95   : > { %v5158_v56 = vadd.f32 %v13483_v38, %v5157_v52  ;;  %v5180_v26 = vadd.f32 %v13507_v46, %v5179_v63  ;;  %v5129_v52 = vmul.f32 1.442695, %v5007_v4  ;;  %v13519_v45 = vpop.eup %9064 }
 0xd97   : > { %v5159_v37 = vadd.f32 %v13492_v36, %v5158_v56  ;;  %v5181_v38 = vadd.f32 %v13517_v10, %v5180_v26  ;;  %v13525_v56 = vpop.eup %9066  ;;  %v5123_v36 = vmul.f32 1.442695, %v5004_v1  ;;  %9088 = vpow2.f32 %v5129_v52 }
 0xd98   : > { %v13529_v63 = vpop.eup %9068  ;;  %9090 = vpow2.f32 %v5133_v44  ;;  %v5079_v52 = vmul.f32 1.442695, %v4982_v19  ;;  %v5083_v44 = vmul.f32 1.442695, %v4984_v28  ;;  %v5087_v19 = vmul.f32 1.442695, %v4986_v42 }
 0xd99   : > { %v5160_v33 = vadd.f32 %v13501_v18, %v5159_v37  ;;  %v5182_v11 = vadd.f32 %v13519_v45, %v5181_v38  ;;  %v13533_v39 = vpop.eup %9070  ;;  %v5137_v37 = vmul.f32 1.442695, %v5011_v24  ;;  %9092 = vpow2.f32 %v5119_v20 }
 0xd9a   : > { %v9073_v0 = vpop.eup %9072  ;;  %9094 = vpow2.f32 %v5123_v36  ;;  %v4988_v24 = vsub.f32 %v13207_v17, %v13381_v48  ;;  %v4990_v36 = vsub.f32 %v13211_v13, %v13381_v48 }
 0xd9b   : > { %v5161_v4 = vadd.f32 %v13511_v34, %v5160_v33  ;;  %v5183_v27 = vadd.f32 %v13525_v56, %v5182_v11  ;;  %v9075_v26 = vpop.eup %9074  ;;  %9096 = vpow2.f32 %v5137_v37  ;;  %v4994_v34 = vsub.f32 %v13219_v29, %v13381_v48 }
 0xd9c   : > { %v13541_v1 = vpop.eup %9076  ;;  %9098 = vpow2.f32 %v5079_v52  ;;  %v5230_v37 = vpack.c.bf16 %v9075_v26, %v9073_v0  ;;  %v5091_v42 = vmul.f32 1.442695, %v4988_v24  ;;  %v5012_v52 = vsub.f32 %v13314_v32, %v13381_v48 }
 0xd9d   : > { %v5162_v12 = vadd.f32 %v13438_v9, %v5161_v4  ;;  %v5184_v60 = vadd.f32 %v13529_v63, %v5183_v27  ;;  %v13545_v33 = vpop.eup %9078  ;;  %9100 = vpow2.f32 %v5083_v44  ;;  %v4996_v24 = vsub.f32 %v13223_v61, %v13381_v48 }
 0xd9e   : > { %v5232_v20 = vpack.c.bf16 %v13545_v33, %v13541_v1  ;;  %v9081_v4 = vpop.eup %9080  ;;  %9102 = vpow2.f32 %v5087_v19  ;;  %v5006_v32 = vsub.f32 %v13263_v16, %v13381_v48  ;;  %v5008_v61 = vsub.f32 %v13276_v21, %v13381_v48 }
 0xd9f   : > { %v5163_v38 = vadd.f32 %v13443_v31, %v5162_v12  ;;  %v5185_v8 = vadd.f32 %v13533_v39, %v5184_v60  ;;  %v5231_v12 = vpack.c.bf16 %v13469_v14, %v13434_v53  ;;  %v9083_v27 = vpop.eup %9082  ;;  %v4992_v60 = vsub.f32 %v13215_v51, %v13381_v48 }
 0xda0   : > { %5249 = vmatprep.subr.bf16.mxu1 %v5232_v20  ;;  %v5010_v14 = vsub.f32 %v13288_v47, %v13381_v48  ;;  %v5229_v51 = vpack.c.bf16 %v13429_v15, %v13425_v49  ;;  %v4998_v47 = vsub.f32 %v13231_v55, %v13381_v48  ;;  %9104 = vpow2.f32 %v5091_v42 }
 0xda1   : > { %v5164_v11 = vadd.f32 %v13449_v54, %v5163_v38  ;;  %v5186_v28 = vadd.f32 %v9081_v4, %v5185_v8  ;;  %v9085_v38 = vpop.eup %9084  ;;  %5250 = vmatpush1.bf16.msra.mxu1 %v5231_v12  ;;  %v5099_v44 = vmul.f32 1.442695, %v4992_v60  ;;  %v5103_v15 = vmul.f32 1.442695, %v4994_v34 }
 0xda2   : > { %5251 = vmatprep.subr.bf16.mxu1 %v5230_v37  ;;  %v5228_v20 = vpack.c.bf16 %v9085_v38, %v9083_v27  ;;  %v13570_v12 = vpop.eup %9086  ;;  %v5139_v55 = vmul.f32 1.442695, %v5012_v52  ;;  %v5227_v16 = vpack.c.bf16 %v13420_v40, %v13416_v2  ;;  %v5226_v34 = vpack.c.bf16 %v9081_v4, %v13533_v39 }
 0xda3   : > { %v5165_v17 = vadd.f32 %v13454_v41, %v5164_v11  ;;  %v5187_v53 = vadd.f32 %v9083_v27, %v5186_v28  ;;  %v5095_v11 = vmul.f32 1.442695, %v4990_v36  ;;  %v5000_v60 = vsub.f32 %v13239_v25, %v13381_v48 }
 0xda4   : > { %v13578_v36 = vpop.eup %9088  ;;  %v5107_v21 = vmul.f32 1.442695, %v4996_v24  ;;  %v5127_v39 = vmul.f32 1.442695, %v5006_v32  ;;  %v5131_v4 = vmul.f32 1.442695, %v5008_v61  ;;  %v5225_v25 = vpack.c.bf16 %v13411_v23, %v13407_v3 }
 0xda5   : > { %v5166_v13 = vadd.f32 %v13460_v6, %v5165_v17  ;;  %v5188_v29 = vadd.f32 %v9085_v38, %v5187_v53  ;;  %5252 = vmatpush1.bf16.msra.mxu1 %v5229_v51  ;;  %v13581_v27 = vpop.eup %9090  ;;  %v5135_v17 = vmul.f32 1.442695, %v5010_v14  ;;  %9106 = vpow2.f32 %v5095_v11 }
 0xda6   : > { %5253 = vmatprep.subr.bf16.mxu1 %v5228_v20  ;;  %v13587_v28 = vpop.eup %9092  ;;  %9108 = vpow2.f32 %v5099_v44  ;;  %v5224_v14 = vpack.c.bf16 %v13529_v63, %v13525_v56  ;;  %v5115_v52 = vmul.f32 1.442695, %v5000_v60  ;;  %v5223_v3 = vpack.c.bf16 %v13400_v57, %v13393_v59 }
 0xda7   : > { %v5167_v8 = vadd.f32 %v13465_v43, %v5166_v13  ;;  %v5189_v19 = vadd.f32 %v9073_v0, %v5188_v29  ;;  %v13591_v0 = vpop.eup %9094  ;;  %v5111_v13 = vmul.f32 1.442695, %v4998_v47  ;;  %9110 = vpow2.f32 %v5103_v15 }
 0xda8   : > { %v5244_v40 = vpack.c.bf16 %v13591_v0, %v13587_v28  ;;  %9112 = vpow2.f32 %v5135_v17  ;;  %v5222_v56 = vpack.c.bf16 %v13519_v45, %v13517_v10  ;;  %v5221_v29 = vpack.c.bf16 %v13386_v22, %v13377_v58 }
 0xda9   : > { %v5168_v49 = vadd.f32 %v13570_v12, %v5167_v8  ;;  %v5190_v38 = vadd.f32 %v9075_v26, %v5189_v19  ;;  %5254 = vmatpush1.bf16.msra.mxu1 %v5227_v16  ;;  %v9097_v26 = vpop.eup %9096  ;;  %9114 = vpow2.f32 %v5139_v55  ;;  %v5220_v24 = vpack.c.bf16 %v13507_v46, %v13497_v50  ;;  %v16613_v46 = vld [vmem:[#allocation17_spill] sm:$0xff] }
 0xdaa   : > { %5255 = vmatprep.subr.bf16.mxu1 %v5226_v34  ;;  %9116 = vpow2.f32 %v5107_v21  ;;  %v5219_v10 = vpack.c.bf16 %v13370_v5, %v13363_v30  ;;  %v5217_v19 = vpack.c.bf16 %v16613_v46, %v13351_v7  ;;  %v5245_v34 = vpack.c.bf16 %v13578_v36, %v13570_v12  ;;  %v16646_v46 = vld [vmem:[#allocation117_spill] sm:$0xff] }
 0xdab   : > { %v5169_v37 = vadd.f32 %v13578_v36, %v5168_v49  ;;  %v5191_v2 = vadd.f32 %v13541_v1, %v5190_v38  ;;  %v13606_v1 = vpop.eup %9098  ;;  %9118 = vpow2.f32 %v5111_v13  ;;  %v5218_v49 = vpack.c.bf16 %v13488_v62, %v13485_v35 }
 0xdac   : > { %v13609_v51 = vpop.eup %9100  ;;  %9120 = vpow2.f32 %v5127_v39  ;;  %v16616_v12 = vpack.c.bf16 %v13454_v41, %v13449_v54  ;;  %v16620_v39 = vld [vmem:[#allocation76_spill] sm:$0xff] }
 0xdad   : > { %v5170_v42 = vadd.f32 %v13581_v27, %v5169_v37  ;;  %v5192_v53 = vadd.f32 %v13545_v33, %v5191_v2  ;;  %5256 = vmatpush1.bf16.msra.mxu1 %v5225_v25  ;;  %9122 = vpow2.f32 %v5131_v4  ;;  %v9103_v63 = vpop.eup %9102  ;;  %v5247_v37 = vpack.c.bf16 %v9097_v26, %v13581_v27  ;;  %v16621_v25 = vld [vmem:[#allocation100_spill] sm:$0xff] }
 0xdae   : > { %5257 = vmatprep.subr.bf16.mxu1 %v5224_v14  ;;  %9124 = vpow2.f32 %v5115_v52  ;;  %v9105_v8 = vpop.eup %9104  ;;  %v16614_v27 = vpack.c.bf16 %v13465_v43, %v13460_v6  ;;  %v5234_v41 = vpack.c.bf16 %v13609_v51, %v13606_v1  ;;  %v16623_v14 = vld [vmem:[#allocation97_spill] sm:$0xff]  ;;  %v16625_v52 = vld [vmem:[#allocation30_spill] sm:$0xff] }
 0xdaf   : > { %v13601_v48 = vadd.f32 %v9097_v26, %v5170_v42  ;;  %v5193_v11 = vadd.f32 %v13606_v1, %v5192_v53  ;;  %v5236_v43 = vpack.c.bf16 %v9105_v8, %v9103_v63  ;;  %v16622_v53 = vld [vmem:[#allocation31_spill] sm:$0xff]  ;;  %v16629_v1 = vld [vmem:[#allocation65_spill] sm:$0xff] }
 0xdb0   : > { %v996_v54 = vadd.f32 %v16622_v53, %v16621_v25  ;;  %v16676_v53 = vld [vmem:[#allocation54_spill] sm:$0xff] }
 0xdb1   : > { %v5194_v23 = vadd.f32 %v13609_v51, %v5193_v11  ;;  %5258 = vmatpush1.bf16.msra.mxu1 %v5223_v3  ;;  %v16626_v11 = vld [vmem:[#allocation74_spill] sm:$0xff]  ;;  %v16627_v3 = vld [vmem:[#allocation23_spill] sm:$0xff] }
 0xdb2   : > { %5259 = vmatprep.subr.bf16.mxu1 %v5222_v56  ;;  %v9107_v59 = vpop.eup %9106  ;;  %v5299_v56 = vmul.f32 0.5, %v996_v54  ;;  %v16630_v51 = vld [vmem:[#allocation55_spill] sm:$0xff] }
 0xdb3   : > { %v5195_v33 = vadd.f32 %v9103_v63, %v5194_v23  ;;  %v9109_v57 = vpop.eup %9108  ;;  %v5233_v23 = vpack.c.bf16 %v16627_v3, %v16626_v11 }
 0xdb4   : > { %v9111_v32 = vpop.eup %9110  ;;  %v5238_v36 = vpack.c.bf16 %v9109_v57, %v9107_v59 }
 0xdb5   : > { %v5196_v20 = vadd.f32 %v9105_v8, %v5195_v33  ;;  %5260 = vmatpush1.bf16.msra.mxu1 %v5221_v29  ;;  %v9113_v45 = vpop.eup %9112  ;;  %v16628_v8 = vmov 0.0   ;;  %v16631_v29 = vld [vmem:[#allocation20_spill] sm:$0xff] }
 0xdb6   : > { %5261 = vmatprep.subr.bf16.mxu1 %v5220_v24  ;;  %v9115_v15 = vpop.eup %9114  ;;  %v16633_v24 = vld [vmem:[#allocation56_spill] sm:$0xff] }
 0xdb7   : > { %v5197_v47 = vadd.f32 %v9107_v59, %v5196_v20  ;;  %v9117_v58 = vpop.eup %9116  ;;  %v5248_v55 = vpack.c.bf16 %v9115_v15, %v9113_v45  ;;  %v16632_v20 = vld [vmem:[#allocation85_spill] sm:$0xff]  ;;  %v13675_v59 = vpop.trf.xlu1 }
 0xdb8   : > { %v9119_v50 = vpop.eup %9118  ;;  %v5240_v26 = vpack.c.bf16 %v9117_v58, %v9111_v32  ;;  %16634 = vst [vmem:[#allocation82_spill] sm:$0xff] %v13675_v59 }
 0xdb9   : > { %v5198_v44 = vadd.f32 %v9109_v57, %v5197_v47  ;;  %5262 = vmatpush1.bf16.msra.mxu1 %v5219_v10  ;;  %v9121_v61 = vpop.eup %9120  ;;  %v16635_v57 = vld [vmem:[#allocation59_spill] sm:$0xff]  ;;  %v16636_v47 = vld [vmem:[#allocation110_spill] sm:$0xff] }
 0xdba   : > { %5263 = vmatprep.subr.bf16.mxu1 %v5218_v49  ;;  %v9123_v16 = vpop.eup %9122  ;;  %v16638_v10 = vld [vmem:[#allocation111_spill] sm:$0xff]  ;;  %v16641_v49 = vld [vmem:[#allocation113_spill] sm:$0xff] }
 0xdbb   : > { %v5199_v22 = vadd.f32 %v9111_v32, %v5198_v44  ;;  %v9125_v5 = vpop.eup %9124  ;;  %v5246_v62 = vpack.c.bf16 %v9123_v16, %v9121_v61  ;;  %v13683_v32 = vpop.trf.xlu1  ;;  %v16640_v44 = vld [vmem:[#allocation112_spill] sm:$0xff] }
 0xdbc   : > { %v5242_v13 = vpack.c.bf16 %v9125_v5, %v9119_v50  ;;  %16637 = vst [vmem:[#allocation94_spill] sm:$0xff] %v13683_v32 }
 0xdbd   : > { %v5200_v17 = vadd.f32 %v9117_v58, %v5199_v22  ;;  %5264 = vmatpush1.bf16.msra.mxu1 %v5217_v19  ;;  %v16643_v58 = vld [vmem:[#allocation114_spill] sm:$0xff] }
 0xdbe   : > { %5265 = vmatprep.subr.bf16.mxu1 %v5248_v55  ;;  %v16650_v55 = vld [vmem:[#allocation121_spill] sm:$0xff] }
 0xdbf   : > { %v5201_v30 = vadd.f32 %v9119_v50, %v5200_v17  ;;  %v16645_v50 = vld [vmem:[#allocation115_spill] sm:$0xff] }
 0xdc1   : > { %v5202_v35 = vadd.f32 %v9125_v5, %v5201_v30  ;;  %5266 = vmatpush2.bf16.msra.mxu1 %v5247_v37  ;;  %v16653_v5 = vld [vmem:[#allocation102_spill] sm:$0xff] }
 0xdc2   : > { %5267 = vmatprep.subr.bf16.mxu1 %v5246_v62  ;;  %v16656_v62 = vld [vmem:[#allocation105_spill] sm:$0xff] }
 0xdc3   : > { %v5203_v38 = vadd.f32 %v13587_v28, %v5202_v35  ;;  %v16617_v28 = vpack.c.bf16 %v13443_v31, %v13438_v9  ;;  %v16624_v9 = vld [vmem:[#allocation87_spill] sm:$0xff] }
 0xdc4   : > { %v1070_v31 = vadd.f32 %v16624_v9, %v16623_v14  ;;  %v16655_v35 = vld [vmem:[#allocation103_spill] sm:$0xff]  ;;  %v16678_v9 = vld [vmem:[#allocation60_spill] sm:$0xff] }
 0xdc5   : > { %v5204_v7 = vadd.f32 %v13591_v0, %v5203_v38  ;;  %5268 = vmatpush2.bf16.msra.mxu1 %v5245_v34  ;;  %v16618_v0 = vld [vmem:[#allocation46_spill] sm:$0xff] }
 0xdc6   : > { %5269 = vmatprep.subr.bf16.mxu1 %v5244_v40  ;;  %v5237_v6 = vpack.c.bf16 %v16618_v0, %v13501_v18  ;;  %v16619_v40 = vld [vmem:[#allocation27_spill] sm:$0xff]  ;;  %v994_v18 = vadd.f32 %v16625_v52, %v16621_v25  ;;  %v5215_v63 = vpack.c.bf16 %v1070_v31, %v1070_v31  ;;  %v16658_v34 = vld [vmem:[#allocation106_spill] sm:$0xff]  ;;  %v16675_v25 = vld [vmem:[#allocation53_spill] sm:$0xff]  ;;  %v5172_v31 = vrot.slane %v13601_v48, 4 }
 0xdc7   : > { %v5205_v60 = vadd.f32 %v9121_v61, %v5204_v7  ;;  %v5235_v4 = vpack.c.bf16 %v16620_v39, %v16619_v40  ;;  %v16648_v61 = vld [vmem:[#allocation119_spill] sm:$0xff]  ;;  %v16673_v39 = vld [vmem:[#allocation90_spill] sm:$0xff] }
 0xdc8   : > { %v5298_v33 = vmul.f32 0.5, %v994_v18  ;;  %v5173_v52 = vadd.f32 %v5172_v31, %v13601_v48 }
 0xdc9   : > { %v5206_v21 = vadd.f32 %v9123_v16, %v5205_v60  ;;  %5270 = vmatpush2.bf16.msra.mxu1 %v16614_v27  ;;  %v16651_v16 = vld [vmem:[#allocation123_spill] sm:$0xff]  ;;  %v16663_v27 = vld [vmem:[#allocation22_spill] sm:$0xff] }
 0xdca   : > { %5271 = vmatprep.subr.bf16.mxu1 %v5242_v13  ;;  %v16660_v60 = vld [vmem:[#allocation43_spill] sm:$0xff]  ;;  %v5174_v18 = vrot.slane %v5173_v52, 2 }
 0xdcb   : > { %v5207_v42 = vadd.f32 %v9113_v45, %v5206_v21  ;;  %v13688_v45 = vpop.trf.xlu1  ;;  %v16661_v21 = vld [vmem:[#allocation21_spill] sm:$0xff] }
 0xdcc   : > { %16639 = vst [vmem:[#allocation63_spill] sm:$0xff] %v13688_v45  ;;  %v5175_v11 = vadd.f32 %v5174_v18, %v5173_v52 }
 0xdcd   : > { %v13637_v2 = vadd.f32 %v9115_v15, %v5207_v42  ;;  %5272 = vmatpush2.bf16.msra.mxu1 %v16616_v12  ;;  %v16666_v12 = vld [vmem:[#allocation44_spill] sm:$0xff] }
 0xdce   : > { %5273 = vmatprep.subr.bf16.mxu1 %v5240_v26  ;;  %v16665_v26 = vld [vmem:[#allocation95_spill] sm:$0xff]  ;;  %v5176_v3 = vrot.slane %v5175_v11, 1 }
 0xdcf   : > { %16615 = vst [vmem:[#allocation67_spill] sm:$0xff] %v13637_v2  ;;  %v13696_v15 = vpop.trf.xlu1 }
 0xdd0   : > { %16642 = vst [vmem:[#allocation70_spill] sm:$0xff] %v13696_v15 }
 0xdd1   : > { %5274 = vmatpush2.bf16.msra.mxu1 %v16617_v28  ;;  %v16668_v28 = vld [vmem:[#allocation25_spill] sm:$0xff] }
 0xdd2   : > { %5275 = vmatprep.subr.bf16.mxu1 %v5238_v36 }
 0xdd3   : > { %v13701_v22 = vpop.trf.xlu1 }
 0xdd4   : > { %16644 = vst [vmem:[#allocation77_spill] sm:$0xff] %v13701_v22 }
 0xdd5   : > { %5276 = vmatpush2.bf16.msra.mxu1 %v5237_v6  ;;  %v16670_v6 = vld [vmem:[#allocation18_spill] sm:$0xff] }
 0xdd6   : > { %5277 = vmatprep.subr.bf16.mxu1 %v5236_v43  ;;  %v16671_v43 = vld [vmem:[#allocation84_spill] sm:$0xff] }
 0xdd7   : > { %v13709_v19 = vpop.trf.xlu1 }
 0xdd8   : > { %16647 = vst [vmem:[#allocation86_spill] sm:$0xff] %v13709_v19 }
 0xdd9   : > { %5278 = vmatpush2.bf16.msra.mxu1 %v5235_v4 }
 0xdda   : > { %5279 = vmatprep.subr.bf16.mxu1 %v5234_v41  ;;  %v16677_v41 = vld [vmem:[#allocation58_spill] sm:$0xff] }
 0xddb   : > { %v13714_v17 = vpop.trf.xlu1 }
 0xddc   : > { %16649 = vst [vmem:[#allocation109_spill] sm:$0xff] %v13714_v17 }
 0xddd   : > { %5280 = vmatpush2.bf16.msra.mxu1 %v5233_v23  ;;  %v5177_v23 = vadd.f32 %v5176_v3, %v5175_v11 }
 0xdde   : > { %5490 = vmatprep.subr.mxu1 %v5299_v56 }
 0xddf   : > { %v13722_v30 = vpop.trf.xlu1  ;;  %9126 = vrcp.f32 %v5177_v23 }
 0xde0   : > { %5282 = vmatmul.mubr.bf16.vlgmr.msra.gmra.mxu1 %v5215_v63  ;;  %16652 = vst [vmem:[#allocation12_spill] sm:$0xff] %v13722_v30 }
 0xde1   : > { %5491 = vmatpush1.msra.mxu1 %v5298_v33  ;;  %5524 = vmatprep.mubr.f32.mxu1 %v16628_v8 }
 0xde3   : > { %v13727_v37 = vpop.trf.xlu1 }
 0xde4   : > { %16654 = vst [vmem:[#allocation13_spill] sm:$0xff] %v13727_v37 }
 0xde7   : > { %v13735_v38 = vpop.trf.xlu1 }
 0xde8   : > { %8247 = vmatmul.mubr.msk.f32.vlgmr.msra.gmra.mxu1 %vm449_vm3, %v16629_v1  ;;  %16657 = vst [vmem:[#allocation79_spill] sm:$0xff] %v13735_v38 }
 0xde9   : > { %5530 = vmatprep.mubr.f32.mxu1 %v16628_v8 }
 0xdeb   : > { %v13740_v7 = vpop.trf.xlu1 }
 0xdec   : > { %8248 = vmatmul.mubr.msk.f32.gmra.mxu1 %vm449_vm3, %v16630_v51  ;;  %16659 = vst [vmem:[#allocation75_spill] sm:$0xff] %v13740_v7  ;;  %v9127_v56 = vpop.eup %9126 }
 0xded   : > { %5536 = vmatprep.mubr.f32.mxu1 %v16628_v8 }
 0xdef   : > { %v13748_v13 = vpop.trf.xlu1 }
 0xdf0   : > { %8249 = vmatmul.mubr.msk.f32.gmra.mxu1 %vm449_vm3, %v16631_v29  ;;  %16662 = vst [vmem:[#allocation99_spill] sm:$0xff] %v13748_v13 }
 0xdf1   : > { %5542 = vmatprep.mubr.f32.mxu1 %v16628_v8 }
 0xdf3   : > { %v13753_v42 = vpop.trf.xlu1 }
 0xdf4   : > { %8250 = vmatmul.mubr.msk.f32.gmra.mxu1 %vm449_vm3, %v16632_v20  ;;  %16664 = vst [vmem:[#allocation93_spill] sm:$0xff] %v13753_v42 }
 0xdf5   : > { %5548 = vmatprep.mubr.f32.mxu1 %v16628_v8 }
 0xdf7   : > { %v13761_v36 = vpop.trf.xlu1 }
 0xdf8   : > { %8251 = vmatmul.mubr.msk.f32.gmra.mxu1 %vm449_vm3, %v16633_v24  ;;  %16667 = vst [vmem:[#allocation37_spill] sm:$0xff] %v13761_v36 }
 0xdf9   : > { %5554 = vmatprep.mubr.f32.mxu1 %v16628_v8 }
 0xdfb   : > { %v13766_v0 = vpop.trf.xlu1 }
 0xdfc   : > { %8252 = vmatmul.mubr.msk.f32.gmra.mxu1 %vm449_vm3, %v16635_v57  ;;  %16669 = vst [vmem:[#allocation88_spill] sm:$0xff] %v13766_v0 }
 0xdfd   : > { %5560 = vmatprep.mubr.f32.mxu1 %v16628_v8 }
 0xdff   : > { %v13774_v40 = vpop.trf.xlu1 }
 0xe00   : > { %8253 = vmatmul.mubr.msk.f32.gmra.mxu1 %vm449_vm3, %v16636_v47  ;;  %16672 = vst [vmem:[#allocation24_spill] sm:$0xff] %v13774_v40 }
 0xe01   : > { %5566 = vmatprep.mubr.f32.mxu1 %v16628_v8 }
 0xe03   : > { %v13779_v4 = vpop.permute.xlu1 %831 }
 0xe04   : > { %8254 = vmatmul.mubr.msk.f32.gmra.mxu1 %vm449_vm3, %v16638_v10  ;;  %16674 = vst [vmem:[#allocation48_spill] sm:$0xff] %v13779_v4  ;;  %v1082_v54 = vadd.f32 %v16676_v53, %v13779_v4 }
 0xe05   : > { %5572 = vmatprep.mubr.f32.mxu1 %v16628_v8 }
 0xe06   : > { %v6900_v14 = vpack.c.bf16 %v1082_v54, %v1082_v54 }
 0xe08   : > { %8255 = vmatmul.mubr.msk.f32.gmra.mxu1 %vm449_vm3, %v16640_v44 }
 0xe09   : > { %5578 = vmatprep.mubr.f32.mxu1 %v16628_v8 }
 0xe0c   : > { %8256 = vmatmul.mubr.msk.f32.gmra.mxu1 %vm449_vm3, %v16641_v49 }
 0xe0d   : > { %5584 = vmatprep.mubr.f32.mxu1 %v16628_v8 }
 0xe10   : > { %8257 = vmatmul.mubr.msk.f32.gmra.mxu1 %vm449_vm3, %v16643_v58 }
 0xe11   : > { %5590 = vmatprep.mubr.f32.mxu1 %v16628_v8 }
 0xe14   : > { %8258 = vmatmul.mubr.msk.f32.gmra.mxu1 %vm449_vm3, %v16645_v50 }
 0xe15   : > { %5596 = vmatprep.mubr.f32.mxu1 %v16628_v8 }
 0xe18   : > { %8259 = vmatmul.mubr.msk.f32.gmra.mxu1 %vm449_vm3, %v16646_v46 }
 0xe19   : > { %5602 = vmatprep.mubr.f32.mxu1 %v16628_v8 }
 0xe1c   : > { %8260 = vmatmul.mubr.msk.f32.gmra.mxu1 %vm449_vm3, %v16648_v61 }
 0xe1d   : > { %5608 = vmatprep.mubr.f32.mxu1 %v16628_v8 }
 0xe20   : > { %8261 = vmatmul.mubr.msk.f32.gmra.mxu1 %vm449_vm3, %v16650_v55 }
 0xe21   : > { %5614 = vmatprep.mubr.f32.mxu1 %v16628_v8 }
 0xe24   : > { %8262 = vmatmul.mubr.msk.f32.gmra.mxu1 %vm449_vm3, %v16651_v16 }
 0xe25   : > { %5620 = vmatprep.mubr.f32.mxu1 %v16628_v8 }
 0xe28   : > { %8263 = vmatmul.mubr.msk.f32.gmra.mxu1 %vm449_vm3, %v16653_v5 }
 0xe29   : > { %5626 = vmatprep.mubr.f32.mxu1 %v16628_v8 }
 0xe2c   : > { %8264 = vmatmul.mubr.msk.f32.gmra.mxu1 %vm449_vm3, %v16655_v35 }
 0xe2d   : > { %5632 = vmatprep.mubr.f32.mxu1 %v16628_v8 }
 0xe30   : > { %8265 = vmatmul.mubr.msk.f32.gmra.mxu1 %vm449_vm3, %v16656_v62 }
 0xe31   : > { %5638 = vmatprep.mubr.f32.mxu1 %v16628_v8 }
 0xe34   : > { %8266 = vmatmul.mubr.msk.f32.gmra.mxu1 %vm449_vm3, %v16658_v34 }
 0xe35   : > { %5644 = vmatprep.mubr.f32.mxu1 %v16628_v8 }
 0xe38   : > { %8267 = vmatmul.mubr.msk.f32.gmra.mxu1 %vm449_vm3, %v16660_v60 }
 0xe39   : > { %5650 = vmatprep.mubr.f32.mxu1 %v16628_v8 }
 0xe3c   : > { %8268 = vmatmul.mubr.msk.f32.gmra.mxu1 %vm449_vm3, %v16661_v21 }
 0xe3d   : > { %5656 = vmatprep.mubr.f32.mxu1 %v16628_v8 }
 0xe40   : > { %8269 = vmatmul.mubr.msk.f32.gmra.mxu1 %vm449_vm3, %v16663_v27 }
 0xe41   : > { %5662 = vmatprep.mubr.f32.mxu1 %v16628_v8 }
 0xe44   : > { %8270 = vmatmul.mubr.msk.f32.gmra.mxu1 %vm449_vm3, %v16665_v26 }
 0xe45   : > { %5668 = vmatprep.mubr.f32.mxu1 %v16628_v8 }
 0xe48   : > { %8271 = vmatmul.mubr.msk.f32.gmra.mxu1 %vm449_vm3, %v16666_v12 }
 0xe49   : > { %5674 = vmatprep.mubr.f32.mxu1 %v16628_v8 }
 0xe4c   : > { %8272 = vmatmul.mubr.msk.f32.gmra.mxu1 %vm449_vm3, %v16668_v28 }
 0xe4d   : > { %5680 = vmatprep.mubr.f32.mxu1 %v16628_v8 }
 0xe50   : > { %8273 = vmatmul.mubr.msk.f32.gmra.mxu1 %vm449_vm3, %v16670_v6 }
 0xe51   : > { %5686 = vmatprep.mubr.f32.mxu1 %v16628_v8 }
 0xe54   : > { %8274 = vmatmul.mubr.msk.f32.gmra.mxu1 %vm449_vm3, %v16671_v43 }
 0xe55   : > { %5692 = vmatprep.mubr.f32.mxu1 %v16628_v8 }
 0xe58   : > { %8275 = vmatmul.mubr.msk.f32.gmra.mxu1 %vm449_vm3, %v16673_v39 }
 0xe59   : > { %5698 = vmatprep.mubr.f32.mxu1 %v16628_v8 }
 0xe5c   : > { %8276 = vmatmul.mubr.msk.f32.gmra.mxu1 %vm449_vm3, %v16675_v25 }
 0xe5d   : > { %5704 = vmatprep.mubr.f32.mxu1 %v16628_v8 }
 0xe60   : > { %8277 = vmatmul.mubr.msk.f32.gmra.mxu1 %vm449_vm3, %v16677_v41 }
 0xe61   : > { %5710 = vmatprep.mubr.f32.mxu1 %v16628_v8 }
 0xe64   : > { %8278 = vmatmul.mubr.msk.f32.gmra.mxu1 %vm449_vm3, %v16678_v9 }
 0xe65   : > { %6965 = vmatprep.mubr.bf16.mxu1 %v6900_v14 }
 0xea0   : > { %v5283_v63 = vpop.f32.mrf.mxu1 }
 0xea1   : > { %v13793_v33 = vmul.f32 %v9127_v56, %v5283_v63 }
 0xea2   : > { %v13795_v1 = vpop.f32.mrf.mxu1 }
 0xea3   : > { %16679 = vst [vmem:[#allocation92_spill] sm:$0xff] %v13793_v33  ;;  %16680 = vst [vmem:[#allocation36_spill] sm:$0xff] %v13795_v1 }
 0xea4   : > { %v5287_v51 = vpop.f32.mrf.mxu1 }
 0xea6   : > { %v5288_v29 = vpop.f32.mrf.mxu1 }
 0xea8   : > { %v13797_v20 = vpop.f32.mrf.mxu1 }
 0xeaa   : > { %v13799_v24 = vpop.f32.mrf.mxu1 }
 0xeac   : > { %v13801_v57 = vpop.f32.mrf.mxu1 }
 0xeae   : > { %v13803_v48 = vpop.f32.mrf.mxu1 }
 0xeb0   : > { %v13805_v47 = vpop.f32.mrf.mxu1 }
 0xeb1   : > { %v5717_v36 = vmax.f32 %v13797_v20, %v13805_v47 }
 0xeb2   : > { %v13807_v10 = vpop.f32.mrf.mxu1 }
 0xeb4   : > { %v13809_v44 = vpop.f32.mrf.mxu1 }
 0xeb5   : > { %v5718_v42 = vmax.f32 %v13801_v57, %v13809_v44 }
 0xeb6   : > { %v13811_v49 = vpop.f32.mrf.mxu1 }
 0xeb7   : > { %16681 = vst [vmem:[#allocation68_spill] sm:$0xff] %v13811_v49 }
 0xeb8   : > { %v13813_v58 = vpop.f32.mrf.mxu1 }
 0xeb9   : > { %v5719_v7 = vmax.f32 %v5717_v36, %v13813_v58 }
 0xeba   : > { %v13815_v50 = vpop.f32.mrf.mxu1 }
 0xebc   : > { %v13817_v46 = vpop.f32.mrf.mxu1 }
 0xebd   : > { %v5720_v38 = vmax.f32 %v5718_v42, %v13817_v46 }
 0xebe   : > { %v13819_v61 = vpop.f32.mrf.mxu1 }
 0xebf   : > { %16682 = vst [vmem:[#allocation108_spill] sm:$0xff] %v13819_v61 }
 0xec0   : > { %v13821_v55 = vpop.f32.mrf.mxu1 }
 0xec1   : > { %v5721_v30 = vmax.f32 %v5719_v7, %v13821_v55 }
 0xec2   : > { %v13823_v16 = vpop.f32.mrf.mxu1 }
 0xec4   : > { %v13825_v5 = vpop.f32.mrf.mxu1 }
 0xec5   : > { %v5722_v17 = vmax.f32 %v5720_v38, %v13825_v5 }
 0xec6   : > { %v13827_v35 = vpop.f32.mrf.mxu1 }
 0xec7   : > { %16683 = vst [vmem:[#allocation69_spill] sm:$0xff] %v13827_v35 }
 0xec8   : > { %v13829_v62 = vpop.f32.mrf.mxu1 }
 0xec9   : > { %16684 = vst [vmem:[#allocation62_spill] sm:$0xff] %v13829_v62  ;;  %v5723_v22 = vmax.f32 %v5721_v30, %v13829_v62 }
 0xeca   : > { %v13831_v34 = vpop.f32.mrf.mxu1 }
 0xecb   : > { %16685 = vst [vmem:[#allocation66_spill] sm:$0xff] %v13831_v34 }
 0xecc   : > { %v13833_v60 = vpop.f32.mrf.mxu1 }
 0xecd   : > { %v5724_v15 = vmax.f32 %v5722_v17, %v13833_v60 }
 0xece   : > { %v13835_v21 = vpop.f32.mrf.mxu1 }
 0xecf   : > { %16686 = vst [vmem:[#allocation124_spill] sm:$0xff] %v13835_v21 }
 0xed0   : > { %v13837_v27 = vpop.f32.mrf.mxu1 }
 0xed1   : > { %16687 = vst [vmem:[#allocation16_spill] sm:$0xff] %v13837_v27  ;;  %v5725_v32 = vmax.f32 %v5723_v22, %v13837_v27 }
 0xed2   : > { %v13839_v26 = vpop.f32.mrf.mxu1 }
 0xed4   : > { %v13841_v12 = vpop.f32.mrf.mxu1 }
 0xed5   : > { %v5726_v36 = vmax.f32 %v5724_v15, %v13841_v12 }
 0xed6   : > { %v13843_v28 = vpop.f32.mrf.mxu1 }
 0xed8   : > { %v13845_v6 = vpop.f32.mrf.mxu1 }
 0xed9   : > { %16688 = vst [vmem:[#allocation47_spill] sm:$0xff] %v13845_v6  ;;  %v5727_v42 = vmax.f32 %v5725_v32, %v13845_v6 }
 0xeda   : > { %v13847_v43 = vpop.f32.mrf.mxu1 }
 0xedc   : > { %v13849_v39 = vpop.f32.mrf.mxu1 }
 0xedd   : > { %v5728_v7 = vmax.f32 %v5726_v36, %v13849_v39  ;;  %v5755_v36 = vmax.f32 %v13803_v48, %v13811_v49 }
 0xede   : > { %v13851_v25 = vpop.f32.mrf.mxu1 }
 0xee0   : > { %v13853_v53 = vpop.f32.mrf.mxu1 }
 0xee1   : > { %v5729_v38 = vmax.f32 %v5727_v42, %v13853_v53 }
 0xee2   : > { %v13855_v54 = vpop.f32.mrf.mxu1 }
 0xee4   : > { %v13857_v41 = vpop.f32.mrf.mxu1 }
 0xee5   : > { %16689 = vst [vmem:[#allocation71_spill] sm:$0xff] %v13857_v41  ;;  %v5730_v30 = vmax.f32 %v5728_v7, %v13857_v41 }
 0xee6   : > { %v13859_v14 = vpop.f32.mrf.mxu1 }
 0xee8   : > { %v13861_v9 = vpop.f32.mrf.mxu1 }
 0xee9   : > { %v5731_v17 = vmax.f32 %v5729_v38, %v13861_v9  ;;  %v5754_v38 = vmax.f32 %v13799_v24, %v13807_v10 }
 0xeea   : > { %v13863_v31 = vpop.f32.mrf.mxu1 }
 0xeec   : > { %v13865_v52 = vpop.f32.mrf.mxu1 }
 0xeed   : > { %v5732_v22 = vmax.f32 %v5730_v30, %v13865_v52  ;;  %v5757_v30 = vmax.f32 %v5755_v36, %v13819_v61 }
 0xeee   : > { %v13867_v18 = vpop.f32.mrf.mxu1 }
 0xeef   : > { %v5759_v49 = vmax.f32 %v5757_v30, %v13827_v35 }
 0xef0   : > { %v13869_v11 = vpop.f32.mrf.mxu1 }
 0xef1   : > { %16690 = vst [vmem:[#allocation81_spill] sm:$0xff] %v13869_v11  ;;  %v5733_v15 = vmax.f32 %v5731_v17, %v13869_v11  ;;  %v5756_v11 = vmax.f32 %v5754_v38, %v13815_v50  ;;  %v5761_v36 = vmax.f32 %v5759_v49, %v13835_v21 }
 0xef2   : > { %v13871_v3 = vpop.f32.mrf.mxu1 }
 0xef3   : > { %v5763_v30 = vmax.f32 %v5761_v36, %v13843_v28 }
 0xef4   : > { %v13873_v23 = vpop.f32.mrf.mxu1 }
 0xef5   : > { %16691 = vst [vmem:[#allocation40_spill] sm:$0xff] %v13873_v23  ;;  %v5734_v32 = vmax.f32 %v5732_v22, %v13873_v23  ;;  %v5765_v49 = vmax.f32 %v5763_v30, %v13851_v25 }
 0xef6   : > { %v13875_v56 = vpop.f32.mrf.mxu1 }
 0xef8   : > { %v13877_v63 = vpop.f32.mrf.mxu1 }
 0xef9   : > { %16692 = vst [vmem:[#allocation104_spill] sm:$0xff] %v13877_v63  ;;  %v5735_v42 = vmax.f32 %v5733_v15, %v13877_v63  ;;  %v5758_v63 = vmax.f32 %v5756_v11, %v13823_v16 }
 0xefa   : > { %v13879_v51 = vpop.f32.mrf.mxu1 }
 0xefb   : > { %v5760_v38 = vmax.f32 %v5758_v63, %v13831_v34  ;;  %v5767_v63 = vmax.f32 %v5765_v49, %v13859_v14 }
 0xefc   : > { %v13881_v29 = vpop.f32.mrf.mxu1 }
 0xefd   : > { %16693 = vst [vmem:[#allocation29_spill] sm:$0xff] %v13881_v29  ;;  %v5736_v7 = vmax.f32 %v5734_v32, %v13881_v29  ;;  %v5762_v11 = vmax.f32 %v5760_v38, %v13839_v26 }
 0xefe   : > { %v13883_v4 = vpop.f32.mrf.mxu1 }
 0xeff   : > { %v5764_v21 = vmax.f32 %v5762_v11, %v13847_v43 }
 0xf00   : > { %v13885_v33 = vpop.f32.mrf.mxu1 }
 0xf01   : > { %v5737_v17 = vmax.f32 %v5735_v42, %v13885_v33  ;;  %v5766_v36 = vmax.f32 %v5764_v21, %v13855_v54 }
 0xf02   : > { %v13887_v1 = vpop.f32.mrf.mxu1 }
 0xf04   : > { %v13889_v2 = vpop.f32.mrf.mxu1 }
 0xf05   : > { %v5738_v22 = vmax.f32 %v5736_v7, %v13889_v2 }
 0xf06   : > { %v13891_v40 = vpop.f32.mrf.mxu1 }
 0xf08   : > { %v13893_v0 = vpop.f32.mrf.mxu1 }
 0xf09   : > { %v5739_v15 = vmax.f32 %v5737_v17, %v13893_v0 }
 0xf0a   : > { %v13899_v13 = vpop.f32.mrf.mxu1 }
 0xf0c   : > { %v13903_v37 = vpop.f32.mrf.mxu1 }
 0xf0d   : > { %v5740_v32 = vmax.f32 %v5738_v22, %v13903_v37 }
 0xf0e   : > { %v13907_v19 = vpop.f32.mrf.mxu1 }
 0xf10   : > { %v13911_v45 = vpop.f32.mrf.mxu1 }
 0xf11   : > { %v5741_v42 = vmax.f32 %v5739_v15, %v13911_v45 }
 0xf12   : > { %v13915_v59 = vpop.f32.mrf.mxu1 }
 0xf14   : > { %v13919_v8 = vpop.f32.mrf.mxu1 }
 0xf15   : > { %v5742_v7 = vmax.f32 %v5740_v32, %v13919_v8 }
 0xf16   : > { %v13923_v62 = vpop.f32.mrf.mxu1 }
 0xf18   : > { %v13927_v27 = vpop.f32.mrf.mxu1 }
 0xf19   : > { %16694 = vst [vmem:[#allocation80_spill] sm:$0xff] %v13927_v27  ;;  %v5743_v17 = vmax.f32 %v5741_v42, %v13927_v27  ;;  %v5769_v42 = vmax.f32 %v5767_v63, %v13867_v18 }
 0xf1a   : > { %v13931_v6 = vpop.f32.mrf.mxu1 }
 0xf1b   : > { %v5771_v38 = vmax.f32 %v5769_v42, %v13875_v56 }
 0xf1c   : > { %v13937_v41 = vpop.f32.mrf.mxu1 }
 0xf1d   : > { %16695 = vst [vmem:[#allocation28_spill] sm:$0xff] %v13937_v41  ;;  %v5744_v22 = vmax.f32 %v5742_v7, %v13937_v41  ;;  %v5768_v41 = vmax.f32 %v5766_v36, %v13863_v31 }
 0xf1e   : > { %v13944_v23 = vpop.f32.mrf.mxu1 }
 0xf1f   : > { %v5770_v30 = vmax.f32 %v5768_v41, %v13871_v3 }
 0xf20   : > { %v13950_v29 = vpop.f32.mrf.mxu1 }
 0xf21   : > { %v5745_v15 = vmax.f32 %v5743_v17, %v13950_v29  ;;  %v5773_v17 = vmax.f32 %v5771_v38, %v13883_v4  ;;  %v5772_v11 = vmax.f32 %v5770_v30, %v13879_v51 }
 0xf22   : > { %v13956_v61 = vpop.f32.mrf.mxu1 }
 0xf23   : > { %v5775_v49 = vmax.f32 %v5773_v17, %v13891_v40  ;;  %v5774_v21 = vmax.f32 %v5772_v11, %v13887_v1 }
 0xf24   : > { %v13962_v35 = vpop.f32.mrf.mxu1 }
 0xf25   : > { %v5746_v32 = vmax.f32 %v5744_v22, %v13962_v35  ;;  %v5776_v36 = vmax.f32 %v5774_v21, %v13899_v13 }
 0xf27   : > { %v5747_v34 = vmax.f32 %v5745_v15, %v5746_v32  ;;  %v5777_v32 = vmax.f32 %v5775_v49, %v13907_v19  ;;  %v5778_v41 = vmax.f32 %v5776_v36, %v13915_v59 }
 0xf29   : > { %v5748_v7 = vrot.slane %v5747_v34, 4  ;;  %v5779_v42 = vmax.f32 %v5777_v32, %v13923_v62  ;;  %v5780_v30 = vmax.f32 %v5778_v41, %v13931_v6 }
 0xf2b   : > { %v5749_v27 = vmax.f32 %v5747_v34, %v5748_v7  ;;  %v13982_v34 = vpop.f32.mrf.mxu1  ;;  %v5781_v7 = vmax.f32 %v5779_v42, %v13944_v23  ;;  %v5782_v17 = vmax.f32 %v5780_v30, %v13956_v61 }
 0xf2d   : > { %v5750_v22 = vrot.slane %v5749_v27, 2 }
 0xf2f   : > { %v5751_v15 = vmax.f32 %v5749_v27, %v5750_v22  ;;  %v5783_v27 = vmax.f32 %v5781_v7, %v13982_v34 }
 0xf31   : > { %v5752_v63 = vrot.slane %v5751_v15, 1  ;;  %v5784_v21 = vmax.f32 %v5782_v17, %v5783_v27 }
 0xf33   : > { %v13986_v38 = vmax.f32 %v5751_v15, %v5752_v63  ;;  %v5785_v41 = vrot.slane %v5784_v21, 4 }
 0xf35   : > { %v5791_v22 = vsub.f32 %v13797_v20, %v13986_v38  ;;  %v5793_v11 = vsub.f32 %v13801_v57, %v13986_v38  ;;  %v5795_v49 = vsub.f32 %v13805_v47, %v13986_v38  ;;  %v5797_v15 = vsub.f32 %v13809_v44, %v13986_v38 }
 0xf36   : > { %v5799_v36 = vsub.f32 %v13813_v58, %v13986_v38  ;;  %v5801_v20 = vsub.f32 %v13817_v46, %v13986_v38  ;;  %v5803_v47 = vsub.f32 %v13821_v55, %v13986_v38  ;;  %v5786_v30 = vmax.f32 %v5784_v21, %v5785_v41  ;;  %v16696_v58 = vld [vmem:[#allocation62_spill] sm:$0xff] }
 0xf37   : > { %v5855_v32 = vmul.f32 1.442695, %v5791_v22  ;;  %v5859_v63 = vmul.f32 1.442695, %v5793_v11  ;;  %v5863_v42 = vmul.f32 1.442695, %v5795_v49  ;;  %v5805_v44 = vsub.f32 %v13825_v5, %v13986_v38 }
 0xf38   : > { %v5867_v57 = vmul.f32 1.442695, %v5797_v15  ;;  %v5871_v7 = vmul.f32 1.442695, %v5799_v36  ;;  %v5875_v27 = vmul.f32 1.442695, %v5801_v20  ;;  %v5807_v17 = vsub.f32 %v16696_v58, %v13986_v38 }
 0xf39   : > { %9128 = vpow2.f32 %v5855_v32  ;;  %v5879_v22 = vmul.f32 1.442695, %v5803_v47  ;;  %v5809_v46 = vsub.f32 %v13833_v60, %v13986_v38  ;;  %v5787_v11 = vrot.slane %v5786_v30, 2  ;;  %v16697_v49 = vld [vmem:[#allocation16_spill] sm:$0xff]  ;;  %v16698_v5 = vld [vmem:[#allocation47_spill] sm:$0xff] }
 0xf3a   : > { %9130 = vpow2.f32 %v5859_v63  ;;  %v5811_v55 = vsub.f32 %v16697_v49, %v13986_v38  ;;  %v5883_v15 = vmul.f32 1.442695, %v5805_v44  ;;  %v5813_v21 = vsub.f32 %v13841_v12, %v13986_v38 }
 0xf3b   : > { %9132 = vpow2.f32 %v5863_v42  ;;  %v5815_v32 = vsub.f32 %v16698_v5, %v13986_v38  ;;  %v5887_v63 = vmul.f32 1.442695, %v5807_v17  ;;  %v5817_v36 = vsub.f32 %v13849_v39, %v13986_v38 }
 0xf3c   : > { %9134 = vpow2.f32 %v5867_v57  ;;  %v5891_v42 = vmul.f32 1.442695, %v5809_v46  ;;  %v5788_v41 = vmax.f32 %v5786_v30, %v5787_v11  ;;  %v5819_v20 = vsub.f32 %v13853_v53, %v13986_v38 }
 0xf3d   : > { %9136 = vpow2.f32 %v5871_v7  ;;  %v5895_v57 = vmul.f32 1.442695, %v5811_v55  ;;  %v5835_v12 = vsub.f32 %v13885_v33, %v13986_v38  ;;  %v5899_v7 = vmul.f32 1.442695, %v5813_v21 }
 0xf3e   : > { %9138 = vpow2.f32 %v5875_v27  ;;  %v5837_v44 = vsub.f32 %v13889_v2, %v13986_v38  ;;  %v5903_v39 = vmul.f32 1.442695, %v5815_v32  ;;  %v5839_v53 = vsub.f32 %v13893_v0, %v13986_v38 }
 0xf3f   : > { %9140 = vpow2.f32 %v5879_v22  ;;  %v5907_v58 = vmul.f32 1.442695, %v5817_v36  ;;  %v5789_v17 = vrot.slane %v5788_v41, 1  ;;  %v5841_v33 = vsub.f32 %v13903_v37, %v13986_v38  ;;  %v16700_v37 = vld [vmem:[#allocation71_spill] sm:$0xff] }
 0xf40   : > { %9142 = vpow2.f32 %v5883_v15  ;;  %v5911_v22 = vmul.f32 1.442695, %v5819_v20  ;;  %v5843_v11 = vsub.f32 %v13911_v45, %v13986_v38  ;;  %v5943_v49 = vmul.f32 1.442695, %v5835_v12  ;;  %v16701_v12 = vld [vmem:[#allocation81_spill] sm:$0xff] }
 0xf41   : > { %9144 = vpow2.f32 %v5887_v63  ;;  %v5845_v0 = vsub.f32 %v13919_v8, %v13986_v38  ;;  %v5947_v55 = vmul.f32 1.442695, %v5837_v44  ;;  %v5821_v5 = vsub.f32 %v16700_v37, %v13986_v38 }
 0xf42   : > { %9146 = vpow2.f32 %v5891_v42  ;;  %v5951_v32 = vmul.f32 1.442695, %v5839_v53  ;;  %v14049_v63 = vmax.f32 %v5788_v41, %v5789_v17  ;;  %v5823_v45 = vsub.f32 %v13861_v9, %v13986_v38 }
 0xf43   : > { %9148 = vpow2.f32 %v5895_v57  ;;  %v5955_v36 = vmul.f32 1.442695, %v5841_v33  ;;  %v5825_v20 = vsub.f32 %v13865_v52, %v13986_v38  ;;  %v5959_v57 = vmul.f32 1.442695, %v5843_v11  ;;  %v16702_v33 = vld [vmem:[#allocation40_spill] sm:$0xff] }
 0xf44   : > { %9150 = vpow2.f32 %v5899_v7  ;;  %v5827_v7 = vsub.f32 %v16701_v12, %v13986_v38  ;;  %v5963_v41 = vmul.f32 1.442695, %v5845_v0  ;;  %v5915_v9 = vmul.f32 1.442695, %v5821_v5 }
 0xf45   : > { %9152 = vpow2.f32 %v5903_v39  ;;  %v5919_v53 = vmul.f32 1.442695, %v5823_v45 }
 0xf46   : > { %v14019_v60 = vpop.eup %9128  ;;  %9154 = vpow2.f32 %v5907_v58  ;;  %v5794_v58 = vsub.f32 %v13803_v48, %v14049_v63  ;;  %v5927_v11 = vmul.f32 1.442695, %v5827_v7 }
 0xf47   : > { %v14023_v47 = vpop.eup %9130  ;;  %9156 = vpow2.f32 %v5911_v22  ;;  %v5829_v22 = vsub.f32 %v16702_v33, %v13986_v38 }
 0xf48   : > { %16699 = vst [vmem:[#allocation52_spill] sm:$0xff] %v14023_v47  ;;  %v5983_v30 = vadd.f32 %v14023_v47, %v14019_v60  ;;  %v14031_v27 = vpop.eup %9132  ;;  %9158 = vpow2.f32 %v5943_v49 }
 0xf49   : > { %v14038_v46 = vpop.eup %9134  ;;  %9160 = vpow2.f32 %v5947_v55  ;;  %v16703_v55 = vld [vmem:[#allocation104_spill] sm:$0xff] }
 0xf4a   : > { %v5984_v2 = vadd.f32 %v14031_v27, %v5983_v30  ;;  %v14045_v21 = vpop.eup %9136  ;;  %9162 = vpow2.f32 %v5951_v32  ;;  %v5792_v30 = vsub.f32 %v13799_v24, %v14049_v63  ;;  %v5796_v24 = vsub.f32 %v13807_v10, %v14049_v63  ;;  %v16704_v32 = vld [vmem:[#allocation68_spill] sm:$0xff]  ;;  %v16705_v10 = vld [vmem:[#allocation29_spill] sm:$0xff] }
 0xf4b   : > { %v14054_v42 = vpop.eup %9138  ;;  %9164 = vpow2.f32 %v5955_v36  ;;  %v5798_v45 = vsub.f32 %v16704_v32, %v14049_v63  ;;  %v5861_v36 = vmul.f32 1.442695, %v5794_v58 }
 0xf4c   : > { %v5985_v15 = vadd.f32 %v14038_v46, %v5984_v2  ;;  %v14061_v39 = vpop.eup %9140  ;;  %v5923_v2 = vmul.f32 1.442695, %v5825_v20  ;;  %9166 = vpow2.f32 %v5959_v57  ;;  %v5857_v48 = vmul.f32 1.442695, %v5792_v30 }
 0xf4d   : > { %v14068_v17 = vpop.eup %9142  ;;  %9168 = vpow2.f32 %v5963_v41  ;;  %v5833_v20 = vsub.f32 %v16705_v10, %v13986_v38  ;;  %v5931_v57 = vmul.f32 1.442695, %v5829_v22  ;;  %v5800_v41 = vsub.f32 %v13815_v50, %v14049_v63 }
 0xf4e   : > { %v5986_v8 = vadd.f32 %v14045_v21, %v5985_v15  ;;  %v14075_v0 = vpop.eup %9144  ;;  %v5831_v15 = vsub.f32 %v16703_v55, %v13986_v38  ;;  %9170 = vpow2.f32 %v5915_v9  ;;  %v5804_v22 = vsub.f32 %v13823_v16, %v14049_v63 }
 0xf4f   : > { %v14079_v37 = vpop.eup %9146  ;;  %9172 = vpow2.f32 %v5919_v53  ;;  %v16706_v53 = vld [vmem:[#allocation108_spill] sm:$0xff]  ;;  %v5939_v50 = vmul.f32 1.442695, %v5833_v20  ;;  %v5873_v32 = vmul.f32 1.442695, %v5800_v41  ;;  %v5816_v16 = vsub.f32 %v13847_v43, %v14049_v63 }
 0xf50   : > { %v5987_v44 = vadd.f32 %v14054_v42, %v5986_v8  ;;  %v14084_v8 = vpop.eup %9148  ;;  %9174 = vpow2.f32 %v5923_v2  ;;  %v5935_v30 = vmul.f32 1.442695, %v5831_v15  ;;  %v5869_v2 = vmul.f32 1.442695, %v5798_v45 }
 0xf51   : > { %v14088_v12 = vpop.eup %9150  ;;  %9176 = vpow2.f32 %v5927_v11  ;;  %v5818_v45 = vsub.f32 %v13851_v25, %v14049_v63  ;;  %v5822_v43 = vsub.f32 %v13859_v14, %v14049_v63 }
 0xf52   : > { %v5988_v52 = vadd.f32 %v14061_v39, %v5987_v44  ;;  %v5865_v44 = vmul.f32 1.442695, %v5796_v24  ;;  %v14093_v9 = vpop.eup %9152  ;;  %9178 = vpow2.f32 %v5857_v48  ;;  %v16708_v48 = vld [vmem:[#allocation66_spill] sm:$0xff] }
 0xf53   : > { %v14097_v58 = vpop.eup %9154  ;;  %9180 = vpow2.f32 %v5861_v36 }
 0xf54   : > { %v5989_v49 = vadd.f32 %v14068_v17, %v5988_v52  ;;  %v5802_v52 = vsub.f32 %v16706_v53, %v14049_v63  ;;  %v14102_v11 = vpop.eup %9156  ;;  %9182 = vpow2.f32 %v5931_v57 }
 0xf55   : > { %v14106_v55 = vpop.eup %9158  ;;  %9184 = vpow2.f32 %v5865_v44 }
 0xf56   : > { %v5990_v5 = vadd.f32 %v14075_v0, %v5989_v49  ;;  %v16707_v49 = vld [vmem:[#allocation69_spill] sm:$0xff]  ;;  %v14111_v10 = vpop.eup %9160  ;;  %9186 = vpow2.f32 %v5935_v30  ;;  %v5877_v36 = vmul.f32 1.442695, %v5802_v52  ;;  %v5820_v30 = vsub.f32 %v13855_v54, %v14049_v63 }
 0xf57   : > { %v5806_v24 = vsub.f32 %v16707_v49, %v14049_v63  ;;  %v14117_v20 = vpop.eup %9162  ;;  %9188 = vpow2.f32 %v5869_v2  ;;  %v5905_v54 = vmul.f32 1.442695, %v5816_v16 }
 0xf58   : > { %v5991_v7 = vadd.f32 %v14079_v37, %v5990_v5  ;;  %v5808_v5 = vsub.f32 %v16708_v48, %v14049_v63  ;;  %v14122_v41 = vpop.eup %9164  ;;  %9190 = vpow2.f32 %v5939_v50  ;;  %v16709_v50 = vld [vmem:[#allocation124_spill] sm:$0xff] }
 0xf59   : > { %v5885_v25 = vmul.f32 1.442695, %v5806_v24  ;;  %v14128_v53 = vpop.eup %9166  ;;  %9192 = vpow2.f32 %v5873_v32  ;;  %v5810_v49 = vsub.f32 %v16709_v50, %v14049_v63  ;;  %v5909_v24 = vmul.f32 1.442695, %v5818_v45 }
 0xf5a   : > { %v5992_v33 = vadd.f32 %v14084_v8, %v5991_v7  ;;  %v5881_v7 = vmul.f32 1.442695, %v5804_v22  ;;  %v14133_v2 = vpop.eup %9168  ;;  %9194 = vpow2.f32 %v5877_v36  ;;  %v5812_v32 = vsub.f32 %v13839_v26, %v14049_v63 }
 0xf5b   : > { %v5814_v36 = vsub.f32 %v13843_v28, %v14049_v63  ;;  %v5893_v22 = vmul.f32 1.442695, %v5810_v49  ;;  %v16715_v49 = vld [vmem:[#allocation28_spill] sm:$0xff] }
 0xf5c   : > { %v5993_v15 = vadd.f32 %v14088_v12, %v5992_v33  ;;  %v5889_v33 = vmul.f32 1.442695, %v5808_v5  ;;  %9196 = vpow2.f32 %v5881_v7  ;;  %v5917_v7 = vmul.f32 1.442695, %v5822_v43 }
 0xf5d   : > { %9198 = vpow2.f32 %v5885_v25  ;;  %v5901_v43 = vmul.f32 1.442695, %v5814_v36 }
 0xf5e   : > { %v5994_v57 = vadd.f32 %v14093_v9, %v5993_v15  ;;  %v14137_v15 = vpop.eup %9170  ;;  %9200 = vpow2.f32 %v5889_v33 }
 0xf5f   : > { %v14142_v5 = vpop.eup %9172  ;;  %9202 = vpow2.f32 %v5905_v54 }
 0xf60   : > { %v5995_v52 = vadd.f32 %v14097_v58, %v5994_v57  ;;  %16710 = vst [vmem:[#allocation120_spill] sm:$0xff] %v14142_v5  ;;  %v5913_v57 = vmul.f32 1.442695, %v5820_v30  ;;  %v14146_v44 = vpop.eup %9174  ;;  %9204 = vpow2.f32 %v5909_v24  ;;  %v16713_v30 = vld [vmem:[#allocation80_spill] sm:$0xff]  ;;  %v5849_v24 = vsub.f32 %v16715_v49, %v13986_v38 }
 0xf61   : > { %16711 = vst [vmem:[#allocation17_spill] sm:$0xff] %v14146_v44  ;;  %v14151_v45 = vpop.eup %9176  ;;  %v5847_v25 = vsub.f32 %v16713_v30, %v13986_v38  ;;  %v5844_v30 = vsub.f32 %v13915_v59, %v14049_v63 }
 0xf62   : > { %v5996_v14 = vadd.f32 %v14102_v11, %v5995_v52  ;;  %16712 = vst [vmem:[#allocation46_spill] sm:$0xff] %v14151_v45  ;;  %v14153_v52 = vpop.eup %9178  ;;  %9206 = vpow2.f32 %v5913_v57 }
 0xf63   : > { %v14156_v26 = vpop.eup %9180  ;;  %9208 = vpow2.f32 %v5917_v7  ;;  %v5967_v7 = vmul.f32 1.442695, %v5847_v25  ;;  %v5853_v25 = vsub.f32 %v13962_v35, %v13986_v38 }
 0xf64   : > { %v5997_v16 = vadd.f32 %v14137_v15, %v5996_v14  ;;  %v5897_v14 = vmul.f32 1.442695, %v5812_v32  ;;  %v14160_v48 = vpop.eup %9182  ;;  %v6020_v33 = vadd.f32 %v14156_v26, %v14153_v52  ;;  %v5851_v32 = vsub.f32 %v13950_v29, %v13986_v38 }
 0xf65   : > { %16714 = vst [vmem:[#allocation27_spill] sm:$0xff] %v14160_v48  ;;  %v14165_v54 = vpop.eup %9184  ;;  %9210 = vpow2.f32 %v5893_v22  ;;  %v5826_v38 = vsub.f32 %v13867_v18, %v14049_v63 }
 0xf66   : > { %v5998_v50 = vadd.f32 %v14142_v5, %v5997_v16  ;;  %v14169_v16 = vpop.eup %9186  ;;  %9212 = vpow2.f32 %v5897_v14  ;;  %v5846_v5 = vsub.f32 %v13923_v62, %v14049_v63  ;;  %v5975_v59 = vmul.f32 1.442695, %v5851_v32 }
 0xf67   : > { %v14175_v36 = vpop.eup %9188  ;;  %9214 = vpow2.f32 %v5901_v43  ;;  %v5824_v62 = vsub.f32 %v13863_v31, %v14049_v63  ;;  %v5961_v43 = vmul.f32 1.442695, %v5844_v30 }
 0xf68   : > { %v5999_v28 = vadd.f32 %v14146_v44, %v5998_v50  ;;  %v6021_v50 = vadd.f32 %v14165_v54, %v6020_v33  ;;  %v14179_v44 = vpop.eup %9190  ;;  %9216 = vpow2.f32 %v5967_v7  ;;  %v5828_v7 = vsub.f32 %v13871_v3, %v14049_v63 }
 0xf69   : > { %16716 = vst [vmem:[#allocation76_spill] sm:$0xff] %v14179_v44  ;;  %v14185_v22 = vpop.eup %9192 }
 0xf6a   : > { %v6000_v57 = vadd.f32 %v14151_v45, %v5999_v28  ;;  %v6022_v29 = vadd.f32 %v14175_v36, %v6021_v50  ;;  %v5971_v28 = vmul.f32 1.442695, %v5849_v24  ;;  %v14187_v33 = vpop.eup %9194 }
 0xf6c   : > { %v6001_v49 = vadd.f32 %v14160_v48, %v6000_v57  ;;  %v6023_v45 = vadd.f32 %v14185_v22, %v6022_v29  ;;  %v14193_v57 = vpop.eup %9196  ;;  %v5965_v48 = vmul.f32 1.442695, %v5846_v5  ;;  %9218 = vpow2.f32 %v5971_v28 }
 0xf6d   : > { %v14197_v50 = vpop.eup %9198  ;;  %9220 = vpow2.f32 %v5975_v59  ;;  %v5921_v28 = vmul.f32 1.442695, %v5824_v62  ;;  %v5925_v59 = vmul.f32 1.442695, %v5826_v38  ;;  %v5929_v62 = vmul.f32 1.442695, %v5828_v7 }
 0xf6e   : > { %v6002_v14 = vadd.f32 %v14169_v16, %v6001_v49  ;;  %v6024_v47 = vadd.f32 %v14187_v33, %v6023_v45  ;;  %v14201_v35 = vpop.eup %9200  ;;  %v5979_v49 = vmul.f32 1.442695, %v5853_v25  ;;  %9222 = vpow2.f32 %v5961_v43 }
 0xf6f   : > { %v9203_v32 = vpop.eup %9202  ;;  %9224 = vpow2.f32 %v5965_v48  ;;  %v5830_v25 = vsub.f32 %v13875_v56, %v14049_v63  ;;  %v5832_v48 = vsub.f32 %v13879_v51, %v14049_v63 }
 0xf70   : > { %v6003_v24 = vadd.f32 %v14179_v44, %v6002_v14  ;;  %v6025_v30 = vadd.f32 %v14193_v57, %v6024_v47  ;;  %v9205_v29 = vpop.eup %9204  ;;  %9226 = vpow2.f32 %v5979_v49  ;;  %v5836_v44 = vsub.f32 %v13887_v1, %v14049_v63 }
 0xf71   : > { %v14209_v5 = vpop.eup %9206  ;;  %9228 = vpow2.f32 %v5921_v28  ;;  %v6072_v49 = vpack.c.bf16 %v9205_v29, %v9203_v32  ;;  %v5933_v7 = vmul.f32 1.442695, %v5830_v25  ;;  %v5854_v28 = vsub.f32 %v13982_v34, %v14049_v63 }
 0xf72   : > { %v6004_v31 = vadd.f32 %v14106_v55, %v6003_v24  ;;  %v6026_v18 = vadd.f32 %v14197_v50, %v6025_v30  ;;  %v14213_v14 = vpop.eup %9208  ;;  %9230 = vpow2.f32 %v5925_v59  ;;  %v5838_v25 = vsub.f32 %v13891_v40, %v14049_v63 }
 0xf73   : > { %v6074_v43 = vpack.c.bf16 %v14213_v14, %v14209_v5  ;;  %v9211_v24 = vpop.eup %9210  ;;  %9232 = vpow2.f32 %v5929_v62  ;;  %v5848_v34 = vsub.f32 %v13931_v6, %v14049_v63  ;;  %v5850_v40 = vsub.f32 %v13944_v23, %v14049_v63 }
 0xf74   : > { %v6005_v45 = vadd.f32 %v14111_v10, %v6004_v31  ;;  %v6027_v3 = vadd.f32 %v14201_v35, %v6026_v18  ;;  %v6073_v31 = vpack.c.bf16 %v14137_v15, %v14102_v11  ;;  %v9213_v30 = vpop.eup %9212  ;;  %v5834_v18 = vsub.f32 %v13883_v4, %v14049_v63 }
 0xf75   : > { %6091 = vmatprep.subr.bf16.mxu0 %v6074_v43  ;;  %v5852_v15 = vsub.f32 %v13956_v61, %v14049_v63  ;;  %v6071_v4 = vpack.c.bf16 %v14097_v58, %v14093_v9  ;;  %v5840_v61 = vsub.f32 %v13899_v13, %v14049_v63  ;;  %9234 = vpow2.f32 %v5933_v7 }
 0xf76   : > { %v6006_v47 = vadd.f32 %v14117_v20, %v6005_v45  ;;  %v6028_v38 = vadd.f32 %v9211_v24, %v6027_v3  ;;  %v9215_v45 = vpop.eup %9214  ;;  %6092 = vmatpush1.bf16.msra.mxu0 %v6073_v31  ;;  %v5941_v59 = vmul.f32 1.442695, %v5834_v18  ;;  %v5945_v58 = vmul.f32 1.442695, %v5836_v44 }
 0xf77   : > { %6093 = vmatprep.subr.bf16.mxu0 %v6072_v49  ;;  %v6070_v43 = vpack.c.bf16 %v9215_v45, %v9213_v30  ;;  %v14238_v31 = vpop.eup %9216  ;;  %v5981_v13 = vmul.f32 1.442695, %v5854_v28  ;;  %v6069_v6 = vpack.c.bf16 %v14088_v12, %v14084_v8  ;;  %v6068_v44 = vpack.c.bf16 %v9211_v24, %v14201_v35 }
 0xf78   : > { %v6007_v56 = vadd.f32 %v14122_v41, %v6006_v47  ;;  %v6029_v11 = vadd.f32 %v9213_v30, %v6028_v38  ;;  %v5937_v47 = vmul.f32 1.442695, %v5832_v48  ;;  %v5842_v18 = vsub.f32 %v13907_v19, %v14049_v63 }
 0xf79   : > { %v14246_v48 = vpop.eup %9218  ;;  %v5949_v23 = vmul.f32 1.442695, %v5838_v25  ;;  %v5969_v35 = vmul.f32 1.442695, %v5848_v34  ;;  %v5973_v24 = vmul.f32 1.442695, %v5850_v40  ;;  %v6067_v19 = vpack.c.bf16 %v14079_v37, %v14075_v0 }
 0xf7a   : > { %v6008_v51 = vadd.f32 %v14128_v53, %v6007_v56  ;;  %v6030_v1 = vadd.f32 %v9215_v45, %v6029_v11  ;;  %6094 = vmatpush1.bf16.msra.mxu0 %v6071_v4  ;;  %v14249_v30 = vpop.eup %9220  ;;  %v5977_v56 = vmul.f32 1.442695, %v5852_v15  ;;  %9236 = vpow2.f32 %v5937_v47 }
 0xf7b   : > { %6095 = vmatprep.subr.bf16.mxu0 %v6070_v43  ;;  %v14255_v38 = vpop.eup %9222  ;;  %9238 = vpow2.f32 %v5941_v59  ;;  %v6066_v15 = vpack.c.bf16 %v14197_v50, %v14193_v57  ;;  %v5957_v28 = vmul.f32 1.442695, %v5842_v18  ;;  %v6065_v0 = vpack.c.bf16 %v14068_v17, %v14061_v39 }
 0xf7c   : > { %v6009_v3 = vadd.f32 %v14133_v2, %v6008_v51  ;;  %v6031_v62 = vadd.f32 %v9203_v32, %v6030_v1  ;;  %v14259_v32 = vpop.eup %9224  ;;  %v5953_v51 = vmul.f32 1.442695, %v5840_v61  ;;  %9240 = vpow2.f32 %v5945_v58 }
 0xf7d   : > { %v6086_v12 = vpack.c.bf16 %v14259_v32, %v14255_v38  ;;  %9242 = vpow2.f32 %v5977_v56  ;;  %v6064_v57 = vpack.c.bf16 %v14187_v33, %v14185_v22  ;;  %v6063_v1 = vpack.c.bf16 %v14054_v42, %v14045_v21 }
 0xf7e   : > { %v6010_v9 = vadd.f32 %v14238_v31, %v6009_v3  ;;  %v6032_v45 = vadd.f32 %v9205_v29, %v6031_v62  ;;  %6096 = vmatpush1.bf16.msra.mxu0 %v6069_v6  ;;  %v9227_v29 = vpop.eup %9226  ;;  %9244 = vpow2.f32 %v5981_v13  ;;  %v6062_v25 = vpack.c.bf16 %v14175_v36, %v14165_v54  ;;  %v16717_v36 = vld [vmem:[#allocation52_spill] sm:$0xff] }
 0xf7f   : > { %6097 = vmatprep.subr.bf16.mxu0 %v6068_v44  ;;  %9246 = vpow2.f32 %v5949_v23  ;;  %v6061_v22 = vpack.c.bf16 %v14038_v46, %v14031_v27  ;;  %v6059_v62 = vpack.c.bf16 %v16717_v36, %v14019_v60  ;;  %v6087_v44 = vpack.c.bf16 %v14246_v48, %v14238_v31  ;;  %v16749_v36 = vld [vmem:[#allocation93_spill] sm:$0xff] }
 0xf80   : > { %v6011_v49 = vadd.f32 %v14246_v48, %v6010_v9  ;;  %v6033_v8 = vadd.f32 %v14209_v5, %v6032_v45  ;;  %v14274_v5 = vpop.eup %9228  ;;  %9248 = vpow2.f32 %v5953_v51  ;;  %v6060_v9 = vpack.c.bf16 %v14156_v26, %v14153_v52 }
 0xf81   : > { %v14277_v4 = vpop.eup %9230  ;;  %9250 = vpow2.f32 %v5969_v35  ;;  %v16719_v31 = vpack.c.bf16 %v14122_v41, %v14117_v20  ;;  %v16723_v35 = vld [vmem:[#allocation27_spill] sm:$0xff] }
 0xf82   : > { %v6012_v7 = vadd.f32 %v14249_v30, %v6011_v49  ;;  %v6034_v11 = vadd.f32 %v14213_v14, %v6033_v8  ;;  %6098 = vmatpush1.bf16.msra.mxu0 %v6067_v19  ;;  %9252 = vpow2.f32 %v5973_v24  ;;  %v9233_v50 = vpop.eup %9232  ;;  %v6089_v49 = vpack.c.bf16 %v9227_v29, %v14249_v30  ;;  %v16724_v19 = vld [vmem:[#allocation38_spill] sm:$0xff] }
 0xf83   : > { %6099 = vmatprep.subr.bf16.mxu0 %v6066_v15  ;;  %9254 = vpow2.f32 %v5957_v28  ;;  %v9235_v3 = vpop.eup %9234  ;;  %v16718_v30 = vpack.c.bf16 %v14133_v2, %v14128_v53  ;;  %v6076_v41 = vpack.c.bf16 %v14277_v4, %v14274_v5  ;;  %v16726_v15 = vld [vmem:[#allocation89_spill] sm:$0xff]  ;;  %v16728_v28 = vld [vmem:[#allocation32_spill] sm:$0xff] }
 0xf84   : > { %v14269_v63 = vadd.f32 %v9227_v29, %v6012_v7  ;;  %v6035_v47 = vadd.f32 %v14274_v5, %v6034_v11  ;;  %v6078_v2 = vpack.c.bf16 %v9235_v3, %v9233_v50  ;;  %v16725_v11 = vld [vmem:[#allocation33_spill] sm:$0xff]  ;;  %v16732_v5 = vld [vmem:[#allocation82_spill] sm:$0xff] }
 0xf85   : > { %v1002_v20 = vadd.f32 %v16725_v11, %v16724_v19  ;;  %v16779_v11 = vld [vmem:[#allocation11_spill] sm:$0xff] }
 0xf86   : > { %v6036_v37 = vadd.f32 %v14277_v4, %v6035_v47  ;;  %6100 = vmatpush1.bf16.msra.mxu0 %v6065_v0  ;;  %v16729_v47 = vld [vmem:[#allocation120_spill] sm:$0xff]  ;;  %v16730_v0 = vld [vmem:[#allocation17_spill] sm:$0xff]  ;;  %v16733_v4 = vld [vmem:[#allocation94_spill] sm:$0xff] }
 0xf87   : > { %6101 = vmatprep.subr.bf16.mxu0 %v6064_v57  ;;  %v9237_v39 = vpop.eup %9236  ;;  %v6141_v57 = vmul.f32 0.5, %v1002_v20 }
 0xf88   : > { %v6037_v14 = vadd.f32 %v9233_v50, %v6036_v37  ;;  %v9239_v17 = vpop.eup %9238  ;;  %v6075_v37 = vpack.c.bf16 %v16730_v0, %v16729_v47 }
 0xf89   : > { %v9241_v34 = vpop.eup %9240  ;;  %v6080_v48 = vpack.c.bf16 %v9239_v17, %v9237_v39 }
 0xf8a   : > { %v6038_v43 = vadd.f32 %v9235_v3, %v6037_v14  ;;  %6102 = vmatpush1.bf16.msra.mxu0 %v6063_v1  ;;  %v9243_v33 = vpop.eup %9242  ;;  %v16731_v3 = vmov 0.0   ;;  %v16734_v1 = vld [vmem:[#allocation63_spill] sm:$0xff] }
 0xf8b   : > { %6103 = vmatprep.subr.bf16.mxu0 %v6062_v25  ;;  %v9245_v58 = vpop.eup %9244  ;;  %v16736_v25 = vld [vmem:[#allocation77_spill] sm:$0xff] }
 0xf8c   : > { %v6039_v61 = vadd.f32 %v9237_v39, %v6038_v43  ;;  %v9247_v21 = vpop.eup %9246  ;;  %v6090_v13 = vpack.c.bf16 %v9245_v58, %v9243_v33  ;;  %v16735_v43 = vld [vmem:[#allocation70_spill] sm:$0xff]  ;;  %v14343_v39 = vpop.trf.xlu0 }
 0xf8d   : > { %v9249_v54 = vpop.eup %9248  ;;  %v6082_v29 = vpack.c.bf16 %v9247_v21, %v9241_v34  ;;  %16737 = vst [vmem:[#allocation100_spill] sm:$0xff] %v14343_v39 }
 0xf8e   : > { %v6040_v59 = vadd.f32 %v9239_v17, %v6039_v61  ;;  %6104 = vmatpush1.bf16.msra.mxu0 %v6061_v22  ;;  %v9251_v40 = vpop.eup %9250  ;;  %v16738_v17 = vld [vmem:[#allocation86_spill] sm:$0xff]  ;;  %v16739_v61 = vld [vmem:[#allocation109_spill] sm:$0xff]  ;;  %v16741_v22 = vld [vmem:[#allocation12_spill] sm:$0xff] }
 0xf8f   : > { %6105 = vmatprep.subr.bf16.mxu0 %v6060_v9  ;;  %v9253_v6 = vpop.eup %9252  ;;  %v16744_v9 = vld [vmem:[#allocation79_spill] sm:$0xff] }
 0xf90   : > { %v6041_v42 = vadd.f32 %v9241_v34, %v6040_v59  ;;  %v9255_v46 = vpop.eup %9254  ;;  %v6088_v26 = vpack.c.bf16 %v9253_v6, %v9251_v40  ;;  %v14351_v34 = vpop.trf.xlu0  ;;  %v16743_v59 = vld [vmem:[#allocation13_spill] sm:$0xff] }
 0xf91   : > { %v6084_v51 = vpack.c.bf16 %v9255_v46, %v9249_v54  ;;  %16740 = vst [vmem:[#allocation31_spill] sm:$0xff] %v14351_v34 }
 0xf92   : > { %v6042_v56 = vadd.f32 %v9247_v21, %v6041_v42  ;;  %6106 = vmatpush1.bf16.msra.mxu0 %v6059_v62  ;;  %v16746_v21 = vld [vmem:[#allocation75_spill] sm:$0xff] }
 0xf93   : > { %6107 = vmatprep.subr.bf16.mxu0 %v6090_v13  ;;  %v16753_v13 = vld [vmem:[#allocation88_spill] sm:$0xff] }
 0xf94   : > { %v6043_v27 = vadd.f32 %v9249_v54, %v6042_v56  ;;  %v16748_v54 = vld [vmem:[#allocation99_spill] sm:$0xff] }
 0xf96   : > { %v6044_v52 = vadd.f32 %v9255_v46, %v6043_v27  ;;  %6108 = vmatpush2.bf16.msra.mxu0 %v6089_v49  ;;  %v16756_v46 = vld [vmem:[#allocation49_spill] sm:$0xff] }
 0xf97   : > { %6109 = vmatprep.subr.bf16.mxu0 %v6088_v26  ;;  %v16759_v26 = vld [vmem:[#allocation118_spill] sm:$0xff] }
 0xf98   : > { %v6045_v45 = vadd.f32 %v14255_v38, %v6044_v52  ;;  %v16720_v38 = vpack.c.bf16 %v14111_v10, %v14106_v55  ;;  %v16727_v55 = vld [vmem:[#allocation45_spill] sm:$0xff]  ;;  %v16758_v52 = vld [vmem:[#allocation116_spill] sm:$0xff] }
 0xf99   : > { %v1074_v10 = vadd.f32 %v16727_v55, %v16726_v15  ;;  %v16781_v55 = vld [vmem:[#allocation101_spill] sm:$0xff] }
 0xf9a   : > { %v6046_v60 = vadd.f32 %v14259_v32, %v6045_v45  ;;  %6110 = vmatpush2.bf16.msra.mxu0 %v6087_v44  ;;  %v16721_v32 = vld [vmem:[#allocation76_spill] sm:$0xff]  ;;  %v16761_v44 = vld [vmem:[#allocation122_spill] sm:$0xff] }
 0xf9b   : > { %6111 = vmatprep.subr.bf16.mxu0 %v6086_v12  ;;  %v6079_v53 = vpack.c.bf16 %v16721_v32, %v14169_v16  ;;  %v16722_v12 = vld [vmem:[#allocation46_spill] sm:$0xff]  ;;  %v1000_v16 = vadd.f32 %v16728_v28, %v16724_v19  ;;  %v6057_v50 = vpack.c.bf16 %v1074_v10, %v1074_v10  ;;  %v16778_v19 = vld [vmem:[#allocation96_spill] sm:$0xff]  ;;  %v6014_v10 = vrot.slane %v14269_v63, 4  ;;  %v16782_v28 = vld [vmem:[#allocation67_spill] sm:$0xff] }
 0xf9c   : > { %v6047_v18 = vadd.f32 %v9251_v40, %v6046_v60  ;;  %v6077_v24 = vpack.c.bf16 %v16723_v35, %v16722_v12  ;;  %v16751_v40 = vld [vmem:[#allocation37_spill] sm:$0xff]  ;;  %v16776_v35 = vld [vmem:[#allocation91_spill] sm:$0xff] }
 0xf9d   : > { %v6140_v14 = vmul.f32 0.5, %v1000_v16  ;;  %v5209_v16 = vrot.slane %v16782_v28, 4  ;;  %v6015_v0 = vadd.f32 %v6014_v10, %v14269_v63 }
 0xf9e   : > { %v6048_v23 = vadd.f32 %v9253_v6, %v6047_v18  ;;  %6112 = vmatpush2.bf16.msra.mxu0 %v16718_v30  ;;  %v16754_v6 = vld [vmem:[#allocation24_spill] sm:$0xff]  ;;  %v16763_v18 = vld [vmem:[#allocation42_spill] sm:$0xff]  ;;  %v16766_v30 = vld [vmem:[#allocation39_spill] sm:$0xff] }
 0xf9f   : > { %6113 = vmatprep.subr.bf16.mxu0 %v6084_v51 }
 0xfa0   : > { %v6049_v7 = vadd.f32 %v9243_v33, %v6048_v23  ;;  %v14356_v33 = vpop.trf.xlu0  ;;  %v16764_v23 = vld [vmem:[#allocation41_spill] sm:$0xff] }
 0xfa1   : > { %16742 = vst [vmem:[#allocation97_spill] sm:$0xff] %v14356_v33 }
 0xfa2   : > { %v14305_v8 = vadd.f32 %v9245_v58, %v6049_v7  ;;  %6114 = vmatpush2.bf16.msra.mxu0 %v16719_v31  ;;  %v16769_v31 = vld [vmem:[#allocation78_spill] sm:$0xff] }
 0xfa3   : > { %6115 = vmatprep.subr.bf16.mxu0 %v6082_v29  ;;  %v16768_v29 = vld [vmem:[#allocation61_spill] sm:$0xff] }
 0xfa4   : > { %v14364_v58 = vpop.trf.xlu0  ;;  %v6051_v47 = vrot.slane %v14305_v8, 4 }
 0xfa5   : > { %16745 = vst [vmem:[#allocation87_spill] sm:$0xff] %v14364_v58 }
 0xfa6   : > { %6116 = vmatpush2.bf16.msra.mxu0 %v16720_v38  ;;  %v16771_v38 = vld [vmem:[#allocation26_spill] sm:$0xff] }
 0xfa7   : > { %6117 = vmatprep.subr.bf16.mxu0 %v6080_v48 }
 0xfa8   : > { %v14369_v42 = vpop.trf.xlu0 }
 0xfa9   : > { %16747 = vst [vmem:[#allocation30_spill] sm:$0xff] %v14369_v42 }
 0xfaa   : > { %6118 = vmatpush2.bf16.msra.mxu0 %v6079_v53  ;;  %v16773_v53 = vld [vmem:[#allocation83_spill] sm:$0xff] }
 0xfab   : > { %6119 = vmatprep.subr.bf16.mxu0 %v6078_v2  ;;  %v16774_v2 = vld [vmem:[#allocation73_spill] sm:$0xff] }
 0xfac   : > { %v14377_v62 = vpop.trf.xlu0 }
 0xfad   : > { %16750 = vst [vmem:[#allocation74_spill] sm:$0xff] %v14377_v62 }
 0xfae   : > { %6120 = vmatpush2.bf16.msra.mxu0 %v6077_v24 }
 0xfaf   : > { %6121 = vmatprep.subr.bf16.mxu0 %v6076_v41  ;;  %v16780_v41 = vld [vmem:[#allocation98_spill] sm:$0xff] }
 0xfb0   : > { %v14382_v56 = vpop.trf.xlu0 }
 0xfb1   : > { %16752 = vst [vmem:[#allocation23_spill] sm:$0xff] %v14382_v56 }
 0xfb2   : > { %6122 = vmatpush2.bf16.msra.mxu0 %v6075_v37  ;;  %v5210_v37 = vadd.f32 %v5209_v16, %v16782_v28 }
 0xfb3   : > { %6332 = vmatprep.subr.mxu0 %v6141_v57  ;;  %v6052_v57 = vadd.f32 %v6051_v47, %v14305_v8 }
 0xfb4   : > { %v14390_v27 = vpop.trf.xlu0 }
 0xfb5   : > { %6124 = vmatmul.mubr.bf16.vlgmr.msra.gmra.mxu0 %v6057_v50  ;;  %16755 = vst [vmem:[#allocation65_spill] sm:$0xff] %v14390_v27  ;;  %v6016_v50 = vrot.slane %v6015_v0, 2 }
 0xfb6   : > { %6333 = vmatpush1.msra.mxu0 %v6140_v14  ;;  %6366 = vmatprep.mubr.f32.mxu0 %v16731_v3  ;;  %v5211_v14 = vrot.slane %v5210_v37, 2 }
 0xfb8   : > { %v14395_v49 = vpop.trf.xlu0 }
 0xfb9   : > { %16757 = vst [vmem:[#allocation55_spill] sm:$0xff] %v14395_v49 }
 0xfbc   : > { %v14403_v45 = vpop.trf.xlu0 }
 0xfbd   : > { %8279 = vmatmul.mubr.msk.f32.vlgmr.msra.gmra.mxu0 %vm449_vm3, %v16732_v5  ;;  %16760 = vst [vmem:[#allocation20_spill] sm:$0xff] %v14403_v45  ;;  %v6053_v5 = vrot.slane %v6052_v57, 2 }
 0xfbe   : > { %6372 = vmatprep.mubr.f32.mxu0 %v16731_v3 }
 0xfc0   : > { %v14408_v60 = vpop.trf.xlu0 }
 0xfc1   : > { %8280 = vmatmul.mubr.msk.f32.gmra.mxu0 %vm449_vm3, %v16733_v4  ;;  %16762 = vst [vmem:[#allocation85_spill] sm:$0xff] %v14408_v60  ;;  %v6017_v4 = vadd.f32 %v6016_v50, %v6015_v0 }
 0xfc2   : > { %6378 = vmatprep.mubr.f32.mxu0 %v16731_v3 }
 0xfc4   : > { %v14416_v51 = vpop.trf.xlu0 }
 0xfc5   : > { %8281 = vmatmul.mubr.msk.f32.gmra.mxu0 %vm449_vm3, %v16734_v1  ;;  %16765 = vst [vmem:[#allocation56_spill] sm:$0xff] %v14416_v51  ;;  %v5212_v1 = vadd.f32 %v5211_v14, %v5210_v37 }
 0xfc6   : > { %6384 = vmatprep.mubr.f32.mxu0 %v16731_v3 }
 0xfc8   : > { %v14421_v7 = vpop.trf.xlu0 }
 0xfc9   : > { %8282 = vmatmul.mubr.msk.f32.gmra.mxu0 %vm449_vm3, %v16735_v43  ;;  %16767 = vst [vmem:[#allocation59_spill] sm:$0xff] %v14421_v7  ;;  %v6054_v43 = vadd.f32 %v6053_v5, %v6052_v57 }
 0xfca   : > { %6390 = vmatprep.mubr.f32.mxu0 %v16731_v3 }
 0xfcc   : > { %v14429_v48 = vpop.trf.xlu0 }
 0xfcd   : > { %8283 = vmatmul.mubr.msk.f32.gmra.mxu0 %vm449_vm3, %v16736_v25  ;;  %16770 = vst [vmem:[#allocation110_spill] sm:$0xff] %v14429_v48  ;;  %v6018_v25 = vrot.slane %v6017_v4, 1 }
 0xfce   : > { %6396 = vmatprep.mubr.f32.mxu0 %v16731_v3 }
 0xfd0   : > { %v14434_v32 = vpop.trf.xlu0 }
 0xfd1   : > { %8284 = vmatmul.mubr.msk.f32.gmra.mxu0 %vm449_vm3, %v16738_v17  ;;  %16772 = vst [vmem:[#allocation111_spill] sm:$0xff] %v14434_v32  ;;  %v5213_v17 = vrot.slane %v5212_v1, 1 }
 0xfd2   : > { %6402 = vmatprep.mubr.f32.mxu0 %v16731_v3 }
 0xfd4   : > { %v14442_v12 = vpop.trf.xlu0 }
 0xfd5   : > { %8285 = vmatmul.mubr.msk.f32.gmra.mxu0 %vm449_vm3, %v16739_v61  ;;  %16775 = vst [vmem:[#allocation112_spill] sm:$0xff] %v14442_v12  ;;  %v6055_v61 = vrot.slane %v6054_v43, 1 }
 0xfd6   : > { %6408 = vmatprep.mubr.f32.mxu0 %v16731_v3 }
 0xfd8   : > { %v14447_v24 = vpop.permute.xlu0 %836 }
 0xfd9   : > { %8286 = vmatmul.mubr.msk.f32.gmra.mxu0 %vm449_vm3, %v16741_v22  ;;  %16777 = vst [vmem:[#allocation113_spill] sm:$0xff] %v14447_v24  ;;  %v1086_v20 = vadd.f32 %v16779_v11, %v14447_v24  ;;  %v6019_v22 = vadd.f32 %v6018_v25, %v6017_v4 }
 0xfda   : > { %6414 = vmatprep.mubr.f32.mxu0 %v16731_v3 }
 0xfdb   : > { %v7742_v15 = vpack.c.bf16 %v1086_v20, %v1086_v20  ;;  %9256 = vrcp.f32 %v6019_v22 }
 0xfdd   : > { %8287 = vmatmul.mubr.msk.f32.gmra.mxu0 %vm449_vm3, %v16743_v59  ;;  %v5214_v59 = vadd.f32 %v5213_v17, %v5212_v1 }
 0xfde   : > { %6420 = vmatprep.mubr.f32.mxu0 %v16731_v3 }
 0xfdf   : > { %9258 = vrcp.f32 %v5214_v59 }
 0xfe1   : > { %8288 = vmatmul.mubr.msk.f32.gmra.mxu0 %vm449_vm3, %v16744_v9  ;;  %v6056_v9 = vadd.f32 %v6055_v61, %v6054_v43 }
 0xfe2   : > { %6426 = vmatprep.mubr.f32.mxu0 %v16731_v3 }
 0xfe3   : > { %9260 = vrcp.f32 %v6056_v9 }
 0xfe5   : > { %8289 = vmatmul.mubr.msk.f32.gmra.mxu0 %vm449_vm3, %v16746_v21 }
 0xfe6   : > { %6432 = vmatprep.mubr.f32.mxu0 %v16731_v3 }
 0xfe8   : > { %v9257_v63 = vpop.eup %9256 }
 0xfe9   : > { %8290 = vmatmul.mubr.msk.f32.gmra.mxu0 %vm449_vm3, %v16748_v54 }
 0xfea   : > { %6438 = vmatprep.mubr.f32.mxu0 %v16731_v3 }
 0xfec   : > { %v9259_v54 = vpop.eup %9258 }
 0xfed   : > { %8291 = vmatmul.mubr.msk.f32.gmra.mxu0 %vm449_vm3, %v16749_v36 }
 0xfee   : > { %6444 = vmatprep.mubr.f32.mxu0 %v16731_v3 }
 0xff0   : > { %v9261_v8 = vpop.eup %9260 }
 0xff1   : > { %8292 = vmatmul.mubr.msk.f32.gmra.mxu0 %vm449_vm3, %v16751_v40 }
 0xff2   : > { %6450 = vmatprep.mubr.f32.mxu0 %v16731_v3 }
 0xff5   : > { %8293 = vmatmul.mubr.msk.f32.gmra.mxu0 %vm449_vm3, %v16753_v13  ;;  %v16784_v13 = vld [vmem:[#allocation36_spill] sm:$0xff] }
 0xff6   : > { %6456 = vmatprep.mubr.f32.mxu0 %v16731_v3 }
 0xff9   : > { %8294 = vmatmul.mubr.msk.f32.gmra.mxu0 %vm449_vm3, %v16754_v6  ;;  %v14468_v6 = vmul.f32 %v9259_v54, %v16784_v13 }
 0xffa   : > { %6462 = vmatprep.mubr.f32.mxu0 %v16731_v3 }
 0xffb   : > { %16785 = vst [vmem:[#allocation115_spill] sm:$0xff] %v14468_v6 }
 0xffd   : > { %8295 = vmatmul.mubr.msk.f32.gmra.mxu0 %vm449_vm3, %v16756_v46 }
 0xffe   : > { %6468 = vmatprep.mubr.f32.mxu0 %v16731_v3 }
0x1001   : > { %8296 = vmatmul.mubr.msk.f32.gmra.mxu0 %vm449_vm3, %v16758_v52 }
0x1002   : > { %6474 = vmatprep.mubr.f32.mxu0 %v16731_v3 }
0x1005   : > { %8297 = vmatmul.mubr.msk.f32.gmra.mxu0 %vm449_vm3, %v16759_v26 }
0x1006   : > { %6480 = vmatprep.mubr.f32.mxu0 %v16731_v3 }
0x1009   : > { %8298 = vmatmul.mubr.msk.f32.gmra.mxu0 %vm449_vm3, %v16761_v44 }
0x100a   : > { %6486 = vmatprep.mubr.f32.mxu0 %v16731_v3 }
0x100d   : > { %8299 = vmatmul.mubr.msk.f32.gmra.mxu0 %vm449_vm3, %v16763_v18 }
0x100e   : > { %6492 = vmatprep.mubr.f32.mxu0 %v16731_v3 }
0x1011   : > { %8300 = vmatmul.mubr.msk.f32.gmra.mxu0 %vm449_vm3, %v16764_v23 }
0x1012   : > { %6498 = vmatprep.mubr.f32.mxu0 %v16731_v3 }
0x1015   : > { %8301 = vmatmul.mubr.msk.f32.gmra.mxu0 %vm449_vm3, %v16766_v30 }
0x1016   : > { %6504 = vmatprep.mubr.f32.mxu0 %v16731_v3 }
0x1019   : > { %8302 = vmatmul.mubr.msk.f32.gmra.mxu0 %vm449_vm3, %v16768_v29 }
0x101a   : > { %6510 = vmatprep.mubr.f32.mxu0 %v16731_v3 }
0x101d   : > { %8303 = vmatmul.mubr.msk.f32.gmra.mxu0 %vm449_vm3, %v16769_v31 }
0x101e   : > { %6516 = vmatprep.mubr.f32.mxu0 %v16731_v3 }
0x1021   : > { %8304 = vmatmul.mubr.msk.f32.gmra.mxu0 %vm449_vm3, %v16771_v38 }
0x1022   : > { %6522 = vmatprep.mubr.f32.mxu0 %v16731_v3 }
0x1025   : > { %8305 = vmatmul.mubr.msk.f32.gmra.mxu0 %vm449_vm3, %v16773_v53 }
0x1026   : > { %6528 = vmatprep.mubr.f32.mxu0 %v16731_v3 }
0x1029   : > { %8306 = vmatmul.mubr.msk.f32.gmra.mxu0 %vm449_vm3, %v16774_v2 }
0x102a   : > { %6534 = vmatprep.mubr.f32.mxu0 %v16731_v3 }
0x102d   : > { %8307 = vmatmul.mubr.msk.f32.gmra.mxu0 %vm449_vm3, %v16776_v35 }
0x102e   : > { %6540 = vmatprep.mubr.f32.mxu0 %v16731_v3 }
0x1031   : > { %8308 = vmatmul.mubr.msk.f32.gmra.mxu0 %vm449_vm3, %v16778_v19 }
0x1032   : > { %6546 = vmatprep.mubr.f32.mxu0 %v16731_v3 }
0x1035   : > { %8309 = vmatmul.mubr.msk.f32.gmra.mxu0 %vm449_vm3, %v16780_v41 }
0x1036   : > { %6552 = vmatprep.mubr.f32.mxu0 %v16731_v3 }
0x1039   : > { %8310 = vmatmul.mubr.msk.f32.gmra.mxu0 %vm449_vm3, %v16781_v55 }
0x103a   : > { %7807 = vmatprep.mubr.bf16.mxu0 %v7742_v15 }
0x1075   : > { %v6125_v21 = vpop.f32.mrf.mxu0 }
0x1076   : > { %v14465_v36 = vmul.f32 %v9257_v63, %v6125_v21 }
0x1077   : > { %v6127_v40 = vpop.f32.mrf.mxu0 }
0x1078   : > { %16783 = vst [vmem:[#allocation114_spill] sm:$0xff] %v14465_v36  ;;  %v14472_v26 = vmul.f32 %v9261_v8, %v6127_v40 }
0x1079   : > { %v6129_v44 = vpop.f32.mrf.mxu0 }
0x107a   : > { %16787 = vst [vmem:[#allocation117_spill] sm:$0xff] %v14472_v26 }
0x107b   : > { %v6130_v23 = vpop.f32.mrf.mxu0 }
0x107d   : > { %v14476_v30 = vpop.f32.mrf.mxu0 }
0x107f   : > { %v14478_v29 = vpop.f32.mrf.mxu0 }
0x1081   : > { %v14480_v31 = vpop.f32.mrf.mxu0 }
0x1083   : > { %v14482_v38 = vpop.f32.mrf.mxu0 }
0x1085   : > { %v14484_v53 = vpop.f32.mrf.mxu0 }
0x1086   : > { %v6559_v48 = vmax.f32 %v14476_v30, %v14484_v53 }
0x1087   : > { %v14486_v2 = vpop.f32.mrf.mxu0 }
0x1089   : > { %v14488_v35 = vpop.f32.mrf.mxu0 }
0x108a   : > { %v6560_v7 = vmax.f32 %v14480_v31, %v14488_v35 }
0x108b   : > { %v14490_v19 = vpop.f32.mrf.mxu0 }
0x108c   : > { %16788 = vst [vmem:[#allocation119_spill] sm:$0xff] %v14490_v19 }
0x108d   : > { %v14492_v11 = vpop.f32.mrf.mxu0 }
0x108e   : > { %v6561_v60 = vmax.f32 %v6559_v48, %v14492_v11 }
0x108f   : > { %v14494_v20 = vpop.f32.mrf.mxu0 }
0x1091   : > { %v14496_v41 = vpop.f32.mrf.mxu0 }
0x1092   : > { %v6562_v45 = vmax.f32 %v6560_v7, %v14496_v41 }
0x1093   : > { %v14498_v15 = vpop.f32.mrf.mxu0 }
0x1094   : > { %16789 = vst [vmem:[#allocation121_spill] sm:$0xff] %v14498_v15 }
0x1095   : > { %v14500_v55 = vpop.f32.mrf.mxu0 }
0x1096   : > { %v6563_v27 = vmax.f32 %v6561_v60, %v14500_v55 }
0x1097   : > { %v14502_v10 = vpop.f32.mrf.mxu0 }
0x1099   : > { %v14504_v28 = vpop.f32.mrf.mxu0 }
0x109a   : > { %v6564_v56 = vmax.f32 %v6562_v45, %v14504_v28 }
0x109b   : > { %v14506_v16 = vpop.f32.mrf.mxu0 }
0x109c   : > { %16790 = vst [vmem:[#allocation123_spill] sm:$0xff] %v14506_v16 }
0x109d   : > { %v14508_v47 = vpop.f32.mrf.mxu0 }
0x109e   : > { %16791 = vst [vmem:[#allocation102_spill] sm:$0xff] %v14508_v47  ;;  %v6565_v42 = vmax.f32 %v6563_v27, %v14508_v47 }
0x109f   : > { %v14510_v0 = vpop.f32.mrf.mxu0 }
0x10a0   : > { %16792 = vst [vmem:[#allocation103_spill] sm:$0xff] %v14510_v0 }
0x10a1   : > { %v14512_v37 = vpop.f32.mrf.mxu0 }
0x10a2   : > { %v6566_v58 = vmax.f32 %v6564_v56, %v14512_v37 }
0x10a3   : > { %v14514_v57 = vpop.f32.mrf.mxu0 }
0x10a4   : > { %16793 = vst [vmem:[#allocation105_spill] sm:$0xff] %v14514_v57 }
0x10a5   : > { %v14516_v50 = vpop.f32.mrf.mxu0 }
0x10a6   : > { %16794 = vst [vmem:[#allocation106_spill] sm:$0xff] %v14516_v50  ;;  %v6567_v34 = vmax.f32 %v6565_v42, %v14516_v50 }
0x10a7   : > { %v14518_v14 = vpop.f32.mrf.mxu0 }
0x10a9   : > { %v14520_v5 = vpop.f32.mrf.mxu0 }
0x10aa   : > { %v6568_v48 = vmax.f32 %v6566_v58, %v14520_v5 }
0x10ab   : > { %v14522_v4 = vpop.f32.mrf.mxu0 }
0x10ad   : > { %v14524_v1 = vpop.f32.mrf.mxu0 }
0x10ae   : > { %16795 = vst [vmem:[#allocation43_spill] sm:$0xff] %v14524_v1  ;;  %v6569_v7 = vmax.f32 %v6567_v34, %v14524_v1 }
0x10af   : > { %v14526_v43 = vpop.f32.mrf.mxu0 }
0x10b1   : > { %v14528_v25 = vpop.f32.mrf.mxu0 }
0x10b2   : > { %v6570_v60 = vmax.f32 %v6568_v48, %v14528_v25  ;;  %v6597_v48 = vmax.f32 %v14482_v38, %v14490_v19 }
0x10b3   : > { %v14530_v17 = vpop.f32.mrf.mxu0 }
0x10b5   : > { %v14532_v61 = vpop.f32.mrf.mxu0 }
0x10b6   : > { %v6571_v45 = vmax.f32 %v6569_v7, %v14532_v61 }
0x10b7   : > { %v14534_v22 = vpop.f32.mrf.mxu0 }
0x10b9   : > { %v14536_v59 = vpop.f32.mrf.mxu0 }
0x10ba   : > { %16796 = vst [vmem:[#allocation21_spill] sm:$0xff] %v14536_v59  ;;  %v6572_v27 = vmax.f32 %v6570_v60, %v14536_v59 }
0x10bb   : > { %v14538_v9 = vpop.f32.mrf.mxu0 }
0x10bd   : > { %v14540_v63 = vpop.f32.mrf.mxu0 }
0x10be   : > { %v6573_v56 = vmax.f32 %v6571_v45, %v14540_v63  ;;  %v6596_v45 = vmax.f32 %v14478_v29, %v14486_v2 }
0x10bf   : > { %v14542_v21 = vpop.f32.mrf.mxu0 }
0x10c1   : > { %v14544_v54 = vpop.f32.mrf.mxu0 }
0x10c2   : > { %v6574_v42 = vmax.f32 %v6572_v27, %v14544_v54  ;;  %v6599_v27 = vmax.f32 %v6597_v48, %v14498_v15 }
0x10c3   : > { %v14546_v8 = vpop.f32.mrf.mxu0 }
0x10c4   : > { %v6601_v19 = vmax.f32 %v6599_v27, %v14506_v16 }
0x10c5   : > { %v14548_v40 = vpop.f32.mrf.mxu0 }
0x10c6   : > { %16797 = vst [vmem:[#allocation22_spill] sm:$0xff] %v14548_v40  ;;  %v6575_v58 = vmax.f32 %v6573_v56, %v14548_v40  ;;  %v6598_v40 = vmax.f32 %v6596_v45, %v14494_v20  ;;  %v6603_v48 = vmax.f32 %v6601_v19, %v14514_v57 }
0x10c7   : > { %v14550_v13 = vpop.f32.mrf.mxu0 }
0x10c8   : > { %v6605_v27 = vmax.f32 %v6603_v48, %v14522_v4 }
0x10c9   : > { %v14552_v44 = vpop.f32.mrf.mxu0 }
0x10ca   : > { %16798 = vst [vmem:[#allocation95_spill] sm:$0xff] %v14552_v44  ;;  %v6576_v34 = vmax.f32 %v6574_v42, %v14552_v44  ;;  %v6607_v19 = vmax.f32 %v6605_v27, %v14530_v17 }
0x10cb   : > { %v14554_v23 = vpop.f32.mrf.mxu0 }
0x10cd   : > { %v14556_v52 = vpop.f32.mrf.mxu0 }
0x10ce   : > { %16799 = vst [vmem:[#allocation44_spill] sm:$0xff] %v14556_v52  ;;  %v6577_v7 = vmax.f32 %v6575_v58, %v14556_v52  ;;  %v6600_v52 = vmax.f32 %v6598_v40, %v14502_v10 }
0x10cf   : > { %v14558_v18 = vpop.f32.mrf.mxu0 }
0x10d0   : > { %v6602_v45 = vmax.f32 %v6600_v52, %v14510_v0  ;;  %v6609_v52 = vmax.f32 %v6607_v19, %v14538_v9 }
0x10d1   : > { %v14560_v46 = vpop.f32.mrf.mxu0 }
0x10d2   : > { %16800 = vst [vmem:[#allocation25_spill] sm:$0xff] %v14560_v46  ;;  %v6578_v60 = vmax.f32 %v6576_v34, %v14560_v46  ;;  %v6604_v40 = vmax.f32 %v6602_v45, %v14518_v14 }
0x10d3   : > { %v14562_v36 = vpop.f32.mrf.mxu0 }
0x10d4   : > { %v6606_v57 = vmax.f32 %v6604_v40, %v14526_v43 }
0x10d5   : > { %v14564_v6 = vpop.f32.mrf.mxu0 }
0x10d6   : > { %v6579_v56 = vmax.f32 %v6577_v7, %v14564_v6  ;;  %v6608_v48 = vmax.f32 %v6606_v57, %v14534_v22 }
0x10d7   : > { %v14566_v26 = vpop.f32.mrf.mxu0 }
0x10d9   : > { %v14568_v24 = vpop.f32.mrf.mxu0 }
0x10da   : > { %v6580_v42 = vmax.f32 %v6578_v60, %v14568_v24 }
0x10db   : > { %v14570_v12 = vpop.f32.mrf.mxu0 }
0x10dd   : > { %v14572_v32 = vpop.f32.mrf.mxu0 }
0x10de   : > { %v6581_v58 = vmax.f32 %v6579_v56, %v14572_v32 }
0x10df   : > { %v14578_v51 = vpop.f32.mrf.mxu0 }
0x10e1   : > { %v14582_v49 = vpop.f32.mrf.mxu0 }
0x10e2   : > { %v6582_v34 = vmax.f32 %v6580_v42, %v14582_v49 }
0x10e3   : > { %v14586_v62 = vpop.f32.mrf.mxu0 }
0x10e5   : > { %v14590_v33 = vpop.f32.mrf.mxu0 }
0x10e6   : > { %v6583_v7 = vmax.f32 %v6581_v58, %v14590_v33 }
0x10e7   : > { %v14594_v39 = vpop.f32.mrf.mxu0 }
0x10e9   : > { %v14598_v3 = vpop.f32.mrf.mxu0 }
0x10ea   : > { %v6584_v60 = vmax.f32 %v6582_v34, %v14598_v3 }
0x10eb   : > { %v14602_v47 = vpop.f32.mrf.mxu0 }
0x10ed   : > { %v14606_v50 = vpop.f32.mrf.mxu0 }
0x10ee   : > { %16801 = vst [vmem:[#allocation18_spill] sm:$0xff] %v14606_v50  ;;  %v6585_v56 = vmax.f32 %v6583_v7, %v14606_v50  ;;  %v6611_v7 = vmax.f32 %v6609_v52, %v14546_v8 }
0x10ef   : > { %v14610_v1 = vpop.f32.mrf.mxu0 }
0x10f0   : > { %v6613_v45 = vmax.f32 %v6611_v7, %v14554_v23 }
0x10f1   : > { %v14616_v59 = vpop.f32.mrf.mxu0 }
0x10f2   : > { %16802 = vst [vmem:[#allocation84_spill] sm:$0xff] %v14616_v59  ;;  %v6586_v42 = vmax.f32 %v6584_v60, %v14616_v59  ;;  %v6610_v59 = vmax.f32 %v6608_v48, %v14542_v21 }
0x10f3   : > { %v14623_v44 = vpop.f32.mrf.mxu0 }
0x10f4   : > { %v6612_v27 = vmax.f32 %v6610_v59, %v14550_v13 }
0x10f5   : > { %v14629_v46 = vpop.f32.mrf.mxu0 }
0x10f6   : > { %v6587_v58 = vmax.f32 %v6585_v56, %v14629_v46  ;;  %v6615_v56 = vmax.f32 %v6613_v45, %v14562_v36  ;;  %v6614_v40 = vmax.f32 %v6612_v27, %v14558_v18 }
0x10f7   : > { %v14635_v15 = vpop.f32.mrf.mxu0 }
0x10f8   : > { %v6617_v19 = vmax.f32 %v6615_v56, %v14570_v12  ;;  %v6616_v57 = vmax.f32 %v6614_v40, %v14566_v26 }
0x10f9   : > { %v14641_v16 = vpop.f32.mrf.mxu0 }
0x10fa   : > { %v6588_v34 = vmax.f32 %v6586_v42, %v14641_v16  ;;  %v6618_v48 = vmax.f32 %v6616_v57, %v14578_v51 }
0x10fc   : > { %v6589_v0 = vmax.f32 %v6587_v58, %v6588_v34  ;;  %v6619_v34 = vmax.f32 %v6617_v19, %v14586_v62  ;;  %v6620_v59 = vmax.f32 %v6618_v48, %v14594_v39 }
0x10fe   : > { %v6590_v60 = vrot.slane %v6589_v0, 4  ;;  %v6621_v7 = vmax.f32 %v6619_v34, %v14602_v47  ;;  %v6622_v27 = vmax.f32 %v6620_v59, %v14610_v1 }
0x1100   : > { %v6591_v50 = vmax.f32 %v6589_v0, %v6590_v60  ;;  %v14661_v0 = vpop.f32.mrf.mxu0  ;;  %v6623_v60 = vmax.f32 %v6621_v7, %v14623_v44  ;;  %v6624_v56 = vmax.f32 %v6622_v27, %v14635_v15 }
0x1102   : > { %v6592_v42 = vrot.slane %v6591_v50, 2 }
0x1104   : > { %v6593_v58 = vmax.f32 %v6591_v50, %v6592_v42  ;;  %v6625_v50 = vmax.f32 %v6623_v60, %v14661_v0 }
0x1106   : > { %v6594_v52 = vrot.slane %v6593_v58, 1  ;;  %v6626_v57 = vmax.f32 %v6624_v56, %v6625_v50 }
0x1108   : > { %v14665_v45 = vmax.f32 %v6593_v58, %v6594_v52  ;;  %v6627_v59 = vrot.slane %v6626_v57, 4 }
0x110a   : > { %v6633_v42 = vsub.f32 %v14476_v30, %v14665_v45  ;;  %v6635_v40 = vsub.f32 %v14480_v31, %v14665_v45  ;;  %v6637_v19 = vsub.f32 %v14484_v53, %v14665_v45  ;;  %v6639_v58 = vsub.f32 %v14488_v35, %v14665_v45 }
0x110b   : > { %v6641_v48 = vsub.f32 %v14492_v11, %v14665_v45  ;;  %v6643_v30 = vsub.f32 %v14496_v41, %v14665_v45  ;;  %v6645_v53 = vsub.f32 %v14500_v55, %v14665_v45  ;;  %v6628_v27 = vmax.f32 %v6626_v57, %v6627_v59  ;;  %v16803_v11 = vld [vmem:[#allocation102_spill] sm:$0xff] }
0x110c   : > { %v6697_v34 = vmul.f32 1.442695, %v6633_v42  ;;  %v6701_v52 = vmul.f32 1.442695, %v6635_v40  ;;  %v6705_v7 = vmul.f32 1.442695, %v6637_v19  ;;  %v6647_v35 = vsub.f32 %v14504_v28, %v14665_v45 }
0x110d   : > { %v6709_v31 = vmul.f32 1.442695, %v6639_v58  ;;  %v6713_v60 = vmul.f32 1.442695, %v6641_v48  ;;  %v6717_v50 = vmul.f32 1.442695, %v6643_v30  ;;  %v6649_v56 = vsub.f32 %v16803_v11, %v14665_v45 }
0x110e   : > { %9262 = vpow2.f32 %v6697_v34  ;;  %v6721_v42 = vmul.f32 1.442695, %v6645_v53  ;;  %v6651_v41 = vsub.f32 %v14512_v37, %v14665_v45  ;;  %v6629_v40 = vrot.slane %v6628_v27, 2  ;;  %v16804_v19 = vld [vmem:[#allocation106_spill] sm:$0xff]  ;;  %v16805_v28 = vld [vmem:[#allocation43_spill] sm:$0xff] }
0x110f   : > { %9264 = vpow2.f32 %v6701_v52  ;;  %v6653_v55 = vsub.f32 %v16804_v19, %v14665_v45  ;;  %v6725_v58 = vmul.f32 1.442695, %v6647_v35  ;;  %v6655_v57 = vsub.f32 %v14520_v5, %v14665_v45 }
0x1110   : > { %9266 = vpow2.f32 %v6705_v7  ;;  %v6657_v34 = vsub.f32 %v16805_v28, %v14665_v45  ;;  %v6729_v52 = vmul.f32 1.442695, %v6649_v56  ;;  %v6659_v48 = vsub.f32 %v14528_v25, %v14665_v45 }
0x1111   : > { %9268 = vpow2.f32 %v6709_v31  ;;  %v6733_v7 = vmul.f32 1.442695, %v6651_v41  ;;  %v6630_v59 = vmax.f32 %v6628_v27, %v6629_v40  ;;  %v6661_v30 = vsub.f32 %v14532_v61, %v14665_v45 }
0x1112   : > { %9270 = vpow2.f32 %v6713_v60  ;;  %v6737_v31 = vmul.f32 1.442695, %v6653_v55  ;;  %v6677_v5 = vsub.f32 %v14564_v6, %v14665_v45  ;;  %v6741_v60 = vmul.f32 1.442695, %v6655_v57 }
0x1113   : > { %9272 = vpow2.f32 %v6717_v50  ;;  %v6679_v35 = vsub.f32 %v14568_v24, %v14665_v45  ;;  %v6745_v25 = vmul.f32 1.442695, %v6657_v34  ;;  %v6681_v61 = vsub.f32 %v14572_v32, %v14665_v45 }
0x1114   : > { %9274 = vpow2.f32 %v6721_v42  ;;  %v6749_v11 = vmul.f32 1.442695, %v6659_v48  ;;  %v6631_v56 = vrot.slane %v6630_v59, 1  ;;  %v6683_v6 = vsub.f32 %v14582_v49, %v14665_v45  ;;  %v16807_v49 = vld [vmem:[#allocation21_spill] sm:$0xff] }
0x1115   : > { %9276 = vpow2.f32 %v6725_v58  ;;  %v6753_v42 = vmul.f32 1.442695, %v6661_v30  ;;  %v6685_v40 = vsub.f32 %v14590_v33, %v14665_v45  ;;  %v6785_v19 = vmul.f32 1.442695, %v6677_v5  ;;  %v16808_v5 = vld [vmem:[#allocation22_spill] sm:$0xff] }
0x1116   : > { %9278 = vpow2.f32 %v6729_v52  ;;  %v6687_v32 = vsub.f32 %v14598_v3, %v14665_v45  ;;  %v6789_v55 = vmul.f32 1.442695, %v6679_v35  ;;  %v6663_v28 = vsub.f32 %v16807_v49, %v14665_v45 }
0x1117   : > { %9280 = vpow2.f32 %v6733_v7  ;;  %v6793_v34 = vmul.f32 1.442695, %v6681_v61  ;;  %v14728_v52 = vmax.f32 %v6630_v59, %v6631_v56  ;;  %v6665_v33 = vsub.f32 %v14540_v63, %v14665_v45 }
0x1118   : > { %9282 = vpow2.f32 %v6737_v31  ;;  %v6797_v48 = vmul.f32 1.442695, %v6683_v6  ;;  %v6667_v30 = vsub.f32 %v14544_v54, %v14665_v45  ;;  %v6801_v31 = vmul.f32 1.442695, %v6685_v40  ;;  %v16809_v6 = vld [vmem:[#allocation95_spill] sm:$0xff] }
0x1119   : > { %9284 = vpow2.f32 %v6741_v60  ;;  %v6669_v60 = vsub.f32 %v16808_v5, %v14665_v45  ;;  %v6805_v59 = vmul.f32 1.442695, %v6687_v32  ;;  %v6757_v63 = vmul.f32 1.442695, %v6663_v28 }
0x111a   : > { %9286 = vpow2.f32 %v6745_v25  ;;  %v6761_v61 = vmul.f32 1.442695, %v6665_v33 }
0x111b   : > { %v14698_v37 = vpop.eup %9262  ;;  %9288 = vpow2.f32 %v6749_v11  ;;  %v6636_v11 = vsub.f32 %v14482_v38, %v14728_v52  ;;  %v6769_v40 = vmul.f32 1.442695, %v6669_v60 }
0x111c   : > { %v14702_v53 = vpop.eup %9264  ;;  %9290 = vpow2.f32 %v6753_v42  ;;  %v6671_v42 = vsub.f32 %v16809_v6, %v14665_v45 }
0x111d   : > { %16806 = vst [vmem:[#allocation90_spill] sm:$0xff] %v14702_v53  ;;  %v6825_v27 = vadd.f32 %v14702_v53, %v14698_v37  ;;  %v14710_v50 = vpop.eup %9266  ;;  %9292 = vpow2.f32 %v6785_v19 }
0x111e   : > { %v14717_v41 = vpop.eup %9268  ;;  %9294 = vpow2.f32 %v6789_v55  ;;  %v16810_v55 = vld [vmem:[#allocation44_spill] sm:$0xff] }
0x111f   : > { %v6826_v24 = vadd.f32 %v14710_v50, %v6825_v27  ;;  %v14724_v57 = vpop.eup %9270  ;;  %9296 = vpow2.f32 %v6793_v34  ;;  %v6634_v27 = vsub.f32 %v14478_v29, %v14728_v52  ;;  %v6638_v29 = vsub.f32 %v14486_v2, %v14728_v52  ;;  %v16811_v34 = vld [vmem:[#allocation119_spill] sm:$0xff]  ;;  %v16812_v2 = vld [vmem:[#allocation25_spill] sm:$0xff] }
0x1120   : > { %v14733_v7 = vpop.eup %9272  ;;  %9298 = vpow2.f32 %v6797_v48  ;;  %v6640_v33 = vsub.f32 %v16811_v34, %v14728_v52  ;;  %v6703_v48 = vmul.f32 1.442695, %v6636_v11 }
0x1121   : > { %v6827_v58 = vadd.f32 %v14717_v41, %v6826_v24  ;;  %v14740_v25 = vpop.eup %9274  ;;  %v6765_v24 = vmul.f32 1.442695, %v6667_v30  ;;  %9300 = vpow2.f32 %v6801_v31  ;;  %v6699_v38 = vmul.f32 1.442695, %v6634_v27 }
0x1122   : > { %v14747_v56 = vpop.eup %9276  ;;  %9302 = vpow2.f32 %v6805_v59  ;;  %v6675_v30 = vsub.f32 %v16812_v2, %v14665_v45  ;;  %v6773_v31 = vmul.f32 1.442695, %v6671_v42  ;;  %v6642_v59 = vsub.f32 %v14494_v20, %v14728_v52 }
0x1123   : > { %v6828_v3 = vadd.f32 %v14724_v57, %v6827_v58  ;;  %v14754_v32 = vpop.eup %9278  ;;  %v6673_v58 = vsub.f32 %v16810_v55, %v14665_v45  ;;  %9304 = vpow2.f32 %v6757_v63  ;;  %v6646_v42 = vsub.f32 %v14502_v10, %v14728_v52 }
0x1124   : > { %v14758_v49 = vpop.eup %9280  ;;  %9306 = vpow2.f32 %v6761_v61  ;;  %v16813_v61 = vld [vmem:[#allocation121_spill] sm:$0xff]  ;;  %v6781_v20 = vmul.f32 1.442695, %v6675_v30  ;;  %v6715_v34 = vmul.f32 1.442695, %v6642_v59  ;;  %v6658_v10 = vsub.f32 %v14526_v43, %v14728_v52 }
0x1125   : > { %v6829_v35 = vadd.f32 %v14733_v7, %v6828_v3  ;;  %v14763_v3 = vpop.eup %9282  ;;  %9308 = vpow2.f32 %v6765_v24  ;;  %v6777_v27 = vmul.f32 1.442695, %v6673_v58  ;;  %v6711_v24 = vmul.f32 1.442695, %v6640_v33 }
0x1126   : > { %v14767_v5 = vpop.eup %9284  ;;  %9310 = vpow2.f32 %v6769_v40  ;;  %v6660_v33 = vsub.f32 %v14530_v17, %v14728_v52  ;;  %v6664_v43 = vsub.f32 %v14538_v9, %v14728_v52 }
0x1127   : > { %v6830_v54 = vadd.f32 %v14740_v25, %v6829_v35  ;;  %v6707_v35 = vmul.f32 1.442695, %v6638_v29  ;;  %v14772_v63 = vpop.eup %9286  ;;  %9312 = vpow2.f32 %v6699_v38  ;;  %v16815_v38 = vld [vmem:[#allocation103_spill] sm:$0xff] }
0x1128   : > { %v14776_v11 = vpop.eup %9288  ;;  %9314 = vpow2.f32 %v6703_v48 }
0x1129   : > { %v6831_v19 = vadd.f32 %v14747_v56, %v6830_v54  ;;  %v6644_v54 = vsub.f32 %v16813_v61, %v14728_v52  ;;  %v14781_v40 = vpop.eup %9290  ;;  %9316 = vpow2.f32 %v6773_v31 }
0x112a   : > { %v14785_v55 = vpop.eup %9292  ;;  %9318 = vpow2.f32 %v6707_v35 }
0x112b   : > { %v6832_v28 = vadd.f32 %v14754_v32, %v6831_v19  ;;  %v16814_v19 = vld [vmem:[#allocation123_spill] sm:$0xff]  ;;  %v14790_v2 = vpop.eup %9294  ;;  %9320 = vpow2.f32 %v6777_v27  ;;  %v6719_v48 = vmul.f32 1.442695, %v6644_v54  ;;  %v6662_v27 = vsub.f32 %v14534_v22, %v14728_v52 }
0x112c   : > { %v6648_v29 = vsub.f32 %v16814_v19, %v14728_v52  ;;  %v14796_v30 = vpop.eup %9296  ;;  %9322 = vpow2.f32 %v6711_v24  ;;  %v6747_v22 = vmul.f32 1.442695, %v6658_v10 }
0x112d   : > { %v6833_v60 = vadd.f32 %v14758_v49, %v6832_v28  ;;  %v6650_v28 = vsub.f32 %v16815_v38, %v14728_v52  ;;  %v14801_v59 = vpop.eup %9298  ;;  %9324 = vpow2.f32 %v6781_v20  ;;  %v16816_v20 = vld [vmem:[#allocation105_spill] sm:$0xff] }
0x112e   : > { %v6727_v17 = vmul.f32 1.442695, %v6648_v29  ;;  %v14807_v61 = vpop.eup %9300  ;;  %9326 = vpow2.f32 %v6715_v34  ;;  %v6652_v19 = vsub.f32 %v16816_v20, %v14728_v52  ;;  %v6751_v29 = vmul.f32 1.442695, %v6660_v33 }
0x112f   : > { %v6834_v6 = vadd.f32 %v14763_v3, %v6833_v60  ;;  %v6723_v60 = vmul.f32 1.442695, %v6646_v42  ;;  %v14812_v24 = vpop.eup %9302  ;;  %9328 = vpow2.f32 %v6719_v48  ;;  %v6654_v34 = vsub.f32 %v14518_v14, %v14728_v52 }
0x1130   : > { %v6656_v48 = vsub.f32 %v14522_v4, %v14728_v52  ;;  %v6735_v42 = vmul.f32 1.442695, %v6652_v19  ;;  %v16822_v19 = vld [vmem:[#allocation84_spill] sm:$0xff] }
0x1131   : > { %v6835_v58 = vadd.f32 %v14767_v5, %v6834_v6  ;;  %v6731_v6 = vmul.f32 1.442695, %v6650_v28  ;;  %9330 = vpow2.f32 %v6723_v60  ;;  %v6759_v60 = vmul.f32 1.442695, %v6664_v43 }
0x1132   : > { %9332 = vpow2.f32 %v6727_v17  ;;  %v6743_v43 = vmul.f32 1.442695, %v6656_v48 }
0x1133   : > { %v6836_v31 = vadd.f32 %v14772_v63, %v6835_v58  ;;  %v14816_v58 = vpop.eup %9304  ;;  %9334 = vpow2.f32 %v6731_v6 }
0x1134   : > { %v14821_v28 = vpop.eup %9306  ;;  %9336 = vpow2.f32 %v6747_v22 }
0x1135   : > { %v6837_v54 = vadd.f32 %v14776_v11, %v6836_v31  ;;  %16817 = vst [vmem:[#allocation53_spill] sm:$0xff] %v14821_v28  ;;  %v6755_v31 = vmul.f32 1.442695, %v6662_v27  ;;  %v14825_v35 = vpop.eup %9308  ;;  %9338 = vpow2.f32 %v6751_v29  ;;  %v16820_v27 = vld [vmem:[#allocation18_spill] sm:$0xff]  ;;  %v6691_v29 = vsub.f32 %v16822_v19, %v14665_v45 }
0x1136   : > { %16818 = vst [vmem:[#allocation54_spill] sm:$0xff] %v14825_v35  ;;  %v14830_v33 = vpop.eup %9310  ;;  %v6689_v17 = vsub.f32 %v16820_v27, %v14665_v45  ;;  %v6686_v27 = vsub.f32 %v14594_v39, %v14728_v52 }
0x1137   : > { %v6838_v9 = vadd.f32 %v14781_v40, %v6837_v54  ;;  %16819 = vst [vmem:[#allocation58_spill] sm:$0xff] %v14830_v33  ;;  %v14832_v54 = vpop.eup %9312  ;;  %9340 = vpow2.f32 %v6755_v31 }
0x1138   : > { %v14835_v14 = vpop.eup %9314  ;;  %9342 = vpow2.f32 %v6759_v60  ;;  %v6809_v60 = vmul.f32 1.442695, %v6689_v17  ;;  %v6695_v17 = vsub.f32 %v14641_v16, %v14665_v45 }
0x1139   : > { %v6839_v10 = vadd.f32 %v14816_v58, %v6838_v9  ;;  %v6739_v9 = vmul.f32 1.442695, %v6654_v34  ;;  %v14839_v38 = vpop.eup %9316  ;;  %v6862_v6 = vadd.f32 %v14835_v14, %v14832_v54  ;;  %v6693_v34 = vsub.f32 %v14629_v46, %v14665_v45 }
0x113a   : > { %16821 = vst [vmem:[#allocation60_spill] sm:$0xff] %v14839_v38  ;;  %v14844_v22 = vpop.eup %9318  ;;  %9344 = vpow2.f32 %v6735_v42  ;;  %v6668_v45 = vsub.f32 %v14546_v8, %v14728_v52 }
0x113b   : > { %v6840_v20 = vadd.f32 %v14821_v28, %v6839_v10  ;;  %v14848_v10 = vpop.eup %9320  ;;  %9346 = vpow2.f32 %v6739_v9  ;;  %v6688_v28 = vsub.f32 %v14602_v47, %v14728_v52  ;;  %v6817_v39 = vmul.f32 1.442695, %v6693_v34 }
0x113c   : > { %v14854_v48 = vpop.eup %9322  ;;  %9348 = vpow2.f32 %v6743_v43  ;;  %v6666_v47 = vsub.f32 %v14542_v21, %v14728_v52  ;;  %v6803_v43 = vmul.f32 1.442695, %v6686_v27 }
0x113d   : > { %v6841_v4 = vadd.f32 %v14825_v35, %v6840_v20  ;;  %v6863_v20 = vadd.f32 %v14844_v22, %v6862_v6  ;;  %v14858_v35 = vpop.eup %9324  ;;  %9350 = vpow2.f32 %v6809_v60  ;;  %v6670_v60 = vsub.f32 %v14550_v13, %v14728_v52 }
0x113e   : > { %16823 = vst [vmem:[#allocation62_spill] sm:$0xff] %v14858_v35  ;;  %v14864_v42 = vpop.eup %9326 }
0x113f   : > { %v6842_v31 = vadd.f32 %v14830_v33, %v6841_v4  ;;  %v6864_v46 = vadd.f32 %v14854_v48, %v6863_v20  ;;  %v6813_v4 = vmul.f32 1.442695, %v6691_v29  ;;  %v14866_v6 = vpop.eup %9328 }
0x1141   : > { %v6843_v19 = vadd.f32 %v14839_v38, %v6842_v31  ;;  %v6865_v33 = vadd.f32 %v14864_v42, %v6864_v46  ;;  %v14872_v31 = vpop.eup %9330  ;;  %v6807_v38 = vmul.f32 1.442695, %v6688_v28  ;;  %9352 = vpow2.f32 %v6813_v4 }
0x1142   : > { %v14876_v20 = vpop.eup %9332  ;;  %9354 = vpow2.f32 %v6817_v39  ;;  %v6763_v4 = vmul.f32 1.442695, %v6666_v47  ;;  %v6767_v39 = vmul.f32 1.442695, %v6668_v45  ;;  %v6771_v47 = vmul.f32 1.442695, %v6670_v60 }
0x1143   : > { %v6844_v9 = vadd.f32 %v14848_v10, %v6843_v19  ;;  %v6866_v53 = vadd.f32 %v14866_v6, %v6865_v33  ;;  %v14880_v16 = vpop.eup %9334  ;;  %v6821_v19 = vmul.f32 1.442695, %v6695_v17  ;;  %9356 = vpow2.f32 %v6803_v43 }
0x1144   : > { %v9337_v34 = vpop.eup %9336  ;;  %9358 = vpow2.f32 %v6807_v38  ;;  %v6672_v17 = vsub.f32 %v14554_v23, %v14728_v52  ;;  %v6674_v38 = vsub.f32 %v14558_v18, %v14728_v52 }
0x1145   : > { %v6845_v29 = vadd.f32 %v14858_v35, %v6844_v9  ;;  %v6867_v27 = vadd.f32 %v14872_v31, %v6866_v53  ;;  %v9339_v46 = vpop.eup %9338  ;;  %9360 = vpow2.f32 %v6821_v19  ;;  %v6678_v35 = vsub.f32 %v14566_v26, %v14728_v52 }
0x1146   : > { %v14888_v28 = vpop.eup %9340  ;;  %9362 = vpow2.f32 %v6763_v4  ;;  %v6914_v19 = vpack.c.bf16 %v9339_v46, %v9337_v34  ;;  %v6775_v60 = vmul.f32 1.442695, %v6672_v17  ;;  %v6696_v4 = vsub.f32 %v14661_v0, %v14728_v52 }
0x1147   : > { %v6846_v21 = vadd.f32 %v14785_v55, %v6845_v29  ;;  %v6868_v8 = vadd.f32 %v14876_v20, %v6867_v27  ;;  %v14892_v9 = vpop.eup %9342  ;;  %9364 = vpow2.f32 %v6767_v39  ;;  %v6680_v17 = vsub.f32 %v14570_v12, %v14728_v52 }
0x1148   : > { %v6916_v43 = vpack.c.bf16 %v14892_v9, %v14888_v28  ;;  %v9345_v29 = vpop.eup %9344  ;;  %9366 = vpow2.f32 %v6771_v47  ;;  %v6690_v0 = vsub.f32 %v14610_v1, %v14728_v52  ;;  %v6692_v12 = vsub.f32 %v14623_v44, %v14728_v52 }
0x1149   : > { %v6847_v33 = vadd.f32 %v14790_v2, %v6846_v21  ;;  %v6869_v13 = vadd.f32 %v14880_v16, %v6868_v8  ;;  %v6915_v21 = vpack.c.bf16 %v14816_v58, %v14781_v40  ;;  %v9347_v27 = vpop.eup %9346  ;;  %v6676_v8 = vsub.f32 %v14562_v36, %v14728_v52 }
0x114a   : > { %6933 = vmatprep.subr.bf16.mxu1 %v6916_v43  ;;  %v6694_v58 = vsub.f32 %v14635_v15, %v14728_v52  ;;  %v6913_v36 = vpack.c.bf16 %v14776_v11, %v14772_v63  ;;  %v6682_v15 = vsub.f32 %v14578_v51, %v14728_v52  ;;  %9368 = vpow2.f32 %v6775_v60 }
0x114b   : > { %v6848_v53 = vadd.f32 %v14796_v30, %v6847_v33  ;;  %v6870_v45 = vadd.f32 %v9345_v29, %v6869_v13  ;;  %v9349_v33 = vpop.eup %9348  ;;  %6934 = vmatpush1.bf16.msra.mxu1 %v6915_v21  ;;  %v6783_v39 = vmul.f32 1.442695, %v6676_v8  ;;  %v6787_v11 = vmul.f32 1.442695, %v6678_v35 }
0x114c   : > { %6935 = vmatprep.subr.bf16.mxu1 %v6914_v19  ;;  %v6912_v43 = vpack.c.bf16 %v9349_v33, %v9347_v27  ;;  %v14917_v21 = vpop.eup %9350  ;;  %v6823_v51 = vmul.f32 1.442695, %v6696_v4  ;;  %v6911_v1 = vpack.c.bf16 %v14767_v5, %v14763_v3  ;;  %v6910_v35 = vpack.c.bf16 %v9345_v29, %v14880_v16 }
0x114d   : > { %v6849_v23 = vadd.f32 %v14801_v59, %v6848_v53  ;;  %v6871_v40 = vadd.f32 %v9347_v27, %v6870_v45  ;;  %v6779_v53 = vmul.f32 1.442695, %v6674_v38  ;;  %v6684_v8 = vsub.f32 %v14586_v62, %v14728_v52 }
0x114e   : > { %v14925_v38 = vpop.eup %9352  ;;  %v6791_v44 = vmul.f32 1.442695, %v6680_v17  ;;  %v6811_v16 = vmul.f32 1.442695, %v6690_v0  ;;  %v6815_v29 = vmul.f32 1.442695, %v6692_v12  ;;  %v6909_v62 = vpack.c.bf16 %v14758_v49, %v14754_v32 }
0x114f   : > { %v6850_v18 = vadd.f32 %v14807_v61, %v6849_v23  ;;  %v6872_v26 = vadd.f32 %v9349_v33, %v6871_v40  ;;  %6936 = vmatpush1.bf16.msra.mxu1 %v6913_v36  ;;  %v14928_v27 = vpop.eup %9354  ;;  %v6819_v23 = vmul.f32 1.442695, %v6694_v58  ;;  %9370 = vpow2.f32 %v6779_v53 }
0x1150   : > { %6937 = vmatprep.subr.bf16.mxu1 %v6912_v43  ;;  %v14934_v45 = vpop.eup %9356  ;;  %9372 = vpow2.f32 %v6783_v39  ;;  %v6908_v58 = vpack.c.bf16 %v14876_v20, %v14872_v31  ;;  %v6799_v4 = vmul.f32 1.442695, %v6684_v8  ;;  %v6907_v32 = vpack.c.bf16 %v14747_v56, %v14740_v25 }
0x1151   : > { %v6851_v13 = vadd.f32 %v14812_v24, %v6850_v18  ;;  %v6873_v47 = vadd.f32 %v9337_v34, %v6872_v26  ;;  %v14938_v34 = vpop.eup %9358  ;;  %v6795_v18 = vmul.f32 1.442695, %v6682_v15  ;;  %9374 = vpow2.f32 %v6787_v11 }
0x1152   : > { %v6928_v5 = vpack.c.bf16 %v14938_v34, %v14934_v45  ;;  %9376 = vpow2.f32 %v6819_v23  ;;  %v6906_v31 = vpack.c.bf16 %v14866_v6, %v14864_v42  ;;  %v6905_v26 = vpack.c.bf16 %v14733_v7, %v14724_v57 }
0x1153   : > { %v6852_v63 = vadd.f32 %v14917_v21, %v6851_v13  ;;  %v6874_v33 = vadd.f32 %v9339_v46, %v6873_v47  ;;  %6938 = vmatpush1.bf16.msra.mxu1 %v6911_v1  ;;  %v9361_v46 = vpop.eup %9360  ;;  %9378 = vpow2.f32 %v6823_v51  ;;  %v6904_v17 = vpack.c.bf16 %v14854_v48, %v14844_v22  ;;  %v16824_v48 = vld [vmem:[#allocation90_spill] sm:$0xff] }
0x1154   : > { %6939 = vmatprep.subr.bf16.mxu1 %v6910_v35  ;;  %9380 = vpow2.f32 %v6791_v44  ;;  %v6903_v42 = vpack.c.bf16 %v14717_v41, %v14710_v50  ;;  %v6901_v47 = vpack.c.bf16 %v16824_v48, %v14698_v37  ;;  %v6929_v35 = vpack.c.bf16 %v14925_v38, %v14917_v21  ;;  %v16851_v48 = vld [vmem:[#allocation110_spill] sm:$0xff] }
0x1155   : > { %v6853_v19 = vadd.f32 %v14925_v38, %v6852_v63  ;;  %v6875_v3 = vadd.f32 %v14888_v28, %v6874_v33  ;;  %v14953_v28 = vpop.eup %9362  ;;  %9382 = vpow2.f32 %v6795_v18  ;;  %v6902_v63 = vpack.c.bf16 %v14835_v14, %v14832_v54 }
0x1156   : > { %v14956_v36 = vpop.eup %9364  ;;  %9384 = vpow2.f32 %v6811_v16  ;;  %v16826_v21 = vpack.c.bf16 %v14801_v59, %v14796_v30  ;;  %v16829_v16 = vld [vmem:[#allocation58_spill] sm:$0xff] }
0x1157   : > { %v6854_v60 = vadd.f32 %v14928_v27, %v6853_v19  ;;  %v6876_v40 = vadd.f32 %v14892_v9, %v6875_v3  ;;  %6940 = vmatpush1.bf16.msra.mxu1 %v6909_v62  ;;  %9386 = vpow2.f32 %v6815_v29  ;;  %v9367_v20 = vpop.eup %9366  ;;  %v6931_v19 = vpack.c.bf16 %v9361_v46, %v14928_v27  ;;  %v16830_v29 = vld [vmem:[#allocation60_spill] sm:$0xff] }
0x1158   : > { %6941 = vmatprep.subr.bf16.mxu1 %v6908_v58  ;;  %9388 = vpow2.f32 %v6799_v4  ;;  %v9369_v13 = vpop.eup %9368  ;;  %v16825_v27 = vpack.c.bf16 %v14812_v24, %v14807_v61  ;;  %v6919_v62 = vpack.c.bf16 %v16830_v29, %v16829_v16  ;;  %v6918_v59 = vpack.c.bf16 %v14956_v36, %v14953_v28  ;;  %v16832_v58 = vld [vmem:[#allocation48_spill] sm:$0xff]  ;;  %v16834_v4 = vld [vmem:[#allocation34_spill] sm:$0xff] }
0x1159   : > { %v14948_v52 = vadd.f32 %v9361_v46, %v6854_v60  ;;  %v6877_v53 = vadd.f32 %v14953_v28, %v6876_v40  ;;  %v6920_v24 = vpack.c.bf16 %v9369_v13, %v9367_v20  ;;  %v16831_v40 = vld [vmem:[#allocation35_spill] sm:$0xff]  ;;  %v16838_v28 = vld [vmem:[#allocation100_spill] sm:$0xff] }
0x115b   : > { %v6878_v49 = vadd.f32 %v14956_v36, %v6877_v53  ;;  %6942 = vmatpush1.bf16.msra.mxu1 %v6907_v32  ;;  %v16836_v32 = vld [vmem:[#allocation54_spill] sm:$0xff]  ;;  %v16839_v36 = vld [vmem:[#allocation31_spill] sm:$0xff] }
0x115c   : > { %6943 = vmatprep.subr.bf16.mxu1 %v6906_v31  ;;  %v9371_v25 = vpop.eup %9370 }
0x115d   : > { %v6879_v9 = vadd.f32 %v9367_v20, %v6878_v49  ;;  %v9373_v56 = vpop.eup %9372 }
0x115e   : > { %v9375_v0 = vpop.eup %9374  ;;  %v6922_v38 = vpack.c.bf16 %v9373_v56, %v9371_v25 }
0x115f   : > { %v6880_v43 = vadd.f32 %v9369_v13, %v6879_v9  ;;  %6944 = vmatpush1.bf16.msra.mxu1 %v6905_v26  ;;  %v9377_v6 = vpop.eup %9376  ;;  %v16837_v13 = vmov 0.0   ;;  %v16840_v26 = vld [vmem:[#allocation97_spill] sm:$0xff] }
0x1160   : > { %6945 = vmatprep.subr.bf16.mxu1 %v6904_v17  ;;  %v9379_v11 = vpop.eup %9378  ;;  %v16842_v17 = vld [vmem:[#allocation30_spill] sm:$0xff] }
0x1161   : > { %v6881_v15 = vadd.f32 %v9371_v25, %v6880_v43  ;;  %v9381_v57 = vpop.eup %9380  ;;  %v6932_v51 = vpack.c.bf16 %v9379_v11, %v9377_v6  ;;  %v16841_v43 = vld [vmem:[#allocation87_spill] sm:$0xff]  ;;  %v16843_v25 = vld [vmem:[#allocation74_spill] sm:$0xff] }
0x1162   : > { %v9383_v22 = vpop.eup %9382  ;;  %v6924_v46 = vpack.c.bf16 %v9381_v57, %v9375_v0 }
0x1163   : > { %v6882_v39 = vadd.f32 %v9373_v56, %v6881_v15  ;;  %6946 = vmatpush1.bf16.msra.mxu1 %v6903_v42  ;;  %v9385_v12 = vpop.eup %9384  ;;  %v16844_v56 = vld [vmem:[#allocation23_spill] sm:$0xff]  ;;  %v16845_v15 = vld [vmem:[#allocation65_spill] sm:$0xff] }
0x1164   : > { %6947 = vmatprep.subr.bf16.mxu1 %v6902_v63  ;;  %v9387_v1 = vpop.eup %9386  ;;  %v16848_v63 = vld [vmem:[#allocation85_spill] sm:$0xff] }
0x1165   : > { %v6883_v7 = vadd.f32 %v9375_v0, %v6882_v39  ;;  %v9389_v41 = vpop.eup %9388  ;;  %v6930_v14 = vpack.c.bf16 %v9387_v1, %v9385_v12  ;;  %v16846_v0 = vld [vmem:[#allocation55_spill] sm:$0xff] }
0x1166   : > { %v6926_v18 = vpack.c.bf16 %v9389_v41, %v9383_v22 }
0x1167   : > { %v6884_v23 = vadd.f32 %v9381_v57, %v6883_v7  ;;  %6948 = vmatpush1.bf16.msra.mxu1 %v6901_v47  ;;  %v16850_v7 = vld [vmem:[#allocation59_spill] sm:$0xff] }
0x1168   : > { %6949 = vmatprep.subr.bf16.mxu1 %v6932_v51  ;;  %v16852_v47 = vld [vmem:[#allocation111_spill] sm:$0xff] }
0x1169   : > { %v6885_v50 = vadd.f32 %v9383_v22, %v6884_v23  ;;  %v16853_v23 = vld [vmem:[#allocation112_spill] sm:$0xff] }
0x116b   : > { %v6886_v54 = vadd.f32 %v9389_v41, %v6885_v50  ;;  %6950 = vmatpush2.bf16.msra.mxu1 %v6931_v19 }
0x116c   : > { %6951 = vmatprep.subr.bf16.mxu1 %v6930_v14 }
0x116d   : > { %v6887_v33 = vadd.f32 %v14934_v45, %v6886_v54  ;;  %v16827_v45 = vpack.c.bf16 %v14790_v2, %v14785_v55  ;;  %v16833_v55 = vld [vmem:[#allocation51_spill] sm:$0xff] }
0x116e   : > { %v1080_v2 = vadd.f32 %v16833_v55, %v16832_v58 }
0x116f   : > { %v6888_v37 = vadd.f32 %v14938_v34, %v6887_v33  ;;  %6952 = vmatpush2.bf16.msra.mxu1 %v6929_v35  ;;  %v16828_v34 = vld [vmem:[#allocation62_spill] sm:$0xff] }
0x1170   : > { %6953 = vmatprep.subr.bf16.mxu1 %v6928_v5  ;;  %v6921_v61 = vpack.c.bf16 %v16828_v34, %v14848_v10  ;;  %v757_v5 = vpop.permute.xlu1 %756  ;;  %v16835_v10 = vld [vmem:[#allocation53_spill] sm:$0xff]  ;;  %v6899_v20 = vpack.c.bf16 %v1080_v2, %v1080_v2 }
0x1171   : > { %v6889_v8 = vadd.f32 %v9385_v12, %v6888_v37  ;;  %v1006_v30 = vadd.f32 %v16831_v40, %v757_v5  ;;  %v1004_v53 = vadd.f32 %v16834_v4, %v757_v5  ;;  %v6917_v49 = vpack.c.bf16 %v16836_v32, %v16835_v10 }
0x1173   : > { %v6890_v44 = vadd.f32 %v9387_v1, %v6889_v8  ;;  %6954 = vmatpush2.bf16.msra.mxu1 %v16825_v27  ;;  %v6983_v31 = vmul.f32 0.5, %v1006_v30  ;;  %v6982_v9 = vmul.f32 0.5, %v1004_v53 }
0x1174   : > { %6955 = vmatprep.subr.bf16.mxu1 %v6926_v18  ;;  %v7032_v42 = vpop.trf.xlu1 }
0x1175   : > { %v6891_v60 = vadd.f32 %v9377_v6, %v6890_v44  ;;  %v16847_v6 = vld [vmem:[#allocation20_spill] sm:$0xff]  ;;  %v6856_v44 = vrot.slane %v14948_v52, 4 }
0x1177   : > { %v14984_v3 = vadd.f32 %v9379_v11, %v6891_v60  ;;  %6956 = vmatpush2.bf16.msra.mxu1 %v16826_v21  ;;  %v16849_v11 = vld [vmem:[#allocation56_spill] sm:$0xff]  ;;  %v6857_v27 = vadd.f32 %v6856_v44, %v14948_v52 }
0x1178   : > { %6957 = vmatprep.subr.bf16.mxu1 %v6924_v46  ;;  %v7033_v39 = vpop.trf.xlu1 }
0x1179   : > { %v6893_v18 = vrot.slane %v14984_v3, 4  ;;  %v6858_v46 = vrot.slane %v6857_v27, 2 }
0x117b   : > { %6958 = vmatpush2.bf16.msra.mxu1 %v16827_v45  ;;  %v6894_v60 = vadd.f32 %v6893_v18, %v14984_v3 }
0x117c   : > { %6959 = vmatprep.subr.bf16.mxu1 %v6922_v38  ;;  %v7034_v57 = vpop.trf.xlu1  ;;  %v6859_v38 = vadd.f32 %v6858_v46, %v6857_v27 }
0x117d   : > { %v6895_v21 = vrot.slane %v6894_v60, 2 }
0x117e   : > { %v6860_v34 = vrot.slane %v6859_v38, 1 }
0x117f   : > { %6960 = vmatpush2.bf16.msra.mxu1 %v6921_v61  ;;  %v6896_v45 = vadd.f32 %v6895_v21, %v6894_v60 }
0x1180   : > { %6961 = vmatprep.subr.bf16.mxu1 %v6920_v24  ;;  %v7035_v22 = vpop.trf.xlu1  ;;  %v6861_v24 = vadd.f32 %v6860_v34, %v6859_v38 }
0x1181   : > { %v6897_v61 = vrot.slane %v6896_v45, 1 }
0x1182   : > { %9390 = vrcp.f32 %v6861_v24 }
0x1183   : > { %6962 = vmatpush2.bf16.msra.mxu1 %v6919_v62  ;;  %v6898_v5 = vadd.f32 %v6897_v61, %v6896_v45 }
0x1184   : > { %6963 = vmatprep.subr.bf16.mxu1 %v6918_v59  ;;  %v7036_v12 = vpop.trf.xlu1 }
0x1185   : > { %9392 = vrcp.f32 %v6898_v5 }
0x1187   : > { %6964 = vmatpush2.bf16.msra.mxu1 %v6917_v49 }
0x1188   : > { %7174 = vmatprep.subr.mxu1 %v6983_v31  ;;  %v7037_v51 = vpop.trf.xlu1 }
0x118a   : > { %6966 = vmatmul.mubr.bf16.vlgmr.msra.gmra.mxu1 %v6899_v20 }
0x118b   : > { %7175 = vmatpush1.msra.mxu1 %v6982_v9  ;;  %7208 = vmatprep.mubr.f32.mxu1 %v16837_v13 }
0x118c   : > { %v7038_v1 = vpop.trf.xlu1 }
0x118f   : > { %v9391_v16 = vpop.eup %9390 }
0x1190   : > { %v7039_v50 = vpop.trf.xlu1 }
0x1192   : > { %8311 = vmatmul.mubr.msk.f32.vlgmr.msra.gmra.mxu1 %vm449_vm3, %v16838_v28  ;;  %v9393_v40 = vpop.eup %9392 }
0x1193   : > { %7214 = vmatprep.mubr.f32.mxu1 %v16837_v13 }
0x1194   : > { %v7040_v41 = vpop.trf.xlu1 }
0x1196   : > { %8312 = vmatmul.mubr.msk.f32.gmra.mxu1 %vm449_vm3, %v16839_v36 }
0x1197   : > { %7220 = vmatprep.mubr.f32.mxu1 %v16837_v13 }
0x1198   : > { %v7041_v19 = vpop.trf.xlu1 }
0x119a   : > { %8313 = vmatmul.mubr.msk.f32.gmra.mxu1 %vm449_vm3, %v16840_v26 }
0x119b   : > { %7226 = vmatprep.mubr.f32.mxu1 %v16837_v13 }
0x119c   : > { %v7042_v54 = vpop.trf.xlu1 }
0x119e   : > { %8314 = vmatmul.mubr.msk.f32.gmra.mxu1 %vm449_vm3, %v16841_v43 }
0x119f   : > { %7232 = vmatprep.mubr.f32.mxu1 %v16837_v13 }
0x11a0   : > { %v7043_v14 = vpop.trf.xlu1 }
0x11a2   : > { %8315 = vmatmul.mubr.msk.f32.gmra.mxu1 %vm449_vm3, %v16842_v17 }
0x11a3   : > { %7238 = vmatprep.mubr.f32.mxu1 %v16837_v13 }
0x11a4   : > { %v7044_v33 = vpop.trf.xlu1 }
0x11a6   : > { %8316 = vmatmul.mubr.msk.f32.gmra.mxu1 %vm449_vm3, %v16843_v25 }
0x11a7   : > { %7244 = vmatprep.mubr.f32.mxu1 %v16837_v13 }
0x11a8   : > { %v7045_v35 = vpop.trf.xlu1 }
0x11aa   : > { %8317 = vmatmul.mubr.msk.f32.gmra.mxu1 %vm449_vm3, %v16844_v56 }
0x11ab   : > { %7250 = vmatprep.mubr.f32.mxu1 %v16837_v13 }
0x11ac   : > { %v7046_v37 = vpop.trf.xlu1 }
0x11ae   : > { %8318 = vmatmul.mubr.msk.f32.gmra.mxu1 %vm449_vm3, %v16845_v15 }
0x11af   : > { %7256 = vmatprep.mubr.f32.mxu1 %v16837_v13 }
0x11b0   : > { %v7047_v8 = vpop.trf.xlu1 }
0x11b2   : > { %8319 = vmatmul.mubr.msk.f32.gmra.mxu1 %vm449_vm3, %v16846_v0 }
0x11b3   : > { %7262 = vmatprep.mubr.f32.mxu1 %v16837_v13 }
0x11b6   : > { %8320 = vmatmul.mubr.msk.f32.gmra.mxu1 %vm449_vm3, %v16847_v6 }
0x11b7   : > { %7268 = vmatprep.mubr.f32.mxu1 %v16837_v13 }
0x11ba   : > { %8321 = vmatmul.mubr.msk.f32.gmra.mxu1 %vm449_vm3, %v16848_v63 }
0x11bb   : > { %7274 = vmatprep.mubr.f32.mxu1 %v16837_v13 }
0x11be   : > { %8322 = vmatmul.mubr.msk.f32.gmra.mxu1 %vm449_vm3, %v16849_v11 }
0x11bf   : > { %7280 = vmatprep.mubr.f32.mxu1 %v16837_v13 }
0x11c2   : > { %8323 = vmatmul.mubr.msk.f32.gmra.mxu1 %vm449_vm3, %v16850_v7 }
0x11c3   : > { %7286 = vmatprep.mubr.f32.mxu1 %v16837_v13 }
0x11c6   : > { %8324 = vmatmul.mubr.msk.f32.gmra.mxu1 %vm449_vm3, %v16851_v48 }
0x11c7   : > { %7292 = vmatprep.mubr.f32.mxu1 %v16837_v13 }
0x11ca   : > { %8325 = vmatmul.mubr.msk.f32.gmra.mxu1 %vm449_vm3, %v16852_v47 }
0x11cb   : > { %7298 = vmatprep.mubr.f32.mxu1 %v16837_v13 }
0x11ce   : > { %8326 = vmatmul.mubr.msk.f32.gmra.mxu1 %vm449_vm3, %v16853_v23 }
0x11cf   : > { %7304 = vmatprep.mubr.f32.mxu1 %v16837_v13 }
0x11d2   : > { %8327 = vmatmul.mubr.msk.f32.gmra.mxu1 %vm449_vm3, %v7032_v42 }
0x11d3   : > { %7310 = vmatprep.mubr.f32.mxu1 %v16837_v13 }
0x11d6   : > { %8328 = vmatmul.mubr.msk.f32.gmra.mxu1 %vm449_vm3, %v7033_v39 }
0x11d7   : > { %7316 = vmatprep.mubr.f32.mxu1 %v16837_v13 }
0x11da   : > { %8329 = vmatmul.mubr.msk.f32.gmra.mxu1 %vm449_vm3, %v7034_v57 }
0x11db   : > { %7322 = vmatprep.mubr.f32.mxu1 %v16837_v13 }
0x11de   : > { %8330 = vmatmul.mubr.msk.f32.gmra.mxu1 %vm449_vm3, %v7035_v22 }
0x11df   : > { %7328 = vmatprep.mubr.f32.mxu1 %v16837_v13 }
0x11e2   : > { %8331 = vmatmul.mubr.msk.f32.gmra.mxu1 %vm449_vm3, %v7036_v12 }
0x11e3   : > { %7334 = vmatprep.mubr.f32.mxu1 %v16837_v13 }
0x11e6   : > { %8332 = vmatmul.mubr.msk.f32.gmra.mxu1 %vm449_vm3, %v7037_v51 }
0x11e7   : > { %7340 = vmatprep.mubr.f32.mxu1 %v16837_v13 }
0x11ea   : > { %8333 = vmatmul.mubr.msk.f32.gmra.mxu1 %vm449_vm3, %v7038_v1 }
0x11eb   : > { %7346 = vmatprep.mubr.f32.mxu1 %v16837_v13 }
0x11ee   : > { %8334 = vmatmul.mubr.msk.f32.gmra.mxu1 %vm449_vm3, %v7039_v50 }
0x11ef   : > { %7352 = vmatprep.mubr.f32.mxu1 %v16837_v13 }
0x11f2   : > { %8335 = vmatmul.mubr.msk.f32.gmra.mxu1 %vm449_vm3, %v7040_v41 }
0x11f3   : > { %7358 = vmatprep.mubr.f32.mxu1 %v16837_v13 }
0x11f6   : > { %8336 = vmatmul.mubr.msk.f32.gmra.mxu1 %vm449_vm3, %v7041_v19 }
0x11f7   : > { %7364 = vmatprep.mubr.f32.mxu1 %v16837_v13 }
0x11fa   : > { %8337 = vmatmul.mubr.msk.f32.gmra.mxu1 %vm449_vm3, %v7042_v54 }
0x11fb   : > { %7370 = vmatprep.mubr.f32.mxu1 %v16837_v13 }
0x11fe   : > { %8338 = vmatmul.mubr.msk.f32.gmra.mxu1 %vm449_vm3, %v7043_v14 }
0x11ff   : > { %7376 = vmatprep.mubr.f32.mxu1 %v16837_v13 }
0x1202   : > { %8339 = vmatmul.mubr.msk.f32.gmra.mxu1 %vm449_vm3, %v7044_v33 }
0x1203   : > { %7382 = vmatprep.mubr.f32.mxu1 %v16837_v13 }
0x1206   : > { %8340 = vmatmul.mubr.msk.f32.gmra.mxu1 %vm449_vm3, %v7045_v35 }
0x1207   : > { %7388 = vmatprep.mubr.f32.mxu1 %v16837_v13 }
0x120a   : > { %8341 = vmatmul.mubr.msk.f32.gmra.mxu1 %vm449_vm3, %v7046_v37 }
0x120b   : > { %7394 = vmatprep.mubr.f32.mxu1 %v16837_v13 }
0x120e   : > { %8342 = vmatmul.mubr.msk.f32.gmra.mxu1 %vm449_vm3, %v7047_v8 }
0x124a   : > { %v6967_v29 = vpop.f32.mrf.mxu1 }
0x124b   : > { %v15088_v62 = vmul.f32 %v9391_v16, %v6967_v29 }
0x124c   : > { %v6969_v30 = vpop.f32.mrf.mxu1 }
0x124d   : > { %16854 = vst [vmem:[#allocation16_spill] sm:$0xff] %v15088_v62  ;;  %v15090_v59 = vmul.f32 %v9393_v40, %v6969_v30 }
0x124e   : > { %v6971_v52 = vpop.f32.mrf.mxu1 }
0x124f   : > { %16855 = vst [vmem:[#allocation47_spill] sm:$0xff] %v15090_v59 }
0x1250   : > { %v6972_v3 = vpop.f32.mrf.mxu1 }
0x1252   : > { %v15092_v58 = vpop.f32.mrf.mxu1 }
0x1254   : > { %v15094_v55 = vpop.f32.mrf.mxu1 }
0x1256   : > { %v15096_v2 = vpop.f32.mrf.mxu1 }
0x1258   : > { %v15098_v4 = vpop.f32.mrf.mxu1 }
0x125a   : > { %v15100_v53 = vpop.f32.mrf.mxu1 }
0x125b   : > { %v7401_v21 = vmax.f32 %v15092_v58, %v15100_v53 }
0x125c   : > { %v15102_v10 = vpop.f32.mrf.mxu1 }
0x125e   : > { %v15104_v32 = vpop.f32.mrf.mxu1 }
0x125f   : > { %v7402_v38 = vmax.f32 %v15096_v2, %v15104_v32 }
0x1260   : > { %v15106_v49 = vpop.f32.mrf.mxu1 }
0x1261   : > { %16856 = vst [vmem:[#allocation71_spill] sm:$0xff] %v15106_v49 }
0x1262   : > { %v15108_v31 = vpop.f32.mrf.mxu1 }
0x1263   : > { %v7403_v34 = vmax.f32 %v7401_v21, %v15108_v31 }
0x1264   : > { %v15110_v20 = vpop.f32.mrf.mxu1 }
0x1266   : > { %v15112_v9 = vpop.f32.mrf.mxu1 }
0x1267   : > { %v7404_v61 = vmax.f32 %v7402_v38, %v15112_v9 }
0x1268   : > { %v15114_v13 = vpop.f32.mrf.mxu1 }
0x1269   : > { %16857 = vst [vmem:[#allocation81_spill] sm:$0xff] %v15114_v13 }
0x126a   : > { %v15116_v28 = vpop.f32.mrf.mxu1 }
0x126b   : > { %v7405_v5 = vmax.f32 %v7403_v34, %v15116_v28 }
0x126c   : > { %v15118_v36 = vpop.f32.mrf.mxu1 }
0x126e   : > { %v15120_v26 = vpop.f32.mrf.mxu1 }
0x126f   : > { %v7406_v16 = vmax.f32 %v7404_v61, %v15120_v26 }
0x1270   : > { %v15122_v43 = vpop.f32.mrf.mxu1 }
0x1271   : > { %16858 = vst [vmem:[#allocation40_spill] sm:$0xff] %v15122_v43 }
0x1272   : > { %v15124_v17 = vpop.f32.mrf.mxu1 }
0x1273   : > { %16859 = vst [vmem:[#allocation104_spill] sm:$0xff] %v15124_v17  ;;  %v7407_v40 = vmax.f32 %v7405_v5, %v15124_v17 }
0x1274   : > { %v15126_v25 = vpop.f32.mrf.mxu1 }
0x1275   : > { %16860 = vst [vmem:[#allocation68_spill] sm:$0xff] %v15126_v25 }
0x1276   : > { %v15128_v56 = vpop.f32.mrf.mxu1 }
0x1277   : > { %v7408_v30 = vmax.f32 %v7406_v16, %v15128_v56 }
0x1278   : > { %v15130_v15 = vpop.f32.mrf.mxu1 }
0x1279   : > { %16861 = vst [vmem:[#allocation29_spill] sm:$0xff] %v15130_v15 }
0x127a   : > { %v15132_v0 = vpop.f32.mrf.mxu1 }
0x127b   : > { %16862 = vst [vmem:[#allocation108_spill] sm:$0xff] %v15132_v0  ;;  %v7409_v3 = vmax.f32 %v7407_v40, %v15132_v0 }
0x127c   : > { %v15134_v42 = vpop.f32.mrf.mxu1 }
0x127e   : > { %v15136_v6 = vpop.f32.mrf.mxu1 }
0x127f   : > { %v7410_v21 = vmax.f32 %v7408_v30, %v15136_v6 }
0x1280   : > { %v15138_v39 = vpop.f32.mrf.mxu1 }
0x1282   : > { %v15140_v63 = vpop.f32.mrf.mxu1 }
0x1283   : > { %16863 = vst [vmem:[#allocation69_spill] sm:$0xff] %v15140_v63  ;;  %v7411_v38 = vmax.f32 %v7409_v3, %v15140_v63 }
0x1284   : > { %v15142_v11 = vpop.f32.mrf.mxu1 }
0x1286   : > { %v15144_v57 = vpop.f32.mrf.mxu1 }
0x1287   : > { %v7412_v34 = vmax.f32 %v7410_v21, %v15144_v57  ;;  %v7439_v21 = vmax.f32 %v15098_v4, %v15106_v49 }
0x1288   : > { %v15146_v7 = vpop.f32.mrf.mxu1 }
0x128a   : > { %v15148_v22 = vpop.f32.mrf.mxu1 }
0x128b   : > { %v7413_v61 = vmax.f32 %v7411_v38, %v15148_v22 }
0x128c   : > { %v15150_v48 = vpop.f32.mrf.mxu1 }
0x128e   : > { %v15152_v47 = vpop.f32.mrf.mxu1 }
0x128f   : > { %16864 = vst [vmem:[#allocation66_spill] sm:$0xff] %v15152_v47  ;;  %v7414_v5 = vmax.f32 %v7412_v34, %v15152_v47 }
0x1290   : > { %v15154_v12 = vpop.f32.mrf.mxu1 }
0x1292   : > { %v15156_v23 = vpop.f32.mrf.mxu1 }
0x1293   : > { %v7415_v16 = vmax.f32 %v7413_v61, %v15156_v23  ;;  %v7438_v61 = vmax.f32 %v15094_v55, %v15102_v10 }
0x1294   : > { %v15158_v51 = vpop.f32.mrf.mxu1 }
0x1296   : > { %v15160_v1 = vpop.f32.mrf.mxu1 }
0x1297   : > { %v7416_v40 = vmax.f32 %v7414_v5, %v15160_v1  ;;  %v7441_v5 = vmax.f32 %v7439_v21, %v15114_v13 }
0x1298   : > { %v15162_v50 = vpop.f32.mrf.mxu1 }
0x1299   : > { %v7443_v49 = vmax.f32 %v7441_v5, %v15122_v43 }
0x129a   : > { %v15164_v41 = vpop.f32.mrf.mxu1 }
0x129b   : > { %16865 = vst [vmem:[#allocation124_spill] sm:$0xff] %v15164_v41  ;;  %v7417_v30 = vmax.f32 %v7415_v16, %v15164_v41  ;;  %v7440_v41 = vmax.f32 %v7438_v61, %v15110_v20  ;;  %v7445_v21 = vmax.f32 %v7443_v49, %v15130_v15 }
0x129c   : > { %v15166_v19 = vpop.f32.mrf.mxu1 }
0x129d   : > { %v7447_v5 = vmax.f32 %v7445_v21, %v15138_v39 }
0x129e   : > { %v15168_v54 = vpop.f32.mrf.mxu1 }
0x129f   : > { %16866 = vst [vmem:[#allocation80_spill] sm:$0xff] %v15168_v54  ;;  %v7418_v3 = vmax.f32 %v7416_v40, %v15168_v54  ;;  %v7449_v49 = vmax.f32 %v7447_v5, %v15146_v7 }
0x12a0   : > { %v15170_v14 = vpop.f32.mrf.mxu1 }
0x12a2   : > { %v15172_v33 = vpop.f32.mrf.mxu1 }
0x12a3   : > { %16867 = vst [vmem:[#allocation28_spill] sm:$0xff] %v15172_v33  ;;  %v7419_v38 = vmax.f32 %v7417_v30, %v15172_v33  ;;  %v7442_v33 = vmax.f32 %v7440_v41, %v15118_v36 }
0x12a4   : > { %v15174_v35 = vpop.f32.mrf.mxu1 }
0x12a5   : > { %v7444_v61 = vmax.f32 %v7442_v33, %v15126_v25  ;;  %v7451_v33 = vmax.f32 %v7449_v49, %v15154_v12 }
0x12a6   : > { %v15176_v37 = vpop.f32.mrf.mxu1 }
0x12a7   : > { %16868 = vst [vmem:[#allocation52_spill] sm:$0xff] %v15176_v37  ;;  %v7420_v34 = vmax.f32 %v7418_v3, %v15176_v37  ;;  %v7446_v41 = vmax.f32 %v7444_v61, %v15134_v42 }
0x12a8   : > { %v15178_v8 = vpop.f32.mrf.mxu1 }
0x12a9   : > { %v7448_v15 = vmax.f32 %v7446_v41, %v15142_v11 }
0x12aa   : > { %v15180_v44 = vpop.f32.mrf.mxu1 }
0x12ab   : > { %v7421_v16 = vmax.f32 %v7419_v38, %v15180_v44  ;;  %v7450_v21 = vmax.f32 %v7448_v15, %v15150_v48 }
0x12ac   : > { %v15182_v18 = vpop.f32.mrf.mxu1 }
0x12ae   : > { %v15184_v27 = vpop.f32.mrf.mxu1 }
0x12af   : > { %v7422_v40 = vmax.f32 %v7420_v34, %v15184_v27 }
0x12b0   : > { %v15186_v60 = vpop.f32.mrf.mxu1 }
0x12b2   : > { %v15188_v46 = vpop.f32.mrf.mxu1 }
0x12b3   : > { %v7423_v30 = vmax.f32 %v7421_v16, %v15188_v46 }
0x12b4   : > { %v15194_v45 = vpop.f32.mrf.mxu1 }
0x12b6   : > { %v15198_v24 = vpop.f32.mrf.mxu1 }
0x12b7   : > { %v7424_v3 = vmax.f32 %v7422_v40, %v15198_v24 }
0x12b8   : > { %v15202_v29 = vpop.f32.mrf.mxu1 }
0x12ba   : > { %v15206_v52 = vpop.f32.mrf.mxu1 }
0x12bb   : > { %v7425_v38 = vmax.f32 %v7423_v30, %v15206_v52 }
0x12bc   : > { %v15210_v59 = vpop.f32.mrf.mxu1 }
0x12be   : > { %v15214_v62 = vpop.f32.mrf.mxu1 }
0x12bf   : > { %v7426_v34 = vmax.f32 %v7424_v3, %v15214_v62 }
0x12c0   : > { %v15218_v17 = vpop.f32.mrf.mxu1 }
0x12c2   : > { %v15222_v0 = vpop.f32.mrf.mxu1 }
0x12c3   : > { %16869 = vst [vmem:[#allocation76_spill] sm:$0xff] %v15222_v0  ;;  %v7427_v16 = vmax.f32 %v7425_v38, %v15222_v0  ;;  %v7453_v38 = vmax.f32 %v7451_v33, %v15162_v50 }
0x12c4   : > { %v15226_v63 = vpop.f32.mrf.mxu1 }
0x12c5   : > { %v7455_v61 = vmax.f32 %v7453_v38, %v15170_v14 }
0x12c6   : > { %v15232_v47 = vpop.f32.mrf.mxu1 }
0x12c7   : > { %16870 = vst [vmem:[#allocation46_spill] sm:$0xff] %v15232_v47  ;;  %v7428_v40 = vmax.f32 %v7426_v34, %v15232_v47  ;;  %v7452_v47 = vmax.f32 %v7450_v21, %v15158_v51 }
0x12c8   : > { %v15239_v54 = vpop.f32.mrf.mxu1 }
0x12c9   : > { %v7454_v5 = vmax.f32 %v7452_v47, %v15166_v19 }
0x12ca   : > { %v15245_v37 = vpop.f32.mrf.mxu1 }
0x12cb   : > { %v7429_v30 = vmax.f32 %v7427_v16, %v15245_v37  ;;  %v7457_v16 = vmax.f32 %v7455_v61, %v15178_v8  ;;  %v7456_v41 = vmax.f32 %v7454_v5, %v15174_v35 }
0x12cc   : > { %v15251_v13 = vpop.f32.mrf.mxu1 }
0x12cd   : > { %v7459_v49 = vmax.f32 %v7457_v16, %v15186_v60  ;;  %v7458_v15 = vmax.f32 %v7456_v41, %v15182_v18 }
0x12ce   : > { %v15257_v43 = vpop.f32.mrf.mxu1 }
0x12cf   : > { %v7430_v3 = vmax.f32 %v7428_v40, %v15257_v43  ;;  %v7460_v21 = vmax.f32 %v7458_v15, %v15194_v45 }
0x12d1   : > { %v7431_v25 = vmax.f32 %v7429_v30, %v7430_v3  ;;  %v7461_v3 = vmax.f32 %v7459_v49, %v15202_v29  ;;  %v7462_v47 = vmax.f32 %v7460_v21, %v15210_v59 }
0x12d3   : > { %v7432_v34 = vrot.slane %v7431_v25, 4  ;;  %v7463_v38 = vmax.f32 %v7461_v3, %v15218_v17  ;;  %v7464_v5 = vmax.f32 %v7462_v47, %v15226_v63 }
0x12d5   : > { %v7433_v0 = vmax.f32 %v7431_v25, %v7432_v34  ;;  %v15277_v25 = vpop.f32.mrf.mxu1  ;;  %v7465_v34 = vmax.f32 %v7463_v38, %v15239_v54  ;;  %v7466_v16 = vmax.f32 %v7464_v5, %v15251_v13 }
0x12d7   : > { %v7434_v40 = vrot.slane %v7433_v0, 2 }
0x12d9   : > { %v7435_v30 = vmax.f32 %v7433_v0, %v7434_v40  ;;  %v7467_v0 = vmax.f32 %v7465_v34, %v15277_v25 }
0x12db   : > { %v7436_v33 = vrot.slane %v7435_v30, 1  ;;  %v7468_v15 = vmax.f32 %v7466_v16, %v7467_v0 }
0x12dd   : > { %v15281_v61 = vmax.f32 %v7435_v30, %v7436_v33  ;;  %v7469_v47 = vrot.slane %v7468_v15, 4 }
0x12df   : > { %v7475_v40 = vsub.f32 %v15092_v58, %v15281_v61  ;;  %v7477_v41 = vsub.f32 %v15096_v2, %v15281_v61  ;;  %v7479_v49 = vsub.f32 %v15100_v53, %v15281_v61  ;;  %v7481_v30 = vsub.f32 %v15104_v32, %v15281_v61 }
0x12e0   : > { %v7483_v21 = vsub.f32 %v15108_v31, %v15281_v61  ;;  %v7485_v58 = vsub.f32 %v15112_v9, %v15281_v61  ;;  %v7487_v53 = vsub.f32 %v15116_v28, %v15281_v61  ;;  %v7470_v5 = vmax.f32 %v7468_v15, %v7469_v47  ;;  %v16871_v31 = vld [vmem:[#allocation104_spill] sm:$0xff] }
0x12e1   : > { %v7539_v3 = vmul.f32 1.442695, %v7475_v40  ;;  %v7543_v33 = vmul.f32 1.442695, %v7477_v41  ;;  %v7547_v38 = vmul.f32 1.442695, %v7479_v49  ;;  %v7489_v32 = vsub.f32 %v15120_v26, %v15281_v61 }
0x12e2   : > { %v7551_v2 = vmul.f32 1.442695, %v7481_v30  ;;  %v7555_v34 = vmul.f32 1.442695, %v7483_v21  ;;  %v7559_v0 = vmul.f32 1.442695, %v7485_v58  ;;  %v7491_v16 = vsub.f32 %v16871_v31, %v15281_v61 }
0x12e3   : > { %9394 = vpow2.f32 %v7539_v3  ;;  %v7563_v40 = vmul.f32 1.442695, %v7487_v53  ;;  %v7493_v9 = vsub.f32 %v15128_v56, %v15281_v61  ;;  %v7471_v41 = vrot.slane %v7470_v5, 2  ;;  %v16872_v49 = vld [vmem:[#allocation108_spill] sm:$0xff]  ;;  %v16873_v26 = vld [vmem:[#allocation69_spill] sm:$0xff] }
0x12e4   : > { %9396 = vpow2.f32 %v7543_v33  ;;  %v7495_v28 = vsub.f32 %v16872_v49, %v15281_v61  ;;  %v7567_v30 = vmul.f32 1.442695, %v7489_v32  ;;  %v7497_v15 = vsub.f32 %v15136_v6, %v15281_v61 }
0x12e5   : > { %9398 = vpow2.f32 %v7547_v38  ;;  %v7499_v3 = vsub.f32 %v16873_v26, %v15281_v61  ;;  %v7571_v33 = vmul.f32 1.442695, %v7491_v16  ;;  %v7501_v21 = vsub.f32 %v15144_v57, %v15281_v61 }
0x12e6   : > { %9400 = vpow2.f32 %v7551_v2  ;;  %v7575_v38 = vmul.f32 1.442695, %v7493_v9  ;;  %v7472_v47 = vmax.f32 %v7470_v5, %v7471_v41  ;;  %v7503_v58 = vsub.f32 %v15148_v22, %v15281_v61 }
0x12e7   : > { %9402 = vpow2.f32 %v7555_v34  ;;  %v7579_v2 = vmul.f32 1.442695, %v7495_v28  ;;  %v7519_v6 = vsub.f32 %v15180_v44, %v15281_v61  ;;  %v7583_v34 = vmul.f32 1.442695, %v7497_v15 }
0x12e8   : > { %9404 = vpow2.f32 %v7559_v0  ;;  %v7521_v32 = vsub.f32 %v15184_v27, %v15281_v61  ;;  %v7587_v57 = vmul.f32 1.442695, %v7499_v3  ;;  %v7523_v22 = vsub.f32 %v15188_v46, %v15281_v61 }
0x12e9   : > { %9406 = vpow2.f32 %v7563_v40  ;;  %v7591_v31 = vmul.f32 1.442695, %v7501_v21  ;;  %v7473_v16 = vrot.slane %v7472_v47, 1  ;;  %v7525_v44 = vsub.f32 %v15198_v24, %v15281_v61  ;;  %v16875_v24 = vld [vmem:[#allocation66_spill] sm:$0xff] }
0x12ea   : > { %9408 = vpow2.f32 %v7567_v30  ;;  %v7595_v40 = vmul.f32 1.442695, %v7503_v58  ;;  %v7527_v41 = vsub.f32 %v15206_v52, %v15281_v61  ;;  %v7627_v49 = vmul.f32 1.442695, %v7519_v6  ;;  %v16876_v6 = vld [vmem:[#allocation124_spill] sm:$0xff] }
0x12eb   : > { %9410 = vpow2.f32 %v7571_v33  ;;  %v7529_v46 = vsub.f32 %v15214_v62, %v15281_v61  ;;  %v7631_v28 = vmul.f32 1.442695, %v7521_v32  ;;  %v7505_v26 = vsub.f32 %v16875_v24, %v15281_v61 }
0x12ec   : > { %9412 = vpow2.f32 %v7575_v38  ;;  %v7635_v3 = vmul.f32 1.442695, %v7523_v22  ;;  %v15344_v33 = vmax.f32 %v7472_v47, %v7473_v16  ;;  %v7507_v52 = vsub.f32 %v15156_v23, %v15281_v61 }
0x12ed   : > { %9414 = vpow2.f32 %v7579_v2  ;;  %v7639_v21 = vmul.f32 1.442695, %v7525_v44  ;;  %v7509_v58 = vsub.f32 %v15160_v1, %v15281_v61  ;;  %v7643_v2 = vmul.f32 1.442695, %v7527_v41  ;;  %v16877_v44 = vld [vmem:[#allocation80_spill] sm:$0xff] }
0x12ee   : > { %9416 = vpow2.f32 %v7583_v34  ;;  %v7511_v34 = vsub.f32 %v16876_v6, %v15281_v61  ;;  %v7647_v47 = vmul.f32 1.442695, %v7529_v46  ;;  %v7599_v23 = vmul.f32 1.442695, %v7505_v26 }
0x12ef   : > { %9418 = vpow2.f32 %v7587_v57  ;;  %v7603_v22 = vmul.f32 1.442695, %v7507_v52 }
0x12f0   : > { %v15314_v56 = vpop.eup %9394  ;;  %9420 = vpow2.f32 %v7591_v31  ;;  %v7478_v31 = vsub.f32 %v15098_v4, %v15344_v33  ;;  %v7611_v41 = vmul.f32 1.442695, %v7511_v34 }
0x12f1   : > { %v15318_v53 = vpop.eup %9396  ;;  %9422 = vpow2.f32 %v7595_v40  ;;  %v7513_v40 = vsub.f32 %v16877_v44, %v15281_v61 }
0x12f2   : > { %16874 = vst [vmem:[#allocation27_spill] sm:$0xff] %v15318_v53  ;;  %v7667_v5 = vadd.f32 %v15318_v53, %v15314_v56  ;;  %v15326_v0 = vpop.eup %9398  ;;  %9424 = vpow2.f32 %v7627_v49 }
0x12f3   : > { %v15333_v9 = vpop.eup %9400  ;;  %9426 = vpow2.f32 %v7631_v28  ;;  %v16878_v28 = vld [vmem:[#allocation28_spill] sm:$0xff] }
0x12f4   : > { %v7668_v27 = vadd.f32 %v15326_v0, %v7667_v5  ;;  %v15340_v15 = vpop.eup %9402  ;;  %9428 = vpow2.f32 %v7635_v3  ;;  %v7476_v5 = vsub.f32 %v15094_v55, %v15344_v33  ;;  %v7480_v55 = vsub.f32 %v15102_v10, %v15344_v33  ;;  %v16879_v3 = vld [vmem:[#allocation71_spill] sm:$0xff]  ;;  %v16880_v10 = vld [vmem:[#allocation52_spill] sm:$0xff] }
0x12f5   : > { %v15349_v38 = vpop.eup %9404  ;;  %9430 = vpow2.f32 %v7639_v21  ;;  %v7482_v52 = vsub.f32 %v16879_v3, %v15344_v33  ;;  %v7545_v21 = vmul.f32 1.442695, %v7478_v31 }
0x12f6   : > { %v7669_v30 = vadd.f32 %v15333_v9, %v7668_v27  ;;  %v15356_v57 = vpop.eup %9406  ;;  %v7607_v27 = vmul.f32 1.442695, %v7509_v58  ;;  %9432 = vpow2.f32 %v7643_v2  ;;  %v7541_v4 = vmul.f32 1.442695, %v7476_v5 }
0x12f7   : > { %v15363_v16 = vpop.eup %9408  ;;  %9434 = vpow2.f32 %v7647_v47  ;;  %v7517_v58 = vsub.f32 %v16880_v10, %v15281_v61  ;;  %v7615_v2 = vmul.f32 1.442695, %v7513_v40  ;;  %v7484_v47 = vsub.f32 %v15110_v20, %v15344_v33 }
0x12f8   : > { %v7670_v62 = vadd.f32 %v15340_v15, %v7669_v30  ;;  %v15370_v46 = vpop.eup %9410  ;;  %v7515_v30 = vsub.f32 %v16878_v28, %v15281_v61  ;;  %9436 = vpow2.f32 %v7599_v23  ;;  %v7488_v40 = vsub.f32 %v15118_v36, %v15344_v33 }
0x12f9   : > { %v15374_v24 = vpop.eup %9412  ;;  %9438 = vpow2.f32 %v7603_v22  ;;  %v16881_v22 = vld [vmem:[#allocation81_spill] sm:$0xff]  ;;  %v7623_v20 = vmul.f32 1.442695, %v7517_v58  ;;  %v7557_v3 = vmul.f32 1.442695, %v7484_v47  ;;  %v7500_v36 = vsub.f32 %v15142_v11, %v15344_v33 }
0x12fa   : > { %v7671_v32 = vadd.f32 %v15349_v38, %v7670_v62  ;;  %v15379_v62 = vpop.eup %9414  ;;  %9440 = vpow2.f32 %v7607_v27  ;;  %v7619_v5 = vmul.f32 1.442695, %v7515_v30  ;;  %v7553_v27 = vmul.f32 1.442695, %v7482_v52 }
0x12fb   : > { %v15383_v6 = vpop.eup %9416  ;;  %9442 = vpow2.f32 %v7611_v41  ;;  %v7502_v52 = vsub.f32 %v15146_v7, %v15344_v33  ;;  %v7506_v11 = vsub.f32 %v15154_v12, %v15344_v33 }
0x12fc   : > { %v7672_v1 = vadd.f32 %v15356_v57, %v7671_v32  ;;  %v7549_v32 = vmul.f32 1.442695, %v7480_v55  ;;  %v15388_v23 = vpop.eup %9418  ;;  %9444 = vpow2.f32 %v7541_v4  ;;  %v16883_v4 = vld [vmem:[#allocation68_spill] sm:$0xff] }
0x12fd   : > { %v15392_v31 = vpop.eup %9420  ;;  %9446 = vpow2.f32 %v7545_v21 }
0x12fe   : > { %v7673_v49 = vadd.f32 %v15363_v16, %v7672_v1  ;;  %v7486_v1 = vsub.f32 %v16881_v22, %v15344_v33  ;;  %v15397_v41 = vpop.eup %9422  ;;  %9448 = vpow2.f32 %v7615_v2 }
0x12ff   : > { %v15401_v28 = vpop.eup %9424  ;;  %9450 = vpow2.f32 %v7549_v32 }
0x1300   : > { %v7674_v26 = vadd.f32 %v15370_v46, %v7673_v49  ;;  %v16882_v49 = vld [vmem:[#allocation40_spill] sm:$0xff]  ;;  %v15406_v10 = vpop.eup %9426  ;;  %9452 = vpow2.f32 %v7619_v5  ;;  %v7561_v21 = vmul.f32 1.442695, %v7486_v1  ;;  %v7504_v5 = vsub.f32 %v15150_v48, %v15344_v33 }
0x1301   : > { %v7490_v55 = vsub.f32 %v16882_v49, %v15344_v33  ;;  %v15412_v58 = vpop.eup %9428  ;;  %9454 = vpow2.f32 %v7553_v27  ;;  %v7589_v48 = vmul.f32 1.442695, %v7500_v36 }
0x1302   : > { %v7675_v34 = vadd.f32 %v15374_v24, %v7674_v26  ;;  %v7492_v26 = vsub.f32 %v16883_v4, %v15344_v33  ;;  %v15417_v47 = vpop.eup %9430  ;;  %9456 = vpow2.f32 %v7623_v20  ;;  %v16884_v20 = vld [vmem:[#allocation29_spill] sm:$0xff] }
0x1303   : > { %v7569_v7 = vmul.f32 1.442695, %v7490_v55  ;;  %v15423_v22 = vpop.eup %9432  ;;  %9458 = vpow2.f32 %v7557_v3  ;;  %v7494_v49 = vsub.f32 %v16884_v20, %v15344_v33  ;;  %v7593_v55 = vmul.f32 1.442695, %v7502_v52 }
0x1304   : > { %v7676_v44 = vadd.f32 %v15379_v62, %v7675_v34  ;;  %v7565_v34 = vmul.f32 1.442695, %v7488_v40  ;;  %v15428_v27 = vpop.eup %9434  ;;  %9460 = vpow2.f32 %v7561_v21  ;;  %v7496_v3 = vsub.f32 %v15134_v42, %v15344_v33 }
0x1305   : > { %v7498_v21 = vsub.f32 %v15138_v39, %v15344_v33  ;;  %v7577_v40 = vmul.f32 1.442695, %v7494_v49  ;;  %v16890_v49 = vld [vmem:[#allocation46_spill] sm:$0xff] }
0x1306   : > { %v7677_v30 = vadd.f32 %v15383_v6, %v7676_v44  ;;  %v7573_v44 = vmul.f32 1.442695, %v7492_v26  ;;  %9462 = vpow2.f32 %v7565_v34  ;;  %v7601_v34 = vmul.f32 1.442695, %v7506_v11 }
0x1307   : > { %9464 = vpow2.f32 %v7569_v7  ;;  %v7585_v11 = vmul.f32 1.442695, %v7498_v21 }
0x1308   : > { %v7678_v2 = vadd.f32 %v15388_v23, %v7677_v30  ;;  %v15432_v30 = vpop.eup %9436  ;;  %9466 = vpow2.f32 %v7573_v44 }
0x1309   : > { %v15437_v26 = vpop.eup %9438  ;;  %9468 = vpow2.f32 %v7589_v48 }
0x130a   : > { %v7679_v1 = vadd.f32 %v15392_v31, %v7678_v2  ;;  %16885 = vst [vmem:[#allocation38_spill] sm:$0xff] %v15437_v26  ;;  %v7597_v2 = vmul.f32 1.442695, %v7504_v5  ;;  %v15441_v32 = vpop.eup %9440  ;;  %9470 = vpow2.f32 %v7593_v55  ;;  %v16888_v5 = vld [vmem:[#allocation76_spill] sm:$0xff]  ;;  %v7533_v55 = vsub.f32 %v16890_v49, %v15281_v61 }
0x130b   : > { %16886 = vst [vmem:[#allocation33_spill] sm:$0xff] %v15441_v32  ;;  %v15446_v52 = vpop.eup %9442  ;;  %v7531_v7 = vsub.f32 %v16888_v5, %v15281_v61  ;;  %v7528_v5 = vsub.f32 %v15210_v59, %v15344_v33 }
0x130c   : > { %v7680_v12 = vadd.f32 %v15397_v41, %v7679_v1  ;;  %16887 = vst [vmem:[#allocation89_spill] sm:$0xff] %v15446_v52  ;;  %v15448_v1 = vpop.eup %9444  ;;  %9472 = vpow2.f32 %v7597_v2 }
0x130d   : > { %v15451_v42 = vpop.eup %9446  ;;  %9474 = vpow2.f32 %v7601_v34  ;;  %v7651_v34 = vmul.f32 1.442695, %v7531_v7  ;;  %v7537_v7 = vsub.f32 %v15257_v43, %v15281_v61 }
0x130e   : > { %v7681_v36 = vadd.f32 %v15432_v30, %v7680_v12  ;;  %v7581_v12 = vmul.f32 1.442695, %v7496_v3  ;;  %v15455_v4 = vpop.eup %9448  ;;  %v7704_v44 = vadd.f32 %v15451_v42, %v15448_v1  ;;  %v7535_v3 = vsub.f32 %v15245_v37, %v15281_v61 }
0x130f   : > { %16889 = vst [vmem:[#allocation45_spill] sm:$0xff] %v15455_v4  ;;  %v15460_v48 = vpop.eup %9450  ;;  %9476 = vpow2.f32 %v7577_v40  ;;  %v7510_v61 = vsub.f32 %v15162_v50, %v15344_v33 }
0x1310   : > { %v7682_v20 = vadd.f32 %v15437_v26, %v7681_v36  ;;  %v15464_v36 = vpop.eup %9452  ;;  %9478 = vpow2.f32 %v7581_v12  ;;  %v7530_v26 = vsub.f32 %v15218_v17, %v15344_v33  ;;  %v7659_v59 = vmul.f32 1.442695, %v7535_v3 }
0x1311   : > { %v15470_v21 = vpop.eup %9454  ;;  %9480 = vpow2.f32 %v7585_v11  ;;  %v7508_v17 = vsub.f32 %v15158_v51, %v15344_v33  ;;  %v7645_v11 = vmul.f32 1.442695, %v7528_v5 }
0x1312   : > { %v7683_v39 = vadd.f32 %v15441_v32, %v7682_v20  ;;  %v7705_v20 = vadd.f32 %v15460_v48, %v7704_v44  ;;  %v15474_v32 = vpop.eup %9456  ;;  %9482 = vpow2.f32 %v7651_v34  ;;  %v7512_v34 = vsub.f32 %v15166_v19, %v15344_v33 }
0x1313   : > { %16891 = vst [vmem:[#allocation32_spill] sm:$0xff] %v15474_v32  ;;  %v15480_v40 = vpop.eup %9458 }
0x1314   : > { %v7684_v2 = vadd.f32 %v15446_v52, %v7683_v39  ;;  %v7706_v37 = vadd.f32 %v15470_v21, %v7705_v20  ;;  %v7655_v39 = vmul.f32 1.442695, %v7533_v55  ;;  %v15482_v44 = vpop.eup %9460 }
0x1316   : > { %v7685_v49 = vadd.f32 %v15455_v4, %v7684_v2  ;;  %v7707_v52 = vadd.f32 %v15480_v40, %v7706_v37  ;;  %v15488_v2 = vpop.eup %9462  ;;  %v7649_v4 = vmul.f32 1.442695, %v7530_v26  ;;  %9484 = vpow2.f32 %v7655_v39 }
0x1317   : > { %v15492_v20 = vpop.eup %9464  ;;  %9486 = vpow2.f32 %v7659_v59  ;;  %v7605_v39 = vmul.f32 1.442695, %v7508_v17  ;;  %v7609_v59 = vmul.f32 1.442695, %v7510_v61  ;;  %v7613_v17 = vmul.f32 1.442695, %v7512_v34 }
0x1318   : > { %v7686_v12 = vadd.f32 %v15464_v36, %v7685_v49  ;;  %v7708_v53 = vadd.f32 %v15482_v44, %v7707_v52  ;;  %v15496_v43 = vpop.eup %9466  ;;  %v7663_v49 = vmul.f32 1.442695, %v7537_v7  ;;  %9488 = vpow2.f32 %v7645_v11 }
0x1319   : > { %v9469_v3 = vpop.eup %9468  ;;  %9490 = vpow2.f32 %v7649_v4  ;;  %v7514_v7 = vsub.f32 %v15170_v14, %v15344_v33  ;;  %v7516_v4 = vsub.f32 %v15174_v35, %v15344_v33 }
0x131a   : > { %v7687_v55 = vadd.f32 %v15474_v32, %v7686_v12  ;;  %v7709_v5 = vadd.f32 %v15488_v2, %v7708_v53  ;;  %v9471_v37 = vpop.eup %9470  ;;  %9492 = vpow2.f32 %v7663_v49  ;;  %v7520_v32 = vsub.f32 %v15182_v18, %v15344_v33 }
0x131b   : > { %v15504_v26 = vpop.eup %9472  ;;  %9494 = vpow2.f32 %v7605_v39  ;;  %v7756_v49 = vpack.c.bf16 %v9471_v37, %v9469_v3  ;;  %v7617_v34 = vmul.f32 1.442695, %v7514_v7  ;;  %v7538_v39 = vsub.f32 %v15277_v25, %v15344_v33 }
0x131c   : > { %v7688_v51 = vadd.f32 %v15401_v28, %v7687_v55  ;;  %v7710_v50 = vadd.f32 %v15492_v20, %v7709_v5  ;;  %v15508_v12 = vpop.eup %9474  ;;  %9496 = vpow2.f32 %v7609_v59  ;;  %v7522_v7 = vsub.f32 %v15186_v60, %v15344_v33 }
0x131d   : > { %v7758_v11 = vpack.c.bf16 %v15508_v12, %v15504_v26  ;;  %v9477_v55 = vpop.eup %9476  ;;  %9498 = vpow2.f32 %v7613_v17  ;;  %v7532_v25 = vsub.f32 %v15226_v63, %v15344_v33  ;;  %v7534_v60 = vsub.f32 %v15239_v54, %v15344_v33 }
0x131e   : > { %v7689_v52 = vadd.f32 %v15406_v10, %v7688_v51  ;;  %v7711_v19 = vadd.f32 %v15496_v43, %v7710_v50  ;;  %v7757_v51 = vpack.c.bf16 %v15432_v30, %v15397_v41  ;;  %v9479_v5 = vpop.eup %9478  ;;  %v7518_v50 = vsub.f32 %v15178_v8, %v15344_v33 }
0x131f   : > { %7775 = vmatprep.subr.bf16.mxu0 %v7758_v11  ;;  %v7536_v30 = vsub.f32 %v15251_v13, %v15344_v33  ;;  %v7755_v8 = vpack.c.bf16 %v15392_v31, %v15388_v23  ;;  %v7524_v13 = vsub.f32 %v15194_v45, %v15344_v33  ;;  %9500 = vpow2.f32 %v7617_v34 }
0x1320   : > { %v7690_v53 = vadd.f32 %v15412_v58, %v7689_v52  ;;  %v7712_v61 = vadd.f32 %v9477_v55, %v7711_v19  ;;  %v9481_v52 = vpop.eup %9480  ;;  %7776 = vmatpush1.bf16.msra.mxu0 %v7757_v51  ;;  %v7625_v59 = vmul.f32 1.442695, %v7518_v50  ;;  %v7629_v31 = vmul.f32 1.442695, %v7520_v32 }
0x1321   : > { %7777 = vmatprep.subr.bf16.mxu0 %v7756_v49  ;;  %v7754_v11 = vpack.c.bf16 %v9481_v52, %v9479_v5  ;;  %v15533_v51 = vpop.eup %9482  ;;  %v7665_v45 = vmul.f32 1.442695, %v7538_v39  ;;  %v7753_v63 = vpack.c.bf16 %v15383_v6, %v15379_v62  ;;  %v7752_v32 = vpack.c.bf16 %v9477_v55, %v15496_v43 }
0x1322   : > { %v7691_v14 = vadd.f32 %v15417_v47, %v7690_v53  ;;  %v7713_v41 = vadd.f32 %v9479_v5, %v7712_v61  ;;  %v7621_v53 = vmul.f32 1.442695, %v7516_v4  ;;  %v7526_v50 = vsub.f32 %v15202_v29, %v15344_v33 }
0x1323   : > { %v15541_v4 = vpop.eup %9484  ;;  %v7633_v54 = vmul.f32 1.442695, %v7522_v7  ;;  %v7653_v43 = vmul.f32 1.442695, %v7532_v25  ;;  %v7657_v55 = vmul.f32 1.442695, %v7534_v60  ;;  %v7751_v29 = vpack.c.bf16 %v15374_v24, %v15370_v46 }
0x1324   : > { %v7692_v35 = vadd.f32 %v15423_v22, %v7691_v14  ;;  %v7714_v18 = vadd.f32 %v9481_v52, %v7713_v41  ;;  %7778 = vmatpush1.bf16.msra.mxu0 %v7755_v8  ;;  %v15544_v5 = vpop.eup %9486  ;;  %v7661_v14 = vmul.f32 1.442695, %v7536_v30  ;;  %9502 = vpow2.f32 %v7621_v53 }
0x1325   : > { %7779 = vmatprep.subr.bf16.mxu0 %v7754_v11  ;;  %v15550_v61 = vpop.eup %9488  ;;  %9504 = vpow2.f32 %v7625_v59  ;;  %v7750_v30 = vpack.c.bf16 %v15492_v20, %v15488_v2  ;;  %v7641_v39 = vmul.f32 1.442695, %v7526_v50  ;;  %v7749_v46 = vpack.c.bf16 %v15363_v16, %v15356_v57 }
0x1326   : > { %v7693_v19 = vadd.f32 %v15428_v27, %v7692_v35  ;;  %v7715_v17 = vadd.f32 %v9469_v3, %v7714_v18  ;;  %v15554_v3 = vpop.eup %9490  ;;  %v7637_v35 = vmul.f32 1.442695, %v7524_v13  ;;  %9506 = vpow2.f32 %v7629_v31 }
0x1327   : > { %v7770_v6 = vpack.c.bf16 %v15554_v3, %v15550_v61  ;;  %9508 = vpow2.f32 %v7661_v14  ;;  %v7748_v2 = vpack.c.bf16 %v15482_v44, %v15480_v40  ;;  %v7747_v18 = vpack.c.bf16 %v15349_v38, %v15340_v15 }
0x1328   : > { %v7694_v23 = vadd.f32 %v15533_v51, %v7693_v19  ;;  %v7716_v52 = vadd.f32 %v9471_v37, %v7715_v17  ;;  %7780 = vmatpush1.bf16.msra.mxu0 %v7753_v63  ;;  %v9493_v37 = vpop.eup %9492  ;;  %9510 = vpow2.f32 %v7665_v45  ;;  %v7746_v7 = vpack.c.bf16 %v15470_v21, %v15460_v48  ;;  %v16892_v21 = vld [vmem:[#allocation27_spill] sm:$0xff] }
0x1329   : > { %7781 = vmatprep.subr.bf16.mxu0 %v7752_v32  ;;  %9512 = vpow2.f32 %v7633_v54  ;;  %v7745_v40 = vpack.c.bf16 %v15333_v9, %v15326_v0  ;;  %v7743_v17 = vpack.c.bf16 %v16892_v21, %v15314_v56  ;;  %v7771_v32 = vpack.c.bf16 %v15541_v4, %v15533_v51  ;;  %v16907_v21 = vld [vmem:[#allocation115_spill] sm:$0xff] }
0x132a   : > { %v7695_v49 = vadd.f32 %v15541_v4, %v7694_v23  ;;  %v7717_v62 = vadd.f32 %v15504_v26, %v7716_v52  ;;  %v15569_v26 = vpop.eup %9494  ;;  %9514 = vpow2.f32 %v7637_v35  ;;  %v7744_v23 = vpack.c.bf16 %v15451_v42, %v15448_v1 }
0x132b   : > { %v15572_v8 = vpop.eup %9496  ;;  %9516 = vpow2.f32 %v7653_v43  ;;  %v16894_v51 = vpack.c.bf16 %v15417_v47, %v15412_v58  ;;  %v16898_v43 = vld [vmem:[#allocation45_spill] sm:$0xff] }
0x132c   : > { %v7696_v34 = vadd.f32 %v15544_v5, %v7695_v49  ;;  %v7718_v41 = vadd.f32 %v15508_v12, %v7717_v62  ;;  %7782 = vmatpush1.bf16.msra.mxu0 %v7751_v29  ;;  %9518 = vpow2.f32 %v7657_v55  ;;  %v9499_v20 = vpop.eup %9498  ;;  %v7773_v49 = vpack.c.bf16 %v9493_v37, %v15544_v5  ;;  %v16899_v47 = vld [vmem:[#allocation113_spill] sm:$0xff]  ;;  %v16900_v29 = vld [vmem:[#allocation10_spill] sm:$0xff] }
0x132d   : > { %7783 = vmatprep.subr.bf16.mxu0 %v7750_v30  ;;  %9520 = vpow2.f32 %v7641_v39  ;;  %v9501_v19 = vpop.eup %9500  ;;  %v16893_v5 = vpack.c.bf16 %v15428_v27, %v15423_v22  ;;  %v16897_v27 = vld [vmem:[#allocation89_spill] sm:$0xff]  ;;  %v7760_v58 = vpack.c.bf16 %v15572_v8, %v15569_v26 }
0x132e   : > { %v15564_v33 = vadd.f32 %v9493_v37, %v7696_v34  ;;  %v7719_v53 = vadd.f32 %v15569_v26, %v7718_v41  ;;  %v7762_v22 = vpack.c.bf16 %v9501_v19, %v9499_v20  ;;  %v7761_v55 = vpack.c.bf16 %v16898_v43, %v16897_v27  ;;  %v9527_v43 = vld [vmem:[%s9787_s23 + $0x8] sm:$0xff] }
0x132f   : > { %v1084_v41 = vadd.f32 %v16900_v29, %v16899_v47  ;;  %v9528_v29 = vld [vmem:[%s9787_s23 + $0x10] sm:$0xff] }
0x1330   : > { %v7720_v24 = vadd.f32 %v15572_v8, %v7719_v53  ;;  %7784 = vmatpush1.bf16.msra.mxu0 %v7749_v46  ;;  %v7698_v53 = vrot.slane %v15564_v33, 4 }
0x1331   : > { %7785 = vmatprep.subr.bf16.mxu0 %v7748_v2  ;;  %v9503_v57 = vpop.eup %9502  ;;  %v7741_v39 = vpack.c.bf16 %v1084_v41, %v1084_v41 }
0x1332   : > { %v7721_v12 = vadd.f32 %v9499_v20, %v7720_v24  ;;  %v9505_v16 = vpop.eup %9504  ;;  %v7699_v24 = vadd.f32 %v7698_v53, %v15564_v33 }
0x1333   : > { %v9507_v25 = vpop.eup %9506  ;;  %v7764_v4 = vpack.c.bf16 %v9505_v16, %v9503_v57 }
0x1334   : > { %v7722_v11 = vadd.f32 %v9501_v19, %v7721_v12  ;;  %7786 = vmatpush1.bf16.msra.mxu0 %v7747_v18  ;;  %v9509_v44 = vpop.eup %9508  ;;  %v7700_v26 = vrot.slane %v7699_v24, 2 }
0x1335   : > { %7787 = vmatprep.subr.bf16.mxu0 %v7746_v7  ;;  %v9511_v31 = vpop.eup %9510 }
0x1336   : > { %v7723_v13 = vadd.f32 %v9503_v57, %v7722_v11  ;;  %v9513_v15 = vpop.eup %9512  ;;  %v7774_v45 = vpack.c.bf16 %v9511_v31, %v9509_v44  ;;  %v7701_v20 = vadd.f32 %v7700_v26, %v7699_v24  ;;  %v9530_v24 = vld [vmem:[%s9787_s23 + $0x20] sm:$0xff] }
0x1337   : > { %v9515_v48 = vpop.eup %9514  ;;  %v7766_v37 = vpack.c.bf16 %v9513_v15, %v9507_v25 }
0x1338   : > { %v7724_v59 = vadd.f32 %v9505_v16, %v7723_v13  ;;  %7788 = vmatpush1.bf16.msra.mxu0 %v7745_v40  ;;  %v9517_v60 = vpop.eup %9516  ;;  %v7702_v19 = vrot.slane %v7701_v20, 1 }
0x1339   : > { %7789 = vmatprep.subr.bf16.mxu0 %v7744_v23  ;;  %v9519_v63 = vpop.eup %9518 }
0x133a   : > { %v7725_v38 = vadd.f32 %v9507_v25, %v7724_v59  ;;  %v9521_v9 = vpop.eup %9520  ;;  %v7772_v42 = vpack.c.bf16 %v9519_v63, %v9517_v60  ;;  %v7703_v11 = vadd.f32 %v7702_v19, %v7701_v20 }
0x133b   : > { %v7768_v35 = vpack.c.bf16 %v9521_v9, %v9515_v48 }
0x133c   : > { %v7726_v14 = vadd.f32 %v9513_v15, %v7725_v38  ;;  %7790 = vmatpush1.bf16.msra.mxu0 %v7743_v17  ;;  %9522 = vrcp.f32 %v7703_v11 }
0x133d   : > { %7791 = vmatprep.subr.bf16.mxu0 %v7774_v45 }
0x133e   : > { %v7727_v0 = vadd.f32 %v9515_v48, %v7726_v14  ;;  %v16906_v48 = vld [vmem:[#allocation117_spill] sm:$0xff]  ;;  %v16910_v14 = vld [vmem:[#allocation92_spill] sm:$0xff] }
0x133f   : > { %v16908_v17 = vpack.c.bf16 %v16906_v48, %v16907_v21 }
0x1340   : > { %v7728_v1 = vadd.f32 %v9521_v9, %v7727_v0  ;;  %7792 = vmatpush2.bf16.msra.mxu0 %v7773_v49  ;;  %v16913_v0 = vld [vmem:[#allocation50_spill] sm:$0xff]  ;;  %v16915_v49 = vld [vmem:[#allocation64_spill] sm:$0xff] }
0x1341   : > { %7793 = vmatprep.subr.bf16.mxu0 %v7772_v42 }
0x1342   : > { %v7729_v52 = vadd.f32 %v15550_v61, %v7728_v1  ;;  %v16895_v61 = vpack.c.bf16 %v15406_v10, %v15401_v28  ;;  %v16901_v28 = vld [vmem:[#allocation38_spill] sm:$0xff]  ;;  %v16902_v10 = vld [vmem:[#allocation33_spill] sm:$0xff]  ;;  %v16916_v1 = vld [vmem:[#allocation107_spill] sm:$0xff] }
0x1343   : > { %v7759_v30 = vpack.c.bf16 %v16902_v10, %v16901_v28  ;;  %v16917_v42 = vpack.c.bf16 %v16915_v49, %v16916_v1 }
0x1344   : > { %v7730_v56 = vadd.f32 %v15554_v3, %v7729_v52  ;;  %7794 = vmatpush2.bf16.msra.mxu0 %v7771_v32  ;;  %v16896_v3 = vld [vmem:[#allocation32_spill] sm:$0xff]  ;;  %v16919_v32 = vld [vmem:[#allocation15_spill] sm:$0xff] }
0x1345   : > { %7795 = vmatprep.subr.bf16.mxu0 %v7770_v6  ;;  %v7763_v6 = vpack.c.bf16 %v16896_v3, %v15464_v36  ;;  %v16903_v36 = vmov 0   ;;  %v16918_v52 = vld [vmem:[#allocation72_spill] sm:$0xff] }
0x1346   : > { %v7731_v50 = vadd.f32 %v9517_v60, %v7730_v56  ;;  %v16909_v60 = vld [vmem:[#allocation114_spill] sm:$0xff]  ;;  %v16920_v56 = vpack.c.bf16 %v16918_v52, %v16919_v32 }
0x1347   : > { %v16911_v45 = vpack.c.bf16 %v16909_v60, %v16910_v14 }
0x1348   : > { %v7732_v54 = vadd.f32 %v9519_v63, %v7731_v50  ;;  %7796 = vmatpush2.bf16.msra.mxu0 %v16893_v5  ;;  %v16912_v63 = vld [vmem:[#allocation19_spill] sm:$0xff]  ;;  %v8460_v50 = vld [vmem:[%s15722_s6] sm:$0xff]  }
0x1349   : > { %7797 = vmatprep.subr.bf16.mxu0 %v7768_v35  ;;  %v9523_v57 = vpop.eup %9522  ;;  %v16914_v9 = vpack.c.bf16 %v16912_v63, %v16913_v0  ;;  %v16922_v35 = vld [vmem:[#allocation57_spill] sm:$0xff] }
0x134a   : > { %v7733_v34 = vadd.f32 %v9509_v44, %v7732_v54  ;;  %v16904_v44 = vld [vmem:[#allocation16_spill] sm:$0xff]  ;;  %v16921_v54 = vld [vmem:[#allocation14_spill] sm:$0xff] }
0x134b   : > { %v16923_v5 = vpack.c.bf16 %v16921_v54, %v16922_v35 }
0x134c   : > { %v7734_v62 = vadd.f32 %v9511_v31, %v7733_v34  ;;  %7798 = vmatpush2.bf16.msra.mxu0 %v16894_v51  ;;  %v16905_v31 = vld [vmem:[#allocation47_spill] sm:$0xff] }
0x134d   : > { %7799 = vmatprep.subr.bf16.mxu0 %v7766_v37  ;;  %v8461_v34 = vld [vmem:[%s15722_s6 + $0x8] sm:$0xff]  }
0x134e   : > { %v7735_v46 = vrot.slane %v7734_v62, 4 }
0x1350   : > { %7800 = vmatpush2.bf16.msra.mxu0 %v16895_v61  ;;  %v7736_v2 = vadd.f32 %v7735_v46, %v7734_v62  ;;  %v7859_v62 = vpop.permute.xlu1 %7858  ;;  %v9526_v61 = vld [vmem:[%s9787_s23] sm:$0xff] }
0x1351   : > { %7801 = vmatprep.subr.bf16.mxu0 %v7764_v4 }
0x1352   : > { %v7737_v8 = vrot.slane %v7736_v2, 2 }
0x1354   : > { %7802 = vmatpush2.bf16.msra.mxu0 %v7763_v6  ;;  %v7738_v12 = vadd.f32 %v7737_v8, %v7736_v2  ;;  %v7869_v10 = vpop.permute.xlu1 %7868 }
0x1355   : > { %7803 = vmatprep.subr.bf16.mxu0 %v7762_v22  ;;  %v7864_v22 = vpop.permute.xlu0 %7863 }
0x1356   : > { %v7739_v18 = vrot.slane %v7738_v12, 1 }
0x1358   : > { %7804 = vmatpush2.bf16.msra.mxu0 %v7761_v55  ;;  %v7740_v7 = vadd.f32 %v7739_v18, %v7738_v12  ;;  %v9531_v12 = vld [vmem:[%s9787_s23 + $0x28] sm:$0xff] }
0x1359   : > { %7805 = vmatprep.subr.bf16.mxu0 %v7760_v58  ;;  %v7874_v8 = vpop.permute.xlu0 %7873 }
0x135a   : > { %9524 = vrcp.f32 %v7740_v7  ;;  %v9532_v7 = vld [vmem:[%s9787_s23 + $0x30] sm:$0xff] }
0x135c   : > { %7806 = vmatpush2.bf16.msra.mxu0 %v7759_v30 }
0x135f   : > { %7808 = vmatmul.mubr.bf16.vlgmr.msra.gmra.mxu0 %v7741_v39  ;;  %v9529_v39 = vld [vmem:[%s9787_s23 + $0x18] sm:$0xff] }
0x1360   : > { %7925 = vmatprep.mubr.bf16.mxu0 %v16903_v36 }
0x1367   : > { %v9525_v25 = vpop.eup %9524 }
0x141f   : > { %v7809_v16 = vpop.f32.mrf.mxu0 }
0x1420   : > { %v7820_v13 = vmul.f32 %v9523_v57, %v7809_v16 }
0x1421   : > { %v7811_v40 = vpop.f32.mrf.mxu0 }
0x1422   : > { %v7850_v59 = vpack.c.bf16 %v7820_v13, %v16904_v44  ;;  %v7821_v23 = vmul.f32 %v9525_v25, %v7811_v40  ;;  %v9533_v13 = vld [vmem:[%s9787_s23 + $0x38] sm:$0xff] }
0x1423   : > { %v7813_v33 = vpop.f32.mrf.mxu0 }
0x1424   : > { %v7851_v15 = vpack.c.bf16 %v7821_v23, %v16905_v31 }
0x1425   : > { %v7814_v38 = vpop.f32.mrf.mxu0 }
0x1426   : > { %7901 = vmatprep.subr.bf16.mxu0 %v7851_v15 }
0x1427   : > { %7902 = vmatpush1.bf16.msra.mxu0 %v7850_v59 }
0x1428   : > { %7903 = vmatprep.subr.bf16.mxu0 %v16908_v17 }
0x142b   : > { %7904 = vmatpush1.bf16.msra.mxu0 %v16911_v45 }
0x142c   : > { %7905 = vmatprep.subr.bf16.mxu0 %v16914_v9 }
0x142f   : > { %7906 = vmatpush1.bf16.msra.mxu0 %v16917_v42 }
0x1430   : > { %7907 = vmatprep.subr.bf16.mxu0 %v16920_v56 }
0x1433   : > { %7908 = vmatpush1.bf16.msra.mxu0 %v16923_v5 }
0x1436   : > { %8345 = vmatmul.mubr.msk.bf16.vlgmr.msra.gmra.mxu0 %vm7886_vm4, %v8460_v50 }
0x1437   : > { %7935 = vmatprep.mubr.bf16.mxu0 %v16903_v36 }
0x143e   : > { %8346 = vmatmul.mubr.msk.bf16.gmra.mxu0 %vm7886_vm4, %v8461_v34 }
0x14f6   : > { %v7927_v37 = vpop.f32.mrf.mxu0 }
0x14f7   : > { %v7928_v51 = vadd.f32 %v7927_v37, %v7859_v62 }
0x14f8   : > { %v7929_v4 = vpop.f32.mrf.mxu0 }
0x14f9   : > { %v7946_v3 = vadd.f32 %v9526_v61, %v7928_v51  ;;  %v7930_v6 = vadd.f32 %v7929_v4, %v7859_v62 }
0x14fa   : > { %v7931_v27 = vpop.f32.mrf.mxu0 }
0x14fb   : > { %7954 = vst [vmem:[%s15649_s12] sm:$0xff] %v7946_v3  ;;  %v7947_v55 = vadd.f32 %v9527_v43, %v7930_v6  ;;  %v7932_v58 = vadd.f32 %v7931_v27, %v7864_v22 }
0x14fc   : > { %v7933_v47 = vpop.f32.mrf.mxu0 }
0x14fd   : > { %7955 = vst [vmem:[%s15649_s12 + $0x8] sm:$0xff] %v7947_v55  ;;  %v7948_v41 = vadd.f32 %v9528_v29, %v7932_v58  ;;  %v7934_v28 = vadd.f32 %v7933_v47, %v7864_v22 }
0x14fe   : > { %v7937_v30 = vpop.f32.mrf.mxu0 }
0x14ff   : > { %7956 = vst [vmem:[%s15649_s12 + $0x10] sm:$0xff] %v7948_v41  ;;  %v7949_v36 = vadd.f32 %v9529_v39, %v7934_v28  ;;  %v7938_v53 = vadd.f32 %v7937_v30, %v7869_v10 }
0x1500   : > { %v7939_v46 = vpop.f32.mrf.mxu0 }
0x1501   : > { %7957 = vst [vmem:[%s15649_s12 + $0x18] sm:$0xff] %v7949_v36  ;;  %v7950_v2 = vadd.f32 %v9530_v24, %v7938_v53  ;;  %v7940_v26 = vadd.f32 %v7939_v46, %v7869_v10 }
0x1502   : > { %v7941_v20 = vpop.f32.mrf.mxu0 }
0x1503   : > { %7958 = vst [vmem:[%s15649_s12 + $0x20] sm:$0xff] %v7950_v2  ;;  %v7951_v19 = vadd.f32 %v9531_v12, %v7940_v26  ;;  %v7942_v18 = vadd.f32 %v7941_v20, %v7874_v8 }
0x1504   : > { %v7943_v11 = vpop.f32.mrf.mxu0 }
0x1505   : > { %7959 = vst [vmem:[%s15649_s12 + $0x28] sm:$0xff] %v7951_v19  ;;  %v7952_v57 = vadd.f32 %v9532_v7, %v7942_v18  ;;  %v7944_v16 = vadd.f32 %v7943_v11, %v7874_v8 }
0x1507   : > { %7960 = vst [vmem:[%s15649_s12 + $0x30] sm:$0xff] %v7952_v57  ;;  %v7953_v25 = vadd.f32 %v9533_v13, %v7944_v16 }
0x1509   : > { %7961 = vst [vmem:[%s15649_s12 + $0x38] sm:$0xff] %v7953_v25 }
0x150a   : > { %9575 = shalt.err (!%p9572_p10)
}
0x150b   : > { %s9576_s23 = scalar_lea.hbm %s15670_s13, 1024  ;;  %s9580_s12 = scalar_lea.hbm %s15724_s8, 2048 }
0x150c   : > { %p9577_p0 = scmp.ne.s32.totalorder %s15670_s13, %s9576_s23  ;;  %p9581_p1 = scmp.lt.s32.totalorder %s15670_s13, %s15724_s8 }
0x150d   : > { %p9582_p3 = scmp.lt.s32.totalorder %s9580_s12, %s9576_s23 }
0x150e   : > { %p9578_p2 = pnand %p9577_p0, %p16924_p12 }
0x150f   : > { %p9583_p6 = por %p9582_p3, %p9581_p1 }
0x1510   : > { %p9579_p9 = pneg %p9578_p2 }
0x1512   : > { %p9584_p11 = pnand %p9583_p6, %p9579_p9 }
0x1514   : > { %9587 = shalt.err (!%p9584_p11)
}
0x1515   : > { %s9637_s20 = smov 256   ;;  %s9638_s22 = smov 16  }
0x1516   : > { %8389 = dma.vmem_to_hbm [thread:$0]  (%p16924_p12), %s15663_s21, 1024, %s15670_s13, %s7963_s9, %s9637_s20, %s9637_s20, %s9638_s22  }
0x1517 PF: > { %s7991_s15 = sand.u32 1, %s9614_s27   ;;  %p16925_p13 = scmp.ne.s32.totalorder %s15954_s18, 0 }
0x1518   : > { %p16926_p4 = scmp.ge.s32.totalorder %s9626_s30, 2  ;;  %s7992_s16 = scalar_lea.sflag [#allocation5], %s7991_s15 }
0x151a   : > { %p8396_p5 = pnand %p16926_p4, %p16925_p13 }
0x151c   : > { %p8397_p7 = pneg %p8396_p5 }
0x151e   : > { %9609 = dma.done.wait (%p8397_p7), %s7992_s16, 1024  }
0x151f   : > { %9611 = vsyncadd (%p8397_p7), %s7992_s16, 4294966272  ;;  %s16927_s24 = sld [smem:[#allocation9_spill]]  ;;  %p21_p8 = scmp.ge.s32.totalorder %s9709_s11, 4  }
0x1520   : > { %s16928_s27 = smov %s9618_s28  ;;  %s16929_s28 = smov %s9622_s29 }
0x1521   : > { %s16931_s30 = smov %s9709_s11  ;;  %23 = sbr.rel (!%p21_p8) target bundleno = 5 (0x5), region = 97 }
0x1525   : > { %s16930_s29 = smov %s16927_s24 }
0x1526   :  { %7997 = vsyncpa [#allocation4], 1 }
0x1527   :  { %7999 = vsyncpa [#allocation4 + $0x1], 1 }
0x1528   :  { %8000 = vsyncpa [#allocation5], 1 }
0x1529   :  { %8002 = vsyncpa [#allocation5 + $0x1], 1 }

</bundles_post_ra>
